<compile_context>
chip_gen: v7x
topology: tpu7x:2x2x1
jax: 0.10.0
libtpu: 0.0.40
codegen_flags: <defaults>
</compile_context>

<pallas_src>
import functools
import math

import jax
import jax.numpy as jnp
import numpy as np
from jax.experimental import pallas as pl
from jax.experimental.pallas import tpu as pltpu

LANE = 128


def _round_up(x, m):
    return (x + m - 1) // m * m


# ----------------------------- fused Pallas kernel -----------------------------

def _mlp3_kernel(a_ref, w1_ref, b1_ref, w2_ref, b2_ref, w3_ref, b3_ref, o_ref):
    """relu(relu(A@W1+b1)@W2+b2)@W3+b3; bf16 MXU matmuls, f32 accumulation."""
    h = jnp.dot(a_ref[...], w1_ref[...], preferred_element_type=jnp.float32)
    h = jnp.maximum(h + b1_ref[...], 0.0).astype(jnp.bfloat16)
    h = jnp.dot(h, w2_ref[...], preferred_element_type=jnp.float32)
    h = jnp.maximum(h + b2_ref[...], 0.0).astype(jnp.bfloat16)
    h = jnp.dot(h, w3_ref[...], preferred_element_type=jnp.float32)
    o_ref[...] = (h + b3_ref[...]).astype(o_ref.dtype)    # last layer: bias, no ReLU


def _pick_tm(m):
    # One 16-row tile for tiny batches; >=2 grid steps for larger batches so the
    # "parallel" M axis engages both v7x TensorCores; up to 512 rows per tile.
    if m <= 16:
        return 16
    return min(512, _round_up((m + 1) // 2, 16))


def fused_mlp3(a, w1, b1, w2, b2, w3, b3, *, out_dtype=jnp.float32):
    """One pallas_call for a 3-layer matmul+bias(+ReLU) chain.

    a : (M, K) bf16 with K == w1.shape[0] (multiple of 128, pre-padded).
    wi: (Ki, Ni) bf16, bi: (1, Ni) f32, all Ki/Ni multiples of 128.
    Weights/biases are full VMEM-resident blocks; only batch rows are tiled.
    All intermediate activations stay in VMEM/vregs.
    """
    M, K = a.shape
    tm = _pick_tm(M)
    Mp = _round_up(M, tm)
    if Mp != M:
        a = jnp.pad(a, ((0, Mp - M), (0, 0)))
    n_out = w3.shape[1]
    out = pl.pallas_call(
        _mlp3_kernel,
        out_shape=jax.ShapeDtypeStruct((Mp, n_out), out_dtype),
        grid=(Mp // tm,),
        in_specs=[
            pl.BlockSpec((tm, K), lambda i: (i, 0)),     # activations, tiled over rows
            pl.BlockSpec(w1.shape, lambda i: (0, 0)),    # weights/biases: VMEM resident
            pl.BlockSpec(b1.shape, lambda i: (0, 0)),
            pl.BlockSpec(w2.shape, lambda i: (0, 0)),
            pl.BlockSpec(b2.shape, lambda i: (0, 0)),
            pl.BlockSpec(w3.shape, lambda i: (0, 0)),
            pl.BlockSpec(b3.shape, lambda i: (0, 0)),
        ],
        out_specs=pl.BlockSpec((tm, n_out), lambda i: (i, 0)),
        compiler_params=pltpu.CompilerParams(
            dimension_semantics=("parallel",),
            vmem_limit_bytes=32 * 1024 * 1024,           # ~12 MiB actually used
        ),
    )(a, w1, b1, w2, b2, w3, b3)
    return out[:M] if Mp != M else out


# -------------- conv / deconv -> dense matrix lowering (init time) -------------

def _conv_to_matrix(w, h_in, w_in, stride):
    """Dense matrix of Conv2d(VALID) acting on NHWC-flattened maps.

    w: numpy (KH, KW, IC, OC).  m[(h*w_in+x)*IC+ic, (oh*OW+ow)*OC+oc] =
    w[kh, kw, ic, oc] with h = s*oh+kh, x = s*ow+kw.
    """
    KH, KW, IC, OC = w.shape
    OH = (h_in - KH) // stride + 1
    OW = (w_in - KW) // stride + 1
    m = np.zeros((h_in * w_in * IC, OH * OW * OC), np.float32)
    for oh in range(OH):
        for ow in range(OW):
            col = (oh * OW + ow) * OC
            for kh in range(KH):
                for kw in range(KW):
                    row = ((oh * stride + kh) * w_in + (ow * stride + kw)) * IC
                    m[row:row + IC, col:col + OC] = w[kh, kw]
    return m, OH, OW


def _deconv_to_matrix(w, h_in, w_in, stride):
    """Dense matrix of ConvTranspose2d(padding=0) on NHWC-flattened maps."""
    KH, KW, IC, OC = w.shape
    OH = (h_in - 1) * stride + KH
    OW = (w_in - 1) * stride + KW
    m = np.zeros((h_in * w_in * IC, OH * OW * OC), np.float32)
    for h in range(h_in):
        for x in range(w_in):
            row = (h * w_in + x) * IC
            for kh in range(KH):
                for kw in range(KW):
                    col = ((h * stride + kh) * OW + (x * stride + kw)) * OC
                    m[row:row + IC, col:col + OC] += w[kh, kw]
    return m, OH, OW


def _pad_wb(m, b, k_pad, n_pad):
    """Zero-pad a dense layer to (k_pad, n_pad); bf16 weight, (1, Np) f32 bias."""
    K, N = m.shape
    mp = np.zeros((k_pad, n_pad), np.float32)
    mp[:K, :N] = m
    bp = np.zeros((1, n_pad), np.float32)
    bp[0, :N] = b
    return jnp.asarray(mp, dtype=jnp.bfloat16), jnp.asarray(bp, dtype=jnp.float32)


# --------------------------------- parameters ----------------------------------

def init_params(key, image_shape_hwc, output_size, feature_size=512):
    H, W, C = image_shape_hwc
    ks = jax.random.split(key, 12)

    def u(k, shape, fan_in):
        s = 1.0 / math.sqrt(fan_in)
        return jax.random.uniform(k, shape, jnp.float32, -s, s)

    # Raw layer parameters, PyTorch default init U(+-1/sqrt(fan_in)).
    w_c1 = u(ks[0], (3, 3, C, 16), C * 9);    b_c1 = u(ks[1], (16,), C * 9)
    w_c2 = u(ks[2], (3, 3, 16, 16), 16 * 9);  b_c2 = u(ks[3], (16,), 16 * 9)
    w_fc = u(ks[4], (784, feature_size), 784); b_fc = u(ks[5], (feature_size,), 784)
    fin = feature_size + output_size
    w_dy = u(ks[6], (fin, 784), fin);         b_dy = u(ks[7], (784,), fin)
    # ConvTranspose2d fan_in = out_channels * kh * kw (PyTorch (IC,OC,KH,KW)).
    w_d1 = u(ks[8], (3, 3, 16, 16), 16 * 9);  b_d1 = u(ks[9], (16,), 16 * 9)
    w_d2 = u(ks[10], (3, 3, 16, C), C * 9);   b_d2 = u(ks[11], (C,), C * 9)

    # Dense (Toeplitz) lowering of conv / deconv layers over NHWC flats.
    m1, OH1, OW1 = _conv_to_matrix(np.asarray(w_c1), H, W, 2)        # 19x19 -> 9x9
    m2, OH2, OW2 = _conv_to_matrix(np.asarray(w_c2), OH1, OW1, 1)    # 9x9  -> 7x7
    assert OH2 * OW2 * 16 == 784, "module hard-codes Linear(784, .) => 19x19 input"
    d1, DH1, DW1 = _deconv_to_matrix(np.asarray(w_d1), OH2, OW2, 1)  # 7x7  -> 9x9
    d2, DH2, DW2 = _deconv_to_matrix(np.asarray(w_d2), DH1, DW1, 2)  # 9x9  -> 19x19
    assert (DH2, DW2) == (H, W)

    # Lane padding (multiples of 128), shared along the layer chain.
    K0p = _round_up(H * W * C, LANE)          # flattened image / final output
    N1p = _round_up(OH1 * OW1 * 16, LANE)     # conv1 / deconv1 map
    N2p = _round_up(OH2 * OW2 * 16, LANE)     # conv2 map / dyn_fc out
    N3p = _round_up(feature_size, LANE)
    KDp = _round_up(fin, LANE)

    weights = {}
    weights['enc_w1'], weights['enc_b1'] = _pad_wb(m1, np.tile(np.asarray(b_c1), OH1 * OW1), K0p, N1p)
    weights['enc_w2'], weights['enc_b2'] = _pad_wb(m2, np.tile(np.asarray(b_c2), OH2 * OW2), N1p, N2p)
    weights['enc_w3'], weights['enc_b3'] = _pad_wb(np.asarray(w_fc), np.asarray(b_fc), N2p, N3p)
    weights['dyn_w1'], weights['dyn_b1'] = _pad_wb(np.asarray(w_dy), np.asarray(b_dy), KDp, N2p)
    weights['dyn_w2'], weights['dyn_b2'] = _pad_wb(d1, np.tile(np.asarray(b_d1), DH1 * DW1), N2p, N1p)
    weights['dyn_w3'], weights['dyn_b3'] = _pad_wb(d2, np.tile(np.asarray(b_d2), DH2 * DW2), N1p, K0p)

    raw = dict(w_c1=w_c1, b_c1=b_c1, w_c2=w_c2, b_c2=b_c2, w_fc=w_fc, b_fc=b_fc,
               w_dy=w_dy, b_dy=b_dy, w_d1=w_d1, b_d1=b_d1, w_d2=w_d2, b_d2=b_d2)
    return dict(weights=weights, raw=raw, feature_size=feature_size,
                output_size=output_size, image_hwc=(H, W, C))


# ---------------------------------- forward ------------------------------------

@functools.partial(jax.jit,
                   static_argnames=('mode', 'feature_size', 'output_size', 'image_hwc'))
def _forward(weights, obs, action, *, mode, feature_size, output_size, image_hwc):
    H, W, C = image_hwc
    B = obs.shape[0]
    # obs.type(torch.float): uint8 pixel values are exact in bf16.
    x = obs.reshape(B, H * W * C).astype(jnp.bfloat16)
    x = jnp.pad(x, ((0, 0), (0, weights['enc_w1'].shape[0] - H * W * C)))
    emb = fused_mlp3(x, weights['enc_w1'], weights['enc_b1'],
                     weights['enc_w2'], weights['enc_b2'],
                     weights['enc_w3'], weights['enc_b3'])[:, :feature_size]
    if mode == 'encode':
        return emb
    if mode != 'dynamics':
        raise ValueError('Invalid mode!')
    act = jax.nn.one_hot(action, output_size, dtype=jnp.float32)
    h = jnp.concatenate([emb, act], axis=1).astype(jnp.bfloat16)
    h = jnp.pad(h, ((0, 0), (0, weights['dyn_w1'].shape[0] - h.shape[1])))
    y = fused_mlp3(h, weights['dyn_w1'], weights['dyn_b1'],
                   weights['dyn_w2'], weights['dyn_b2'],
                   weights['dyn_w3'], weights['dyn_b3'])
    return y[:, :H * W * C].reshape(B, H, W, C)   # already NHWC == permute(0, 2, 3, 1)


def forward_pixel_forward(params, obs, action, mode='dynamics'):
    return _forward(params['weights'], obs, action, mode=mode,
                    feature_size=params['feature_size'],
                    output_size=params['output_size'],
                    image_hwc=params['image_hwc'])


# --------------------------- pure-JAX f32 reference ----------------------------

def _reference_forward(raw, obs, action, output_size, mode):
    P = jax.lax.Precision.HIGHEST
    dn = ('NHWC', 'HWIO', 'NHWC')

    def deconv(x, w, b, stride):
        kh, kw = w.shape[0], w.shape[1]
        y = jax.lax.conv_general_dilated(
            x, w[::-1, ::-1], window_strides=(1, 1),
            padding=[(kh - 1, kh - 1), (kw - 1, kw - 1)],
            lhs_dilation=(stride, stride), dimension_numbers=dn, precision=P)
        return y + b

    x = obs.astype(jnp.float32)
    h = jax.nn.relu(jax.lax.conv_general_dilated(
        x, raw['w_c1'], (2, 2), 'VALID', dimension_numbers=dn, precision=P) + raw['b_c1'])
    h = jax.nn.relu(jax.lax.conv_general_dilated(
        h, raw['w_c2'], (1, 1), 'VALID', dimension_numbers=dn, precision=P) + raw['b_c2'])
    emb = jnp.dot(h.reshape(h.shape[0], -1), raw['w_fc'], precision=P) + raw['b_fc']
    if mode == 'encode':
        return emb
    act = jax.nn.one_hot(action, output_size, dtype=jnp.float32)
    g = jax.nn.relu(jnp.dot(jnp.concatenate([emb, act], axis=1), raw['w_dy'],
                            precision=P) + raw['b_dy'])
    g = g.reshape(g.shape[0], 7, 7, 16)
    g = jax.nn.relu(deconv(g, raw['w_d1'], raw['b_d1'], 1))
    return deconv(g, raw['w_d2'], raw['b_d2'], 2)


# ------------------------------------ main --------------------------------------

if __name__ == "__main__":
    key = jax.random.PRNGKey(0)
    B = 2
    H = W = 19          # forced by the hard-coded Linear(784, .) = 16*7*7
    C = 3
    feature_size = 128  # small and lane-aligned
    output_size = 4

    kp, kx, ka = jax.random.split(key, 3)
    params = init_params(kp, (H, W, C), output_size, feature_size)
    obs = jax.random.randint(kx, (B, H, W, C), 0, 256, dtype=jnp.int32).astype(jnp.uint8)
    action = jax.random.randint(ka, (B,), 0, output_size, dtype=jnp.int32)

    emb = jax.block_until_ready(forward_pixel_forward(params, obs, action, mode='encode'))
    nxt = jax.block_until_ready(forward_pixel_forward(params, obs, action, mode='dynamics'))

    assert emb.shape == (B, feature_size)
    assert nxt.shape == (B, H, W, C)
    assert bool(jnp.all(jnp.isfinite(emb))) and bool(jnp.all(jnp.isfinite(nxt)))

    # End-to-end check vs a pure-JAX f32 reference (kernel uses bf16 weights /
    # activations, so allow a few % of the output's max magnitude).
    ref_emb = _reference_forward(params['raw'], obs, action, output_size, 'encode')
    ref_nxt = _reference_forward(params['raw'], obs, action, output_size, 'dynamics')
    for got, ref in ((emb, ref_emb), (nxt, ref_nxt)):
        scale = jnp.maximum(jnp.max(jnp.abs(ref)), 1.0)
        err = jnp.max(jnp.abs(got.astype(jnp.float32) - ref))
        assert bool(err <= 5e-2 * scale), f"max abs err {float(err)} vs scale {float(scale)}"

    print("KERNEL_OK")
</pallas_src>

<mosaic_0001>
module attributes {stable_mosaic.version = 11 : i64} {
  func.func @_mlp3_kernel(%arg0: i32, %arg1: memref<16x1152xbf16, #tpu.memory_space<vmem>>, %arg2: memref<1152x1408xbf16, #tpu.memory_space<vmem>>, %arg3: memref<1x1408xf32, #tpu.memory_space<vmem>>, %arg4: memref<1408x896xbf16, #tpu.memory_space<vmem>>, %arg5: memref<1x896xf32, #tpu.memory_space<vmem>>, %arg6: memref<896x128xbf16, #tpu.memory_space<vmem>>, %arg7: memref<1x128xf32, #tpu.memory_space<vmem>>, %arg8: memref<16x128xf32, #tpu.memory_space<vmem>>) attributes {dimension_semantics = [#tpu.dimension_semantics<parallel>], iteration_bounds = array<i64: 1>, scalar_prefetch = 0 : i64, scratch_operands = 0 : i64, tpu.core_type = #tpu.core_type<tc>, window_params = [{transform_indices = @transform_0, window_bounds = array<i64: 16, 1152>}, {pipeline_mode = #tpu.pipeline_mode<synchronous>, transform_indices = @transform_1, window_bounds = array<i64: 1152, 1408>}, {pipeline_mode = #tpu.pipeline_mode<synchronous>, transform_indices = @transform_2, window_bounds = array<i64: 1, 1408>}, {pipeline_mode = #tpu.pipeline_mode<synchronous>, transform_indices = @transform_3, window_bounds = array<i64: 1408, 896>}, {pipeline_mode = #tpu.pipeline_mode<synchronous>, transform_indices = @transform_4, window_bounds = array<i64: 1, 896>}, {pipeline_mode = #tpu.pipeline_mode<synchronous>, transform_indices = @transform_5, window_bounds = array<i64: 896, 128>}, {pipeline_mode = #tpu.pipeline_mode<synchronous>, transform_indices = @transform_6, window_bounds = array<i64: 1, 128>}, {transform_indices = @transform_7, window_bounds = array<i64: 16, 128>}]} {
    %c0 = arith.constant 0 : index
    %c0_0 = arith.constant 0 : index
    %0 = vector.load %arg1[%c0, %c0_0] : memref<16x1152xbf16, #tpu.memory_space<vmem>>, vector<16x1152xbf16>
    %c0_1 = arith.constant 0 : index
    %c0_2 = arith.constant 0 : index
    %1 = vector.load %arg2[%c0_1, %c0_2] : memref<1152x1408xbf16, #tpu.memory_space<vmem>>, vector<1152x1408xbf16>
    %cst = arith.constant dense<0.000000e+00> : vector<16x1408xf32>
    %2 = tpu.matmul %0, %1, %cst {dimension_numbers = #tpu.dot_dimension_numbers<[1], [0], [0], [1], [0, 0, 1, 1], [], []>} : vector<16x1152xbf16>, vector<1152x1408xbf16>, vector<16x1408xf32> -> vector<16x1408xf32>
    %c0_3 = arith.constant 0 : index
    %c0_4 = arith.constant 0 : index
    %3 = vector.load %arg3[%c0_3, %c0_4] : memref<1x1408xf32, #tpu.memory_space<vmem>>, vector<1x1408xf32>
    %4 = vector.broadcast %3 : vector<1x1408xf32> to vector<16x1408xf32>
    %5 = arith.addf %2, %4 : vector<16x1408xf32>
    %cst_5 = arith.constant 0.000000e+00 : f32
    %6 = vector.broadcast %cst_5 : f32 to vector<16x1408xf32>
    %7 = arith.maximumf %5, %6 : vector<16x1408xf32>
    %8 = arith.truncf %7 : vector<16x1408xf32> to vector<16x1408xbf16>
    %c0_6 = arith.constant 0 : index
    %c0_7 = arith.constant 0 : index
    %9 = vector.load %arg4[%c0_6, %c0_7] : memref<1408x896xbf16, #tpu.memory_space<vmem>>, vector<1408x896xbf16>
    %cst_8 = arith.constant dense<0.000000e+00> : vector<16x896xf32>
    %10 = tpu.matmul %8, %9, %cst_8 {dimension_numbers = #tpu.dot_dimension_numbers<[1], [0], [0], [1], [0, 0, 1, 1], [], []>} : vector<16x1408xbf16>, vector<1408x896xbf16>, vector<16x896xf32> -> vector<16x896xf32>
    %c0_9 = arith.constant 0 : index
    %c0_10 = arith.constant 0 : index
    %11 = vector.load %arg5[%c0_9, %c0_10] : memref<1x896xf32, #tpu.memory_space<vmem>>, vector<1x896xf32>
    %12 = vector.broadcast %11 : vector<1x896xf32> to vector<16x896xf32>
    %13 = arith.addf %10, %12 : vector<16x896xf32>
    %cst_11 = arith.constant 0.000000e+00 : f32
    %14 = vector.broadcast %cst_11 : f32 to vector<16x896xf32>
    %15 = arith.maximumf %13, %14 : vector<16x896xf32>
    %16 = arith.truncf %15 : vector<16x896xf32> to vector<16x896xbf16>
    %c0_12 = arith.constant 0 : index
    %c0_13 = arith.constant 0 : index
    %17 = vector.load %arg6[%c0_12, %c0_13] : memref<896x128xbf16, #tpu.memory_space<vmem>>, vector<896x128xbf16>
    %cst_14 = arith.constant dense<0.000000e+00> : vector<16x128xf32>
    %18 = tpu.matmul %16, %17, %cst_14 {dimension_numbers = #tpu.dot_dimension_numbers<[1], [0], [0], [1], [0, 0, 1, 1], [], []>} : vector<16x896xbf16>, vector<896x128xbf16>, vector<16x128xf32> -> vector<16x128xf32>
    %c0_15 = arith.constant 0 : index
    %c0_16 = arith.constant 0 : index
    %19 = vector.load %arg7[%c0_15, %c0_16] : memref<1x128xf32, #tpu.memory_space<vmem>>, vector<1x128xf32>
    %20 = vector.broadcast %19 : vector<1x128xf32> to vector<16x128xf32>
    %21 = arith.addf %18, %20 : vector<16x128xf32>
    %c0_17 = arith.constant 0 : index
    %c0_18 = arith.constant 0 : index
    %22 = vector.load %arg8[%c0_17, %c0_18] : memref<16x128xf32, #tpu.memory_space<vmem>>, vector<16x128xf32>
    tpu.vector_store %arg8[%c0_17, %c0_18], %21 {strides = array<i32>} : memref<16x128xf32, #tpu.memory_space<vmem>>, vector<16x128xf32>,
    return
  }
  func.func @transform_0(%arg0: i32) -> (i32, i32) {
    %c0_i32 = arith.constant 0 : i32
    %c0_i32_0 = arith.constant 0 : i32
    return %arg0, %c0_i32 : i32, i32
  }
  func.func @transform_1(%arg0: i32) -> (i32, i32) {
    %c0_i32 = arith.constant 0 : i32
    %c0_i32_0 = arith.constant 0 : i32
    %c0_i32_1 = arith.constant 0 : i32
    return %c0_i32, %c0_i32_0 : i32, i32
  }
  func.func @transform_2(%arg0: i32) -> (i32, i32) {
    %c0_i32 = arith.constant 0 : i32
    %c0_i32_0 = arith.constant 0 : i32
    %c0_i32_1 = arith.constant 0 : i32
    return %c0_i32, %c0_i32_0 : i32, i32
  }
  func.func @transform_3(%arg0: i32) -> (i32, i32) {
    %c0_i32 = arith.constant 0 : i32
    %c0_i32_0 = arith.constant 0 : i32
    %c0_i32_1 = arith.constant 0 : i32
    return %c0_i32, %c0_i32_0 : i32, i32
  }
  func.func @transform_4(%arg0: i32) -> (i32, i32) {
    %c0_i32 = arith.constant 0 : i32
    %c0_i32_0 = arith.constant 0 : i32
    %c0_i32_1 = arith.constant 0 : i32
    return %c0_i32, %c0_i32_0 : i32, i32
  }
  func.func @transform_5(%arg0: i32) -> (i32, i32) {
    %c0_i32 = arith.constant 0 : i32
    %c0_i32_0 = arith.constant 0 : i32
    %c0_i32_1 = arith.constant 0 : i32
    return %c0_i32, %c0_i32_0 : i32, i32
  }
  func.func @transform_6(%arg0: i32) -> (i32, i32) {
    %c0_i32 = arith.constant 0 : i32
    %c0_i32_0 = arith.constant 0 : i32
    %c0_i32_1 = arith.constant 0 : i32
    return %c0_i32, %c0_i32_0 : i32, i32
  }
  func.func @transform_7(%arg0: i32) -> (i32, i32) {
    %c0_i32 = arith.constant 0 : i32
    %c0_i32_0 = arith.constant 0 : i32
    return %arg0, %c0_i32 : i32, i32
  }
}

</mosaic_0001>

<bundles_post_ra>
// kernel: _forward.1
= control target key start
LH: loop header
LB: loop body
LE: loop exit
PB: predicated region body
PF: predicated region fallthrough
CT: control target
= control target key end

     0   :  { %12 = vsyncpa [#allocation3], 0  ;;  %s16712_s0 = inlined_call_operand.vmem [shape: bf16[16,1152], index: 0, kind: input, shape index: {}]   ;;  %s16713_s1 = inlined_call_operand.hbm [shape: bf16[1152,1408], index: 1, kind: input, shape index: {}]   ;;  %s16714_s2 = inlined_call_operand.hbm [shape: f32[1,1408], index: 2, kind: input, shape index: {}]   ;;  %s16715_s3 = inlined_call_operand.hbm [shape: bf16[1408,896], index: 3, kind: input, shape index: {}]   ;;  %s16716_s4 = inlined_call_operand.hbm [shape: f32[1,896], index: 4, kind: input, shape index: {}]   ;;  %s16717_s5 = inlined_call_operand.hbm [shape: bf16[896,128], index: 5, kind: input, shape index: {}]   ;;  %s16718_s6 = inlined_call_operand.hbm [shape: f32[1,128], index: 6, kind: input, shape index: {}]   ;;  %s16719_s7 = inlined_call_operand.vmem [shape: f32[16,128], index: 7, kind: output, shape index: {}]  }
   0x1   :  { %13 = vsyncpa [#allocation5], 0 }
   0x2   :  { %14 = vsyncpa [#allocation8], 0 }
   0x3   :  { %15 = vsyncpa [#allocation11], 0  ;;  %s16281_s24 = smov [#allocation4]   ;;  %s16282_s26 = smov [#allocation7]  }
   0x4   :  { %s36_s25 = sshll.u32 %s16281_s24, 4  ;;  %s58_s27 = sshll.u32 %s16282_s26, 4  ;;  %s37_s25 = int_to_ptr.vmem [resolvable:$true] %s36_s25  ;;  %s59_s27 = int_to_ptr.vmem [resolvable:$true] %s58_s27 }
   0x5   :  { %s16141_s30 = scalar_lea.hbm %s16714_s2, 176 }
   0x6   :  { %p16142_p0 = scmp.ne.s32.totalorder %s16714_s2, %s16141_s30  ;;  %p16145_p1 = scmp.lt.u32.totalorder %s16141_s30, %s16714_s2 }
   0x8   :  { %p16147_p2 = pnand %p16145_p1, %p16142_p0 }
   0xa   :  { %16150 = shalt.err (!%p16147_p2)
}
   0xb   :  { %s16151_s12 = scalar_lea.vmem %s37_s25, 176  ;;  %s16155_s13 = scalar_lea.vmem %s37_s25, 192 }
   0xc   :  { %p16152_p3 = scmp.ne.s32.totalorder %s37_s25, %s16151_s12  ;;  %p16156_p4 = scmp.lt.s32.totalorder %s37_s25, %s37_s25 }
   0xd   :  { %p16157_p5 = scmp.lt.s32.totalorder %s16155_s13, %s16151_s12 }
   0xf   :  { %p16158_p6 = por %p16157_p5, %p16156_p4 }
  0x11   :  { %p16159_p7 = pnand %p16158_p6, %p16152_p3 }
  0x13   :  { %16162 = shalt.err (!%p16159_p7)
}
  0x14   :  { %39 = dma.hbm_to_vmem [thread:$0]  %s16714_s2, 176, %s37_s25, [#allocation5]  }
  0x15   :  { %s16163_s18 = scalar_lea.hbm %s16716_s4, 112 }
  0x16   :  { %p16164_p8 = scmp.ne.s32.totalorder %s16716_s4, %s16163_s18  ;;  %p16167_p9 = scmp.lt.u32.totalorder %s16163_s18, %s16716_s4 }
  0x18   :  { %p16169_p10 = pnand %p16167_p9, %p16164_p8 }
  0x1a   :  { %16172 = shalt.err (!%p16169_p10)
}
  0x1b   :  { %s16173_s23 = scalar_lea.vmem %s59_s27, 112  ;;  %s16177_s24 = scalar_lea.vmem %s59_s27, 128 }
  0x1c   :  { %p16174_p11 = scmp.ne.s32.totalorder %s59_s27, %s16173_s23  ;;  %p16178_p12 = scmp.lt.s32.totalorder %s59_s27, %s59_s27 }
  0x1d   :  { %p16179_p13 = scmp.lt.s32.totalorder %s16177_s24, %s16173_s23 }
  0x1f   :  { %p16180_p0 = por %p16179_p13, %p16178_p12 }
  0x21   :  { %p16181_p1 = pnand %p16180_p0, %p16174_p11 }
  0x23   :  { %16184 = shalt.err (!%p16181_p1)
}
  0x24   :  { %61 = dma.hbm_to_vmem [thread:$0]  %s16716_s4, 112, %s59_s27, [#allocation8]  }
  0x25   :  { %s16283_s26 = smov [#allocation2]   ;;  %s16185_s8 = scalar_lea.hbm %s16713_s1, 101376 }
  0x26   :  { %s23_s28 = sshll.u32 %s16283_s26, 4  ;;  %p16186_p2 = scmp.ne.s32.totalorder %s16713_s1, %s16185_s8  ;;  %s24_s28 = int_to_ptr.vmem [resolvable:$true] %s23_s28 }
  0x27   :  { %p16189_p3 = scmp.lt.u32.totalorder %s16185_s8, %s16713_s1 }
  0x29   :  { %p16191_p4 = pnand %p16189_p3, %p16186_p2 }
  0x2b   :  { %16194 = shalt.err (!%p16191_p4)
}
  0x2c   :  { %s16195_s13 = scalar_lea.vmem %s24_s28, 101376  ;;  %p16200_p6 = scmp.lt.s32.totalorder %s24_s28, %s24_s28 }
  0x2d   :  { %p16196_p5 = scmp.ne.s32.totalorder %s24_s28, %s16195_s13  ;;  %p16201_p7 = scmp.lt.s32.totalorder %s16195_s13, %s16195_s13 }
  0x2f   :  { %p16202_p8 = por %p16201_p7, %p16200_p6 }
  0x31   :  { %p16203_p9 = pnand %p16202_p8, %p16196_p5 }
  0x33   :  { %16206 = shalt.err (!%p16203_p9)
}
  0x34   :  { %s16284_s4 = smov 704   ;;  %s16285_s27 = smov 44  }
  0x35   :  { %29 = dma.hbm_to_vmem [thread:$0]  %s16713_s1, 101376, %s24_s28, [#allocation3], %s16284_s4, %s16284_s4, %s16285_s27  }
  0x36   :  { %s16286_s16 = smov [#allocation6]   ;;  %s16207_s20 = scalar_lea.hbm %s16715_s3, 78848 }
  0x37   :  { %s45_s17 = sshll.u32 %s16286_s16, 4  ;;  %p16208_p10 = scmp.ne.s32.totalorder %s16715_s3, %s16207_s20  ;;  %s46_s17 = int_to_ptr.vmem [resolvable:$true] %s45_s17 }
  0x38   :  { %p16211_p11 = scmp.lt.u32.totalorder %s16207_s20, %s16715_s3 }
  0x3a   :  { %p16213_p12 = pnand %p16211_p11, %p16208_p10 }
  0x3c   :  { %16216 = shalt.err (!%p16213_p12)
}
  0x3d   :  { %s16217_s2 = scalar_lea.vmem %s46_s17, 78848  ;;  %p16222_p0 = scmp.lt.s32.totalorder %s46_s17, %s46_s17 }
  0x3e   :  { %p16218_p13 = scmp.ne.s32.totalorder %s46_s17, %s16217_s2  ;;  %p16223_p1 = scmp.lt.s32.totalorder %s16217_s2, %s16217_s2 }
  0x40   :  { %p16224_p2 = por %p16223_p1, %p16222_p0 }
  0x42   :  { %p16225_p3 = pnand %p16224_p2, %p16218_p13 }
  0x44   :  { %16228 = shalt.err (!%p16225_p3)
}
  0x45   :  { %s16287_s1 = smov 448   ;;  %s16288_s25 = smov 28  }
  0x46   :  { %51 = dma.hbm_to_vmem [thread:$0]  %s16715_s3, 78848, %s46_s17, [#allocation5], %s16287_s1, %s16287_s1, %s16288_s25  }
  0x47   :  { %s16289_s29 = smov [#allocation9]   ;;  %s16229_s10 = scalar_lea.hbm %s16717_s5, 7168 }
  0x48   :  { %s67_s30 = sshll.u32 %s16289_s29, 4  ;;  %p16230_p4 = scmp.ne.s32.totalorder %s16717_s5, %s16229_s10  ;;  %s68_s30 = int_to_ptr.vmem [resolvable:$true] %s67_s30 }
  0x49   :  { %p16233_p5 = scmp.lt.u32.totalorder %s16229_s10, %s16717_s5 }
  0x4b   :  { %p16235_p6 = pnand %p16233_p5, %p16230_p4 }
  0x4d   :  { %16238 = shalt.err (!%p16235_p6)
}
  0x4e   :  { %s16239_s27 = scalar_lea.vmem %s68_s30, 7168  ;;  %p16244_p8 = scmp.lt.s32.totalorder %s68_s30, %s68_s30 }
  0x4f   :  { %p16240_p7 = scmp.ne.s32.totalorder %s68_s30, %s16239_s27  ;;  %p16245_p9 = scmp.lt.s32.totalorder %s16239_s27, %s16239_s27 }
  0x51   :  { %p16246_p10 = por %p16245_p9, %p16244_p8 }
  0x53   :  { %p16247_p11 = pnand %p16246_p10, %p16240_p7 }
  0x55   :  { %16250 = shalt.err (!%p16247_p11)
}
  0x56   :  { %s16290_s3 = smov 64   ;;  %s16291_s14 = smov 4  }
  0x57   :  { %73 = dma.hbm_to_vmem [thread:$0]  %s16717_s5, 7168, %s68_s30, [#allocation8], %s16290_s3, %s16290_s3, %s16291_s14  }
  0x58   :  { %s16292_s17 = smov [#allocation10]   ;;  %s16251_s21 = scalar_lea.hbm %s16718_s6, 16 }
  0x59   :  { %s80_s18 = sshll.u32 %s16292_s17, 4  ;;  %p16252_p12 = scmp.ne.s32.totalorder %s16718_s6, %s16251_s21  ;;  %s81_s18 = int_to_ptr.vmem [resolvable:$true] %s80_s18 }
  0x5a   :  { %p16255_p13 = scmp.lt.u32.totalorder %s16251_s21, %s16718_s6 }
  0x5c   :  { %p16257_p0 = pnand %p16255_p13, %p16252_p12 }
  0x5e   :  { %16260 = shalt.err (!%p16257_p0)
}
  0x5f   :  { %s16261_s1 = scalar_lea.vmem %s81_s18, 16  ;;  %s16265_s5 = scalar_lea.vmem %s81_s18, 32 }
  0x60   :  { %p16262_p1 = scmp.ne.s32.totalorder %s81_s18, %s16261_s1  ;;  %p16266_p2 = scmp.lt.s32.totalorder %s81_s18, %s81_s18 }
  0x61   :  { %p16267_p3 = scmp.lt.s32.totalorder %s16265_s5, %s16261_s1 }
  0x63   :  { %p16268_p4 = por %p16267_p3, %p16266_p2 }
  0x65   :  { %p16269_p5 = pnand %p16268_p4, %p16262_p1 }
  0x67   :  { %16272 = shalt.err (!%p16269_p5)
}
  0x68   :  { %83 = dma.hbm_to_vmem [thread:$0]  %s16718_s6, 16, %s81_s18, [#allocation11]  }
  0x69   :  { %16273 = dma.done.wait [#allocation3], 101376  }
  0x6a   :  { %16274 = vsyncadd [#allocation3], 4294865920 }
  0x6b   :  { %16275 = dma.done.wait [#allocation5], 79024  }
  0x6c   :  { %16276 = vsyncadd [#allocation5], 4294888272 }
  0x6d   :  { %16277 = dma.done.wait [#allocation8], 7280  }
  0x6e   :  { %16278 = vsyncadd [#allocation8], 4294960016 }
  0x6f   :  { %16279 = dma.done.wait [#allocation11], 16  }
  0x70   :  { %16280 = vsyncadd [#allocation11], 4294967280  ;;  %v14018_v0 = vld [vmem:[#allocation2 + $0x4] ss:$44 sps:$4 sm:$0xff]   ;;  %v14020_v1 = vld [vmem:[#allocation2 + $0xc] ss:$44 sps:$4 sm:$0xff]  }
  0x71   :  { %5114 = vmatprep.subr.bf16.mxu0 %v14018_v0  ;;  %v14022_v2 = vld [vmem:[#allocation2] ss:$44 sps:$4 sm:$0xff]   ;;  %v14023_v3 = vld [vmem:[#allocation2 + $0x8] ss:$44 sps:$4 sm:$0xff]   ;;  %5329 = vmatprep.subr.bf16.mxu1 %v14020_v1  ;;  %v14026_v5 = vld [vmem:[#allocation2 + $0x64] ss:$44 sps:$4 sm:$0xff]  }
  0x72   :  { %v14024_v4 = vld [vmem:[#allocation2 + $0x5c] ss:$44 sps:$4 sm:$0xff]   ;;  %5115 = vmatpush1.bf16.msra.mxu0 %v14022_v2  ;;  %5330 = vmatpush1.bf16.msra.mxu1 %v14023_v3  ;;  %v14028_v6 = vld [vmem:[#allocation2 + $0x58] ss:$44 sps:$4 sm:$0xff]   ;;  %v14029_v7 = vld [vmem:[#allocation2 + $0x60] ss:$44 sps:$4 sm:$0xff]  }
  0x73   :  { %5116 = vmatprep.subr.bf16.mxu0 %v14024_v4  ;;  %5331 = vmatprep.subr.bf16.mxu1 %v14026_v5  ;;  %v14030_v8 = vld [vmem:[#allocation2 + $0xb4] ss:$44 sps:$4 sm:$0xff]   ;;  %v14032_v9 = vld [vmem:[#allocation2 + $0xbc] ss:$44 sps:$4 sm:$0xff]   ;;  %v14035_v11 = vld [vmem:[#allocation2 + $0xb8] ss:$44 sps:$4 sm:$0xff]  }
  0x74   :  { %v14034_v10 = vld [vmem:[#allocation2 + $0xb0] ss:$44 sps:$4 sm:$0xff]   ;;  %v14036_v12 = vld [vmem:[#allocation2 + $0x10c] ss:$44 sps:$4 sm:$0xff]   ;;  %v14038_v13 = vld [vmem:[#allocation2 + $0x114] ss:$44 sps:$4 sm:$0xff]  }
  0x75   :  { %v14040_v14 = vld [vmem:[#allocation2 + $0x108] ss:$44 sps:$4 sm:$0xff]   ;;  %v14041_v15 = vld [vmem:[#allocation2 + $0x110] ss:$44 sps:$4 sm:$0xff]   ;;  %v14044_v17 = vld [vmem:[#allocation2 + $0x16c] ss:$44 sps:$4 sm:$0xff]  }
  0x76   :  { %5117 = vmatpush1.bf16.msra.mxu0 %v14028_v6  ;;  %5332 = vmatpush1.bf16.msra.mxu1 %v14029_v7  ;;  %v14042_v16 = vld [vmem:[#allocation2 + $0x164] ss:$44 sps:$4 sm:$0xff]   ;;  %v14046_v18 = vld [vmem:[#allocation2 + $0x160] ss:$44 sps:$4 sm:$0xff]   ;;  %v14047_v19 = vld [vmem:[#allocation2 + $0x168] ss:$44 sps:$4 sm:$0xff]  }
  0x77   :  { %5118 = vmatprep.subr.bf16.mxu0 %v14030_v8  ;;  %5333 = vmatprep.subr.bf16.mxu1 %v14032_v9  ;;  %v14048_v20 = vld [vmem:[#allocation2 + $0x1bc] ss:$44 sps:$4 sm:$0xff]   ;;  %v14050_v21 = vld [vmem:[#allocation2 + $0x1c4] ss:$44 sps:$4 sm:$0xff]   ;;  %v14053_v23 = vld [vmem:[#allocation2 + $0x1c0] ss:$44 sps:$4 sm:$0xff]  }
  0x78   :  { %v14052_v22 = vld [vmem:[#allocation2 + $0x1b8] ss:$44 sps:$4 sm:$0xff]   ;;  %v14054_v24 = vld [vmem:[#allocation2 + $0x214] ss:$44 sps:$4 sm:$0xff]   ;;  %v14056_v25 = vld [vmem:[#allocation2 + $0x21c] ss:$44 sps:$4 sm:$0xff]  }
  0x79   :  { %v14058_v26 = vld [vmem:[#allocation2 + $0x210] ss:$44 sps:$4 sm:$0xff]   ;;  %v14059_v27 = vld [vmem:[#allocation2 + $0x218] ss:$44 sps:$4 sm:$0xff]   ;;  %v14062_v29 = vld [vmem:[#allocation2 + $0x274] ss:$44 sps:$4 sm:$0xff]  }
  0x7a   :  { %5119 = vmatpush1.bf16.msra.mxu0 %v14034_v10  ;;  %5334 = vmatpush1.bf16.msra.mxu1 %v14035_v11  ;;  %v14060_v28 = vld [vmem:[#allocation2 + $0x26c] ss:$44 sps:$4 sm:$0xff]   ;;  %v14064_v30 = vld [vmem:[#allocation2 + $0x268] ss:$44 sps:$4 sm:$0xff]   ;;  %v14065_v31 = vld [vmem:[#allocation2 + $0x270] ss:$44 sps:$4 sm:$0xff]  }
  0x7b   :  { %5120 = vmatprep.subr.bf16.mxu0 %v14036_v12  ;;  %5335 = vmatprep.subr.bf16.mxu1 %v14038_v13  ;;  %v14066_v32 = vld [vmem:[#allocation2 + $0x2c4] ss:$44 sps:$4 sm:$0xff]   ;;  %v14068_v33 = vld [vmem:[#allocation2 + $0x2cc] ss:$44 sps:$4 sm:$0xff]   ;;  %v14071_v35 = vld [vmem:[#allocation2 + $0x2c8] ss:$44 sps:$4 sm:$0xff]  }
  0x7c   :  { %v14070_v34 = vld [vmem:[#allocation2 + $0x2c0] ss:$44 sps:$4 sm:$0xff]   ;;  %v14072_v36 = vld [vmem:[#allocation2 + $0x31c] ss:$44 sps:$4 sm:$0xff]   ;;  %v14074_v37 = vld [vmem:[#allocation2 + $0x324] ss:$44 sps:$4 sm:$0xff]  }
  0x7d   :  { %v14076_v38 = vld [vmem:[#allocation2 + $0x318] ss:$44 sps:$4 sm:$0xff]   ;;  %v14077_v39 = vld [vmem:[#allocation2 + $0x320] ss:$44 sps:$4 sm:$0xff]   ;;  %v14080_v41 = vld [vmem:[#allocation2 + $0x37c] ss:$44 sps:$4 sm:$0xff]  }
  0x7e   :  { %5121 = vmatpush1.bf16.msra.mxu0 %v14040_v14  ;;  %5336 = vmatpush1.bf16.msra.mxu1 %v14041_v15  ;;  %v14078_v40 = vld [vmem:[#allocation2 + $0x374] ss:$44 sps:$4 sm:$0xff]   ;;  %v14082_v42 = vld [vmem:[#allocation2 + $0x370] ss:$44 sps:$4 sm:$0xff]   ;;  %v14083_v43 = vld [vmem:[#allocation2 + $0x378] ss:$44 sps:$4 sm:$0xff]  }
  0x7f   :  { %5122 = vmatprep.subr.bf16.mxu0 %v14042_v16  ;;  %5337 = vmatprep.subr.bf16.mxu1 %v14044_v17  ;;  %v14084_v44 = vld [vmem:[#allocation2 + $0x3cc] ss:$44 sps:$4 sm:$0xff]   ;;  %v14086_v45 = vld [vmem:[#allocation2 + $0x3d4] ss:$44 sps:$4 sm:$0xff]   ;;  %v14114_v47 = vld [vmem:[%s16712_s0 + $0x4] ss:$36 sps:$4 sm:$0xff]  }
  0x80   :  { %v14088_v46 = vld [vmem:[#allocation2 + $0x3c8] ss:$44 sps:$4 sm:$0xff]   ;;  %v14089_v48 = vld [vmem:[#allocation2 + $0x3d0] ss:$44 sps:$4 sm:$0xff]   ;;  %v14092_v50 = vld [vmem:[#allocation2 + $0x42c] ss:$44 sps:$4 sm:$0xff]   ;;  %5146 = vmatprep.mubr.bf16.mxu0 %v14114_v47  ;;  %5361 = vmatprep.mubr.bf16.mxu1 %v14114_v47 }
  0x81   :  { %v14090_v49 = vld [vmem:[#allocation2 + $0x424] ss:$44 sps:$4 sm:$0xff]   ;;  %v14094_v51 = vld [vmem:[#allocation2 + $0x420] ss:$44 sps:$4 sm:$0xff]   ;;  %v14095_v52 = vld [vmem:[#allocation2 + $0x428] ss:$44 sps:$4 sm:$0xff]  }
  0x82   :  { %5123 = vmatpush1.bf16.msra.mxu0 %v14046_v18  ;;  %5338 = vmatpush1.bf16.msra.mxu1 %v14047_v19  ;;  %v14096_v53 = vld [vmem:[#allocation2 + $0x47c] ss:$44 sps:$4 sm:$0xff]   ;;  %v14098_v54 = vld [vmem:[#allocation2 + $0x484] ss:$44 sps:$4 sm:$0xff]   ;;  %v14101_v56 = vld [vmem:[#allocation2 + $0x480] ss:$44 sps:$4 sm:$0xff]  }
  0x83   :  { %5124 = vmatprep.subr.bf16.mxu0 %v14048_v20  ;;  %5339 = vmatprep.subr.bf16.mxu1 %v14050_v21  ;;  %v14100_v55 = vld [vmem:[#allocation2 + $0x478] ss:$44 sps:$4 sm:$0xff]   ;;  %v14102_v57 = vld [vmem:[#allocation2 + $0x4d4] ss:$44 sps:$4 sm:$0xff]   ;;  %v14104_v58 = vld [vmem:[#allocation2 + $0x4dc] ss:$44 sps:$4 sm:$0xff]  }
  0x84   :  { %v14106_v59 = vld [vmem:[#allocation2 + $0x4d0] ss:$44 sps:$4 sm:$0xff]   ;;  %v14107_v60 = vld [vmem:[#allocation2 + $0x4d8] ss:$44 sps:$4 sm:$0xff]   ;;  %v14110_v62 = vld [vmem:[#allocation2 + $0x534] ss:$44 sps:$4 sm:$0xff]  }
  0x85   :  { %v14108_v61 = vld [vmem:[#allocation2 + $0x52c] ss:$44 sps:$4 sm:$0xff]   ;;  %v14112_v63 = vld [vmem:[#allocation2 + $0x528] ss:$44 sps:$4 sm:$0xff]   ;;  %v14113_v0 = vld [vmem:[#allocation2 + $0x530] ss:$44 sps:$4 sm:$0xff]  }
  0x86   :  { %5125 = vmatpush1.bf16.msra.mxu0 %v14052_v22  ;;  %5340 = vmatpush1.bf16.msra.mxu1 %v14053_v23  ;;  %v14118_v1 = vld [vmem:[#allocation2 + $0x584] ss:$44 sps:$4 sm:$0xff]   ;;  %v14121_v2 = vld [vmem:[#allocation2 + $0x58c] ss:$44 sps:$4 sm:$0xff]   ;;  %v14119_v4 = vld [vmem:[#allocation2 + $0x588] ss:$44 sps:$4 sm:$0xff]  }
  0x87   :  { %5126 = vmatprep.subr.bf16.mxu0 %v14054_v24  ;;  %5341 = vmatprep.subr.bf16.mxu1 %v14056_v25  ;;  %v14116_v3 = vld [vmem:[#allocation2 + $0x580] ss:$44 sps:$4 sm:$0xff]   ;;  %v14125_v6 = vld [vmem:[#allocation2 + $0x5dc] ss:$44 sps:$4 sm:$0xff]   ;;  %v14128_v7 = vld [vmem:[#allocation2 + $0x5e4] ss:$44 sps:$4 sm:$0xff]  }
  0x88   :  { %v14122_v5 = vld [vmem:[%s16712_s0] ss:$36 sps:$4 sm:$0xff]   ;;  %v14134_v11 = vld [vmem:[#allocation2 + $0x63c] ss:$44 sps:$4 sm:$0xff]   ;;  %v14137_v14 = vld [vmem:[#allocation2 + $0x68c] ss:$44 sps:$4 sm:$0xff]  }
  0x89   :  { %v14123_v8 = vld [vmem:[#allocation2 + $0x5d8] ss:$44 sps:$4 sm:$0xff]   ;;  %v14126_v9 = vld [vmem:[#allocation2 + $0x5e0] ss:$44 sps:$4 sm:$0xff]   ;;  %v14129_v12 = vld [vmem:[#allocation2 + $0x630] ss:$44 sps:$4 sm:$0xff]  }
  0x8a   :  { %5127 = vmatpush1.bf16.msra.mxu0 %v14058_v26  ;;  %5342 = vmatpush1.bf16.msra.mxu1 %v14059_v27  ;;  %v14131_v10 = vld [vmem:[#allocation2 + $0x634] ss:$44 sps:$4 sm:$0xff]   ;;  %v14132_v13 = vld [vmem:[#allocation2 + $0x638] ss:$44 sps:$4 sm:$0xff]   ;;  %v14138_v17 = vld [vmem:[#allocation2 + $0x690] ss:$44 sps:$4 sm:$0xff]  }
  0x8b   :  { %5128 = vmatprep.subr.bf16.mxu0 %v14060_v28  ;;  %5343 = vmatprep.subr.bf16.mxu1 %v14062_v29  ;;  %v14140_v15 = vld [vmem:[#allocation2 + $0x694] ss:$44 sps:$4 sm:$0xff]   ;;  %v14143_v18 = vld [vmem:[#allocation2 + $0x6e4] ss:$44 sps:$4 sm:$0xff]   ;;  %v14146_v19 = vld [vmem:[#allocation2 + $0x6ec] ss:$44 sps:$4 sm:$0xff]  }
  0x8c   :  { %v14135_v16 = vld [vmem:[#allocation2 + $0x688] ss:$44 sps:$4 sm:$0xff]   ;;  %v14141_v20 = vld [vmem:[#allocation2 + $0x6e0] ss:$44 sps:$4 sm:$0xff]   ;;  %v14152_v23 = vld [vmem:[#allocation2 + $0x744] ss:$44 sps:$4 sm:$0xff]  }
  0x8d   :  { %v14144_v21 = vld [vmem:[#allocation2 + $0x6e8] ss:$44 sps:$4 sm:$0xff]   ;;  %v14147_v24 = vld [vmem:[#allocation2 + $0x738] ss:$44 sps:$4 sm:$0xff]   ;;  %v14150_v25 = vld [vmem:[#allocation2 + $0x740] ss:$44 sps:$4 sm:$0xff]  }
  0x8e   :  { %5129 = vmatpush1.bf16.msra.mxu0 %v14064_v30  ;;  %5344 = vmatpush1.bf16.msra.mxu1 %v14065_v31  ;;  %v14149_v22 = vld [vmem:[#allocation2 + $0x73c] ss:$44 sps:$4 sm:$0xff]   ;;  %v14155_v26 = vld [vmem:[#allocation2 + $0x794] ss:$44 sps:$4 sm:$0xff]   ;;  %v14213_v29 = vld [vmem:[%s16712_s0 + $0xc] ss:$36 sps:$4 sm:$0xff]  }
  0x8f   :  { %5130 = vmatprep.subr.bf16.mxu0 %v14066_v32  ;;  %5345 = vmatprep.subr.bf16.mxu1 %v14068_v33  ;;  %v14158_v27 = vld [vmem:[#allocation2 + $0x79c] ss:$44 sps:$4 sm:$0xff]   ;;  %v14156_v30 = vld [vmem:[#allocation2 + $0x798] ss:$44 sps:$4 sm:$0xff]   ;;  %v14164_v32 = vld [vmem:[#allocation2 + $0x7f4] ss:$44 sps:$4 sm:$0xff]  }
  0x90   :  { %v14153_v28 = vld [vmem:[#allocation2 + $0x790] ss:$44 sps:$4 sm:$0xff]   ;;  %v14161_v31 = vld [vmem:[#allocation2 + $0x7ec] ss:$44 sps:$4 sm:$0xff]   ;;  %v14159_v33 = vld [vmem:[#allocation2 + $0x7e8] ss:$44 sps:$4 sm:$0xff]  }
  0x91   :  { %v14185_v47 = vld [vmem:[#allocation2 + $0x94c] ss:$44 sps:$4 sm:$0xff]   ;;  %vm16295_vm0 = vmmov 0  }
  0x92   :  { %5131 = vmatpush1.bf16.msra.mxu0 %v14070_v34  ;;  %5346 = vmatpush1.bf16.msra.mxu1 %v14071_v35  ;;  %v14162_v34 = vld [vmem:[#allocation2 + $0x7f0] ss:$44 sps:$4 sm:$0xff]  }
  0x93   :  { %5132 = vmatprep.subr.bf16.mxu0 %v14072_v36  ;;  %5347 = vmatprep.subr.bf16.mxu1 %v14074_v37  ;;  %v14167_v35 = vld [vmem:[#allocation2 + $0x844] ss:$44 sps:$4 sm:$0xff]   ;;  %v14170_v36 = vld [vmem:[#allocation2 + $0x84c] ss:$44 sps:$4 sm:$0xff]  }
  0x94   :  { %v14165_v37 = vld [vmem:[#allocation2 + $0x840] ss:$44 sps:$4 sm:$0xff]  }
  0x96   :  { %5133 = vmatpush1.bf16.msra.mxu0 %v14076_v38  ;;  %5348 = vmatpush1.bf16.msra.mxu1 %v14077_v39  ;;  %v14168_v38 = vld [vmem:[#allocation2 + $0x848] ss:$44 sps:$4 sm:$0xff]  }
  0x97   :  { %5134 = vmatprep.subr.bf16.mxu0 %v14078_v40  ;;  %5349 = vmatprep.subr.bf16.mxu1 %v14080_v41  ;;  %v14173_v39 = vld [vmem:[#allocation2 + $0x89c] ss:$44 sps:$4 sm:$0xff]   ;;  %v14176_v40 = vld [vmem:[#allocation2 + $0x8a4] ss:$44 sps:$4 sm:$0xff]  }
  0x98   :  { %v14171_v41 = vld [vmem:[#allocation2 + $0x898] ss:$44 sps:$4 sm:$0xff]  }
  0x9a   :  { %5135 = vmatpush1.bf16.msra.mxu0 %v14082_v42  ;;  %5350 = vmatpush1.bf16.msra.mxu1 %v14083_v43  ;;  %v14174_v42 = vld [vmem:[#allocation2 + $0x8a0] ss:$44 sps:$4 sm:$0xff]  }
  0x9b   :  { %5136 = vmatprep.subr.bf16.mxu0 %v14084_v44  ;;  %5351 = vmatprep.subr.bf16.mxu1 %v14086_v45  ;;  %v14179_v43 = vld [vmem:[#allocation2 + $0x8f4] ss:$44 sps:$4 sm:$0xff]   ;;  %v14182_v44 = vld [vmem:[#allocation2 + $0x8fc] ss:$44 sps:$4 sm:$0xff]  }
  0x9c   :  { %v14177_v45 = vld [vmem:[#allocation2 + $0x8f0] ss:$44 sps:$4 sm:$0xff]  }
  0x9e   :  { %5137 = vmatpush1.bf16.msra.mxu0 %v14088_v46  ;;  %5352 = vmatpush1.bf16.msra.mxu1 %v14089_v48  ;;  %v14180_v46 = vld [vmem:[#allocation2 + $0x8f8] ss:$44 sps:$4 sm:$0xff]   ;;  %v14188_v48 = vld [vmem:[#allocation2 + $0x954] ss:$44 sps:$4 sm:$0xff]  }
  0x9f   :  { %5138 = vmatprep.subr.bf16.mxu0 %v14090_v49  ;;  %5353 = vmatprep.subr.bf16.mxu1 %v14092_v50  ;;  %v14183_v49 = vld [vmem:[#allocation2 + $0x948] ss:$44 sps:$4 sm:$0xff]   ;;  %v14186_v50 = vld [vmem:[#allocation2 + $0x950] ss:$44 sps:$4 sm:$0xff]  }
  0xa2   :  { %5139 = vmatpush1.bf16.msra.mxu0 %v14094_v51  ;;  %5354 = vmatpush1.bf16.msra.mxu1 %v14095_v52  ;;  %v14191_v51 = vld [vmem:[#allocation2 + $0x9a4] ss:$44 sps:$4 sm:$0xff]   ;;  %v14194_v52 = vld [vmem:[#allocation2 + $0x9ac] ss:$44 sps:$4 sm:$0xff]  }
  0xa3   :  { %5140 = vmatprep.subr.bf16.mxu0 %v14096_v53  ;;  %5355 = vmatprep.subr.bf16.mxu1 %v14098_v54  ;;  %v14189_v53 = vld [vmem:[#allocation2 + $0x9a0] ss:$44 sps:$4 sm:$0xff]   ;;  %v14192_v54 = vld [vmem:[#allocation2 + $0x9a8] ss:$44 sps:$4 sm:$0xff]  }
  0xa6   :  { %5141 = vmatpush1.bf16.msra.mxu0 %v14100_v55  ;;  %5356 = vmatpush1.bf16.msra.mxu1 %v14101_v56  ;;  %v14197_v55 = vld [vmem:[#allocation2 + $0x9fc] ss:$44 sps:$4 sm:$0xff]   ;;  %v14200_v56 = vld [vmem:[#allocation2 + $0xa04] ss:$44 sps:$4 sm:$0xff]  }
  0xa7   :  { %5142 = vmatprep.subr.bf16.mxu0 %v14102_v57  ;;  %5357 = vmatprep.subr.bf16.mxu1 %v14104_v58  ;;  %v14195_v57 = vld [vmem:[#allocation2 + $0x9f8] ss:$44 sps:$4 sm:$0xff]   ;;  %v14198_v58 = vld [vmem:[#allocation2 + $0xa00] ss:$44 sps:$4 sm:$0xff]  }
  0xaa   :  { %5143 = vmatpush1.bf16.msra.mxu0 %v14106_v59  ;;  %5358 = vmatpush1.bf16.msra.mxu1 %v14107_v60  ;;  %v14203_v59 = vld [vmem:[#allocation2 + $0xa54] ss:$44 sps:$4 sm:$0xff]   ;;  %v14206_v60 = vld [vmem:[#allocation2 + $0xa5c] ss:$44 sps:$4 sm:$0xff]  }
  0xab   :  { %5144 = vmatprep.subr.bf16.mxu0 %v14108_v61  ;;  %5359 = vmatprep.subr.bf16.mxu1 %v14110_v62  ;;  %v14201_v61 = vld [vmem:[#allocation2 + $0xa50] ss:$44 sps:$4 sm:$0xff]   ;;  %v14204_v62 = vld [vmem:[#allocation2 + $0xa58] ss:$44 sps:$4 sm:$0xff]  }
  0xae   :  { %5145 = vmatpush1.bf16.msra.mxu0 %v14112_v63  ;;  %5360 = vmatpush1.bf16.msra.mxu1 %v14113_v0  ;;  %v14209_v63 = vld [vmem:[#allocation2 + $0xaac] ss:$44 sps:$4 sm:$0xff]   ;;  %v14212_v0 = vld [vmem:[#allocation2 + $0xab4] ss:$44 sps:$4 sm:$0xff]  }
  0xaf   :  { %5157 = vmatprep.subr.bf16.mxu0 %v14118_v1  ;;  %5372 = vmatprep.subr.bf16.mxu1 %v14121_v2  ;;  %v14207_v1 = vld [vmem:[#allocation2 + $0xaa8] ss:$44 sps:$4 sm:$0xff]   ;;  %v14210_v2 = vld [vmem:[#allocation2 + $0xab0] ss:$44 sps:$4 sm:$0xff]  }
  0xb1   :  { %5147 = vmatmul.mubr.bf16.vlgmr.msra.gmra.mrb[0].mxu0 %v14122_v5  ;;  %5362 = vmatmul.mubr.bf16.vlgmr.msra.gmra.mrb[0].mxu1 %v14122_v5  ;;  %v14215_v5 = vld [vmem:[#allocation2 + $0xb00] ss:$44 sps:$4 sm:$0xff]  }
  0xb2   :  { %5158 = vmatpush1.bf16.msra.mxu0 %v14116_v3  ;;  %5373 = vmatpush1.bf16.msra.mxu1 %v14119_v4  ;;  %v14217_v3 = vld [vmem:[#allocation2 + $0xb04] ss:$44 sps:$4 sm:$0xff]   ;;  %v14220_v4 = vld [vmem:[#allocation2 + $0xb0c] ss:$44 sps:$4 sm:$0xff]  }
  0xb3   :  { %5159 = vmatprep.subr.bf16.mxu0 %v14125_v6  ;;  %5374 = vmatprep.subr.bf16.mxu1 %v14128_v7  ;;  %v14218_v6 = vld [vmem:[#allocation2 + $0xb08] ss:$44 sps:$4 sm:$0xff]  }
  0xb4   :  { %5189 = vmatprep.mubr.bf16.mxu0 %v14213_v29  ;;  %5404 = vmatprep.mubr.bf16.mxu1 %v14213_v29  ;;  %v14221_v7 = vld [vmem:[%s16712_s0 + $0x8] ss:$36 sps:$4 sm:$0xff]   ;;  %v14254_v29 = vld [vmem:[#allocation2 + $0xd14] ss:$44 sps:$4 sm:$0xff]  }
  0xb6   :  { %5160 = vmatpush1.bf16.msra.mxu0 %v14123_v8  ;;  %5375 = vmatpush1.bf16.msra.mxu1 %v14126_v9  ;;  %v14224_v8 = vld [vmem:[#allocation2 + $0xb5c] ss:$44 sps:$4 sm:$0xff]   ;;  %v14227_v9 = vld [vmem:[#allocation2 + $0xb64] ss:$44 sps:$4 sm:$0xff]  }
  0xb7   :  { %5161 = vmatprep.subr.bf16.mxu0 %v14131_v10  ;;  %5376 = vmatprep.subr.bf16.mxu1 %v14134_v11  ;;  %v14222_v10 = vld [vmem:[#allocation2 + $0xb58] ss:$44 sps:$4 sm:$0xff]  }
  0xb8   :  { %v14312_v11 = vld [vmem:[%s16712_s0 + $0x14] ss:$36 sps:$4 sm:$0xff]  }
  0xba   :  { %5162 = vmatpush1.bf16.msra.mxu0 %v14129_v12  ;;  %5377 = vmatpush1.bf16.msra.mxu1 %v14132_v13  ;;  %v14225_v12 = vld [vmem:[#allocation2 + $0xb60] ss:$44 sps:$4 sm:$0xff]  }
  0xbb   :  { %5163 = vmatprep.subr.bf16.mxu0 %v14137_v14  ;;  %5378 = vmatprep.subr.bf16.mxu1 %v14140_v15  ;;  %v14230_v13 = vld [vmem:[#allocation2 + $0xbb4] ss:$44 sps:$4 sm:$0xff]   ;;  %v14233_v14 = vld [vmem:[#allocation2 + $0xbbc] ss:$44 sps:$4 sm:$0xff]  }
  0xbc   :  { %v14228_v15 = vld [vmem:[#allocation2 + $0xbb0] ss:$44 sps:$4 sm:$0xff]  }
  0xbe   :  { %5164 = vmatpush1.bf16.msra.mxu0 %v14135_v16  ;;  %5379 = vmatpush1.bf16.msra.mxu1 %v14138_v17  ;;  %v14231_v16 = vld [vmem:[#allocation2 + $0xbb8] ss:$44 sps:$4 sm:$0xff]  }
  0xbf   :  { %5165 = vmatprep.subr.bf16.mxu0 %v14143_v18  ;;  %5380 = vmatprep.subr.bf16.mxu1 %v14146_v19  ;;  %v14236_v17 = vld [vmem:[#allocation2 + $0xc0c] ss:$44 sps:$4 sm:$0xff]   ;;  %v14239_v18 = vld [vmem:[#allocation2 + $0xc14] ss:$44 sps:$4 sm:$0xff]  }
  0xc0   :  { %v14234_v19 = vld [vmem:[#allocation2 + $0xc08] ss:$44 sps:$4 sm:$0xff]  }
  0xc2   :  { %5166 = vmatpush1.bf16.msra.mxu0 %v14141_v20  ;;  %5381 = vmatpush1.bf16.msra.mxu1 %v14144_v21  ;;  %v14237_v20 = vld [vmem:[#allocation2 + $0xc10] ss:$44 sps:$4 sm:$0xff]  }
  0xc3   :  { %5167 = vmatprep.subr.bf16.mxu0 %v14149_v22  ;;  %5382 = vmatprep.subr.bf16.mxu1 %v14152_v23  ;;  %v14242_v21 = vld [vmem:[#allocation2 + $0xc64] ss:$44 sps:$4 sm:$0xff]   ;;  %v14245_v22 = vld [vmem:[#allocation2 + $0xc6c] ss:$44 sps:$4 sm:$0xff]  }
  0xc4   :  { %v14240_v23 = vld [vmem:[#allocation2 + $0xc60] ss:$44 sps:$4 sm:$0xff]  }
  0xc6   :  { %5168 = vmatpush1.bf16.msra.mxu0 %v14147_v24  ;;  %5383 = vmatpush1.bf16.msra.mxu1 %v14150_v25  ;;  %v14243_v24 = vld [vmem:[#allocation2 + $0xc68] ss:$44 sps:$4 sm:$0xff]  }
  0xc7   :  { %5169 = vmatprep.subr.bf16.mxu0 %v14155_v26  ;;  %5384 = vmatprep.subr.bf16.mxu1 %v14158_v27  ;;  %v14248_v25 = vld [vmem:[#allocation2 + $0xcbc] ss:$44 sps:$4 sm:$0xff]   ;;  %v14251_v26 = vld [vmem:[#allocation2 + $0xcc4] ss:$44 sps:$4 sm:$0xff]  }
  0xc8   :  { %v14246_v27 = vld [vmem:[#allocation2 + $0xcb8] ss:$44 sps:$4 sm:$0xff]  }
  0xca   :  { %5170 = vmatpush1.bf16.msra.mxu0 %v14153_v28  ;;  %5385 = vmatpush1.bf16.msra.mxu1 %v14156_v30  ;;  %v14249_v28 = vld [vmem:[#allocation2 + $0xcc0] ss:$44 sps:$4 sm:$0xff]   ;;  %v14257_v30 = vld [vmem:[#allocation2 + $0xd1c] ss:$44 sps:$4 sm:$0xff]  }
  0xcb   :  { %5171 = vmatprep.subr.bf16.mxu0 %v14161_v31  ;;  %5386 = vmatprep.subr.bf16.mxu1 %v14164_v32  ;;  %v14252_v31 = vld [vmem:[#allocation2 + $0xd10] ss:$44 sps:$4 sm:$0xff]   ;;  %v14255_v32 = vld [vmem:[#allocation2 + $0xd18] ss:$44 sps:$4 sm:$0xff]  }
  0xce   :  { %5172 = vmatpush1.bf16.msra.mxu0 %v14159_v33  ;;  %5387 = vmatpush1.bf16.msra.mxu1 %v14162_v34  ;;  %v14260_v33 = vld [vmem:[#allocation2 + $0xd6c] ss:$44 sps:$4 sm:$0xff]   ;;  %v14263_v34 = vld [vmem:[#allocation2 + $0xd74] ss:$44 sps:$4 sm:$0xff]  }
  0xcf   :  { %5173 = vmatprep.subr.bf16.mxu0 %v14167_v35  ;;  %5388 = vmatprep.subr.bf16.mxu1 %v14170_v36  ;;  %v14258_v35 = vld [vmem:[#allocation2 + $0xd68] ss:$44 sps:$4 sm:$0xff]   ;;  %v14261_v36 = vld [vmem:[#allocation2 + $0xd70] ss:$44 sps:$4 sm:$0xff]  }
  0xd2   :  { %5174 = vmatpush1.bf16.msra.mxu0 %v14165_v37  ;;  %5389 = vmatpush1.bf16.msra.mxu1 %v14168_v38  ;;  %v14266_v37 = vld [vmem:[#allocation2 + $0xdc4] ss:$44 sps:$4 sm:$0xff]   ;;  %v14269_v38 = vld [vmem:[#allocation2 + $0xdcc] ss:$44 sps:$4 sm:$0xff]  }
  0xd3   :  { %5175 = vmatprep.subr.bf16.mxu0 %v14173_v39  ;;  %5390 = vmatprep.subr.bf16.mxu1 %v14176_v40  ;;  %v14264_v39 = vld [vmem:[#allocation2 + $0xdc0] ss:$44 sps:$4 sm:$0xff]   ;;  %v14267_v40 = vld [vmem:[#allocation2 + $0xdc8] ss:$44 sps:$4 sm:$0xff]  }
  0xd6   :  { %5176 = vmatpush1.bf16.msra.mxu0 %v14171_v41  ;;  %5391 = vmatpush1.bf16.msra.mxu1 %v14174_v42  ;;  %v14272_v41 = vld [vmem:[#allocation2 + $0xe1c] ss:$44 sps:$4 sm:$0xff]   ;;  %v14275_v42 = vld [vmem:[#allocation2 + $0xe24] ss:$44 sps:$4 sm:$0xff]  }
  0xd7   :  { %5177 = vmatprep.subr.bf16.mxu0 %v14179_v43  ;;  %5392 = vmatprep.subr.bf16.mxu1 %v14182_v44  ;;  %v14270_v43 = vld [vmem:[#allocation2 + $0xe18] ss:$44 sps:$4 sm:$0xff]   ;;  %v14273_v44 = vld [vmem:[#allocation2 + $0xe20] ss:$44 sps:$4 sm:$0xff]  }
  0xda   :  { %5178 = vmatpush1.bf16.msra.mxu0 %v14177_v45  ;;  %5393 = vmatpush1.bf16.msra.mxu1 %v14180_v46  ;;  %v14278_v45 = vld [vmem:[#allocation2 + $0xe74] ss:$44 sps:$4 sm:$0xff]   ;;  %v14281_v46 = vld [vmem:[#allocation2 + $0xe7c] ss:$44 sps:$4 sm:$0xff]  }
  0xdb   :  { %5179 = vmatprep.subr.bf16.mxu0 %v14185_v47  ;;  %5394 = vmatprep.subr.bf16.mxu1 %v14188_v48  ;;  %v14276_v47 = vld [vmem:[#allocation2 + $0xe70] ss:$44 sps:$4 sm:$0xff]   ;;  %v14279_v48 = vld [vmem:[#allocation2 + $0xe78] ss:$44 sps:$4 sm:$0xff]  }
  0xde   :  { %5180 = vmatpush1.bf16.msra.mxu0 %v14183_v49  ;;  %5395 = vmatpush1.bf16.msra.mxu1 %v14186_v50  ;;  %v14284_v49 = vld [vmem:[#allocation2 + $0xecc] ss:$44 sps:$4 sm:$0xff]   ;;  %v14287_v50 = vld [vmem:[#allocation2 + $0xed4] ss:$44 sps:$4 sm:$0xff]  }
  0xdf   :  { %5181 = vmatprep.subr.bf16.mxu0 %v14191_v51  ;;  %5396 = vmatprep.subr.bf16.mxu1 %v14194_v52  ;;  %v14282_v51 = vld [vmem:[#allocation2 + $0xec8] ss:$44 sps:$4 sm:$0xff]   ;;  %v14285_v52 = vld [vmem:[#allocation2 + $0xed0] ss:$44 sps:$4 sm:$0xff]  }
  0xe2   :  { %5182 = vmatpush1.bf16.msra.mxu0 %v14189_v53  ;;  %5397 = vmatpush1.bf16.msra.mxu1 %v14192_v54  ;;  %v14290_v53 = vld [vmem:[#allocation2 + $0xf24] ss:$44 sps:$4 sm:$0xff]   ;;  %v14293_v54 = vld [vmem:[#allocation2 + $0xf2c] ss:$44 sps:$4 sm:$0xff]  }
  0xe3   :  { %5183 = vmatprep.subr.bf16.mxu0 %v14197_v55  ;;  %5398 = vmatprep.subr.bf16.mxu1 %v14200_v56  ;;  %v14288_v55 = vld [vmem:[#allocation2 + $0xf20] ss:$44 sps:$4 sm:$0xff]   ;;  %v14291_v56 = vld [vmem:[#allocation2 + $0xf28] ss:$44 sps:$4 sm:$0xff]  }
  0xe6   :  { %5184 = vmatpush1.bf16.msra.mxu0 %v14195_v57  ;;  %5399 = vmatpush1.bf16.msra.mxu1 %v14198_v58  ;;  %v14296_v57 = vld [vmem:[#allocation2 + $0xf7c] ss:$44 sps:$4 sm:$0xff]   ;;  %v14299_v58 = vld [vmem:[#allocation2 + $0xf84] ss:$44 sps:$4 sm:$0xff]  }
  0xe7   :  { %5185 = vmatprep.subr.bf16.mxu0 %v14203_v59  ;;  %5400 = vmatprep.subr.bf16.mxu1 %v14206_v60  ;;  %v14294_v59 = vld [vmem:[#allocation2 + $0xf78] ss:$44 sps:$4 sm:$0xff]   ;;  %v14297_v60 = vld [vmem:[#allocation2 + $0xf80] ss:$44 sps:$4 sm:$0xff]  }
  0xea   :  { %5186 = vmatpush1.bf16.msra.mxu0 %v14201_v61  ;;  %5401 = vmatpush1.bf16.msra.mxu1 %v14204_v62  ;;  %v14302_v61 = vld [vmem:[#allocation2 + $0xfd4] ss:$44 sps:$4 sm:$0xff]   ;;  %v14305_v62 = vld [vmem:[#allocation2 + $0xfdc] ss:$44 sps:$4 sm:$0xff]  }
  0xeb   :  { %5187 = vmatprep.subr.bf16.mxu0 %v14209_v63  ;;  %5402 = vmatprep.subr.bf16.mxu1 %v14212_v0  ;;  %v14300_v63 = vld [vmem:[#allocation2 + $0xfd0] ss:$44 sps:$4 sm:$0xff]   ;;  %v14303_v0 = vld [vmem:[#allocation2 + $0xfd8] ss:$44 sps:$4 sm:$0xff]  }
  0xee   :  { %5188 = vmatpush1.bf16.msra.mxu0 %v14207_v1  ;;  %5403 = vmatpush1.bf16.msra.mxu1 %v14210_v2  ;;  %v14308_v1 = vld [vmem:[#allocation2 + $0x102c] ss:$44 sps:$4 sm:$0xff]   ;;  %v14311_v2 = vld [vmem:[#allocation2 + $0x1034] ss:$44 sps:$4 sm:$0xff]  }
  0xef   :  { %5200 = vmatprep.subr.bf16.mxu0 %v14217_v3  ;;  %5415 = vmatprep.subr.bf16.mxu1 %v14220_v4  ;;  %v14306_v3 = vld [vmem:[#allocation2 + $0x1028] ss:$44 sps:$4 sm:$0xff]   ;;  %v14309_v4 = vld [vmem:[#allocation2 + $0x1030] ss:$44 sps:$4 sm:$0xff]  }
  0xf1   :  { %5190 = vmatmul.mubr.bf16.vlgmr.msra.gmra.mrb[0].mxu0 %v14221_v7  ;;  %5405 = vmatmul.mubr.bf16.vlgmr.msra.gmra.mrb[0].mxu1 %v14221_v7  ;;  %v14314_v7 = vld [vmem:[#allocation2 + $0x1080] ss:$44 sps:$4 sm:$0xff]  }
  0xf2   :  { %5201 = vmatpush1.bf16.msra.mxu0 %v14215_v5  ;;  %5416 = vmatpush1.bf16.msra.mxu1 %v14218_v6  ;;  %v14316_v5 = vld [vmem:[#allocation2 + $0x1084] ss:$44 sps:$4 sm:$0xff]   ;;  %v14319_v6 = vld [vmem:[#allocation2 + $0x108c] ss:$44 sps:$4 sm:$0xff]  }
  0xf3   :  { %5202 = vmatprep.subr.bf16.mxu0 %v14224_v8  ;;  %5417 = vmatprep.subr.bf16.mxu1 %v14227_v9  ;;  %v14317_v8 = vld [vmem:[#allocation2 + $0x1088] ss:$44 sps:$4 sm:$0xff]  }
  0xf4   :  { %5232 = vmatprep.mubr.bf16.mxu0 %v14312_v11  ;;  %5447 = vmatprep.mubr.bf16.mxu1 %v14312_v11  ;;  %v14320_v9 = vld [vmem:[%s16712_s0 + $0x10] ss:$36 sps:$4 sm:$0xff]  }
  0xf5   :  { %v14326_v11 = vld [vmem:[#allocation2 + $0x10e4] ss:$44 sps:$4 sm:$0xff]  }
  0xf6   :  { %5203 = vmatpush1.bf16.msra.mxu0 %v14222_v10  ;;  %5418 = vmatpush1.bf16.msra.mxu1 %v14225_v12  ;;  %v14323_v10 = vld [vmem:[#allocation2 + $0x10dc] ss:$44 sps:$4 sm:$0xff]  }
  0xf7   :  { %5204 = vmatprep.subr.bf16.mxu0 %v14230_v13  ;;  %5419 = vmatprep.subr.bf16.mxu1 %v14233_v14  ;;  %v14411_v12 = vld [vmem:[%s16712_s0 + $0x1c] ss:$36 sps:$4 sm:$0xff]   ;;  %v14321_v13 = vld [vmem:[#allocation2 + $0x10d8] ss:$44 sps:$4 sm:$0xff]  }
  0xf8   :  { %v14324_v14 = vld [vmem:[#allocation2 + $0x10e0] ss:$44 sps:$4 sm:$0xff]  }
  0xfa   :  { %5205 = vmatpush1.bf16.msra.mxu0 %v14228_v15  ;;  %5420 = vmatpush1.bf16.msra.mxu1 %v14231_v16  ;;  %v14329_v15 = vld [vmem:[#allocation2 + $0x1134] ss:$44 sps:$4 sm:$0xff]   ;;  %v14332_v16 = vld [vmem:[#allocation2 + $0x113c] ss:$44 sps:$4 sm:$0xff]  }
  0xfb   :  { %5206 = vmatprep.subr.bf16.mxu0 %v14236_v17  ;;  %5421 = vmatprep.subr.bf16.mxu1 %v14239_v18  ;;  %v14327_v17 = vld [vmem:[#allocation2 + $0x1130] ss:$44 sps:$4 sm:$0xff]   ;;  %v14330_v18 = vld [vmem:[#allocation2 + $0x1138] ss:$44 sps:$4 sm:$0xff]  }
  0xfe   :  { %5207 = vmatpush1.bf16.msra.mxu0 %v14234_v19  ;;  %5422 = vmatpush1.bf16.msra.mxu1 %v14237_v20  ;;  %v14335_v19 = vld [vmem:[#allocation2 + $0x118c] ss:$44 sps:$4 sm:$0xff]   ;;  %v14338_v20 = vld [vmem:[#allocation2 + $0x1194] ss:$44 sps:$4 sm:$0xff]  }
  0xff   :  { %5208 = vmatprep.subr.bf16.mxu0 %v14242_v21  ;;  %5423 = vmatprep.subr.bf16.mxu1 %v14245_v22  ;;  %v14333_v21 = vld [vmem:[#allocation2 + $0x1188] ss:$44 sps:$4 sm:$0xff]   ;;  %v14336_v22 = vld [vmem:[#allocation2 + $0x1190] ss:$44 sps:$4 sm:$0xff]  }
 0x102   :  { %5209 = vmatpush1.bf16.msra.mxu0 %v14240_v23  ;;  %5424 = vmatpush1.bf16.msra.mxu1 %v14243_v24  ;;  %v14341_v23 = vld [vmem:[#allocation2 + $0x11e4] ss:$44 sps:$4 sm:$0xff]   ;;  %v14344_v24 = vld [vmem:[#allocation2 + $0x11ec] ss:$44 sps:$4 sm:$0xff]  }
 0x103   :  { %5210 = vmatprep.subr.bf16.mxu0 %v14248_v25  ;;  %5425 = vmatprep.subr.bf16.mxu1 %v14251_v26  ;;  %v14339_v25 = vld [vmem:[#allocation2 + $0x11e0] ss:$44 sps:$4 sm:$0xff]   ;;  %v14342_v26 = vld [vmem:[#allocation2 + $0x11e8] ss:$44 sps:$4 sm:$0xff]  }
 0x106   :  { %5211 = vmatpush1.bf16.msra.mxu0 %v14246_v27  ;;  %5426 = vmatpush1.bf16.msra.mxu1 %v14249_v28  ;;  %v14347_v27 = vld [vmem:[#allocation2 + $0x123c] ss:$44 sps:$4 sm:$0xff]   ;;  %v14350_v28 = vld [vmem:[#allocation2 + $0x1244] ss:$44 sps:$4 sm:$0xff]  }
 0x107   :  { %5212 = vmatprep.subr.bf16.mxu0 %v14254_v29  ;;  %5427 = vmatprep.subr.bf16.mxu1 %v14257_v30  ;;  %v14345_v29 = vld [vmem:[#allocation2 + $0x1238] ss:$44 sps:$4 sm:$0xff]   ;;  %v14348_v30 = vld [vmem:[#allocation2 + $0x1240] ss:$44 sps:$4 sm:$0xff]  }
 0x10a   :  { %5213 = vmatpush1.bf16.msra.mxu0 %v14252_v31  ;;  %5428 = vmatpush1.bf16.msra.mxu1 %v14255_v32  ;;  %v14353_v31 = vld [vmem:[#allocation2 + $0x1294] ss:$44 sps:$4 sm:$0xff]   ;;  %v14356_v32 = vld [vmem:[#allocation2 + $0x129c] ss:$44 sps:$4 sm:$0xff]  }
 0x10b   :  { %5214 = vmatprep.subr.bf16.mxu0 %v14260_v33  ;;  %5429 = vmatprep.subr.bf16.mxu1 %v14263_v34  ;;  %v14351_v33 = vld [vmem:[#allocation2 + $0x1290] ss:$44 sps:$4 sm:$0xff]   ;;  %v14354_v34 = vld [vmem:[#allocation2 + $0x1298] ss:$44 sps:$4 sm:$0xff]  }
 0x10e   :  { %5215 = vmatpush1.bf16.msra.mxu0 %v14258_v35  ;;  %5430 = vmatpush1.bf16.msra.mxu1 %v14261_v36  ;;  %v14359_v35 = vld [vmem:[#allocation2 + $0x12ec] ss:$44 sps:$4 sm:$0xff]   ;;  %v14362_v36 = vld [vmem:[#allocation2 + $0x12f4] ss:$44 sps:$4 sm:$0xff]  }
 0x10f   :  { %5216 = vmatprep.subr.bf16.mxu0 %v14266_v37  ;;  %5431 = vmatprep.subr.bf16.mxu1 %v14269_v38  ;;  %v14357_v37 = vld [vmem:[#allocation2 + $0x12e8] ss:$44 sps:$4 sm:$0xff]   ;;  %v14360_v38 = vld [vmem:[#allocation2 + $0x12f0] ss:$44 sps:$4 sm:$0xff]  }
 0x112   :  { %5217 = vmatpush1.bf16.msra.mxu0 %v14264_v39  ;;  %5432 = vmatpush1.bf16.msra.mxu1 %v14267_v40  ;;  %v14365_v39 = vld [vmem:[#allocation2 + $0x1344] ss:$44 sps:$4 sm:$0xff]   ;;  %v14368_v40 = vld [vmem:[#allocation2 + $0x134c] ss:$44 sps:$4 sm:$0xff]  }
 0x113   :  { %5218 = vmatprep.subr.bf16.mxu0 %v14272_v41  ;;  %5433 = vmatprep.subr.bf16.mxu1 %v14275_v42  ;;  %v14363_v41 = vld [vmem:[#allocation2 + $0x1340] ss:$44 sps:$4 sm:$0xff]   ;;  %v14366_v42 = vld [vmem:[#allocation2 + $0x1348] ss:$44 sps:$4 sm:$0xff]  }
 0x116   :  { %5219 = vmatpush1.bf16.msra.mxu0 %v14270_v43  ;;  %5434 = vmatpush1.bf16.msra.mxu1 %v14273_v44  ;;  %v14371_v43 = vld [vmem:[#allocation2 + $0x139c] ss:$44 sps:$4 sm:$0xff]   ;;  %v14374_v44 = vld [vmem:[#allocation2 + $0x13a4] ss:$44 sps:$4 sm:$0xff]  }
 0x117   :  { %5220 = vmatprep.subr.bf16.mxu0 %v14278_v45  ;;  %5435 = vmatprep.subr.bf16.mxu1 %v14281_v46  ;;  %v14369_v45 = vld [vmem:[#allocation2 + $0x1398] ss:$44 sps:$4 sm:$0xff]   ;;  %v14372_v46 = vld [vmem:[#allocation2 + $0x13a0] ss:$44 sps:$4 sm:$0xff]  }
 0x11a   :  { %5221 = vmatpush1.bf16.msra.mxu0 %v14276_v47  ;;  %5436 = vmatpush1.bf16.msra.mxu1 %v14279_v48  ;;  %v14377_v47 = vld [vmem:[#allocation2 + $0x13f4] ss:$44 sps:$4 sm:$0xff]   ;;  %v14380_v48 = vld [vmem:[#allocation2 + $0x13fc] ss:$44 sps:$4 sm:$0xff]  }
 0x11b   :  { %5222 = vmatprep.subr.bf16.mxu0 %v14284_v49  ;;  %5437 = vmatprep.subr.bf16.mxu1 %v14287_v50  ;;  %v14375_v49 = vld [vmem:[#allocation2 + $0x13f0] ss:$44 sps:$4 sm:$0xff]   ;;  %v14378_v50 = vld [vmem:[#allocation2 + $0x13f8] ss:$44 sps:$4 sm:$0xff]  }
 0x11e   :  { %5223 = vmatpush1.bf16.msra.mxu0 %v14282_v51  ;;  %5438 = vmatpush1.bf16.msra.mxu1 %v14285_v52  ;;  %v14383_v51 = vld [vmem:[#allocation2 + $0x144c] ss:$44 sps:$4 sm:$0xff]   ;;  %v14386_v52 = vld [vmem:[#allocation2 + $0x1454] ss:$44 sps:$4 sm:$0xff]  }
 0x11f   :  { %5224 = vmatprep.subr.bf16.mxu0 %v14290_v53  ;;  %5439 = vmatprep.subr.bf16.mxu1 %v14293_v54  ;;  %v14381_v53 = vld [vmem:[#allocation2 + $0x1448] ss:$44 sps:$4 sm:$0xff]   ;;  %v14384_v54 = vld [vmem:[#allocation2 + $0x1450] ss:$44 sps:$4 sm:$0xff]  }
 0x122   :  { %5225 = vmatpush1.bf16.msra.mxu0 %v14288_v55  ;;  %5440 = vmatpush1.bf16.msra.mxu1 %v14291_v56  ;;  %v14389_v55 = vld [vmem:[#allocation2 + $0x14a4] ss:$44 sps:$4 sm:$0xff]   ;;  %v14392_v56 = vld [vmem:[#allocation2 + $0x14ac] ss:$44 sps:$4 sm:$0xff]  }
 0x123   :  { %5226 = vmatprep.subr.bf16.mxu0 %v14296_v57  ;;  %5441 = vmatprep.subr.bf16.mxu1 %v14299_v58  ;;  %v14387_v57 = vld [vmem:[#allocation2 + $0x14a0] ss:$44 sps:$4 sm:$0xff]   ;;  %v14390_v58 = vld [vmem:[#allocation2 + $0x14a8] ss:$44 sps:$4 sm:$0xff]  }
 0x126   :  { %5227 = vmatpush1.bf16.msra.mxu0 %v14294_v59  ;;  %5442 = vmatpush1.bf16.msra.mxu1 %v14297_v60  ;;  %v14395_v59 = vld [vmem:[#allocation2 + $0x14fc] ss:$44 sps:$4 sm:$0xff]   ;;  %v14398_v60 = vld [vmem:[#allocation2 + $0x1504] ss:$44 sps:$4 sm:$0xff]  }
 0x127   :  { %5228 = vmatprep.subr.bf16.mxu0 %v14302_v61  ;;  %5443 = vmatprep.subr.bf16.mxu1 %v14305_v62  ;;  %v14393_v61 = vld [vmem:[#allocation2 + $0x14f8] ss:$44 sps:$4 sm:$0xff]   ;;  %v14396_v62 = vld [vmem:[#allocation2 + $0x1500] ss:$44 sps:$4 sm:$0xff]  }
 0x12a   :  { %5229 = vmatpush1.bf16.msra.mxu0 %v14300_v63  ;;  %5444 = vmatpush1.bf16.msra.mxu1 %v14303_v0  ;;  %v14401_v63 = vld [vmem:[#allocation2 + $0x1554] ss:$44 sps:$4 sm:$0xff]   ;;  %v14404_v0 = vld [vmem:[#allocation2 + $0x155c] ss:$44 sps:$4 sm:$0xff]  }
 0x12b   :  { %5230 = vmatprep.subr.bf16.mxu0 %v14308_v1  ;;  %5445 = vmatprep.subr.bf16.mxu1 %v14311_v2  ;;  %v14399_v1 = vld [vmem:[#allocation2 + $0x1550] ss:$44 sps:$4 sm:$0xff]   ;;  %v14402_v2 = vld [vmem:[#allocation2 + $0x1558] ss:$44 sps:$4 sm:$0xff]  }
 0x12e   :  { %5231 = vmatpush1.bf16.msra.mxu0 %v14306_v3  ;;  %5446 = vmatpush1.bf16.msra.mxu1 %v14309_v4  ;;  %v14407_v3 = vld [vmem:[#allocation2 + $0x15ac] ss:$44 sps:$4 sm:$0xff]   ;;  %v14410_v4 = vld [vmem:[#allocation2 + $0x15b4] ss:$44 sps:$4 sm:$0xff]  }
 0x12f   :  { %5243 = vmatprep.subr.bf16.mxu0 %v14316_v5  ;;  %5458 = vmatprep.subr.bf16.mxu1 %v14319_v6  ;;  %v14405_v5 = vld [vmem:[#allocation2 + $0x15a8] ss:$44 sps:$4 sm:$0xff]   ;;  %v14408_v6 = vld [vmem:[#allocation2 + $0x15b0] ss:$44 sps:$4 sm:$0xff]  }
 0x131   :  { %5233 = vmatmul.mubr.bf16.vlgmr.msra.gmra.mrb[0].mxu0 %v14320_v9  ;;  %5448 = vmatmul.mubr.bf16.vlgmr.msra.gmra.mrb[0].mxu1 %v14320_v9  ;;  %v14413_v9 = vld [vmem:[#allocation2 + $0x1600] ss:$44 sps:$4 sm:$0xff]  }
 0x132   :  { %5244 = vmatpush1.bf16.msra.mxu0 %v14314_v7  ;;  %5459 = vmatpush1.bf16.msra.mxu1 %v14317_v8  ;;  %v14415_v7 = vld [vmem:[#allocation2 + $0x1604] ss:$44 sps:$4 sm:$0xff]   ;;  %v14418_v8 = vld [vmem:[#allocation2 + $0x160c] ss:$44 sps:$4 sm:$0xff]  }
 0x133   :  { %5245 = vmatprep.subr.bf16.mxu0 %v14323_v10  ;;  %5460 = vmatprep.subr.bf16.mxu1 %v14326_v11  ;;  %v14419_v10 = vld [vmem:[%s16712_s0 + $0x18] ss:$36 sps:$4 sm:$0xff]   ;;  %v14416_v11 = vld [vmem:[#allocation2 + $0x1608] ss:$44 sps:$4 sm:$0xff]  }
 0x134   :  { %5275 = vmatprep.mubr.bf16.mxu0 %v14411_v12  ;;  %5490 = vmatprep.mubr.bf16.mxu1 %v14411_v12  ;;  %v14422_v12 = vld [vmem:[#allocation2 + $0x165c] ss:$44 sps:$4 sm:$0xff]  }
 0x136   :  { %5246 = vmatpush1.bf16.msra.mxu0 %v14321_v13  ;;  %5461 = vmatpush1.bf16.msra.mxu1 %v14324_v14  ;;  %v14425_v13 = vld [vmem:[#allocation2 + $0x1664] ss:$44 sps:$4 sm:$0xff]  }
 0x137   :  { %5247 = vmatprep.subr.bf16.mxu0 %v14329_v15  ;;  %5462 = vmatprep.subr.bf16.mxu1 %v14332_v16  ;;  %v14420_v14 = vld [vmem:[#allocation2 + $0x1658] ss:$44 sps:$4 sm:$0xff]   ;;  %v14423_v15 = vld [vmem:[#allocation2 + $0x1660] ss:$44 sps:$4 sm:$0xff]  }
 0x138   :  { %v14428_v16 = vld [vmem:[#allocation2 + $0x16b4] ss:$44 sps:$4 sm:$0xff]  }
 0x13a   :  { %5248 = vmatpush1.bf16.msra.mxu0 %v14327_v17  ;;  %5463 = vmatpush1.bf16.msra.mxu1 %v14330_v18  ;;  %v14431_v17 = vld [vmem:[#allocation2 + $0x16bc] ss:$44 sps:$4 sm:$0xff]   ;;  %v16293_v18 = vmov 0  }
 0x13b   :  { %5249 = vmatprep.subr.bf16.mxu0 %v14335_v19  ;;  %5464 = vmatprep.subr.bf16.mxu1 %v14338_v20  ;;  %v14426_v19 = vld [vmem:[#allocation2 + $0x16b0] ss:$44 sps:$4 sm:$0xff]   ;;  %v14429_v20 = vld [vmem:[#allocation2 + $0x16b8] ss:$44 sps:$4 sm:$0xff]  }
 0x13e   :  { %5250 = vmatpush1.bf16.msra.mxu0 %v14333_v21  ;;  %5465 = vmatpush1.bf16.msra.mxu1 %v14336_v22  ;;  %v14434_v21 = vld [vmem:[#allocation2 + $0x170c] ss:$44 sps:$4 sm:$0xff]   ;;  %v14437_v22 = vld [vmem:[#allocation2 + $0x1714] ss:$44 sps:$4 sm:$0xff]  }
 0x13f   :  { %5251 = vmatprep.subr.bf16.mxu0 %v14341_v23  ;;  %5466 = vmatprep.subr.bf16.mxu1 %v14344_v24  ;;  %v14432_v23 = vld [vmem:[#allocation2 + $0x1708] ss:$44 sps:$4 sm:$0xff]   ;;  %v14435_v24 = vld [vmem:[#allocation2 + $0x1710] ss:$44 sps:$4 sm:$0xff]  }
 0x142   :  { %5252 = vmatpush1.bf16.msra.mxu0 %v14339_v25  ;;  %5467 = vmatpush1.bf16.msra.mxu1 %v14342_v26  ;;  %v14440_v25 = vld [vmem:[#allocation2 + $0x1764] ss:$44 sps:$4 sm:$0xff]   ;;  %v14443_v26 = vld [vmem:[#allocation2 + $0x176c] ss:$44 sps:$4 sm:$0xff]  }
 0x143   :  { %5253 = vmatprep.subr.bf16.mxu0 %v14347_v27  ;;  %5468 = vmatprep.subr.bf16.mxu1 %v14350_v28  ;;  %v14438_v27 = vld [vmem:[#allocation2 + $0x1760] ss:$44 sps:$4 sm:$0xff]   ;;  %v14441_v28 = vld [vmem:[#allocation2 + $0x1768] ss:$44 sps:$4 sm:$0xff]  }
 0x146   :  { %5254 = vmatpush1.bf16.msra.mxu0 %v14345_v29  ;;  %5469 = vmatpush1.bf16.msra.mxu1 %v14348_v30  ;;  %v14446_v29 = vld [vmem:[#allocation2 + $0x17bc] ss:$44 sps:$4 sm:$0xff]   ;;  %v14449_v30 = vld [vmem:[#allocation2 + $0x17c4] ss:$44 sps:$4 sm:$0xff]  }
 0x147   :  { %5255 = vmatprep.subr.bf16.mxu0 %v14353_v31  ;;  %5470 = vmatprep.subr.bf16.mxu1 %v14356_v32  ;;  %v14444_v31 = vld [vmem:[#allocation2 + $0x17b8] ss:$44 sps:$4 sm:$0xff]   ;;  %v14447_v32 = vld [vmem:[#allocation2 + $0x17c0] ss:$44 sps:$4 sm:$0xff]  }
 0x14a   :  { %5256 = vmatpush1.bf16.msra.mxu0 %v14351_v33  ;;  %5471 = vmatpush1.bf16.msra.mxu1 %v14354_v34  ;;  %v14452_v33 = vld [vmem:[#allocation2 + $0x1814] ss:$44 sps:$4 sm:$0xff]   ;;  %v14455_v34 = vld [vmem:[#allocation2 + $0x181c] ss:$44 sps:$4 sm:$0xff]  }
 0x14b   :  { %5257 = vmatprep.subr.bf16.mxu0 %v14359_v35  ;;  %5472 = vmatprep.subr.bf16.mxu1 %v14362_v36  ;;  %v14450_v35 = vld [vmem:[#allocation2 + $0x1810] ss:$44 sps:$4 sm:$0xff]   ;;  %v14453_v36 = vld [vmem:[#allocation2 + $0x1818] ss:$44 sps:$4 sm:$0xff]  }
 0x14e   :  { %5258 = vmatpush1.bf16.msra.mxu0 %v14357_v37  ;;  %5473 = vmatpush1.bf16.msra.mxu1 %v14360_v38  ;;  %v14458_v37 = vld [vmem:[#allocation2 + $0x186c] ss:$44 sps:$4 sm:$0xff]   ;;  %v14461_v38 = vld [vmem:[#allocation2 + $0x1874] ss:$44 sps:$4 sm:$0xff]  }
 0x14f   :  { %5259 = vmatprep.subr.bf16.mxu0 %v14365_v39  ;;  %5474 = vmatprep.subr.bf16.mxu1 %v14368_v40  ;;  %v14456_v39 = vld [vmem:[#allocation2 + $0x1868] ss:$44 sps:$4 sm:$0xff]   ;;  %v14459_v40 = vld [vmem:[#allocation2 + $0x1870] ss:$44 sps:$4 sm:$0xff]  }
 0x152   :  { %5260 = vmatpush1.bf16.msra.mxu0 %v14363_v41  ;;  %5475 = vmatpush1.bf16.msra.mxu1 %v14366_v42  ;;  %v14462_v41 = vld [vmem:[%s16712_s0 + $0x20] ss:$36 sps:$4 sm:$0xff]  }
 0x153   :  { %5261 = vmatprep.subr.bf16.mxu0 %v14371_v43  ;;  %5476 = vmatprep.subr.bf16.mxu1 %v14374_v44  ;;  %v14465_v42 = vld [vmem:[#allocation2 + $0x14] ss:$44 sps:$4 sm:$0xff]   ;;  %v14468_v43 = vld [vmem:[#allocation2 + $0x1c] ss:$44 sps:$4 sm:$0xff]  }
 0x154   :  { %v14463_v44 = vld [vmem:[#allocation2 + $0x10] ss:$44 sps:$4 sm:$0xff]  }
 0x156   :  { %5262 = vmatpush1.bf16.msra.mxu0 %v14369_v45  ;;  %5477 = vmatpush1.bf16.msra.mxu1 %v14372_v46  ;;  %v14466_v45 = vld [vmem:[#allocation2 + $0x18] ss:$44 sps:$4 sm:$0xff]  }
 0x157   :  { %5263 = vmatprep.subr.bf16.mxu0 %v14377_v47  ;;  %5478 = vmatprep.subr.bf16.mxu1 %v14380_v48  ;;  %v14471_v46 = vld [vmem:[#allocation2 + $0x6c] ss:$44 sps:$4 sm:$0xff]   ;;  %v14474_v47 = vld [vmem:[#allocation2 + $0x74] ss:$44 sps:$4 sm:$0xff]  }
 0x158   :  { %v14469_v48 = vld [vmem:[#allocation2 + $0x68] ss:$44 sps:$4 sm:$0xff]  }
 0x15a   :  { %5264 = vmatpush1.bf16.msra.mxu0 %v14375_v49  ;;  %5479 = vmatpush1.bf16.msra.mxu1 %v14378_v50  ;;  %v14472_v49 = vld [vmem:[#allocation2 + $0x70] ss:$44 sps:$4 sm:$0xff]  }
 0x15b   :  { %5265 = vmatprep.subr.bf16.mxu0 %v14383_v51  ;;  %5480 = vmatprep.subr.bf16.mxu1 %v14386_v52  ;;  %v14477_v50 = vld [vmem:[#allocation2 + $0xc4] ss:$44 sps:$4 sm:$0xff]   ;;  %v14480_v51 = vld [vmem:[#allocation2 + $0xcc] ss:$44 sps:$4 sm:$0xff]  }
 0x15c   :  { %v16119_v52 = vld [vmem:[%s16712_s0 + $0x4] ss:$36 sps:$4 sm:$0xff]  }
 0x15e   :  { %5266 = vmatpush1.bf16.msra.mxu0 %v14381_v53  ;;  %5481 = vmatpush1.bf16.msra.mxu1 %v14384_v54  ;;  %v14475_v53 = vld [vmem:[#allocation2 + $0xc0] ss:$44 sps:$4 sm:$0xff]   ;;  %v14478_v54 = vld [vmem:[#allocation2 + $0xc8] ss:$44 sps:$4 sm:$0xff]  }
 0x15f   :  { %5267 = vmatprep.subr.bf16.mxu0 %v14389_v55  ;;  %5482 = vmatprep.subr.bf16.mxu1 %v14392_v56  ;;  %v14483_v55 = vld [vmem:[#allocation2 + $0x11c] ss:$44 sps:$4 sm:$0xff]   ;;  %v14486_v56 = vld [vmem:[#allocation2 + $0x124] ss:$44 sps:$4 sm:$0xff]  }
 0x162   :  { %5268 = vmatpush1.bf16.msra.mxu0 %v14387_v57  ;;  %5483 = vmatpush1.bf16.msra.mxu1 %v14390_v58  ;;  %v14481_v57 = vld [vmem:[#allocation2 + $0x118] ss:$44 sps:$4 sm:$0xff]   ;;  %v14484_v58 = vld [vmem:[#allocation2 + $0x120] ss:$44 sps:$4 sm:$0xff]  }
 0x163   :  { %5269 = vmatprep.subr.bf16.mxu0 %v14395_v59  ;;  %5484 = vmatprep.subr.bf16.mxu1 %v14398_v60  ;;  %v14489_v59 = vld [vmem:[#allocation2 + $0x174] ss:$44 sps:$4 sm:$0xff]   ;;  %v14492_v60 = vld [vmem:[#allocation2 + $0x17c] ss:$44 sps:$4 sm:$0xff]  }
 0x166   :  { %5270 = vmatpush1.bf16.msra.mxu0 %v14393_v61  ;;  %5485 = vmatpush1.bf16.msra.mxu1 %v14396_v62  ;;  %v14487_v61 = vld [vmem:[#allocation2 + $0x170] ss:$44 sps:$4 sm:$0xff]   ;;  %v14490_v62 = vld [vmem:[#allocation2 + $0x178] ss:$44 sps:$4 sm:$0xff]  }
 0x167   :  { %5271 = vmatprep.subr.bf16.mxu0 %v14401_v63  ;;  %5486 = vmatprep.subr.bf16.mxu1 %v14404_v0  ;;  %v14495_v63 = vld [vmem:[#allocation2 + $0x1cc] ss:$44 sps:$4 sm:$0xff]   ;;  %v14498_v0 = vld [vmem:[#allocation2 + $0x1d4] ss:$44 sps:$4 sm:$0xff]  }
 0x16a   :  { %5272 = vmatpush1.bf16.msra.mxu0 %v14399_v1  ;;  %5487 = vmatpush1.bf16.msra.mxu1 %v14402_v2  ;;  %v14493_v1 = vld [vmem:[#allocation2 + $0x1c8] ss:$44 sps:$4 sm:$0xff]   ;;  %v14496_v2 = vld [vmem:[#allocation2 + $0x1d0] ss:$44 sps:$4 sm:$0xff]  }
 0x16b   :  { %5273 = vmatprep.subr.bf16.mxu0 %v14407_v3  ;;  %5488 = vmatprep.subr.bf16.mxu1 %v14410_v4  ;;  %v14501_v3 = vld [vmem:[#allocation2 + $0x224] ss:$44 sps:$4 sm:$0xff]   ;;  %v14504_v4 = vld [vmem:[#allocation2 + $0x22c] ss:$44 sps:$4 sm:$0xff]  }
 0x16e   :  { %5274 = vmatpush1.bf16.msra.mxu0 %v14405_v5  ;;  %5489 = vmatpush1.bf16.msra.mxu1 %v14408_v6  ;;  %v14499_v5 = vld [vmem:[#allocation2 + $0x220] ss:$44 sps:$4 sm:$0xff]   ;;  %v14502_v6 = vld [vmem:[#allocation2 + $0x228] ss:$44 sps:$4 sm:$0xff]  }
 0x16f   :  { %5286 = vmatprep.subr.bf16.mxu0 %v14415_v7  ;;  %5501 = vmatprep.subr.bf16.mxu1 %v14418_v8  ;;  %v14507_v7 = vld [vmem:[#allocation2 + $0x27c] ss:$44 sps:$4 sm:$0xff]   ;;  %v14510_v8 = vld [vmem:[#allocation2 + $0x284] ss:$44 sps:$4 sm:$0xff]  }
 0x171   :  { %5276 = vmatmul.mubr.bf16.vlgmr.msra.gmra.mrb[0].mxu0 %v14419_v10  ;;  %5491 = vmatmul.mubr.bf16.vlgmr.msra.gmra.mrb[0].mxu1 %v14419_v10  ;;  %v14508_v10 = vld [vmem:[#allocation2 + $0x280] ss:$44 sps:$4 sm:$0xff]  }
 0x172   :  { %5287 = vmatpush1.bf16.msra.mxu0 %v14413_v9  ;;  %5502 = vmatpush1.bf16.msra.mxu1 %v14416_v11  ;;  %v14505_v9 = vld [vmem:[#allocation2 + $0x278] ss:$44 sps:$4 sm:$0xff]   ;;  %v14513_v11 = vld [vmem:[#allocation2 + $0x2d4] ss:$44 sps:$4 sm:$0xff]  }
 0x173   :  { %5288 = vmatprep.subr.bf16.mxu0 %v14422_v12  ;;  %5503 = vmatprep.subr.bf16.mxu1 %v14425_v13  ;;  %v14516_v12 = vld [vmem:[#allocation2 + $0x2dc] ss:$44 sps:$4 sm:$0xff]  }
 0x174   :  { %5318 = vmatprep.mubr.bf16.mxu0 %v16293_v18  ;;  %5533 = vmatprep.mubr.bf16.mxu1 %v16293_v18  ;;  %v14511_v13 = vld [vmem:[#allocation2 + $0x2d0] ss:$44 sps:$4 sm:$0xff]  }
 0x176   :  { %5289 = vmatpush1.bf16.msra.mxu0 %v14420_v14  ;;  %5504 = vmatpush1.bf16.msra.mxu1 %v14423_v15  ;;  %v14514_v14 = vld [vmem:[#allocation2 + $0x2d8] ss:$44 sps:$4 sm:$0xff]  }
 0x177   :  { %5290 = vmatprep.subr.bf16.mxu0 %v14428_v16  ;;  %5505 = vmatprep.subr.bf16.mxu1 %v14431_v17  ;;  %v14519_v15 = vld [vmem:[#allocation2 + $0x32c] ss:$44 sps:$4 sm:$0xff]   ;;  %v14522_v16 = vld [vmem:[#allocation2 + $0x334] ss:$44 sps:$4 sm:$0xff]  }
 0x178   :  { %v14517_v17 = vld [vmem:[#allocation2 + $0x328] ss:$44 sps:$4 sm:$0xff]  }
 0x17a   :  { %5291 = vmatpush1.bf16.msra.mxu0 %v14426_v19  ;;  %5506 = vmatpush1.bf16.msra.mxu1 %v14429_v20  ;;  %v14520_v19 = vld [vmem:[#allocation2 + $0x330] ss:$44 sps:$4 sm:$0xff]  }
 0x17b   :  { %5292 = vmatprep.subr.bf16.mxu0 %v14434_v21  ;;  %5507 = vmatprep.subr.bf16.mxu1 %v14437_v22  ;;  %v14525_v20 = vld [vmem:[#allocation2 + $0x384] ss:$44 sps:$4 sm:$0xff]   ;;  %v14528_v21 = vld [vmem:[#allocation2 + $0x38c] ss:$44 sps:$4 sm:$0xff]  }
 0x17c   :  { %v14523_v22 = vld [vmem:[#allocation2 + $0x380] ss:$44 sps:$4 sm:$0xff]  }
 0x17e   :  { %5293 = vmatpush1.bf16.msra.mxu0 %v14432_v23  ;;  %5508 = vmatpush1.bf16.msra.mxu1 %v14435_v24  ;;  %v14526_v23 = vld [vmem:[#allocation2 + $0x388] ss:$44 sps:$4 sm:$0xff]  }
 0x17f   :  { %5294 = vmatprep.subr.bf16.mxu0 %v14440_v25  ;;  %5509 = vmatprep.subr.bf16.mxu1 %v14443_v26  ;;  %v14531_v24 = vld [vmem:[#allocation2 + $0x3dc] ss:$44 sps:$4 sm:$0xff]   ;;  %v14534_v25 = vld [vmem:[#allocation2 + $0x3e4] ss:$44 sps:$4 sm:$0xff]  }
 0x180   :  { %v14529_v26 = vld [vmem:[#allocation2 + $0x3d8] ss:$44 sps:$4 sm:$0xff]  }
 0x182   :  { %5295 = vmatpush1.bf16.msra.mxu0 %v14438_v27  ;;  %5510 = vmatpush1.bf16.msra.mxu1 %v14441_v28  ;;  %v14532_v27 = vld [vmem:[#allocation2 + $0x3e0] ss:$44 sps:$4 sm:$0xff]  }
 0x183   :  { %5296 = vmatprep.subr.bf16.mxu0 %v14446_v29  ;;  %5511 = vmatprep.subr.bf16.mxu1 %v14449_v30  ;;  %v14537_v28 = vld [vmem:[#allocation2 + $0x434] ss:$44 sps:$4 sm:$0xff]   ;;  %v14540_v29 = vld [vmem:[#allocation2 + $0x43c] ss:$44 sps:$4 sm:$0xff]  }
 0x184   :  { %v14535_v30 = vld [vmem:[#allocation2 + $0x430] ss:$44 sps:$4 sm:$0xff]  }
 0x186   :  { %5297 = vmatpush1.bf16.msra.mxu0 %v14444_v31  ;;  %5512 = vmatpush1.bf16.msra.mxu1 %v14447_v32  ;;  %v14538_v31 = vld [vmem:[#allocation2 + $0x438] ss:$44 sps:$4 sm:$0xff]  }
 0x187   :  { %5298 = vmatprep.subr.bf16.mxu0 %v14452_v33  ;;  %5513 = vmatprep.subr.bf16.mxu1 %v14455_v34  ;;  %v14543_v32 = vld [vmem:[#allocation2 + $0x48c] ss:$44 sps:$4 sm:$0xff]   ;;  %v14546_v33 = vld [vmem:[#allocation2 + $0x494] ss:$44 sps:$4 sm:$0xff]  }
 0x188   :  { %v14541_v34 = vld [vmem:[#allocation2 + $0x488] ss:$44 sps:$4 sm:$0xff]  }
 0x18a   :  { %5299 = vmatpush1.bf16.msra.mxu0 %v14450_v35  ;;  %5514 = vmatpush1.bf16.msra.mxu1 %v14453_v36  ;;  %v14544_v35 = vld [vmem:[#allocation2 + $0x490] ss:$44 sps:$4 sm:$0xff]  }
 0x18b   :  { %5300 = vmatprep.subr.bf16.mxu0 %v14458_v37  ;;  %5515 = vmatprep.subr.bf16.mxu1 %v14461_v38  ;;  %v14549_v36 = vld [vmem:[#allocation2 + $0x4e4] ss:$44 sps:$4 sm:$0xff]   ;;  %v14552_v37 = vld [vmem:[#allocation2 + $0x4ec] ss:$44 sps:$4 sm:$0xff]  }
 0x18c   :  { %v14547_v38 = vld [vmem:[#allocation2 + $0x4e0] ss:$44 sps:$4 sm:$0xff]  }
 0x18e   :  { %5301 = vmatpush1.bf16.msra.mxu0 %v14456_v39  ;;  %5516 = vmatpush1.bf16.msra.mxu1 %v14459_v40  ;;  %v14550_v39 = vld [vmem:[#allocation2 + $0x4e8] ss:$44 sps:$4 sm:$0xff]  }
 0x18f   :  { %5544 = vmatprep.subr.bf16.mxu0 %v14465_v42  ;;  %5759 = vmatprep.subr.bf16.mxu1 %v14468_v43  ;;  %v14555_v40 = vld [vmem:[#allocation2 + $0x53c] ss:$44 sps:$4 sm:$0xff]   ;;  %v14553_v42 = vld [vmem:[#allocation2 + $0x538] ss:$44 sps:$4 sm:$0xff]   ;;  %v14556_v43 = vld [vmem:[#allocation2 + $0x540] ss:$44 sps:$4 sm:$0xff]  }
 0x191   :  { %5319 = vmatmul.mubr.bf16.vlgmr.msra.gmra.mrb[0].mxu0 %v14462_v41  ;;  %5534 = vmatmul.mubr.bf16.vlgmr.msra.gmra.mrb[0].mxu1 %v14462_v41  ;;  %v14558_v41 = vld [vmem:[#allocation2 + $0x544] ss:$44 sps:$4 sm:$0xff]  }
 0x192   :  { %5545 = vmatpush1.bf16.msra.mxu0 %v14463_v44  ;;  %5760 = vmatpush1.bf16.msra.mxu1 %v14466_v45  ;;  %v14561_v44 = vld [vmem:[#allocation2 + $0x594] ss:$44 sps:$4 sm:$0xff]   ;;  %v14564_v45 = vld [vmem:[#allocation2 + $0x59c] ss:$44 sps:$4 sm:$0xff]  }
 0x193   :  { %5546 = vmatprep.subr.bf16.mxu0 %v14471_v46  ;;  %5761 = vmatprep.subr.bf16.mxu1 %v14474_v47  ;;  %v14559_v46 = vld [vmem:[#allocation2 + $0x590] ss:$44 sps:$4 sm:$0xff]   ;;  %v14562_v47 = vld [vmem:[#allocation2 + $0x598] ss:$44 sps:$4 sm:$0xff]  }
 0x194   :  { %5576 = vmatprep.mubr.bf16.mxu0 %v16119_v52  ;;  %5791 = vmatprep.mubr.bf16.mxu1 %v16119_v52  ;;  %v14568_v52 = vld [vmem:[#allocation2 + $0x5f0] ss:$44 sps:$4 sm:$0xff]  }
 0x196   :  { %5547 = vmatpush1.bf16.msra.mxu0 %v14469_v48  ;;  %5762 = vmatpush1.bf16.msra.mxu1 %v14472_v49  ;;  %v14567_v48 = vld [vmem:[#allocation2 + $0x5ec] ss:$44 sps:$4 sm:$0xff]   ;;  %v14570_v49 = vld [vmem:[#allocation2 + $0x5f4] ss:$44 sps:$4 sm:$0xff]  }
 0x197   :  { %5548 = vmatprep.subr.bf16.mxu0 %v14477_v50  ;;  %5763 = vmatprep.subr.bf16.mxu1 %v14480_v51  ;;  %v16120_v50 = vld [vmem:[%s16712_s0] ss:$36 sps:$4 sm:$0xff]   ;;  %v14565_v51 = vld [vmem:[#allocation2 + $0x5e8] ss:$44 sps:$4 sm:$0xff]  }
 0x19a   :  { %5549 = vmatpush1.bf16.msra.mxu0 %v14475_v53  ;;  %5764 = vmatpush1.bf16.msra.mxu1 %v14478_v54  ;;  %v14573_v53 = vld [vmem:[#allocation2 + $0x644] ss:$44 sps:$4 sm:$0xff]   ;;  %v14576_v54 = vld [vmem:[#allocation2 + $0x64c] ss:$44 sps:$4 sm:$0xff]  }
 0x19b   :  { %5550 = vmatprep.subr.bf16.mxu0 %v14483_v55  ;;  %5765 = vmatprep.subr.bf16.mxu1 %v14486_v56  ;;  %v16121_v55 = vld [vmem:[%s16712_s0 + $0xc] ss:$36 sps:$4 sm:$0xff]  }
 0x19c   :  { %v14571_v56 = vld [vmem:[#allocation2 + $0x640] ss:$44 sps:$4 sm:$0xff]  }
 0x19e   :  { %5551 = vmatpush1.bf16.msra.mxu0 %v14481_v57  ;;  %5766 = vmatpush1.bf16.msra.mxu1 %v14484_v58  ;;  %v14574_v57 = vld [vmem:[#allocation2 + $0x648] ss:$44 sps:$4 sm:$0xff]  }
 0x19f   :  { %5552 = vmatprep.subr.bf16.mxu0 %v14489_v59  ;;  %5767 = vmatprep.subr.bf16.mxu1 %v14492_v60  ;;  %v14579_v58 = vld [vmem:[#allocation2 + $0x69c] ss:$44 sps:$4 sm:$0xff]   ;;  %v14582_v59 = vld [vmem:[#allocation2 + $0x6a4] ss:$44 sps:$4 sm:$0xff]  }
 0x1a0   :  { %v14577_v60 = vld [vmem:[#allocation2 + $0x698] ss:$44 sps:$4 sm:$0xff]  }
 0x1a2   :  { %5553 = vmatpush1.bf16.msra.mxu0 %v14487_v61  ;;  %5768 = vmatpush1.bf16.msra.mxu1 %v14490_v62  ;;  %v14580_v61 = vld [vmem:[#allocation2 + $0x6a0] ss:$44 sps:$4 sm:$0xff]  }
 0x1a3   :  { %5554 = vmatprep.subr.bf16.mxu0 %v14495_v63  ;;  %5769 = vmatprep.subr.bf16.mxu1 %v14498_v0  ;;  %v14585_v62 = vld [vmem:[#allocation2 + $0x6f4] ss:$44 sps:$4 sm:$0xff]   ;;  %v14588_v63 = vld [vmem:[#allocation2 + $0x6fc] ss:$44 sps:$4 sm:$0xff]  }
 0x1a4   :  { %v14583_v0 = vld [vmem:[#allocation2 + $0x6f0] ss:$44 sps:$4 sm:$0xff]  }
 0x1a6   :  { %5555 = vmatpush1.bf16.msra.mxu0 %v14493_v1  ;;  %5770 = vmatpush1.bf16.msra.mxu1 %v14496_v2  ;;  %v14586_v1 = vld [vmem:[#allocation2 + $0x6f8] ss:$44 sps:$4 sm:$0xff]  }
 0x1a7   :  { %5556 = vmatprep.subr.bf16.mxu0 %v14501_v3  ;;  %5771 = vmatprep.subr.bf16.mxu1 %v14504_v4  ;;  %v14591_v2 = vld [vmem:[#allocation2 + $0x74c] ss:$44 sps:$4 sm:$0xff]   ;;  %v14594_v3 = vld [vmem:[#allocation2 + $0x754] ss:$44 sps:$4 sm:$0xff]  }
 0x1a8   :  { %v14589_v4 = vld [vmem:[#allocation2 + $0x748] ss:$44 sps:$4 sm:$0xff]  }
 0x1aa   :  { %5557 = vmatpush1.bf16.msra.mxu0 %v14499_v5  ;;  %5772 = vmatpush1.bf16.msra.mxu1 %v14502_v6  ;;  %v14592_v5 = vld [vmem:[#allocation2 + $0x750] ss:$44 sps:$4 sm:$0xff]  }
 0x1ab   :  { %5558 = vmatprep.subr.bf16.mxu0 %v14507_v7  ;;  %5773 = vmatprep.subr.bf16.mxu1 %v14510_v8  ;;  %v14597_v6 = vld [vmem:[#allocation2 + $0x7a4] ss:$44 sps:$4 sm:$0xff]   ;;  %v14600_v7 = vld [vmem:[#allocation2 + $0x7ac] ss:$44 sps:$4 sm:$0xff]  }
 0x1ac   :  { %v14595_v8 = vld [vmem:[#allocation2 + $0x7a0] ss:$44 sps:$4 sm:$0xff]  }
 0x1ae   :  { %5559 = vmatpush1.bf16.msra.mxu0 %v14505_v9  ;;  %5774 = vmatpush1.bf16.msra.mxu1 %v14508_v10  ;;  %v14598_v9 = vld [vmem:[#allocation2 + $0x7a8] ss:$44 sps:$4 sm:$0xff]  }
 0x1af   :  { %5560 = vmatprep.subr.bf16.mxu0 %v14513_v11  ;;  %5775 = vmatprep.subr.bf16.mxu1 %v14516_v12  ;;  %v14603_v10 = vld [vmem:[#allocation2 + $0x7fc] ss:$44 sps:$4 sm:$0xff]   ;;  %v14606_v11 = vld [vmem:[#allocation2 + $0x804] ss:$44 sps:$4 sm:$0xff]  }
 0x1b0   :  { %v14601_v12 = vld [vmem:[#allocation2 + $0x7f8] ss:$44 sps:$4 sm:$0xff]  }
 0x1b2   :  { %5561 = vmatpush1.bf16.msra.mxu0 %v14511_v13  ;;  %5776 = vmatpush1.bf16.msra.mxu1 %v14514_v14  ;;  %v14604_v13 = vld [vmem:[#allocation2 + $0x800] ss:$44 sps:$4 sm:$0xff]  }
 0x1b3   :  { %5562 = vmatprep.subr.bf16.mxu0 %v14519_v15  ;;  %5777 = vmatprep.subr.bf16.mxu1 %v14522_v16  ;;  %v14609_v14 = vld [vmem:[#allocation2 + $0x854] ss:$44 sps:$4 sm:$0xff]   ;;  %v14612_v15 = vld [vmem:[#allocation2 + $0x85c] ss:$44 sps:$4 sm:$0xff]  }
 0x1b4   :  { %v14607_v16 = vld [vmem:[#allocation2 + $0x850] ss:$44 sps:$4 sm:$0xff]  }
 0x1b6   :  { %5563 = vmatpush1.bf16.msra.mxu0 %v14517_v17  ;;  %5778 = vmatpush1.bf16.msra.mxu1 %v14520_v19  ;;  %v14610_v17 = vld [vmem:[#allocation2 + $0x858] ss:$44 sps:$4 sm:$0xff]  }
 0x1b7   :  { %5564 = vmatprep.subr.bf16.mxu0 %v14525_v20  ;;  %5779 = vmatprep.subr.bf16.mxu1 %v14528_v21  ;;  %v14615_v19 = vld [vmem:[#allocation2 + $0x8ac] ss:$44 sps:$4 sm:$0xff]   ;;  %v14618_v20 = vld [vmem:[#allocation2 + $0x8b4] ss:$44 sps:$4 sm:$0xff]  }
 0x1b8   :  { %v14613_v21 = vld [vmem:[#allocation2 + $0x8a8] ss:$44 sps:$4 sm:$0xff]  }
 0x1ba   :  { %5565 = vmatpush1.bf16.msra.mxu0 %v14523_v22  ;;  %5780 = vmatpush1.bf16.msra.mxu1 %v14526_v23  ;;  %v14616_v22 = vld [vmem:[#allocation2 + $0x8b0] ss:$44 sps:$4 sm:$0xff]  }
 0x1bb   :  { %5566 = vmatprep.subr.bf16.mxu0 %v14531_v24  ;;  %5781 = vmatprep.subr.bf16.mxu1 %v14534_v25  ;;  %v14621_v23 = vld [vmem:[#allocation2 + $0x904] ss:$44 sps:$4 sm:$0xff]   ;;  %v14624_v24 = vld [vmem:[#allocation2 + $0x90c] ss:$44 sps:$4 sm:$0xff]  }
 0x1bc   :  { %v14619_v25 = vld [vmem:[#allocation2 + $0x900] ss:$44 sps:$4 sm:$0xff]  }
 0x1be   :  { %5567 = vmatpush1.bf16.msra.mxu0 %v14529_v26  ;;  %5782 = vmatpush1.bf16.msra.mxu1 %v14532_v27  ;;  %v14622_v26 = vld [vmem:[#allocation2 + $0x908] ss:$44 sps:$4 sm:$0xff]  }
 0x1bf   :  { %5568 = vmatprep.subr.bf16.mxu0 %v14537_v28  ;;  %5783 = vmatprep.subr.bf16.mxu1 %v14540_v29  ;;  %v14627_v27 = vld [vmem:[#allocation2 + $0x95c] ss:$44 sps:$4 sm:$0xff]   ;;  %v14630_v28 = vld [vmem:[#allocation2 + $0x964] ss:$44 sps:$4 sm:$0xff]  }
 0x1c0   :  { %v14625_v29 = vld [vmem:[#allocation2 + $0x958] ss:$44 sps:$4 sm:$0xff]  }
 0x1c2   :  { %5569 = vmatpush1.bf16.msra.mxu0 %v14535_v30  ;;  %5784 = vmatpush1.bf16.msra.mxu1 %v14538_v31  ;;  %v14628_v30 = vld [vmem:[#allocation2 + $0x960] ss:$44 sps:$4 sm:$0xff]  }
 0x1c3   :  { %5570 = vmatprep.subr.bf16.mxu0 %v14543_v32  ;;  %5785 = vmatprep.subr.bf16.mxu1 %v14546_v33  ;;  %v14633_v31 = vld [vmem:[#allocation2 + $0x9b4] ss:$44 sps:$4 sm:$0xff]   ;;  %v14636_v32 = vld [vmem:[#allocation2 + $0x9bc] ss:$44 sps:$4 sm:$0xff]  }
 0x1c4   :  { %v14631_v33 = vld [vmem:[#allocation2 + $0x9b0] ss:$44 sps:$4 sm:$0xff]  }
 0x1c6   :  { %5571 = vmatpush1.bf16.msra.mxu0 %v14541_v34  ;;  %5786 = vmatpush1.bf16.msra.mxu1 %v14544_v35  ;;  %v14634_v34 = vld [vmem:[#allocation2 + $0x9b8] ss:$44 sps:$4 sm:$0xff]  }
 0x1c7   :  { %5572 = vmatprep.subr.bf16.mxu0 %v14549_v36  ;;  %5787 = vmatprep.subr.bf16.mxu1 %v14552_v37  ;;  %v14639_v35 = vld [vmem:[#allocation2 + $0xa0c] ss:$44 sps:$4 sm:$0xff]   ;;  %v14642_v36 = vld [vmem:[#allocation2 + $0xa14] ss:$44 sps:$4 sm:$0xff]  }
 0x1c8   :  { %v14637_v37 = vld [vmem:[#allocation2 + $0xa08] ss:$44 sps:$4 sm:$0xff]  }
 0x1ca   :  { %5573 = vmatpush1.bf16.msra.mxu0 %v14547_v38  ;;  %5788 = vmatpush1.bf16.msra.mxu1 %v14550_v39  ;;  %v14640_v38 = vld [vmem:[#allocation2 + $0xa10] ss:$44 sps:$4 sm:$0xff]  }
 0x1cb   :  { %5574 = vmatprep.subr.bf16.mxu0 %v14555_v40  ;;  %5789 = vmatprep.subr.bf16.mxu1 %v14558_v41  ;;  %v14645_v39 = vld [vmem:[#allocation2 + $0xa64] ss:$44 sps:$4 sm:$0xff]   ;;  %v14648_v40 = vld [vmem:[#allocation2 + $0xa6c] ss:$44 sps:$4 sm:$0xff]  }
 0x1cc   :  { %v14643_v41 = vld [vmem:[#allocation2 + $0xa60] ss:$44 sps:$4 sm:$0xff]  }
 0x1ce   :  { %5575 = vmatpush1.bf16.msra.mxu0 %v14553_v42  ;;  %5790 = vmatpush1.bf16.msra.mxu1 %v14556_v43  ;;  %v14646_v42 = vld [vmem:[#allocation2 + $0xa68] ss:$44 sps:$4 sm:$0xff]  }
 0x1cf   :  { %5587 = vmatprep.subr.bf16.mxu0 %v14561_v44  ;;  %5802 = vmatprep.subr.bf16.mxu1 %v14564_v45  ;;  %v14651_v43 = vld [vmem:[#allocation2 + $0xabc] ss:$44 sps:$4 sm:$0xff]   ;;  %v14654_v44 = vld [vmem:[#allocation2 + $0xac4] ss:$44 sps:$4 sm:$0xff]  }
 0x1d0   :  { %v14649_v45 = vld [vmem:[#allocation2 + $0xab8] ss:$44 sps:$4 sm:$0xff]  }
 0x1d1   :  { %5577 = vmatmul.mubr.bf16.vlgmr.msra.gmra.mrb[4].mxu0 %v16120_v50  ;;  %5792 = vmatmul.mubr.bf16.vlgmr.msra.gmra.mrb[4].mxu1 %v16120_v50  ;;  %v14658_v50 = vld [vmem:[#allocation2 + $0xb18] ss:$44 sps:$4 sm:$0xff]  }
 0x1d2   :  { %5588 = vmatpush1.bf16.msra.mxu0 %v14559_v46  ;;  %5803 = vmatpush1.bf16.msra.mxu1 %v14562_v47  ;;  %v14652_v46 = vld [vmem:[#allocation2 + $0xac0] ss:$44 sps:$4 sm:$0xff]  }
 0x1d3   :  { %5589 = vmatprep.subr.bf16.mxu0 %v14567_v48  ;;  %5804 = vmatprep.subr.bf16.mxu1 %v14570_v49  ;;  %v14657_v47 = vld [vmem:[#allocation2 + $0xb14] ss:$44 sps:$4 sm:$0xff]   ;;  %v14660_v48 = vld [vmem:[#allocation2 + $0xb1c] ss:$44 sps:$4 sm:$0xff]  }
 0x1d4   :  { %5619 = vmatprep.mubr.bf16.mxu0 %v16121_v55  ;;  %5834 = vmatprep.mubr.bf16.mxu1 %v16121_v55  ;;  %v14655_v49 = vld [vmem:[#allocation2 + $0xb10] ss:$44 sps:$4 sm:$0xff]  }
 0x1d5   :  { %v14664_v55 = vld [vmem:[#allocation2 + $0xb70] ss:$44 sps:$4 sm:$0xff]  }
 0x1d6   :  { %5590 = vmatpush1.bf16.msra.mxu0 %v14565_v51  ;;  %5805 = vmatpush1.bf16.msra.mxu1 %v14568_v52  ;;  %v14663_v51 = vld [vmem:[#allocation2 + $0xb6c] ss:$44 sps:$4 sm:$0xff]   ;;  %v14666_v52 = vld [vmem:[#allocation2 + $0xb74] ss:$44 sps:$4 sm:$0xff]  }
 0x1d7   :  { %5591 = vmatprep.subr.bf16.mxu0 %v14573_v53  ;;  %5806 = vmatprep.subr.bf16.mxu1 %v14576_v54  ;;  %v16122_v53 = vld [vmem:[%s16712_s0 + $0x8] ss:$36 sps:$4 sm:$0xff]  }
 0x1d8   :  { %v14661_v54 = vld [vmem:[#allocation2 + $0xb68] ss:$44 sps:$4 sm:$0xff]  }
 0x1da   :  { %5592 = vmatpush1.bf16.msra.mxu0 %v14571_v56  ;;  %5807 = vmatpush1.bf16.msra.mxu1 %v14574_v57  ;;  %v14669_v56 = vld [vmem:[#allocation2 + $0xbc4] ss:$44 sps:$4 sm:$0xff]   ;;  %v14672_v57 = vld [vmem:[#allocation2 + $0xbcc] ss:$44 sps:$4 sm:$0xff]  }
 0x1db   :  { %5593 = vmatprep.subr.bf16.mxu0 %v14579_v58  ;;  %5808 = vmatprep.subr.bf16.mxu1 %v14582_v59  ;;  %v16123_v58 = vld [vmem:[%s16712_s0 + $0x14] ss:$36 sps:$4 sm:$0xff]   ;;  %v14667_v59 = vld [vmem:[#allocation2 + $0xbc0] ss:$44 sps:$4 sm:$0xff]  }
 0x1de   :  { %5594 = vmatpush1.bf16.msra.mxu0 %v14577_v60  ;;  %5809 = vmatpush1.bf16.msra.mxu1 %v14580_v61  ;;  %v14670_v60 = vld [vmem:[#allocation2 + $0xbc8] ss:$44 sps:$4 sm:$0xff]  }
 0x1df   :  { %5595 = vmatprep.subr.bf16.mxu0 %v14585_v62  ;;  %5810 = vmatprep.subr.bf16.mxu1 %v14588_v63  ;;  %v14675_v61 = vld [vmem:[#allocation2 + $0xc1c] ss:$44 sps:$4 sm:$0xff]   ;;  %v14678_v62 = vld [vmem:[#allocation2 + $0xc24] ss:$44 sps:$4 sm:$0xff]  }
 0x1e0   :  { %v14673_v63 = vld [vmem:[#allocation2 + $0xc18] ss:$44 sps:$4 sm:$0xff]  }
 0x1e2   :  { %5596 = vmatpush1.bf16.msra.mxu0 %v14583_v0  ;;  %5811 = vmatpush1.bf16.msra.mxu1 %v14586_v1  ;;  %v14676_v0 = vld [vmem:[#allocation2 + $0xc20] ss:$44 sps:$4 sm:$0xff]  }
 0x1e3   :  { %5597 = vmatprep.subr.bf16.mxu0 %v14591_v2  ;;  %5812 = vmatprep.subr.bf16.mxu1 %v14594_v3  ;;  %v14681_v1 = vld [vmem:[#allocation2 + $0xc74] ss:$44 sps:$4 sm:$0xff]   ;;  %v14684_v2 = vld [vmem:[#allocation2 + $0xc7c] ss:$44 sps:$4 sm:$0xff]  }
 0x1e4   :  { %v14679_v3 = vld [vmem:[#allocation2 + $0xc70] ss:$44 sps:$4 sm:$0xff]  }
 0x1e6   :  { %5598 = vmatpush1.bf16.msra.mxu0 %v14589_v4  ;;  %5813 = vmatpush1.bf16.msra.mxu1 %v14592_v5  ;;  %v14682_v4 = vld [vmem:[#allocation2 + $0xc78] ss:$44 sps:$4 sm:$0xff]  }
 0x1e7   :  { %5599 = vmatprep.subr.bf16.mxu0 %v14597_v6  ;;  %5814 = vmatprep.subr.bf16.mxu1 %v14600_v7  ;;  %v14687_v5 = vld [vmem:[#allocation2 + $0xccc] ss:$44 sps:$4 sm:$0xff]   ;;  %v14690_v6 = vld [vmem:[#allocation2 + $0xcd4] ss:$44 sps:$4 sm:$0xff]  }
 0x1e8   :  { %v14685_v7 = vld [vmem:[#allocation2 + $0xcc8] ss:$44 sps:$4 sm:$0xff]  }
 0x1ea   :  { %5600 = vmatpush1.bf16.msra.mxu0 %v14595_v8  ;;  %5815 = vmatpush1.bf16.msra.mxu1 %v14598_v9  ;;  %v14688_v8 = vld [vmem:[#allocation2 + $0xcd0] ss:$44 sps:$4 sm:$0xff]  }
 0x1eb   :  { %5601 = vmatprep.subr.bf16.mxu0 %v14603_v10  ;;  %5816 = vmatprep.subr.bf16.mxu1 %v14606_v11  ;;  %v14693_v9 = vld [vmem:[#allocation2 + $0xd24] ss:$44 sps:$4 sm:$0xff]   ;;  %v14696_v10 = vld [vmem:[#allocation2 + $0xd2c] ss:$44 sps:$4 sm:$0xff]  }
 0x1ec   :  { %v14691_v11 = vld [vmem:[#allocation2 + $0xd20] ss:$44 sps:$4 sm:$0xff]  }
 0x1ee   :  { %5602 = vmatpush1.bf16.msra.mxu0 %v14601_v12  ;;  %5817 = vmatpush1.bf16.msra.mxu1 %v14604_v13  ;;  %v14694_v12 = vld [vmem:[#allocation2 + $0xd28] ss:$44 sps:$4 sm:$0xff]  }
 0x1ef   :  { %5603 = vmatprep.subr.bf16.mxu0 %v14609_v14  ;;  %5818 = vmatprep.subr.bf16.mxu1 %v14612_v15  ;;  %v14699_v13 = vld [vmem:[#allocation2 + $0xd7c] ss:$44 sps:$4 sm:$0xff]   ;;  %v14702_v14 = vld [vmem:[#allocation2 + $0xd84] ss:$44 sps:$4 sm:$0xff]  }
 0x1f0   :  { %v14697_v15 = vld [vmem:[#allocation2 + $0xd78] ss:$44 sps:$4 sm:$0xff]  }
 0x1f2   :  { %5604 = vmatpush1.bf16.msra.mxu0 %v14607_v16  ;;  %5819 = vmatpush1.bf16.msra.mxu1 %v14610_v17  ;;  %v14700_v16 = vld [vmem:[#allocation2 + $0xd80] ss:$44 sps:$4 sm:$0xff]  }
 0x1f3   :  { %5605 = vmatprep.subr.bf16.mxu0 %v14615_v19  ;;  %5820 = vmatprep.subr.bf16.mxu1 %v14618_v20  ;;  %v14705_v17 = vld [vmem:[#allocation2 + $0xdd4] ss:$44 sps:$4 sm:$0xff]   ;;  %v14708_v19 = vld [vmem:[#allocation2 + $0xddc] ss:$44 sps:$4 sm:$0xff]  }
 0x1f4   :  { %v14703_v20 = vld [vmem:[#allocation2 + $0xdd0] ss:$44 sps:$4 sm:$0xff]  }
 0x1f6   :  { %5606 = vmatpush1.bf16.msra.mxu0 %v14613_v21  ;;  %5821 = vmatpush1.bf16.msra.mxu1 %v14616_v22  ;;  %v14706_v21 = vld [vmem:[#allocation2 + $0xdd8] ss:$44 sps:$4 sm:$0xff]  }
 0x1f7   :  { %5607 = vmatprep.subr.bf16.mxu0 %v14621_v23  ;;  %5822 = vmatprep.subr.bf16.mxu1 %v14624_v24  ;;  %v14711_v22 = vld [vmem:[#allocation2 + $0xe2c] ss:$44 sps:$4 sm:$0xff]   ;;  %v14714_v23 = vld [vmem:[#allocation2 + $0xe34] ss:$44 sps:$4 sm:$0xff]  }
 0x1f8   :  { %v14709_v24 = vld [vmem:[#allocation2 + $0xe28] ss:$44 sps:$4 sm:$0xff]  }
 0x1fa   :  { %5608 = vmatpush1.bf16.msra.mxu0 %v14619_v25  ;;  %5823 = vmatpush1.bf16.msra.mxu1 %v14622_v26  ;;  %v14712_v25 = vld [vmem:[#allocation2 + $0xe30] ss:$44 sps:$4 sm:$0xff]  }
 0x1fb   :  { %5609 = vmatprep.subr.bf16.mxu0 %v14627_v27  ;;  %5824 = vmatprep.subr.bf16.mxu1 %v14630_v28  ;;  %v14717_v26 = vld [vmem:[#allocation2 + $0xe84] ss:$44 sps:$4 sm:$0xff]   ;;  %v14720_v27 = vld [vmem:[#allocation2 + $0xe8c] ss:$44 sps:$4 sm:$0xff]  }
 0x1fc   :  { %v14715_v28 = vld [vmem:[#allocation2 + $0xe80] ss:$44 sps:$4 sm:$0xff]  }
 0x1fe   :  { %5610 = vmatpush1.bf16.msra.mxu0 %v14625_v29  ;;  %5825 = vmatpush1.bf16.msra.mxu1 %v14628_v30  ;;  %v14718_v29 = vld [vmem:[#allocation2 + $0xe88] ss:$44 sps:$4 sm:$0xff]  }
 0x1ff   :  { %5611 = vmatprep.subr.bf16.mxu0 %v14633_v31  ;;  %5826 = vmatprep.subr.bf16.mxu1 %v14636_v32  ;;  %v14723_v30 = vld [vmem:[#allocation2 + $0xedc] ss:$44 sps:$4 sm:$0xff]   ;;  %v14726_v31 = vld [vmem:[#allocation2 + $0xee4] ss:$44 sps:$4 sm:$0xff]  }
 0x200   :  { %v14721_v32 = vld [vmem:[#allocation2 + $0xed8] ss:$44 sps:$4 sm:$0xff]  }
 0x202   :  { %5612 = vmatpush1.bf16.msra.mxu0 %v14631_v33  ;;  %5827 = vmatpush1.bf16.msra.mxu1 %v14634_v34  ;;  %v14724_v33 = vld [vmem:[#allocation2 + $0xee0] ss:$44 sps:$4 sm:$0xff]  }
 0x203   :  { %5613 = vmatprep.subr.bf16.mxu0 %v14639_v35  ;;  %5828 = vmatprep.subr.bf16.mxu1 %v14642_v36  ;;  %v14729_v34 = vld [vmem:[#allocation2 + $0xf34] ss:$44 sps:$4 sm:$0xff]   ;;  %v14732_v35 = vld [vmem:[#allocation2 + $0xf3c] ss:$44 sps:$4 sm:$0xff]  }
 0x204   :  { %v14727_v36 = vld [vmem:[#allocation2 + $0xf30] ss:$44 sps:$4 sm:$0xff]  }
 0x206   :  { %5614 = vmatpush1.bf16.msra.mxu0 %v14637_v37  ;;  %5829 = vmatpush1.bf16.msra.mxu1 %v14640_v38  ;;  %v14730_v37 = vld [vmem:[#allocation2 + $0xf38] ss:$44 sps:$4 sm:$0xff]  }
 0x207   :  { %5615 = vmatprep.subr.bf16.mxu0 %v14645_v39  ;;  %5830 = vmatprep.subr.bf16.mxu1 %v14648_v40  ;;  %v14735_v38 = vld [vmem:[#allocation2 + $0xf8c] ss:$44 sps:$4 sm:$0xff]   ;;  %v14738_v39 = vld [vmem:[#allocation2 + $0xf94] ss:$44 sps:$4 sm:$0xff]  }
 0x208   :  { %v14733_v40 = vld [vmem:[#allocation2 + $0xf88] ss:$44 sps:$4 sm:$0xff]  }
 0x20a   :  { %5616 = vmatpush1.bf16.msra.mxu0 %v14643_v41  ;;  %5831 = vmatpush1.bf16.msra.mxu1 %v14646_v42  ;;  %v14736_v41 = vld [vmem:[#allocation2 + $0xf90] ss:$44 sps:$4 sm:$0xff]  }
 0x20b   :  { %5617 = vmatprep.subr.bf16.mxu0 %v14651_v43  ;;  %5832 = vmatprep.subr.bf16.mxu1 %v14654_v44  ;;  %v14741_v42 = vld [vmem:[#allocation2 + $0xfe4] ss:$44 sps:$4 sm:$0xff]   ;;  %v14744_v43 = vld [vmem:[#allocation2 + $0xfec] ss:$44 sps:$4 sm:$0xff]  }
 0x20c   :  { %v14739_v44 = vld [vmem:[#allocation2 + $0xfe0] ss:$44 sps:$4 sm:$0xff]  }
 0x20e   :  { %5618 = vmatpush1.bf16.msra.mxu0 %v14649_v45  ;;  %5833 = vmatpush1.bf16.msra.mxu1 %v14652_v46  ;;  %v14742_v45 = vld [vmem:[#allocation2 + $0xfe8] ss:$44 sps:$4 sm:$0xff]  }
 0x20f   :  { %5630 = vmatprep.subr.bf16.mxu0 %v14657_v47  ;;  %5845 = vmatprep.subr.bf16.mxu1 %v14660_v48  ;;  %v14747_v46 = vld [vmem:[#allocation2 + $0x103c] ss:$44 sps:$4 sm:$0xff]   ;;  %v14750_v47 = vld [vmem:[#allocation2 + $0x1044] ss:$44 sps:$4 sm:$0xff]  }
 0x210   :  { %v14745_v48 = vld [vmem:[#allocation2 + $0x1038] ss:$44 sps:$4 sm:$0xff]  }
 0x211   :  { %5620 = vmatmul.mubr.bf16.vlgmr.msra.gmra.mrb[4].mxu0 %v16122_v53  ;;  %5835 = vmatmul.mubr.bf16.vlgmr.msra.gmra.mrb[4].mxu1 %v16122_v53  ;;  %v14754_v53 = vld [vmem:[#allocation2 + $0x1098] ss:$44 sps:$4 sm:$0xff]  }
 0x212   :  { %5631 = vmatpush1.bf16.msra.mxu0 %v14655_v49  ;;  %5846 = vmatpush1.bf16.msra.mxu1 %v14658_v50  ;;  %v14748_v49 = vld [vmem:[#allocation2 + $0x1040] ss:$44 sps:$4 sm:$0xff]  }
 0x213   :  { %5632 = vmatprep.subr.bf16.mxu0 %v14663_v51  ;;  %5847 = vmatprep.subr.bf16.mxu1 %v14666_v52  ;;  %v14753_v50 = vld [vmem:[#allocation2 + $0x1094] ss:$44 sps:$4 sm:$0xff]   ;;  %v14756_v51 = vld [vmem:[#allocation2 + $0x109c] ss:$44 sps:$4 sm:$0xff]  }
 0x214   :  { %5662 = vmatprep.mubr.bf16.mxu0 %v16123_v58  ;;  %5877 = vmatprep.mubr.bf16.mxu1 %v16123_v58  ;;  %v14751_v52 = vld [vmem:[#allocation2 + $0x1090] ss:$44 sps:$4 sm:$0xff]  }
 0x215   :  { %v14760_v58 = vld [vmem:[#allocation2 + $0x10f0] ss:$44 sps:$4 sm:$0xff]  }
 0x216   :  { %5633 = vmatpush1.bf16.msra.mxu0 %v14661_v54  ;;  %5848 = vmatpush1.bf16.msra.mxu1 %v14664_v55  ;;  %v14759_v54 = vld [vmem:[#allocation2 + $0x10ec] ss:$44 sps:$4 sm:$0xff]   ;;  %v14762_v55 = vld [vmem:[#allocation2 + $0x10f4] ss:$44 sps:$4 sm:$0xff]  }
 0x217   :  { %5634 = vmatprep.subr.bf16.mxu0 %v14669_v56  ;;  %5849 = vmatprep.subr.bf16.mxu1 %v14672_v57  ;;  %v14757_v56 = vld [vmem:[#allocation2 + $0x10e8] ss:$44 sps:$4 sm:$0xff]  }
 0x218   :  { %v16124_v57 = vld [vmem:[%s16712_s0 + $0x10] ss:$36 sps:$4 sm:$0xff]  }
 0x21a   :  { %5635 = vmatpush1.bf16.msra.mxu0 %v14667_v59  ;;  %5850 = vmatpush1.bf16.msra.mxu1 %v14670_v60  ;;  %v14765_v59 = vld [vmem:[#allocation2 + $0x1144] ss:$44 sps:$4 sm:$0xff]   ;;  %v14768_v60 = vld [vmem:[#allocation2 + $0x114c] ss:$44 sps:$4 sm:$0xff]  }
 0x21b   :  { %5636 = vmatprep.subr.bf16.mxu0 %v14675_v61  ;;  %5851 = vmatprep.subr.bf16.mxu1 %v14678_v62  ;;  %v14763_v61 = vld [vmem:[#allocation2 + $0x1140] ss:$44 sps:$4 sm:$0xff]  }
 0x21c   :  { %v16125_v62 = vld [vmem:[%s16712_s0 + $0x1c] ss:$36 sps:$4 sm:$0xff]  }
 0x21e   :  { %5637 = vmatpush1.bf16.msra.mxu0 %v14673_v63  ;;  %5852 = vmatpush1.bf16.msra.mxu1 %v14676_v0  ;;  %v981_v63 = vlaneseq  ;;  %v14766_v0 = vld [vmem:[#allocation2 + $0x1148] ss:$44 sps:$4 sm:$0xff]  }
 0x21f   :  { %5638 = vmatprep.subr.bf16.mxu0 %v14681_v1  ;;  %5853 = vmatprep.subr.bf16.mxu1 %v14684_v2  ;;  %v14771_v1 = vld [vmem:[#allocation2 + $0x119c] ss:$44 sps:$4 sm:$0xff]   ;;  %v14774_v2 = vld [vmem:[#allocation2 + $0x11a4] ss:$44 sps:$4 sm:$0xff]  }
 0x222   :  { %5639 = vmatpush1.bf16.msra.mxu0 %v14679_v3  ;;  %5854 = vmatpush1.bf16.msra.mxu1 %v14682_v4  ;;  %v14769_v3 = vld [vmem:[#allocation2 + $0x1198] ss:$44 sps:$4 sm:$0xff]   ;;  %v16458_v4 = vshrl.u32 %v981_v63, 7 }
 0x223   :  { %5640 = vmatprep.subr.bf16.mxu0 %v14687_v5  ;;  %5855 = vmatprep.subr.bf16.mxu1 %v14690_v6  ;;  %v14772_v5 = vld [vmem:[#allocation2 + $0x11a0] ss:$44 sps:$4 sm:$0xff]   ;;  %v14802_v63 = vld [vmem:[#allocation2 + $0x1358] ss:$44 sps:$4 sm:$0xff]  }
 0x224   :  { %v14777_v6 = vld [vmem:[#allocation2 + $0x11f4] ss:$44 sps:$4 sm:$0xff]  }
 0x226   :  { %5641 = vmatpush1.bf16.msra.mxu0 %v14685_v7  ;;  %5856 = vmatpush1.bf16.msra.mxu1 %v14688_v8  ;;  %v14780_v7 = vld [vmem:[#allocation2 + $0x11fc] ss:$44 sps:$4 sm:$0xff]  }
 0x227   :  { %5642 = vmatprep.subr.bf16.mxu0 %v14693_v9  ;;  %5857 = vmatprep.subr.bf16.mxu1 %v14696_v10  ;;  %v14775_v8 = vld [vmem:[#allocation2 + $0x11f0] ss:$44 sps:$4 sm:$0xff]   ;;  %v14778_v9 = vld [vmem:[#allocation2 + $0x11f8] ss:$44 sps:$4 sm:$0xff]   ;;  %v16461_v10 = vsub.s32 0, %v16458_v4 }
 0x22a   :  { %5643 = vmatpush1.bf16.msra.mxu0 %v14691_v11  ;;  %5858 = vmatpush1.bf16.msra.mxu1 %v14694_v12  ;;  %v16464_v11 = vsub.s32 2, %v16458_v4  ;;  %v977_v12 = vld [vmem:[#allocation4] sm:$0xff] }
 0x22b   :  { %5644 = vmatprep.subr.bf16.mxu0 %v14699_v13  ;;  %5859 = vmatprep.subr.bf16.mxu1 %v14702_v14  ;;  %v16467_v13 = vsub.s32 1, %v16458_v4  ;;  %v995_v14 = vsub.s32 3, %v16458_v4 }
 0x22e   :  { %5645 = vmatpush1.bf16.msra.mxu0 %v14697_v15  ;;  %5860 = vmatpush1.bf16.msra.mxu1 %v14700_v16  ;;  %v14783_v15 = vld [vmem:[#allocation2 + $0x124c] ss:$44 sps:$4 sm:$0xff]   ;;  %v14786_v16 = vld [vmem:[#allocation2 + $0x1254] ss:$44 sps:$4 sm:$0xff]  }
 0x22f   :  { %5646 = vmatprep.subr.bf16.mxu0 %v14705_v17  ;;  %5861 = vmatprep.subr.bf16.mxu1 %v14708_v19  ;;  %v14781_v17 = vld [vmem:[#allocation2 + $0x1248] ss:$44 sps:$4 sm:$0xff]   ;;  %v984_v19 = vrot.slane %v977_v12, %v16461_v10 }
 0x232   :  { %5647 = vmatpush1.bf16.msra.mxu0 %v14703_v20  ;;  %5862 = vmatpush1.bf16.msra.mxu1 %v14706_v21  ;;  %v992_v20 = vrot.slane %v977_v12, %v16464_v11  ;;  %v988_v21 = vrot.slane %v977_v12, %v16467_v13 }
 0x233   :  { %5648 = vmatprep.subr.bf16.mxu0 %v14711_v22  ;;  %5863 = vmatprep.subr.bf16.mxu1 %v14714_v23  ;;  %v996_v22 = vrot.slane %v977_v12, %v995_v14  ;;  %v14784_v23 = vld [vmem:[#allocation2 + $0x1250] ss:$44 sps:$4 sm:$0xff]  }
 0x234   :  { %v14822_v12 = vld [vmem:[#allocation2 + $0x1464] ss:$44 sps:$4 sm:$0xff]  }
 0x236   :  { %5649 = vmatpush1.bf16.msra.mxu0 %v14709_v24  ;;  %5864 = vmatpush1.bf16.msra.mxu1 %v14712_v25  ;;  %v14789_v24 = vld [vmem:[#allocation2 + $0x12a4] ss:$44 sps:$4 sm:$0xff]   ;;  %v14792_v25 = vld [vmem:[#allocation2 + $0x12ac] ss:$44 sps:$4 sm:$0xff]  }
 0x237   :  { %5650 = vmatprep.subr.bf16.mxu0 %v14717_v26  ;;  %5865 = vmatprep.subr.bf16.mxu1 %v14720_v27 }
 0x23a   :  { %5651 = vmatpush1.bf16.msra.mxu0 %v14715_v28  ;;  %5866 = vmatpush1.bf16.msra.mxu1 %v14718_v29 }
 0x23b   :  { %5652 = vmatprep.subr.bf16.mxu0 %v14723_v30  ;;  %5867 = vmatprep.subr.bf16.mxu1 %v14726_v31 }
 0x23e   :  { %5653 = vmatpush1.bf16.msra.mxu0 %v14721_v32  ;;  %5868 = vmatpush1.bf16.msra.mxu1 %v14724_v33 }
 0x23f   :  { %5654 = vmatprep.subr.bf16.mxu0 %v14729_v34  ;;  %5869 = vmatprep.subr.bf16.mxu1 %v14732_v35 }
 0x242   :  { %5655 = vmatpush1.bf16.msra.mxu0 %v14727_v36  ;;  %5870 = vmatpush1.bf16.msra.mxu1 %v14730_v37  ;;  %v14787_v36 = vld [vmem:[#allocation2 + $0x12a0] ss:$44 sps:$4 sm:$0xff]   ;;  %v14790_v37 = vld [vmem:[#allocation2 + $0x12a8] ss:$44 sps:$4 sm:$0xff]  }
 0x243   :  { %5656 = vmatprep.subr.bf16.mxu0 %v14735_v38  ;;  %5871 = vmatprep.subr.bf16.mxu1 %v14738_v39 }
 0x246   :  { %5657 = vmatpush1.bf16.msra.mxu0 %v14733_v40  ;;  %5872 = vmatpush1.bf16.msra.mxu1 %v14736_v41 }
 0x247   :  { %5658 = vmatprep.subr.bf16.mxu0 %v14741_v42  ;;  %5873 = vmatprep.subr.bf16.mxu1 %v14744_v43  ;;  %v14795_v42 = vld [vmem:[#allocation2 + $0x12fc] ss:$44 sps:$4 sm:$0xff]   ;;  %v14798_v43 = vld [vmem:[#allocation2 + $0x1304] ss:$44 sps:$4 sm:$0xff]  }
 0x24a   :  { %5659 = vmatpush1.bf16.msra.mxu0 %v14739_v44  ;;  %5874 = vmatpush1.bf16.msra.mxu1 %v14742_v45 }
 0x24b   :  { %5660 = vmatprep.subr.bf16.mxu0 %v14747_v46  ;;  %5875 = vmatprep.subr.bf16.mxu1 %v14750_v47  ;;  %v14793_v47 = vld [vmem:[#allocation2 + $0x12f8] ss:$44 sps:$4 sm:$0xff]  }
 0x24e   :  { %5661 = vmatpush1.bf16.msra.mxu0 %v14745_v48  ;;  %5876 = vmatpush1.bf16.msra.mxu1 %v14748_v49  ;;  %v14796_v48 = vld [vmem:[#allocation2 + $0x1300] ss:$44 sps:$4 sm:$0xff]  }
 0x24f   :  { %5673 = vmatprep.subr.bf16.mxu0 %v14753_v50  ;;  %5888 = vmatprep.subr.bf16.mxu1 %v14756_v51 }
 0x251   :  { %5663 = vmatmul.mubr.bf16.vlgmr.msra.gmra.mrb[4].mxu0 %v16124_v57  ;;  %5878 = vmatmul.mubr.bf16.vlgmr.msra.gmra.mrb[4].mxu1 %v16124_v57 }
 0x252   :  { %5674 = vmatpush1.bf16.msra.mxu0 %v14751_v52  ;;  %5889 = vmatpush1.bf16.msra.mxu1 %v14754_v53 }
 0x253   :  { %5675 = vmatprep.subr.bf16.mxu0 %v14759_v54  ;;  %5890 = vmatprep.subr.bf16.mxu1 %v14762_v55 }
 0x254   :  { %5705 = vmatprep.mubr.bf16.mxu0 %v16125_v62  ;;  %5920 = vmatprep.mubr.bf16.mxu1 %v16125_v62  ;;  %v14799_v62 = vld [vmem:[#allocation2 + $0x1350] ss:$44 sps:$4 sm:$0xff]  }
 0x256   :  { %5676 = vmatpush1.bf16.msra.mxu0 %v14757_v56  ;;  %5891 = vmatpush1.bf16.msra.mxu1 %v14760_v58  ;;  %v14801_v56 = vld [vmem:[#allocation2 + $0x1354] ss:$44 sps:$4 sm:$0xff]  }
 0x257   :  { %5677 = vmatprep.subr.bf16.mxu0 %v14765_v59  ;;  %5892 = vmatprep.subr.bf16.mxu1 %v14768_v60  ;;  %v14804_v59 = vld [vmem:[#allocation2 + $0x135c] ss:$44 sps:$4 sm:$0xff]  }
 0x25a   :  { %5678 = vmatpush1.bf16.msra.mxu0 %v14763_v61  ;;  %5893 = vmatpush1.bf16.msra.mxu1 %v14766_v0  ;;  %v14807_v0 = vld [vmem:[#allocation2 + $0x13ac] ss:$44 sps:$4 sm:$0xff]  }
 0x25b   :  { %5679 = vmatprep.subr.bf16.mxu0 %v14771_v1  ;;  %5894 = vmatprep.subr.bf16.mxu1 %v14774_v2  ;;  %v14810_v1 = vld [vmem:[#allocation2 + $0x13b4] ss:$44 sps:$4 sm:$0xff]  }
 0x25c   :  { %v14805_v2 = vld [vmem:[#allocation2 + $0x13a8] ss:$44 sps:$4 sm:$0xff]  }
 0x25e   :  { %5680 = vmatpush1.bf16.msra.mxu0 %v14769_v3  ;;  %5895 = vmatpush1.bf16.msra.mxu1 %v14772_v5  ;;  %v14808_v3 = vld [vmem:[#allocation2 + $0x13b0] ss:$44 sps:$4 sm:$0xff]  }
 0x25f   :  { %5681 = vmatprep.subr.bf16.mxu0 %v14777_v6  ;;  %5896 = vmatprep.subr.bf16.mxu1 %v14780_v7  ;;  %v14813_v5 = vld [vmem:[#allocation2 + $0x1404] ss:$44 sps:$4 sm:$0xff]   ;;  %v14816_v6 = vld [vmem:[#allocation2 + $0x140c] ss:$44 sps:$4 sm:$0xff]  }
 0x260   :  { %v14811_v7 = vld [vmem:[#allocation2 + $0x1400] ss:$44 sps:$4 sm:$0xff]  }
 0x262   :  { %5682 = vmatpush1.bf16.msra.mxu0 %v14775_v8  ;;  %5897 = vmatpush1.bf16.msra.mxu1 %v14778_v9  ;;  %v14814_v8 = vld [vmem:[#allocation2 + $0x1408] ss:$44 sps:$4 sm:$0xff]  }
 0x263   :  { %5683 = vmatprep.subr.bf16.mxu0 %v14783_v15  ;;  %5898 = vmatprep.subr.bf16.mxu1 %v14786_v16  ;;  %v14819_v9 = vld [vmem:[#allocation2 + $0x145c] ss:$44 sps:$4 sm:$0xff]   ;;  %v14817_v15 = vld [vmem:[#allocation2 + $0x1458] ss:$44 sps:$4 sm:$0xff]   ;;  %v14820_v16 = vld [vmem:[#allocation2 + $0x1460] ss:$44 sps:$4 sm:$0xff]  }
 0x264   :  { %v5320_v26 = vpop.f32.mrb[0].mxu0  ;;  %v5535_v27 = vpop.f32.mrb[0].mxu1 }
 0x265   :  { %v13831_v28 = vadd.f32 %v5320_v26, %v984_v19  ;;  %v13835_v29 = vadd.f32 %v5535_v27, %v992_v20  ;;  %v5322_v30 = vpop.f32.mrb[1].mxu0  ;;  %v5537_v31 = vpop.f32.mrb[1].mxu1  ;;  %v14837_v26 = vld [vmem:[#allocation2 + $0x1564] ss:$44 sps:$4 sm:$0xff]   ;;  %v14840_v27 = vld [vmem:[#allocation2 + $0x156c] ss:$44 sps:$4 sm:$0xff]  }
 0x266   :  { %v13832_v32 = vadd.f32 %v5322_v30, %v988_v21  ;;  %v13836_v33 = vadd.f32 %v5537_v31, %v996_v22  ;;  %v5324_v34 = vpop.f32.mrb[2].mxu0  ;;  %v5539_v35 = vpop.f32.mrb[2].mxu1  ;;  %5684 = vmatpush1.bf16.msra.mxu0 %v14781_v17  ;;  %5899 = vmatpush1.bf16.msra.mxu1 %v14784_v23  ;;  %v14825_v17 = vld [vmem:[#allocation2 + $0x14b4] ss:$44 sps:$4 sm:$0xff]   ;;  %v14843_v30 = vld [vmem:[#allocation2 + $0x15bc] ss:$44 sps:$4 sm:$0xff]  }
 0x267   :  { %v13833_v38 = vadd.f32 %v5324_v34, %v984_v19  ;;  %v13837_v39 = vadd.f32 %v5539_v35, %v992_v20  ;;  %v5326_v40 = vpop.f32.mrb[3].mxu0  ;;  %v5541_v41 = vpop.f32.mrb[3].mxu1  ;;  %5685 = vmatprep.subr.bf16.mxu0 %v14789_v24  ;;  %5900 = vmatprep.subr.bf16.mxu1 %v14792_v25  ;;  %v6394_v44 = vmax.f32 %v13831_v28, 0.0  ;;  %v6396_v49 = vmax.f32 %v13835_v29, 0.0  ;;  %v14828_v19 = vld [vmem:[#allocation2 + $0x14bc] ss:$44 sps:$4 sm:$0xff]  }
 0x268   :  { %v13834_v45 = vadd.f32 %v5326_v40, %v988_v21  ;;  %v13838_v46 = vadd.f32 %v5541_v41, %v996_v22  ;;  %v6395_v52 = vmax.f32 %v13832_v32, 0.0  ;;  %v6397_v53 = vmax.f32 %v13836_v33, 0.0  ;;  %v14823_v20 = vld [vmem:[#allocation2 + $0x14b0] ss:$44 sps:$4 sm:$0xff]   ;;  %v14826_v21 = vld [vmem:[#allocation2 + $0x14b8] ss:$44 sps:$4 sm:$0xff]  }
 0x269   :  { %v6405_v50 = vmax.f32 %v13833_v38, 0.0  ;;  %v6407_v51 = vmax.f32 %v13837_v39, 0.0  ;;  %v14831_v22 = vld [vmem:[#allocation2 + $0x150c] ss:$44 sps:$4 sm:$0xff]   ;;  %v14834_v23 = vld [vmem:[#allocation2 + $0x1514] ss:$44 sps:$4 sm:$0xff]  }
 0x26a   :  { %v6406_v54 = vmax.f32 %v13834_v45, 0.0  ;;  %v6408_v55 = vmax.f32 %v13838_v46, 0.0  ;;  %5686 = vmatpush1.bf16.msra.mxu0 %v14787_v36  ;;  %5901 = vmatpush1.bf16.msra.mxu1 %v14790_v37  ;;  %v14829_v24 = vld [vmem:[#allocation2 + $0x1508] ss:$44 sps:$4 sm:$0xff]   ;;  %v14832_v25 = vld [vmem:[#allocation2 + $0x1510] ss:$44 sps:$4 sm:$0xff]  }
 0x26b   :  { %v16475_v57 = vpack.c.bf16 %v6405_v50, %v6394_v44  ;;  %v16477_v58 = vpack.c.bf16 %v6407_v51, %v6396_v49  ;;  %5687 = vmatprep.subr.bf16.mxu0 %v14795_v42  ;;  %5902 = vmatprep.subr.bf16.mxu1 %v14798_v43  ;;  %v14835_v28 = vld [vmem:[#allocation2 + $0x1560] ss:$44 sps:$4 sm:$0xff]   ;;  %v14838_v29 = vld [vmem:[#allocation2 + $0x1568] ss:$44 sps:$4 sm:$0xff]   ;;  %v14846_v31 = vld [vmem:[#allocation2 + $0x15c4] ss:$44 sps:$4 sm:$0xff]  }
 0x26c   :  { %v16479_v60 = vpack.c.bf16 %v6406_v54, %v6395_v52  ;;  %v16481_v61 = vpack.c.bf16 %v6408_v55, %v6397_v53  ;;  %v14841_v32 = vld [vmem:[#allocation2 + $0x15b8] ss:$44 sps:$4 sm:$0xff]   ;;  %v14844_v33 = vld [vmem:[#allocation2 + $0x15c0] ss:$44 sps:$4 sm:$0xff]   ;;  %v14852_v35 = vld [vmem:[#allocation2 + $0x161c] ss:$44 sps:$4 sm:$0xff]  }
 0x26d   :  { %v14849_v34 = vld [vmem:[#allocation2 + $0x1614] ss:$44 sps:$4 sm:$0xff]   ;;  %v14847_v36 = vld [vmem:[#allocation2 + $0x1610] ss:$44 sps:$4 sm:$0xff]   ;;  %v14850_v37 = vld [vmem:[#allocation2 + $0x1618] ss:$44 sps:$4 sm:$0xff]  }
 0x26e   :  { %5688 = vmatpush1.bf16.msra.mxu0 %v14793_v47  ;;  %5903 = vmatpush1.bf16.msra.mxu1 %v14796_v48  ;;  %v14855_v38 = vld [vmem:[#allocation2 + $0x166c] ss:$44 sps:$4 sm:$0xff]   ;;  %v14858_v39 = vld [vmem:[#allocation2 + $0x1674] ss:$44 sps:$4 sm:$0xff]   ;;  %v14856_v42 = vld [vmem:[#allocation2 + $0x1670] ss:$44 sps:$4 sm:$0xff]  }
 0x26f   :  { %5689 = vmatprep.subr.bf16.mxu0 %v14801_v56  ;;  %5904 = vmatprep.subr.bf16.mxu1 %v14804_v59  ;;  %v14853_v40 = vld [vmem:[#allocation2 + $0x1668] ss:$44 sps:$4 sm:$0xff]   ;;  %v16126_v41 = vld [vmem:[%s16712_s0 + $0x18] ss:$36 sps:$4 sm:$0xff]   ;;  %v14861_v43 = vld [vmem:[#allocation2 + $0x16c4] ss:$44 sps:$4 sm:$0xff]  }
 0x270   :  { %v14864_v44 = vld [vmem:[#allocation2 + $0x16cc] ss:$44 sps:$4 sm:$0xff]   ;;  %v14862_v46 = vld [vmem:[#allocation2 + $0x16c8] ss:$44 sps:$4 sm:$0xff]   ;;  %v14870_v48 = vld [vmem:[#allocation2 + $0x1724] ss:$44 sps:$4 sm:$0xff]  }
 0x271   :  { %v14859_v45 = vld [vmem:[#allocation2 + $0x16c0] ss:$44 sps:$4 sm:$0xff]   ;;  %v14867_v47 = vld [vmem:[#allocation2 + $0x171c] ss:$44 sps:$4 sm:$0xff]   ;;  %v14865_v49 = vld [vmem:[#allocation2 + $0x1718] ss:$44 sps:$4 sm:$0xff]  }
 0x272   :  { %5690 = vmatpush1.bf16.msra.mxu0 %v14799_v62  ;;  %5905 = vmatpush1.bf16.msra.mxu1 %v14802_v63  ;;  %v14868_v50 = vld [vmem:[#allocation2 + $0x1720] ss:$44 sps:$4 sm:$0xff]   ;;  %v14876_v52 = vld [vmem:[#allocation2 + $0x177c] ss:$44 sps:$4 sm:$0xff]   ;;  %v14874_v54 = vld [vmem:[#allocation2 + $0x1778] ss:$44 sps:$4 sm:$0xff]  }
 0x273   :  { %5691 = vmatprep.subr.bf16.mxu0 %v14807_v0  ;;  %5906 = vmatprep.subr.bf16.mxu1 %v14810_v1  ;;  %v14873_v51 = vld [vmem:[#allocation2 + $0x1774] ss:$44 sps:$4 sm:$0xff]   ;;  %v14871_v53 = vld [vmem:[#allocation2 + $0x1770] ss:$44 sps:$4 sm:$0xff]   ;;  %v14879_v55 = vld [vmem:[#allocation2 + $0x17cc] ss:$44 sps:$4 sm:$0xff]  }
 0x274   :  { %v14882_v56 = vld [vmem:[#allocation2 + $0x17d4] ss:$44 sps:$4 sm:$0xff]   ;;  %v14880_v62 = vld [vmem:[#allocation2 + $0x17d0] ss:$44 sps:$4 sm:$0xff]   ;;  %v14888_v0 = vld [vmem:[#allocation2 + $0x182c] ss:$44 sps:$4 sm:$0xff]  }
 0x275   :  { %v14877_v59 = vld [vmem:[#allocation2 + $0x17c8] ss:$44 sps:$4 sm:$0xff]   ;;  %v14885_v63 = vld [vmem:[#allocation2 + $0x1824] ss:$44 sps:$4 sm:$0xff]   ;;  %v14883_v1 = vld [vmem:[#allocation2 + $0x1820] ss:$44 sps:$4 sm:$0xff]  }
 0x276   :  { %5692 = vmatpush1.bf16.msra.mxu0 %v14805_v2  ;;  %5907 = vmatpush1.bf16.msra.mxu1 %v14808_v3  ;;  %v14886_v2 = vld [vmem:[#allocation2 + $0x1828] ss:$44 sps:$4 sm:$0xff]  }
 0x277   :  { %5693 = vmatprep.subr.bf16.mxu0 %v14813_v5  ;;  %5908 = vmatprep.subr.bf16.mxu1 %v14816_v6  ;;  %v14891_v3 = vld [vmem:[#allocation2 + $0x187c] ss:$44 sps:$4 sm:$0xff]   ;;  %v14894_v5 = vld [vmem:[#allocation2 + $0x1884] ss:$44 sps:$4 sm:$0xff]  }
 0x278   :  { %v14889_v6 = vld [vmem:[#allocation2 + $0x1878] ss:$44 sps:$4 sm:$0xff]  }
 0x27a   :  { %5694 = vmatpush1.bf16.msra.mxu0 %v14811_v7  ;;  %5909 = vmatpush1.bf16.msra.mxu1 %v14814_v8  ;;  %v14892_v7 = vld [vmem:[#allocation2 + $0x1880] ss:$44 sps:$4 sm:$0xff]   ;;  %v14897_v8 = vld [vmem:[#allocation2 + $0x24] ss:$44 sps:$4 sm:$0xff]  }
 0x27b   :  { %5695 = vmatprep.subr.bf16.mxu0 %v14819_v9  ;;  %5910 = vmatprep.subr.bf16.mxu1 %v14822_v12  ;;  %v14898_v9 = vld [vmem:[#allocation2 + $0x2e8] ss:$44 sps:$4 sm:$0xff]   ;;  %v14895_v12 = vld [vmem:[#allocation2 + $0x20] ss:$44 sps:$4 sm:$0xff]  }
 0x27e   :  { %5696 = vmatpush1.bf16.msra.mxu0 %v14817_v15  ;;  %5911 = vmatpush1.bf16.msra.mxu1 %v14820_v16  ;;  %v14899_v15 = vld [vmem:[#allocation2 + $0x28] ss:$44 sps:$4 sm:$0xff]  }
 0x27f   :  { %5697 = vmatprep.subr.bf16.mxu0 %v14825_v17  ;;  %5912 = vmatprep.subr.bf16.mxu1 %v14828_v19  ;;  %v14902_v16 = vld [vmem:[#allocation2 + $0x7c] ss:$44 sps:$4 sm:$0xff]   ;;  %v14903_v17 = vld [vmem:[#allocation2 + $0x340] ss:$44 sps:$4 sm:$0xff]   ;;  %v14900_v19 = vld [vmem:[#allocation2 + $0x78] ss:$44 sps:$4 sm:$0xff]  }
 0x282   :  { %5698 = vmatpush1.bf16.msra.mxu0 %v14823_v20  ;;  %5913 = vmatpush1.bf16.msra.mxu1 %v14826_v21  ;;  %v14904_v20 = vld [vmem:[#allocation2 + $0x80] ss:$44 sps:$4 sm:$0xff]  }
 0x283   :  { %5699 = vmatprep.subr.bf16.mxu0 %v14831_v22  ;;  %5914 = vmatprep.subr.bf16.mxu1 %v14834_v23  ;;  %v16127_v21 = vld [vmem:[%s16712_s0 + $0x20] ss:$36 sps:$4 sm:$0xff]  }
 0x284   :  { %v14907_v22 = vld [vmem:[#allocation2 + $0xd4] ss:$44 sps:$4 sm:$0xff]   ;;  %v14908_v23 = vld [vmem:[#allocation2 + $0x398] ss:$44 sps:$4 sm:$0xff]  }
 0x286   :  { %5700 = vmatpush1.bf16.msra.mxu0 %v14829_v24  ;;  %5915 = vmatpush1.bf16.msra.mxu1 %v14832_v25  ;;  %v14905_v24 = vld [vmem:[#allocation2 + $0xd0] ss:$44 sps:$4 sm:$0xff]   ;;  %v14909_v25 = vld [vmem:[#allocation2 + $0xd8] ss:$44 sps:$4 sm:$0xff]  }
 0x287   :  { %5701 = vmatprep.subr.bf16.mxu0 %v14837_v26  ;;  %5916 = vmatprep.subr.bf16.mxu1 %v14840_v27  ;;  %v16128_v26 = vld [vmem:[%s16712_s0 + $0x4] ss:$36 sps:$4 sm:$0xff]   ;;  %v14912_v27 = vld [vmem:[#allocation2 + $0x12c] ss:$44 sps:$4 sm:$0xff]  }
 0x28a   :  { %5702 = vmatpush1.bf16.msra.mxu0 %v14835_v28  ;;  %5917 = vmatpush1.bf16.msra.mxu1 %v14838_v29  ;;  %v14913_v28 = vld [vmem:[#allocation2 + $0x3f0] ss:$44 sps:$4 sm:$0xff]   ;;  %v14910_v29 = vld [vmem:[#allocation2 + $0x128] ss:$44 sps:$4 sm:$0xff]  }
 0x28b   :  { %5703 = vmatprep.subr.bf16.mxu0 %v14843_v30  ;;  %5918 = vmatprep.subr.bf16.mxu1 %v14846_v31  ;;  %v14914_v30 = vld [vmem:[#allocation2 + $0x130] ss:$44 sps:$4 sm:$0xff]  }
 0x28c   :  { %v14917_v31 = vld [vmem:[#allocation2 + $0x184] ss:$44 sps:$4 sm:$0xff]  }
 0x28e   :  { %5704 = vmatpush1.bf16.msra.mxu0 %v14841_v32  ;;  %5919 = vmatpush1.bf16.msra.mxu1 %v14844_v33  ;;  %v14918_v32 = vld [vmem:[#allocation2 + $0x448] ss:$44 sps:$4 sm:$0xff]   ;;  %v14915_v33 = vld [vmem:[#allocation2 + $0x180] ss:$44 sps:$4 sm:$0xff]  }
 0x28f   :  { %5716 = vmatprep.subr.bf16.mxu0 %v14849_v34  ;;  %5931 = vmatprep.subr.bf16.mxu1 %v14852_v35  ;;  %v14919_v34 = vld [vmem:[#allocation2 + $0x188] ss:$44 sps:$4 sm:$0xff]  }
 0x290   :  { %v14922_v35 = vld [vmem:[#allocation2 + $0x1dc] ss:$44 sps:$4 sm:$0xff]  }
 0x291   :  { %5706 = vmatmul.mubr.bf16.vlgmr.msra.gmra.mrb[4].mxu0 %v16126_v41  ;;  %5921 = vmatmul.mubr.bf16.vlgmr.msra.gmra.mrb[4].mxu1 %v16126_v41  ;;  %v14925_v41 = vld [vmem:[#allocation2 + $0x230] ss:$44 sps:$4 sm:$0xff]  }
 0x292   :  { %5717 = vmatpush1.bf16.msra.mxu0 %v14847_v36  ;;  %5932 = vmatpush1.bf16.msra.mxu1 %v14850_v37  ;;  %v14923_v36 = vld [vmem:[#allocation2 + $0x4a0] ss:$44 sps:$4 sm:$0xff]   ;;  %v14920_v37 = vld [vmem:[#allocation2 + $0x1d8] ss:$44 sps:$4 sm:$0xff]  }
 0x293   :  { %5718 = vmatprep.subr.bf16.mxu0 %v14855_v38  ;;  %5933 = vmatprep.subr.bf16.mxu1 %v14858_v39  ;;  %v14924_v38 = vld [vmem:[#allocation2 + $0x1e0] ss:$44 sps:$4 sm:$0xff]  }
 0x294   :  { %5748 = vmatprep.mubr.bf16.mxu0 %v16293_v18  ;;  %5963 = vmatprep.mubr.bf16.mxu1 %v16293_v18  ;;  %v14927_v39 = vld [vmem:[#allocation2 + $0x234] ss:$44 sps:$4 sm:$0xff]  }
 0x296   :  { %5719 = vmatpush1.bf16.msra.mxu0 %v14853_v40  ;;  %5934 = vmatpush1.bf16.msra.mxu1 %v14856_v42  ;;  %v14928_v40 = vld [vmem:[#allocation2 + $0x4f8] ss:$44 sps:$4 sm:$0xff]  }
 0x297   :  { %5720 = vmatprep.subr.bf16.mxu0 %v14861_v43  ;;  %5935 = vmatprep.subr.bf16.mxu1 %v14864_v44  ;;  %v14929_v42 = vld [vmem:[#allocation2 + $0x238] ss:$44 sps:$4 sm:$0xff]   ;;  %v14933_v44 = vld [vmem:[#allocation2 + $0x550] ss:$44 sps:$4 sm:$0xff]  }
 0x298   :  { %v14932_v43 = vld [vmem:[#allocation2 + $0x28c] ss:$44 sps:$4 sm:$0xff]  }
 0x29a   :  { %5721 = vmatpush1.bf16.msra.mxu0 %v14859_v45  ;;  %5936 = vmatpush1.bf16.msra.mxu1 %v14862_v46  ;;  %v14930_v45 = vld [vmem:[#allocation2 + $0x288] ss:$44 sps:$4 sm:$0xff]   ;;  %v14934_v46 = vld [vmem:[#allocation2 + $0x290] ss:$44 sps:$4 sm:$0xff]  }
 0x29b   :  { %5722 = vmatprep.subr.bf16.mxu0 %v14867_v47  ;;  %5937 = vmatprep.subr.bf16.mxu1 %v14870_v48  ;;  %v14937_v47 = vld [vmem:[#allocation2 + $0x2e4] ss:$44 sps:$4 sm:$0xff]   ;;  %v14938_v48 = vld [vmem:[#allocation2 + $0x868] ss:$44 sps:$4 sm:$0xff]  }
 0x29e   :  { %5723 = vmatpush1.bf16.msra.mxu0 %v14865_v49  ;;  %5938 = vmatpush1.bf16.msra.mxu1 %v14868_v50  ;;  %v14935_v49 = vld [vmem:[#allocation2 + $0x2e0] ss:$44 sps:$4 sm:$0xff]   ;;  %v14939_v50 = vld [vmem:[#allocation2 + $0x5a8] ss:$44 sps:$4 sm:$0xff]  }
 0x29f   :  { %5724 = vmatprep.subr.bf16.mxu0 %v14873_v51  ;;  %5939 = vmatprep.subr.bf16.mxu1 %v14876_v52  ;;  %v14942_v51 = vld [vmem:[#allocation2 + $0x33c] ss:$44 sps:$4 sm:$0xff]   ;;  %v14943_v52 = vld [vmem:[#allocation2 + $0x8c0] ss:$44 sps:$4 sm:$0xff]  }
 0x2a2   :  { %5725 = vmatpush1.bf16.msra.mxu0 %v14871_v53  ;;  %5940 = vmatpush1.bf16.msra.mxu1 %v14874_v54  ;;  %v14940_v53 = vld [vmem:[#allocation2 + $0x338] ss:$44 sps:$4 sm:$0xff]   ;;  %v14944_v54 = vld [vmem:[#allocation2 + $0x600] ss:$44 sps:$4 sm:$0xff]  }
 0x2a3   :  { %5726 = vmatprep.subr.bf16.mxu0 %v14879_v55  ;;  %5941 = vmatprep.subr.bf16.mxu1 %v14882_v56  ;;  %v16497_v55 = vld [vmem:[%s16712_s0] ss:$36 sps:$4 sm:$0xff]  }
 0x2a4   :  { %v14947_v56 = vld [vmem:[#allocation2 + $0x394] ss:$44 sps:$4 sm:$0xff]  }
 0x2a6   :  { %5727 = vmatpush1.bf16.msra.mxu0 %v14877_v59  ;;  %5942 = vmatpush1.bf16.msra.mxu1 %v14880_v62  ;;  %v14948_v59 = vld [vmem:[#allocation2 + $0x918] ss:$44 sps:$4 sm:$0xff]   ;;  %v16503_v62 = vld [vmem:[%s16712_s0 + $0xc] ss:$36 sps:$4 sm:$0xff]  }
 0x2a7   :  { %5728 = vmatprep.subr.bf16.mxu0 %v14885_v63  ;;  %5943 = vmatprep.subr.bf16.mxu1 %v14888_v0  ;;  %v14945_v63 = vld [vmem:[#allocation2 + $0x390] ss:$44 sps:$4 sm:$0xff]   ;;  %v14949_v0 = vld [vmem:[#allocation2 + $0x658] ss:$44 sps:$4 sm:$0xff]  }
 0x2aa   :  { %5729 = vmatpush1.bf16.msra.mxu0 %v14883_v1  ;;  %5944 = vmatpush1.bf16.msra.mxu1 %v14886_v2  ;;  %v14952_v1 = vld [vmem:[#allocation2 + $0x3ec] ss:$44 sps:$4 sm:$0xff]   ;;  %v14953_v2 = vld [vmem:[#allocation2 + $0x970] ss:$44 sps:$4 sm:$0xff]  }
 0x2ab   :  { %5730 = vmatprep.subr.bf16.mxu0 %v14891_v3  ;;  %5945 = vmatprep.subr.bf16.mxu1 %v14894_v5  ;;  %v14950_v3 = vld [vmem:[#allocation2 + $0x3e8] ss:$44 sps:$4 sm:$0xff]   ;;  %v14954_v5 = vld [vmem:[#allocation2 + $0x6b0] ss:$44 sps:$4 sm:$0xff]  }
 0x2ae   :  { %5731 = vmatpush1.bf16.msra.mxu0 %v14889_v6  ;;  %5946 = vmatpush1.bf16.msra.mxu1 %v14892_v7  ;;  %v14957_v6 = vld [vmem:[#allocation2 + $0x444] ss:$44 sps:$4 sm:$0xff]   ;;  %v14958_v7 = vld [vmem:[#allocation2 + $0x9c8] ss:$44 sps:$4 sm:$0xff]  }
 0x2af   :  { %5974 = vmatprep.subr.bf16.mxu0 %v14897_v8  ;;  %13480 = vmatprep.subr.bf16.mxu1 %v14898_v9  ;;  %v14955_v8 = vld [vmem:[#allocation2 + $0x440] ss:$44 sps:$4 sm:$0xff]   ;;  %v14959_v9 = vld [vmem:[#allocation2 + $0x708] ss:$44 sps:$4 sm:$0xff]  }
 0x2b1   :  { %5749 = vmatmul.mubr.bf16.vlgmr.msra.gmra.mrb[4].mxu0 %v16127_v21  ;;  %5964 = vmatmul.mubr.bf16.vlgmr.msra.gmra.mrb[4].mxu1 %v16127_v21  ;;  %v14965_v21 = vld [vmem:[#allocation2 + $0x4f0] ss:$44 sps:$4 sm:$0xff]  }
 0x2b2   :  { %5975 = vmatpush1.bf16.msra.mxu0 %v14895_v12  ;;  %13481 = vmatpush3.bf16.msra.mxu1 %v14899_v15  ;;  %v14962_v12 = vld [vmem:[#allocation2 + $0x49c] ss:$44 sps:$4 sm:$0xff]   ;;  %v14963_v15 = vld [vmem:[#allocation2 + $0xa20] ss:$44 sps:$4 sm:$0xff]  }
 0x2b3   :  { %5976 = vmatprep.subr.bf16.mxu0 %v14902_v16  ;;  %13482 = vmatprep.subr.bf16.mxu1 %v14903_v17  ;;  %v14960_v16 = vld [vmem:[#allocation2 + $0x498] ss:$44 sps:$4 sm:$0xff]   ;;  %v14964_v17 = vld [vmem:[#allocation2 + $0x760] ss:$44 sps:$4 sm:$0xff]  }
 0x2b4   :  { %6221 = vmatprep.mubr.bf16.mxu1 %v16128_v26  ;;  %6006 = vmatprep.mubr.bf16.mxu0 %v16128_v26  ;;  %v14974_v26 = vld [vmem:[#allocation2 + $0x810] ss:$44 sps:$4 sm:$0xff]  }
 0x2b6   :  { %5977 = vmatpush1.bf16.msra.mxu0 %v14900_v19  ;;  %13483 = vmatpush3.bf16.msra.mxu1 %v14904_v20  ;;  %v14967_v19 = vld [vmem:[#allocation2 + $0x4f4] ss:$44 sps:$4 sm:$0xff]   ;;  %v14968_v20 = vld [vmem:[#allocation2 + $0xa78] ss:$44 sps:$4 sm:$0xff]  }
 0x2b7   :  { %5978 = vmatprep.subr.bf16.mxu0 %v14907_v22  ;;  %13484 = vmatprep.subr.bf16.mxu1 %v14908_v23  ;;  %v14969_v22 = vld [vmem:[#allocation2 + $0x7b8] ss:$44 sps:$4 sm:$0xff]  }
 0x2b8   :  { %v14972_v23 = vld [vmem:[#allocation2 + $0x54c] ss:$44 sps:$4 sm:$0xff]  }
 0x2ba   :  { %5979 = vmatpush1.bf16.msra.mxu0 %v14905_v24  ;;  %13485 = vmatpush3.bf16.msra.mxu1 %v14909_v25  ;;  %v14973_v24 = vld [vmem:[#allocation2 + $0xad0] ss:$44 sps:$4 sm:$0xff]   ;;  %v14970_v25 = vld [vmem:[#allocation2 + $0x548] ss:$44 sps:$4 sm:$0xff]  }
 0x2bb   :  { %5980 = vmatprep.subr.bf16.mxu0 %v14912_v27  ;;  %13486 = vmatprep.subr.bf16.mxu1 %v14913_v28  ;;  %v14977_v27 = vld [vmem:[#allocation2 + $0x5a4] ss:$44 sps:$4 sm:$0xff]   ;;  %v14978_v28 = vld [vmem:[#allocation2 + $0xde8] ss:$44 sps:$4 sm:$0xff]  }
 0x2be   :  { %5981 = vmatpush1.bf16.msra.mxu0 %v14910_v29  ;;  %13487 = vmatpush3.bf16.msra.mxu1 %v14914_v30  ;;  %v14975_v29 = vld [vmem:[#allocation2 + $0x5a0] ss:$44 sps:$4 sm:$0xff]   ;;  %v14979_v30 = vld [vmem:[#allocation2 + $0xb28] ss:$44 sps:$4 sm:$0xff]  }
 0x2bf   :  { %5982 = vmatprep.subr.bf16.mxu0 %v14917_v31  ;;  %13488 = vmatprep.subr.bf16.mxu1 %v14918_v32  ;;  %v14982_v31 = vld [vmem:[#allocation2 + $0x5fc] ss:$44 sps:$4 sm:$0xff]   ;;  %v14983_v32 = vld [vmem:[#allocation2 + $0xe40] ss:$44 sps:$4 sm:$0xff]  }
 0x2c2   :  { %5983 = vmatpush1.bf16.msra.mxu0 %v14915_v33  ;;  %13489 = vmatpush3.bf16.msra.mxu1 %v14919_v34  ;;  %v16509_v33 = vld [vmem:[%s16712_s0 + $0x8] ss:$36 sps:$4 sm:$0xff]   ;;  %v14980_v34 = vld [vmem:[#allocation2 + $0x5f8] ss:$44 sps:$4 sm:$0xff]  }
 0x2c3   :  { %5984 = vmatprep.subr.bf16.mxu0 %v14922_v35  ;;  %13490 = vmatprep.subr.bf16.mxu1 %v14923_v36  ;;  %v14984_v35 = vld [vmem:[#allocation2 + $0xb80] ss:$44 sps:$4 sm:$0xff]  }
 0x2c4   :  { %v14987_v36 = vld [vmem:[#allocation2 + $0x654] ss:$44 sps:$4 sm:$0xff]  }
 0x2c6   :  { %5985 = vmatpush1.bf16.msra.mxu0 %v14920_v37  ;;  %13491 = vmatpush3.bf16.msra.mxu1 %v14924_v38  ;;  %v14988_v37 = vld [vmem:[#allocation2 + $0xe98] ss:$44 sps:$4 sm:$0xff]  }
 0x2c7   :  { %5986 = vmatprep.subr.bf16.mxu0 %v14927_v39  ;;  %13492 = vmatprep.subr.bf16.mxu1 %v14928_v40  ;;  %v16516_v38 = vld [vmem:[%s16712_s0 + $0x14] ss:$36 sps:$4 sm:$0xff]   ;;  %v14985_v39 = vld [vmem:[#allocation2 + $0x650] ss:$44 sps:$4 sm:$0xff]  }
 0x2c8   :  { %v14989_v40 = vld [vmem:[#allocation2 + $0xbd8] ss:$44 sps:$4 sm:$0xff]  }
 0x2ca   :  { %5987 = vmatpush1.bf16.msra.mxu0 %v14925_v41  ;;  %13493 = vmatpush3.bf16.msra.mxu1 %v14929_v42  ;;  %v14992_v41 = vld [vmem:[#allocation2 + $0x6ac] ss:$44 sps:$4 sm:$0xff]   ;;  %v14993_v42 = vld [vmem:[#allocation2 + $0xef0] ss:$44 sps:$4 sm:$0xff]  }
 0x2cb   :  { %5988 = vmatprep.subr.bf16.mxu0 %v14932_v43  ;;  %13494 = vmatprep.subr.bf16.mxu1 %v14933_v44  ;;  %v14990_v43 = vld [vmem:[#allocation2 + $0x6a8] ss:$44 sps:$4 sm:$0xff]   ;;  %v14994_v44 = vld [vmem:[#allocation2 + $0xc30] ss:$44 sps:$4 sm:$0xff]  }
 0x2ce   :  { %5989 = vmatpush1.bf16.msra.mxu0 %v14930_v45  ;;  %13495 = vmatpush3.bf16.msra.mxu1 %v14934_v46  ;;  %v14997_v45 = vld [vmem:[#allocation2 + $0x704] ss:$44 sps:$4 sm:$0xff]   ;;  %v14998_v46 = vld [vmem:[#allocation2 + $0xf48] ss:$44 sps:$4 sm:$0xff]  }
 0x2cf   :  { %5990 = vmatprep.subr.bf16.mxu0 %v14937_v47  ;;  %13502 = vmatprep.subr.bf16.mxu1 %v14938_v48  ;;  %v14995_v47 = vld [vmem:[#allocation2 + $0x700] ss:$44 sps:$4 sm:$0xff]   ;;  %v14999_v48 = vld [vmem:[#allocation2 + $0xc88] ss:$44 sps:$4 sm:$0xff]  }
 0x2d1   :  { %6222 = vmatmul.mubr.bf16.vlgmr.msra.gmra.mrb[8].mxu1 %v16497_v55 }
 0x2d2   :  { %5991 = vmatpush1.bf16.msra.mxu0 %v14935_v49  ;;  %13503 = vmatpush3.bf16.msra.mxu1 %v14939_v50  ;;  %v15002_v49 = vld [vmem:[#allocation2 + $0x75c] ss:$44 sps:$4 sm:$0xff]   ;;  %v15003_v50 = vld [vmem:[#allocation2 + $0xfa0] ss:$44 sps:$4 sm:$0xff]  }
 0x2d3   :  { %5992 = vmatprep.subr.bf16.mxu0 %v14942_v51  ;;  %13504 = vmatprep.subr.bf16.mxu1 %v14943_v52  ;;  %v15000_v51 = vld [vmem:[#allocation2 + $0x758] ss:$44 sps:$4 sm:$0xff]   ;;  %v15004_v52 = vld [vmem:[#allocation2 + $0xce0] ss:$44 sps:$4 sm:$0xff]  }
 0x2d4   :  { %6262 = vmatprep.mubr.bf16.mxu1 %v16503_v62 }
 0x2d6   :  { %5993 = vmatpush1.bf16.msra.mxu0 %v14940_v53  ;;  %13505 = vmatpush3.bf16.msra.mxu1 %v14944_v54  ;;  %v15007_v53 = vld [vmem:[#allocation2 + $0x7b4] ss:$44 sps:$4 sm:$0xff]   ;;  %v15008_v54 = vld [vmem:[#allocation2 + $0xff8] ss:$44 sps:$4 sm:$0xff]  }
 0x2d7   :  { %5994 = vmatprep.subr.bf16.mxu0 %v14947_v56  ;;  %13506 = vmatprep.subr.bf16.mxu1 %v14948_v59  ;;  %v15009_v56 = vld [vmem:[#allocation2 + $0xd38] ss:$44 sps:$4 sm:$0xff]  }
 0x2d8   :  { %v15012_v59 = vld [vmem:[#allocation2 + $0x80c] ss:$44 sps:$4 sm:$0xff]  }
 0x2da   :  { %5995 = vmatpush1.bf16.msra.mxu0 %v14945_v63  ;;  %13507 = vmatpush3.bf16.msra.mxu1 %v14949_v0  ;;  %v15010_v63 = vld [vmem:[#allocation2 + $0x808] ss:$44 sps:$4 sm:$0xff]   ;;  %v15014_v0 = vld [vmem:[#allocation2 + $0xd90] ss:$44 sps:$4 sm:$0xff]  }
 0x2db   :  { %5996 = vmatprep.subr.bf16.mxu0 %v14952_v1  ;;  %13508 = vmatprep.subr.bf16.mxu1 %v14953_v2  ;;  %v15017_v1 = vld [vmem:[#allocation2 + $0x864] ss:$44 sps:$4 sm:$0xff]   ;;  %v15018_v2 = vld [vmem:[#allocation2 + $0x1368] ss:$44 sps:$4 sm:$0xff]  }
 0x2de   :  { %5997 = vmatpush1.bf16.msra.mxu0 %v14950_v3  ;;  %13509 = vmatpush3.bf16.msra.mxu1 %v14954_v5  ;;  %v15015_v3 = vld [vmem:[#allocation2 + $0x860] ss:$44 sps:$4 sm:$0xff]   ;;  %v15019_v5 = vld [vmem:[#allocation2 + $0x10a8] ss:$44 sps:$4 sm:$0xff]  }
 0x2df   :  { %5998 = vmatprep.subr.bf16.mxu0 %v14957_v6  ;;  %13510 = vmatprep.subr.bf16.mxu1 %v14958_v7  ;;  %v15022_v6 = vld [vmem:[#allocation2 + $0x8bc] ss:$44 sps:$4 sm:$0xff]   ;;  %v15023_v7 = vld [vmem:[#allocation2 + $0x13c0] ss:$44 sps:$4 sm:$0xff]  }
 0x2e2   :  { %5999 = vmatpush1.bf16.msra.mxu0 %v14955_v8  ;;  %13511 = vmatpush3.bf16.msra.mxu1 %v14959_v9  ;;  %v15020_v8 = vld [vmem:[#allocation2 + $0x8b8] ss:$44 sps:$4 sm:$0xff]   ;;  %v16523_v9 = vld [vmem:[%s16712_s0 + $0x10] ss:$36 sps:$4 sm:$0xff]  }
 0x2e3   :  { %6000 = vmatprep.subr.bf16.mxu0 %v14962_v12  ;;  %13512 = vmatprep.subr.bf16.mxu1 %v14963_v15  ;;  %v15024_v12 = vld [vmem:[#allocation2 + $0x1100] ss:$44 sps:$4 sm:$0xff]  }
 0x2e4   :  { %v15027_v15 = vld [vmem:[#allocation2 + $0x914] ss:$44 sps:$4 sm:$0xff]  }
 0x2e6   :  { %6001 = vmatpush1.bf16.msra.mxu0 %v14960_v16  ;;  %13513 = vmatpush3.bf16.msra.mxu1 %v14964_v17  ;;  %v15028_v16 = vld [vmem:[#allocation2 + $0x1418] ss:$44 sps:$4 sm:$0xff]   ;;  %v16529_v17 = vld [vmem:[%s16712_s0 + $0x1c] ss:$36 sps:$4 sm:$0xff]  }
 0x2e7   :  { %6002 = vmatprep.subr.bf16.mxu0 %v14967_v19  ;;  %13514 = vmatprep.subr.bf16.mxu1 %v14968_v20  ;;  %v15025_v19 = vld [vmem:[#allocation2 + $0x910] ss:$44 sps:$4 sm:$0xff]   ;;  %v15029_v20 = vld [vmem:[#allocation2 + $0x1158] ss:$44 sps:$4 sm:$0xff]  }
 0x2ea   :  { %6003 = vmatpush1.bf16.msra.mxu0 %v14965_v21  ;;  %13515 = vmatpush3.bf16.msra.mxu1 %v14969_v22  ;;  %v15032_v21 = vld [vmem:[#allocation2 + $0x96c] ss:$44 sps:$4 sm:$0xff]   ;;  %v15033_v22 = vld [vmem:[#allocation2 + $0x1470] ss:$44 sps:$4 sm:$0xff]  }
 0x2eb   :  { %6004 = vmatprep.subr.bf16.mxu0 %v14972_v23  ;;  %13516 = vmatprep.subr.bf16.mxu1 %v14973_v24  ;;  %v15030_v23 = vld [vmem:[#allocation2 + $0x968] ss:$44 sps:$4 sm:$0xff]   ;;  %v15034_v24 = vld [vmem:[#allocation2 + $0x11b0] ss:$44 sps:$4 sm:$0xff]  }
 0x2ee   :  { %6005 = vmatpush1.bf16.msra.mxu0 %v14970_v25  ;;  %13517 = vmatpush3.bf16.msra.mxu1 %v14974_v26  ;;  %v15037_v25 = vld [vmem:[#allocation2 + $0x9c4] ss:$44 sps:$4 sm:$0xff]   ;;  %v15038_v26 = vld [vmem:[#allocation2 + $0x14c8] ss:$44 sps:$4 sm:$0xff]  }
 0x2ef   :  { %6017 = vmatprep.subr.bf16.mxu0 %v14977_v27  ;;  %13524 = vmatprep.subr.bf16.mxu1 %v14978_v28  ;;  %v15035_v27 = vld [vmem:[#allocation2 + $0x9c0] ss:$44 sps:$4 sm:$0xff]   ;;  %v15039_v28 = vld [vmem:[#allocation2 + $0x1208] ss:$44 sps:$4 sm:$0xff]  }
 0x2f1   :  { %6263 = vmatmul.mubr.bf16.vlgmr.msra.gmra.mrb[12].mxu1 %v16509_v33  ;;  %6007 = vmatmul.mubr.bf16.vlgmr.msra.gmra.mrb[8].mxu0 %v16497_v55  ;;  %v15005_v55 = vld [vmem:[#allocation2 + $0x7b0] ss:$44 sps:$4 sm:$0xff]  }
 0x2f2   :  { %6018 = vmatpush1.bf16.msra.mxu0 %v14975_v29  ;;  %13525 = vmatpush3.bf16.msra.mxu1 %v14979_v30  ;;  %v15042_v29 = vld [vmem:[#allocation2 + $0xa1c] ss:$44 sps:$4 sm:$0xff]   ;;  %v15043_v30 = vld [vmem:[#allocation2 + $0x1520] ss:$44 sps:$4 sm:$0xff]  }
 0x2f3   :  { %6019 = vmatprep.subr.bf16.mxu0 %v14982_v31  ;;  %13526 = vmatprep.subr.bf16.mxu1 %v14983_v32  ;;  %v15040_v31 = vld [vmem:[#allocation2 + $0xa18] ss:$44 sps:$4 sm:$0xff]   ;;  %v15044_v32 = vld [vmem:[#allocation2 + $0x1260] ss:$44 sps:$4 sm:$0xff]  }
 0x2f4   :  { %6303 = vmatprep.mubr.bf16.mxu1 %v16516_v38  ;;  %6049 = vmatprep.mubr.bf16.mxu0 %v16503_v62  ;;  %v15013_v62 = vld [vmem:[#allocation2 + $0x1050] ss:$44 sps:$4 sm:$0xff]  }
 0x2f6   :  { %6020 = vmatpush1.bf16.msra.mxu0 %v14980_v34  ;;  %13527 = vmatpush3.bf16.msra.mxu1 %v14984_v35  ;;  %v15047_v34 = vld [vmem:[#allocation2 + $0xa74] ss:$44 sps:$4 sm:$0xff]   ;;  %v15048_v35 = vld [vmem:[#allocation2 + $0x1578] ss:$44 sps:$4 sm:$0xff]  }
 0x2f7   :  { %6021 = vmatprep.subr.bf16.mxu0 %v14987_v36  ;;  %13528 = vmatprep.subr.bf16.mxu1 %v14988_v37  ;;  %v15045_v36 = vld [vmem:[#allocation2 + $0xa70] ss:$44 sps:$4 sm:$0xff]   ;;  %v15049_v37 = vld [vmem:[#allocation2 + $0x12b8] ss:$44 sps:$4 sm:$0xff]  }
 0x2fa   :  { %6022 = vmatpush1.bf16.msra.mxu0 %v14985_v39  ;;  %13529 = vmatpush3.bf16.msra.mxu1 %v14989_v40  ;;  %v15052_v39 = vld [vmem:[#allocation2 + $0xacc] ss:$44 sps:$4 sm:$0xff]   ;;  %v15053_v40 = vld [vmem:[#allocation2 + $0x15d0] ss:$44 sps:$4 sm:$0xff]  }
 0x2fb   :  { %6023 = vmatprep.subr.bf16.mxu0 %v14992_v41  ;;  %13530 = vmatprep.subr.bf16.mxu1 %v14993_v42  ;;  %v15050_v41 = vld [vmem:[#allocation2 + $0xac8] ss:$44 sps:$4 sm:$0xff]   ;;  %v15054_v42 = vld [vmem:[#allocation2 + $0x1310] ss:$44 sps:$4 sm:$0xff]  }
 0x2fe   :  { %6024 = vmatpush1.bf16.msra.mxu0 %v14990_v43  ;;  %13531 = vmatpush3.bf16.msra.mxu1 %v14994_v44  ;;  %v15057_v43 = vld [vmem:[#allocation2 + $0xb24] ss:$44 sps:$4 sm:$0xff]   ;;  %v15055_v44 = vld [vmem:[#allocation2 + $0xb20] ss:$44 sps:$4 sm:$0xff]  }
 0x2ff   :  { %6025 = vmatprep.subr.bf16.mxu0 %v14997_v45  ;;  %13532 = vmatprep.subr.bf16.mxu1 %v14998_v46  ;;  %v15058_v45 = vld [vmem:[#allocation2 + $0x1628] ss:$44 sps:$4 sm:$0xff]   ;;  %v16294_v46 = vmov 0.0  }
 0x302   :  { %6026 = vmatpush1.bf16.msra.mxu0 %v14995_v47  ;;  %13533 = vmatpush3.bf16.msra.mxu1 %v14999_v48  ;;  %v15061_v47 = vld [vmem:[#allocation2 + $0xb7c] ss:$44 sps:$4 sm:$0xff]  }
 0x303   :  { %6027 = vmatprep.subr.bf16.mxu0 %v15002_v49  ;;  %13534 = vmatprep.subr.bf16.mxu1 %v15003_v50  ;;  %v16135_v48 = vld [vmem:[%s16712_s0 + $0x18] ss:$36 sps:$4 sm:$0xff]   ;;  %v15062_v50 = vld [vmem:[#allocation2 + $0x1680] ss:$44 sps:$4 sm:$0xff]  }
 0x304   :  { %v15059_v49 = vld [vmem:[#allocation2 + $0xb78] ss:$44 sps:$4 sm:$0xff]  }
 0x306   :  { %6028 = vmatpush1.bf16.msra.mxu0 %v15000_v51  ;;  %13535 = vmatpush3.bf16.msra.mxu1 %v15004_v52  ;;  %v15065_v51 = vld [vmem:[#allocation2 + $0xbd4] ss:$44 sps:$4 sm:$0xff]   ;;  %v15063_v52 = vld [vmem:[#allocation2 + $0xbd0] ss:$44 sps:$4 sm:$0xff]  }
 0x307   :  { %6029 = vmatprep.subr.bf16.mxu0 %v15007_v53  ;;  %13536 = vmatprep.subr.bf16.mxu1 %v15008_v54  ;;  %v15066_v53 = vld [vmem:[#allocation2 + $0x16d8] ss:$44 sps:$4 sm:$0xff]   ;;  %v15067_v54 = vld [vmem:[#allocation2 + $0xc28] ss:$44 sps:$4 sm:$0xff]  }
 0x30a   :  { %6030 = vmatpush1.bf16.msra.mxu0 %v15005_v55  ;;  %13537 = vmatpush3.bf16.msra.mxu1 %v15009_v56  ;;  %v15070_v55 = vld [vmem:[#allocation2 + $0x1730] ss:$44 sps:$4 sm:$0xff]  }
 0x30b   :  { %6031 = vmatprep.subr.bf16.mxu0 %v15012_v59  ;;  %13538 = vmatprep.subr.bf16.mxu1 %v15013_v62  ;;  %v15073_v56 = vld [vmem:[#allocation2 + $0xc84] ss:$44 sps:$4 sm:$0xff]   ;;  %v15071_v59 = vld [vmem:[#allocation2 + $0xc80] ss:$44 sps:$4 sm:$0xff]   ;;  %v15077_v62 = vld [vmem:[#allocation2 + $0xcdc] ss:$44 sps:$4 sm:$0xff]  }
 0x30e   :  { %6032 = vmatpush1.bf16.msra.mxu0 %v15010_v63  ;;  %13539 = vmatpush3.bf16.msra.mxu1 %v15014_v0  ;;  %v15075_v63 = vld [vmem:[#allocation2 + $0xcd8] ss:$44 sps:$4 sm:$0xff]   ;;  %v15078_v0 = vld [vmem:[#allocation2 + $0x17e0] ss:$44 sps:$4 sm:$0xff]  }
 0x30f   :  { %6033 = vmatprep.subr.bf16.mxu0 %v15017_v1  ;;  %13546 = vmatprep.subr.bf16.mxu1 %v15018_v2  ;;  %v15081_v1 = vld [vmem:[#allocation2 + $0xd34] ss:$44 sps:$4 sm:$0xff]   ;;  %v15079_v2 = vld [vmem:[#allocation2 + $0xd30] ss:$44 sps:$4 sm:$0xff]  }
 0x311   :  { %6304 = vmatmul.mubr.bf16.vlgmr.msra.gmra.mrb[16].mxu1 %v16523_v9 }
 0x312   :  { %6034 = vmatpush1.bf16.msra.mxu0 %v15015_v3  ;;  %13547 = vmatpush3.bf16.msra.mxu1 %v15019_v5  ;;  %v15082_v3 = vld [vmem:[#allocation2 + $0x1838] ss:$44 sps:$4 sm:$0xff]  }
 0x313   :  { %6035 = vmatprep.subr.bf16.mxu0 %v15022_v6  ;;  %13548 = vmatprep.subr.bf16.mxu1 %v15023_v7  ;;  %v15085_v5 = vld [vmem:[#allocation2 + $0xd8c] ss:$44 sps:$4 sm:$0xff]   ;;  %v15083_v6 = vld [vmem:[#allocation2 + $0xd88] ss:$44 sps:$4 sm:$0xff]   ;;  %v15086_v7 = vld [vmem:[#allocation2 + $0x1890] ss:$44 sps:$4 sm:$0xff]  }
 0x314   :  { %6344 = vmatprep.mubr.bf16.mxu1 %v16529_v17 }
 0x316   :  { %6036 = vmatpush1.bf16.msra.mxu0 %v15020_v8  ;;  %13549 = vmatpush3.bf16.msra.mxu1 %v15024_v12  ;;  %v15089_v8 = vld [vmem:[#allocation2 + $0xde4] ss:$44 sps:$4 sm:$0xff]  }
 0x317   :  { %6037 = vmatprep.subr.bf16.mxu0 %v15027_v15  ;;  %13550 = vmatprep.subr.bf16.mxu1 %v15028_v16  ;;  %v15092_v12 = vld [vmem:[#allocation6 + $0x4] ss:$28 sps:$4 sm:$0xff]  }
 0x318   :  { %v15087_v15 = vld [vmem:[#allocation2 + $0xde0] ss:$44 sps:$4 sm:$0xff]  }
 0x319   :  { %v15090_v16 = vld [vmem:[#allocation6] ss:$28 sps:$4 sm:$0xff]  }
 0x31a   :  { %6038 = vmatpush1.bf16.msra.mxu0 %v15025_v19  ;;  %13551 = vmatpush3.bf16.msra.mxu1 %v15029_v20  ;;  %v15095_v19 = vld [vmem:[#allocation2 + $0xe3c] ss:$44 sps:$4 sm:$0xff]  }
 0x31b   :  { %6039 = vmatprep.subr.bf16.mxu0 %v15032_v21  ;;  %13552 = vmatprep.subr.bf16.mxu1 %v15033_v22  ;;  %v15098_v20 = vld [vmem:[#allocation6 + $0x3c] ss:$28 sps:$4 sm:$0xff]  }
 0x31c   :  { %v16136_v21 = vld [vmem:[%s16712_s0 + $0x20] ss:$36 sps:$4 sm:$0xff]  }
 0x31d   :  { %v15093_v22 = vld [vmem:[#allocation2 + $0xe38] ss:$44 sps:$4 sm:$0xff]  }
 0x31e   :  { %6040 = vmatpush1.bf16.msra.mxu0 %v15030_v23  ;;  %13553 = vmatpush3.bf16.msra.mxu1 %v15034_v24  ;;  %v15096_v23 = vld [vmem:[#allocation6 + $0x38] ss:$28 sps:$4 sm:$0xff]  }
 0x31f   :  { %6041 = vmatprep.subr.bf16.mxu0 %v15037_v25  ;;  %13554 = vmatprep.subr.bf16.mxu1 %v15038_v26  ;;  %v15101_v24 = vld [vmem:[#allocation2 + $0xe94] ss:$44 sps:$4 sm:$0xff]   ;;  %v15099_v26 = vld [vmem:[#allocation2 + $0xe90] ss:$44 sps:$4 sm:$0xff]  }
 0x320   :  { %v15104_v25 = vld [vmem:[#allocation6 + $0x74] ss:$28 sps:$4 sm:$0xff]  }
 0x322   :  { %6042 = vmatpush1.bf16.msra.mxu0 %v15035_v27  ;;  %13555 = vmatpush3.bf16.msra.mxu1 %v15039_v28  ;;  %v15102_v27 = vld [vmem:[#allocation6 + $0x70] ss:$28 sps:$4 sm:$0xff]  }
 0x323   :  { %6043 = vmatprep.subr.bf16.mxu0 %v15042_v29  ;;  %13556 = vmatprep.subr.bf16.mxu1 %v15043_v30  ;;  %v15107_v28 = vld [vmem:[#allocation2 + $0xeec] ss:$44 sps:$4 sm:$0xff]   ;;  %v15105_v30 = vld [vmem:[#allocation2 + $0xee8] ss:$44 sps:$4 sm:$0xff]  }
 0x324   :  { %v15110_v29 = vld [vmem:[#allocation6 + $0xac] ss:$28 sps:$4 sm:$0xff]  }
 0x326   :  { %6044 = vmatpush1.bf16.msra.mxu0 %v15040_v31  ;;  %13557 = vmatpush3.bf16.msra.mxu1 %v15044_v32  ;;  %v15108_v31 = vld [vmem:[#allocation6 + $0xa8] ss:$28 sps:$4 sm:$0xff]  }
 0x327   :  { %6045 = vmatprep.subr.bf16.mxu0 %v15047_v34  ;;  %13558 = vmatprep.subr.bf16.mxu1 %v15048_v35  ;;  %v15113_v32 = vld [vmem:[#allocation2 + $0xf44] ss:$44 sps:$4 sm:$0xff]   ;;  %v15111_v35 = vld [vmem:[#allocation2 + $0xf40] ss:$44 sps:$4 sm:$0xff]  }
 0x328   :  { %v15116_v34 = vld [vmem:[#allocation6 + $0xe4] ss:$28 sps:$4 sm:$0xff]  }
 0x32a   :  { %6046 = vmatpush1.bf16.msra.mxu0 %v15045_v36  ;;  %13559 = vmatpush3.bf16.msra.mxu1 %v15049_v37  ;;  %v15114_v36 = vld [vmem:[#allocation6 + $0xe0] ss:$28 sps:$4 sm:$0xff]  }
 0x32b   :  { %6047 = vmatprep.subr.bf16.mxu0 %v15052_v39  ;;  %13560 = vmatprep.subr.bf16.mxu1 %v15053_v40  ;;  %v15119_v37 = vld [vmem:[#allocation2 + $0xf9c] ss:$44 sps:$4 sm:$0xff]   ;;  %v15117_v40 = vld [vmem:[#allocation2 + $0xf98] ss:$44 sps:$4 sm:$0xff]  }
 0x32c   :  { %v15122_v39 = vld [vmem:[#allocation6 + $0x11c] ss:$28 sps:$4 sm:$0xff]  }
 0x32e   :  { %6048 = vmatpush1.bf16.msra.mxu0 %v15050_v41  ;;  %13561 = vmatpush3.bf16.msra.mxu1 %v15054_v42  ;;  %v15120_v41 = vld [vmem:[#allocation6 + $0x118] ss:$28 sps:$4 sm:$0xff]  }
 0x32f   :  { %6060 = vmatprep.subr.bf16.mxu0 %v15057_v43  ;;  %13771 = vmatprep.subr.bf16.mxu1 %v16294_v46  ;;  %v15125_v42 = vld [vmem:[#allocation2 + $0xff4] ss:$44 sps:$4 sm:$0xff]  }
 0x330   :  { %v15128_v43 = vld [vmem:[#allocation6 + $0x154] ss:$28 sps:$4 sm:$0xff]  }
 0x331   :  { %6345 = vmatmul.mubr.bf16.vlgmr.msra.gmra.mrb[20].mxu1 %v16135_v48  ;;  %6050 = vmatmul.mubr.bf16.vlgmr.msra.gmra.mrb[8].mxu0 %v16509_v33  ;;  %v15069_v33 = vld [vmem:[#allocation2 + $0xc2c] ss:$44 sps:$4 sm:$0xff]  }
 0x332   :  { %6061 = vmatpush1.bf16.msra.mxu0 %v15055_v44  ;;  %13772 = vmatpush3.bf16.msra.mxu1 %v15058_v45  ;;  %v15123_v44 = vld [vmem:[#allocation2 + $0xff0] ss:$44 sps:$4 sm:$0xff]   ;;  %v15134_v48 = vld [vmem:[#allocation6 + $0x18c] ss:$28 sps:$4 sm:$0xff]  }
 0x333   :  { %6062 = vmatprep.subr.bf16.mxu0 %v15061_v47  ;;  %13773 = vmatprep.subr.bf16.mxu1 %v16294_v46  ;;  %v15126_v45 = vld [vmem:[#allocation6 + $0x150] ss:$28 sps:$4 sm:$0xff]  }
 0x334   :  { %13787 = vmatprep.mubr.msk.bf16.mxu1 %vm16295_vm0, %v16294_v46  ;;  %6092 = vmatprep.mubr.bf16.mxu0 %v16516_v38  ;;  %v15074_v38 = vld [vmem:[#allocation2 + $0x1788] ss:$44 sps:$4 sm:$0xff]   ;;  %v15131_v47 = vld [vmem:[#allocation2 + $0x104c] ss:$44 sps:$4 sm:$0xff]  }
 0x336   :  { %6063 = vmatpush1.bf16.msra.mxu0 %v15059_v49  ;;  %13774 = vmatpush3.bf16.msra.mxu1 %v15062_v50  ;;  %v15129_v49 = vld [vmem:[#allocation2 + $0x1048] ss:$44 sps:$4 sm:$0xff]  }
 0x337   :  { %6064 = vmatprep.subr.bf16.mxu0 %v15065_v51  ;;  %13775 = vmatprep.subr.bf16.mxu1 %v16294_v46  ;;  %v15132_v50 = vld [vmem:[#allocation6 + $0x188] ss:$28 sps:$4 sm:$0xff]  }
 0x338   :  { %v15137_v51 = vld [vmem:[#allocation2 + $0x10a4] ss:$44 sps:$4 sm:$0xff]  }
 0x33a   :  { %6065 = vmatpush1.bf16.msra.mxu0 %v15063_v52  ;;  %13776 = vmatpush3.bf16.msra.mxu1 %v15066_v53  ;;  %v15140_v52 = vld [vmem:[#allocation6 + $0x1c4] ss:$28 sps:$4 sm:$0xff]  }
 0x33b   :  { %6066 = vmatprep.subr.bf16.mxu0 %v15069_v33  ;;  %13777 = vmatprep.subr.bf16.mxu1 %v16294_v46  ;;  %v15135_v53 = vld [vmem:[#allocation2 + $0x10a0] ss:$44 sps:$4 sm:$0xff]  }
 0x33c   :  { %v15138_v33 = vld [vmem:[#allocation6 + $0x1c0] ss:$28 sps:$4 sm:$0xff]  }
 0x33e   :  { %6067 = vmatpush1.bf16.msra.mxu0 %v15067_v54  ;;  %13778 = vmatpush3.bf16.msra.mxu1 %v15070_v55  ;;  %v15143_v54 = vld [vmem:[#allocation2 + $0x10fc] ss:$44 sps:$4 sm:$0xff]  }
 0x33f   :  { %6068 = vmatprep.subr.bf16.mxu0 %v15073_v56  ;;  %13779 = vmatprep.subr.bf16.mxu1 %v16294_v46  ;;  %v15146_v55 = vld [vmem:[#allocation6 + $0x1fc] ss:$28 sps:$4 sm:$0xff]  }
 0x340   :  { %v15141_v56 = vld [vmem:[#allocation2 + $0x10f8] ss:$44 sps:$4 sm:$0xff]  }
 0x342   :  { %6069 = vmatpush1.bf16.msra.mxu0 %v15071_v59  ;;  %13780 = vmatpush3.bf16.msra.mxu1 %v15074_v38  ;;  %v15144_v59 = vld [vmem:[#allocation6 + $0x1f8] ss:$28 sps:$4 sm:$0xff]  }
 0x343   :  { %6070 = vmatprep.subr.bf16.mxu0 %v15077_v62  ;;  %13781 = vmatprep.subr.bf16.mxu1 %v16294_v46  ;;  %v15149_v38 = vld [vmem:[#allocation2 + $0x1154] ss:$44 sps:$4 sm:$0xff]  }
 0x344   :  { %v15152_v62 = vld [vmem:[#allocation6 + $0x234] ss:$28 sps:$4 sm:$0xff]  }
 0x346   :  { %6071 = vmatpush1.bf16.msra.mxu0 %v15075_v63  ;;  %13782 = vmatpush3.bf16.msra.mxu1 %v15078_v0  ;;  %v15147_v63 = vld [vmem:[#allocation2 + $0x1150] ss:$44 sps:$4 sm:$0xff]  }
 0x347   :  { %6072 = vmatprep.subr.bf16.mxu0 %v15081_v1  ;;  %13783 = vmatprep.subr.bf16.mxu1 %v16294_v46  ;;  %v15150_v0 = vld [vmem:[#allocation6 + $0x230] ss:$28 sps:$4 sm:$0xff]  }
 0x348   :  { %v15155_v1 = vld [vmem:[#allocation2 + $0x11ac] ss:$44 sps:$4 sm:$0xff]  }
 0x34a   :  { %6073 = vmatpush1.bf16.msra.mxu0 %v15079_v2  ;;  %13784 = vmatpush3.bf16.msra.mxu1 %v15082_v3  ;;  %v15158_v2 = vld [vmem:[#allocation6 + $0x26c] ss:$28 sps:$4 sm:$0xff]  }
 0x34b   :  { %6074 = vmatprep.subr.bf16.mxu0 %v15085_v5  ;;  %13785 = vmatprep.subr.bf16.mxu1 %v16294_v46  ;;  %v15153_v3 = vld [vmem:[#allocation2 + $0x11a8] ss:$44 sps:$4 sm:$0xff]  }
 0x34c   :  { %v15156_v5 = vld [vmem:[#allocation6 + $0x268] ss:$28 sps:$4 sm:$0xff]  }
 0x34e   :  { %6075 = vmatpush1.bf16.msra.mxu0 %v15083_v6  ;;  %13786 = vmatpush3.bf16.msra.mxu1 %v15086_v7  ;;  %v15164_v6 = vld [vmem:[#allocation6 + $0x2a4] ss:$28 sps:$4 sm:$0xff]  }
 0x34f   :  { %6076 = vmatprep.subr.bf16.mxu0 %v15089_v8  ;;  %10336 = vmatprep.subr.bf16.mxu1 %v15092_v12  ;;  %v15159_v7 = vld [vmem:[#allocation2 + $0x1200] ss:$44 sps:$4 sm:$0xff]   ;;  %v999_v12 = vsub.s32 4, %v16458_v4 }
 0x350   :  { %v15162_v8 = vld [vmem:[#allocation6 + $0x2a0] ss:$28 sps:$4 sm:$0xff]  }
 0x351   :  { %13788 = vmatmul.mubr.bf16.vlgmr.msra.gmra.mrb[24].mxu1 %v16136_v21  ;;  %v15165_v21 = vld [vmem:[#allocation2 + $0x1258] ss:$44 sps:$4 sm:$0xff]  }
 0x352   :  { %6077 = vmatpush1.bf16.msra.mxu0 %v15087_v15  ;;  %10337 = vmatpush1.bf16.msra.mxu1 %v15090_v16  ;;  %v1003_v15 = vsub.s32 5, %v16458_v4  ;;  %v1011_v16 = vsub.s32 7, %v16458_v4 }
 0x353   :  { %10368 = vmatprep.mubr.bf16.mxu1 %v16479_v60  ;;  %6078 = vmatprep.subr.bf16.mxu0 %v15095_v19  ;;  %v15167_v19 = vld [vmem:[#allocation2 + $0x125c] ss:$44 sps:$4 sm:$0xff]  }
 0x354   :  { %10338 = vmatprep.subr.bf16.mxu1 %v15098_v20  ;;  %v15170_v20 = vld [vmem:[#allocation6 + $0x2dc] ss:$28 sps:$4 sm:$0xff]  }
 0x356   :  { %6079 = vmatpush1.bf16.msra.mxu0 %v15093_v22  ;;  %10339 = vmatpush1.bf16.msra.mxu1 %v15096_v23  ;;  %v15168_v22 = vld [vmem:[#allocation6 + $0x2d8] ss:$28 sps:$4 sm:$0xff]  }
 0x357   :  { %6080 = vmatprep.subr.bf16.mxu0 %v15101_v24  ;;  %10340 = vmatprep.subr.bf16.mxu1 %v15104_v25  ;;  %v16137_v23 = vld [vmem:[#allocation4] sm:$0xff] }
 0x358   :  { %v1000_v24 = vrot.slane %v16137_v23, %v999_v12 }
 0x35a   :  { %6081 = vmatpush1.bf16.msra.mxu0 %v15099_v26  ;;  %10341 = vmatpush1.bf16.msra.mxu1 %v15102_v27  ;;  %v15173_v26 = vld [vmem:[#allocation2 + $0x12b4] ss:$44 sps:$4 sm:$0xff]  }
 0x35b   :  { %6082 = vmatprep.subr.bf16.mxu0 %v15107_v28  ;;  %10342 = vmatprep.subr.bf16.mxu1 %v15110_v29  ;;  %v15176_v27 = vld [vmem:[#allocation6 + $0x314] ss:$28 sps:$4 sm:$0xff]   ;;  %v1004_v28 = vrot.slane %v16137_v23, %v1003_v15  ;;  %v1012_v29 = vrot.slane %v16137_v23, %v1011_v16 }
 0x35c   :  { %v15191_v16 = vld [vmem:[#allocation2 + $0x13bc] ss:$44 sps:$4 sm:$0xff]  }
 0x35e   :  { %6083 = vmatpush1.bf16.msra.mxu0 %v15105_v30  ;;  %10343 = vmatpush1.bf16.msra.mxu1 %v15108_v31 }
 0x35f   :  { %6084 = vmatprep.subr.bf16.mxu0 %v15113_v32  ;;  %10344 = vmatprep.subr.bf16.mxu1 %v15116_v34  ;;  %v15171_v32 = vld [vmem:[#allocation2 + $0x12b0] ss:$44 sps:$4 sm:$0xff]  }
 0x362   :  { %6085 = vmatpush1.bf16.msra.mxu0 %v15111_v35  ;;  %10345 = vmatpush1.bf16.msra.mxu1 %v15114_v36 }
 0x363   :  { %6086 = vmatprep.subr.bf16.mxu0 %v15119_v37  ;;  %10346 = vmatprep.subr.bf16.mxu1 %v15122_v39  ;;  %v15174_v39 = vld [vmem:[#allocation6 + $0x310] ss:$28 sps:$4 sm:$0xff]  }
 0x366   :  { %6087 = vmatpush1.bf16.msra.mxu0 %v15117_v40  ;;  %10347 = vmatpush1.bf16.msra.mxu1 %v15120_v41  ;;  %v15179_v40 = vld [vmem:[#allocation2 + $0x130c] ss:$44 sps:$4 sm:$0xff]  }
 0x367   :  { %6088 = vmatprep.subr.bf16.mxu0 %v15125_v42  ;;  %10348 = vmatprep.subr.bf16.mxu1 %v15128_v43 }
 0x36a   :  { %6089 = vmatpush1.bf16.msra.mxu0 %v15123_v44  ;;  %10349 = vmatpush1.bf16.msra.mxu1 %v15126_v45 }
 0x36b   :  { %6090 = vmatprep.subr.bf16.mxu0 %v15131_v47  ;;  %10350 = vmatprep.subr.bf16.mxu1 %v15134_v48 }
 0x36e   :  { %6091 = vmatpush1.bf16.msra.mxu0 %v15129_v49  ;;  %10351 = vmatpush1.bf16.msra.mxu1 %v15132_v50  ;;  %v15182_v50 = vld [vmem:[#allocation6 + $0x34c] ss:$28 sps:$4 sm:$0xff]  }
 0x36f   :  { %6103 = vmatprep.subr.bf16.mxu0 %v15137_v51  ;;  %10352 = vmatprep.subr.bf16.mxu1 %v15140_v52 }
 0x371   :  { %6093 = vmatmul.mubr.bf16.vlgmr.msra.gmra.mrb[8].mxu0 %v16523_v9  ;;  %v15161_v9 = vld [vmem:[#allocation2 + $0x1204] ss:$44 sps:$4 sm:$0xff]  }
 0x372   :  { %6104 = vmatpush1.bf16.msra.mxu0 %v15135_v53  ;;  %10353 = vmatpush1.bf16.msra.mxu1 %v15138_v33 }
 0x373   :  { %6105 = vmatprep.subr.bf16.mxu0 %v15143_v54  ;;  %10354 = vmatprep.subr.bf16.mxu1 %v15146_v55  ;;  %v15177_v54 = vld [vmem:[#allocation2 + $0x1308] ss:$44 sps:$4 sm:$0xff]  }
 0x374   :  { %6135 = vmatprep.mubr.bf16.mxu0 %v16529_v17  ;;  %v1007_v17 = vsub.s32 6, %v16458_v4 }
 0x376   :  { %6106 = vmatpush1.bf16.msra.mxu0 %v15141_v56  ;;  %10355 = vmatpush1.bf16.msra.mxu1 %v15144_v59  ;;  %v1008_v25 = vrot.slane %v16137_v23, %v1007_v17  ;;  %v15200_v23 = vld [vmem:[#allocation6 + $0x3f4] ss:$28 sps:$4 sm:$0xff]  }
 0x377   :  { %6107 = vmatprep.subr.bf16.mxu0 %v15149_v38  ;;  %10356 = vmatprep.subr.bf16.mxu1 %v15152_v62  ;;  %v15180_v62 = vld [vmem:[#allocation6 + $0x348] ss:$28 sps:$4 sm:$0xff]  }
 0x37a   :  { %6108 = vmatpush1.bf16.msra.mxu0 %v15147_v63  ;;  %10357 = vmatpush1.bf16.msra.mxu1 %v15150_v0 }
 0x37b   :  { %6109 = vmatprep.subr.bf16.mxu0 %v15155_v1  ;;  %10358 = vmatprep.subr.bf16.mxu1 %v15158_v2 }
 0x37e   :  { %6110 = vmatpush1.bf16.msra.mxu0 %v15153_v3  ;;  %10359 = vmatpush1.bf16.msra.mxu1 %v15156_v5  ;;  %v15185_v3 = vld [vmem:[#allocation2 + $0x1364] ss:$44 sps:$4 sm:$0xff]  }
 0x37f   :  { %6111 = vmatprep.subr.bf16.mxu0 %v15161_v9  ;;  %10360 = vmatprep.subr.bf16.mxu1 %v15164_v6  ;;  %v15188_v5 = vld [vmem:[#allocation6 + $0x384] ss:$28 sps:$4 sm:$0xff]  }
 0x382   :  { %6112 = vmatpush1.bf16.msra.mxu0 %v15159_v7  ;;  %10361 = vmatpush1.bf16.msra.mxu1 %v15162_v8  ;;  %v15183_v7 = vld [vmem:[#allocation2 + $0x1360] ss:$44 sps:$4 sm:$0xff]  }
 0x383   :  { %6113 = vmatprep.subr.bf16.mxu0 %v15167_v19  ;;  %10362 = vmatprep.subr.bf16.mxu1 %v15170_v20  ;;  %v15186_v8 = vld [vmem:[#allocation6 + $0x380] ss:$28 sps:$4 sm:$0xff]   ;;  %v15189_v19 = vld [vmem:[#allocation2 + $0x13b8] ss:$44 sps:$4 sm:$0xff]  }
 0x384   :  { %v5750_v30 = vpop.f32.mrb[4].mxu0  ;;  %v5965_v31 = vpop.f32.mrb[4].mxu1  ;;  %v15192_v20 = vld [vmem:[#allocation6 + $0x3b8] ss:$28 sps:$4 sm:$0xff]  }
 0x385   :  { %v13839_v34 = vadd.f32 %v5750_v30, %v1000_v24  ;;  %v13843_v35 = vadd.f32 %v5965_v31, %v1008_v25  ;;  %v5752_v36 = vpop.f32.mrb[5].mxu0  ;;  %v5967_v37 = vpop.f32.mrb[5].mxu1  ;;  %v15209_v30 = vld [vmem:[#allocation2 + $0x14c4] ss:$44 sps:$4 sm:$0xff]  }
 0x386   :  { %v13840_v41 = vadd.f32 %v5752_v36, %v1004_v28  ;;  %v13844_v42 = vadd.f32 %v5967_v37, %v1012_v29  ;;  %v5754_v43 = vpop.f32.mrb[6].mxu0  ;;  %v5969_v44 = vpop.f32.mrb[6].mxu1  ;;  %6114 = vmatpush1.bf16.msra.mxu0 %v15165_v21  ;;  %10363 = vmatpush1.bf16.msra.mxu1 %v15168_v22  ;;  %v15194_v21 = vld [vmem:[#allocation6 + $0x3bc] ss:$28 sps:$4 sm:$0xff]   ;;  %v15197_v22 = vld [vmem:[#allocation2 + $0x1414] ss:$44 sps:$4 sm:$0xff]  }
 0x387   :  { %v13841_v45 = vadd.f32 %v5754_v43, %v1000_v24  ;;  %v13845_v47 = vadd.f32 %v5969_v44, %v1008_v25  ;;  %v5756_v48 = vpop.f32.mrb[7].mxu0  ;;  %v5971_v49 = vpop.f32.mrb[7].mxu1  ;;  %6115 = vmatprep.subr.bf16.mxu0 %v15173_v26  ;;  %10364 = vmatprep.subr.bf16.mxu1 %v15176_v27  ;;  %v6398_v51 = vmax.f32 %v13839_v34, 0.0  ;;  %v6400_v52 = vmax.f32 %v13843_v35, 0.0  ;;  %v15195_v24 = vld [vmem:[#allocation2 + $0x1410] ss:$44 sps:$4 sm:$0xff]  }
 0x388   :  { %v13842_v53 = vadd.f32 %v5756_v48, %v1004_v28  ;;  %v13846_v33 = vadd.f32 %v5971_v49, %v1012_v29  ;;  %v6399_v55 = vmax.f32 %v13840_v41, 0.0  ;;  %v6401_v56 = vmax.f32 %v13844_v42, 0.0  ;;  %v15198_v25 = vld [vmem:[#allocation6 + $0x3f0] ss:$28 sps:$4 sm:$0xff]   ;;  %v15201_v28 = vld [vmem:[#allocation2 + $0x1468] ss:$44 sps:$4 sm:$0xff]  }
 0x389   :  { %v6409_v59 = vmax.f32 %v13841_v45, 0.0  ;;  %v6411_v38 = vmax.f32 %v13845_v47, 0.0  ;;  %v15203_v26 = vld [vmem:[#allocation2 + $0x146c] ss:$44 sps:$4 sm:$0xff]   ;;  %v15204_v29 = vld [vmem:[#allocation6 + $0x428] ss:$28 sps:$4 sm:$0xff]  }
 0x38a   :  { %v6410_v63 = vmax.f32 %v13842_v53, 0.0  ;;  %v6412_v0 = vmax.f32 %v13846_v33, 0.0  ;;  %6116 = vmatpush1.bf16.msra.mxu0 %v15171_v32  ;;  %10365 = vmatpush1.bf16.msra.mxu1 %v15174_v39  ;;  %v15206_v27 = vld [vmem:[#allocation6 + $0x42c] ss:$28 sps:$4 sm:$0xff]   ;;  %v15212_v31 = vld [vmem:[#allocation6 + $0x464] ss:$28 sps:$4 sm:$0xff]  }
 0x38b   :  { %v16563_v1 = vpack.c.bf16 %v6409_v59, %v6398_v51  ;;  %v16565_v2 = vpack.c.bf16 %v6411_v38, %v6400_v52  ;;  %6117 = vmatprep.subr.bf16.mxu0 %v15179_v40  ;;  %10366 = vmatprep.subr.bf16.mxu1 %v15182_v50  ;;  %v15207_v32 = vld [vmem:[#allocation2 + $0x14c0] ss:$44 sps:$4 sm:$0xff]   ;;  %v15215_v35 = vld [vmem:[#allocation2 + $0x151c] ss:$44 sps:$4 sm:$0xff]   ;;  %v15213_v37 = vld [vmem:[#allocation2 + $0x1518] ss:$44 sps:$4 sm:$0xff]  }
 0x38c   :  { %v16567_v9 = vpack.c.bf16 %v6410_v63, %v6399_v55  ;;  %v16569_v6 = vpack.c.bf16 %v6412_v0, %v6401_v56  ;;  %v15210_v34 = vld [vmem:[#allocation6 + $0x460] ss:$28 sps:$4 sm:$0xff]   ;;  %v15216_v39 = vld [vmem:[#allocation6 + $0x498] ss:$28 sps:$4 sm:$0xff]   ;;  %v15219_v43 = vld [vmem:[#allocation2 + $0x1570] ss:$44 sps:$4 sm:$0xff]  }
 0x38d   :  { %v15218_v36 = vld [vmem:[#allocation6 + $0x49c] ss:$28 sps:$4 sm:$0xff]   ;;  %v15221_v40 = vld [vmem:[#allocation2 + $0x1574] ss:$44 sps:$4 sm:$0xff]   ;;  %v15222_v44 = vld [vmem:[#allocation6 + $0x4d0] ss:$28 sps:$4 sm:$0xff]  }
 0x38e   :  { %6118 = vmatpush1.bf16.msra.mxu0 %v15177_v54  ;;  %10367 = vmatpush1.bf16.msra.mxu1 %v15180_v62  ;;  %v15224_v41 = vld [vmem:[#allocation6 + $0x4d4] ss:$28 sps:$4 sm:$0xff]   ;;  %v15227_v47 = vld [vmem:[#allocation2 + $0x15cc] ss:$44 sps:$4 sm:$0xff]   ;;  %v15225_v53 = vld [vmem:[#allocation2 + $0x15c8] ss:$44 sps:$4 sm:$0xff]  }
 0x38f   :  { %6119 = vmatprep.subr.bf16.mxu0 %v15185_v3  ;;  %10379 = vmatprep.subr.bf16.mxu1 %v15188_v5  ;;  %v15230_v48 = vld [vmem:[#allocation6 + $0x50c] ss:$28 sps:$4 sm:$0xff]   ;;  %v15233_v54 = vld [vmem:[#allocation2 + $0x1624] ss:$44 sps:$4 sm:$0xff]   ;;  %v15231_v56 = vld [vmem:[#allocation2 + $0x1620] ss:$44 sps:$4 sm:$0xff]  }
 0x390   :  { %v15228_v33 = vld [vmem:[#allocation6 + $0x508] ss:$28 sps:$4 sm:$0xff]   ;;  %v15234_v59 = vld [vmem:[#allocation6 + $0x540] ss:$28 sps:$4 sm:$0xff]   ;;  %v15237_v63 = vld [vmem:[#allocation2 + $0x1678] ss:$44 sps:$4 sm:$0xff]  }
 0x391   :  { %10369 = vmatmul.mubr.bf16.vlgmr.msra.gmra.mrb[28].mxu1 %v16475_v57  ;;  %v15236_v55 = vld [vmem:[#allocation6 + $0x544] ss:$28 sps:$4 sm:$0xff]   ;;  %v15239_v38 = vld [vmem:[#allocation2 + $0x167c] ss:$44 sps:$4 sm:$0xff]   ;;  %v15240_v0 = vld [vmem:[#allocation6 + $0x578] ss:$28 sps:$4 sm:$0xff]  }
 0x392   :  { %6120 = vmatpush1.bf16.msra.mxu0 %v15183_v7  ;;  %10380 = vmatpush1.bf16.msra.mxu1 %v15186_v8  ;;  %v15242_v62 = vld [vmem:[#allocation6 + $0x57c] ss:$28 sps:$4 sm:$0xff]   ;;  %v16138_v3 = vld [vmem:[%s16712_s0 + $0x18] ss:$36 sps:$4 sm:$0xff]   ;;  %v15245_v5 = vld [vmem:[#allocation2 + $0x16d4] ss:$44 sps:$4 sm:$0xff]  }
 0x393   :  { %10411 = vmatprep.mubr.bf16.mxu1 %v16481_v61  ;;  %6121 = vmatprep.subr.bf16.mxu0 %v15191_v16  ;;  %v15248_v7 = vld [vmem:[#allocation6 + $0x5b4] ss:$28 sps:$4 sm:$0xff]  }
 0x394   :  { %10381 = vmatprep.subr.bf16.mxu1 %v15194_v21  ;;  %v15243_v8 = vld [vmem:[#allocation2 + $0x16d0] ss:$44 sps:$4 sm:$0xff]   ;;  %v15249_v21 = vld [vmem:[#allocation2 + $0x1728] ss:$44 sps:$4 sm:$0xff]  }
 0x395   :  { %v15246_v16 = vld [vmem:[#allocation6 + $0x5b0] ss:$28 sps:$4 sm:$0xff]  }
 0x396   :  { %6122 = vmatpush1.bf16.msra.mxu0 %v15189_v19  ;;  %10382 = vmatpush1.bf16.msra.mxu1 %v15192_v20  ;;  %v15251_v19 = vld [vmem:[#allocation2 + $0x172c] ss:$44 sps:$4 sm:$0xff]  }
 0x397   :  { %6123 = vmatprep.subr.bf16.mxu0 %v15197_v22  ;;  %10383 = vmatprep.subr.bf16.mxu1 %v15200_v23  ;;  %v15254_v20 = vld [vmem:[#allocation6 + $0x5ec] ss:$28 sps:$4 sm:$0xff]   ;;  %v978_v23 = vld [vmem:[#allocation4 + $0x8] sm:$0x7] }
 0x398   :  { %v15252_v22 = vld [vmem:[#allocation6 + $0x5e8] ss:$28 sps:$4 sm:$0xff]  }
 0x39a   :  { %6124 = vmatpush1.bf16.msra.mxu0 %v15195_v24  ;;  %10384 = vmatpush1.bf16.msra.mxu1 %v15198_v25  ;;  %v15257_v24 = vld [vmem:[#allocation2 + $0x1784] ss:$44 sps:$4 sm:$0xff]  }
 0x39b   :  { %6125 = vmatprep.subr.bf16.mxu0 %v15203_v26  ;;  %10385 = vmatprep.subr.bf16.mxu1 %v15206_v27  ;;  %v15260_v25 = vld [vmem:[#allocation6 + $0x624] ss:$28 sps:$4 sm:$0xff]  }
 0x39c   :  { %v15255_v26 = vld [vmem:[#allocation2 + $0x1780] ss:$44 sps:$4 sm:$0xff]  }
 0x39d   :  { %v15258_v27 = vld [vmem:[#allocation6 + $0x620] ss:$28 sps:$4 sm:$0xff]  }
 0x39e   :  { %6126 = vmatpush1.bf16.msra.mxu0 %v15201_v28  ;;  %10386 = vmatpush1.bf16.msra.mxu1 %v15204_v29  ;;  %v15263_v28 = vld [vmem:[#allocation2 + $0x17dc] ss:$44 sps:$4 sm:$0xff]  }
 0x39f   :  { %6127 = vmatprep.subr.bf16.mxu0 %v15209_v30  ;;  %10387 = vmatprep.subr.bf16.mxu1 %v15212_v31  ;;  %v15266_v29 = vld [vmem:[#allocation6 + $0x65c] ss:$28 sps:$4 sm:$0xff]   ;;  %v1024_v30 = vrot.slane %v978_v23, %v16464_v11  ;;  %v15308_v23 = vld [vmem:[#allocation6 + $0xec] ss:$28 sps:$4 sm:$0xff]  }
 0x3a0   :  { %v15261_v31 = vld [vmem:[#allocation2 + $0x17d8] ss:$44 sps:$4 sm:$0xff]  }
 0x3a2   :  { %6128 = vmatpush1.bf16.msra.mxu0 %v15207_v32  ;;  %10388 = vmatpush1.bf16.msra.mxu1 %v15210_v34  ;;  %v15264_v32 = vld [vmem:[#allocation6 + $0x658] ss:$28 sps:$4 sm:$0xff]  }
 0x3a3   :  { %6129 = vmatprep.subr.bf16.mxu0 %v15215_v35  ;;  %10389 = vmatprep.subr.bf16.mxu1 %v15218_v36  ;;  %v15269_v34 = vld [vmem:[#allocation2 + $0x1834] ss:$44 sps:$4 sm:$0xff]  }
 0x3a4   :  { %v13496_v42 = vpop.f32.mrb[8].mxu1  ;;  %v15272_v35 = vld [vmem:[#allocation6 + $0x694] ss:$28 sps:$4 sm:$0xff]  }
 0x3a5   :  { %v13497_v45 = vpop.f32.mrb[9].mxu1 }
 0x3a6   :  { %6130 = vmatpush1.bf16.msra.mxu0 %v15213_v37  ;;  %10390 = vmatpush1.bf16.msra.mxu1 %v15216_v39  ;;  %v16573_v49 = vadd.f32 %v13497_v45, %v13496_v42  ;;  %v13499_v50 = vpop.f32.mrb[10].mxu1  ;;  %v15267_v39 = vld [vmem:[#allocation2 + $0x1830] ss:$44 sps:$4 sm:$0xff]   ;;  %v15275_v45 = vld [vmem:[#allocation2 + $0x188c] ss:$44 sps:$4 sm:$0xff]  }
 0x3a7   :  { %6131 = vmatprep.subr.bf16.mxu0 %v15221_v40  ;;  %10391 = vmatprep.subr.bf16.mxu1 %v15224_v41  ;;  %v13500_v51 = vpop.f32.mrb[11].mxu1  ;;  %v15270_v40 = vld [vmem:[#allocation6 + $0x690] ss:$28 sps:$4 sm:$0xff]  }
 0x3a8   :  { %v16575_v52 = vadd.f32 %v13500_v51, %v13499_v50  ;;  %v6224_v36 = vadd.f32 %v16573_v49, %v1024_v30  ;;  %v15276_v49 = vld [vmem:[#allocation6 + $0x6c8] ss:$28 sps:$4 sm:$0xff]  }
 0x3aa   :  { %6132 = vmatpush1.bf16.msra.mxu0 %v15219_v43  ;;  %10392 = vmatpush1.bf16.msra.mxu1 %v15222_v44 }
 0x3ab   :  { %6133 = vmatprep.subr.bf16.mxu0 %v15227_v47  ;;  %10393 = vmatprep.subr.bf16.mxu1 %v15230_v48  ;;  %v15278_v47 = vld [vmem:[#allocation6 + $0x6cc] ss:$28 sps:$4 sm:$0xff]   ;;  %v6227_v48 = vadd.f32 %v16575_v52, %v1024_v30  ;;  %v16139_v52 = vld [vmem:[%s16712_s0 + $0x20] ss:$36 sps:$4 sm:$0xff]  }
 0x3ac   :  { %v15317_v30 = vld [vmem:[#allocation6 + $0x854] ss:$28 sps:$4 sm:$0xff]  }
 0x3ae   :  { %6134 = vmatpush1.bf16.msra.mxu0 %v15225_v53  ;;  %10394 = vmatpush1.bf16.msra.mxu1 %v15228_v33  ;;  %v15273_v53 = vld [vmem:[#allocation2 + $0x1888] ss:$44 sps:$4 sm:$0xff]  }
 0x3af   :  { %6146 = vmatprep.subr.bf16.mxu0 %v15233_v54  ;;  %10395 = vmatprep.subr.bf16.mxu1 %v15236_v55  ;;  %v15281_v54 = vld [vmem:[#allocation6 + $0x704] ss:$28 sps:$4 sm:$0xff]   ;;  %v15284_v55 = vld [vmem:[#allocation6 + $0xc] ss:$28 sps:$4 sm:$0xff]  }
 0x3b1   :  { %6136 = vmatmul.mubr.bf16.vlgmr.msra.gmra.mrb[8].mxu0 %v16138_v3  ;;  %v15293_v3 = vld [vmem:[#allocation6 + $0x774] ss:$28 sps:$4 sm:$0xff]  }
 0x3b2   :  { %6147 = vmatpush1.bf16.msra.mxu0 %v15231_v56  ;;  %10396 = vmatpush1.bf16.msra.mxu1 %v15234_v59  ;;  %v15279_v56 = vld [vmem:[#allocation6 + $0x700] ss:$28 sps:$4 sm:$0xff]   ;;  %v15282_v59 = vld [vmem:[#allocation6 + $0x8] ss:$28 sps:$4 sm:$0xff]  }
 0x3b3   :  { %6148 = vmatprep.subr.bf16.mxu0 %v15239_v38  ;;  %10397 = vmatprep.subr.bf16.mxu1 %v15242_v62  ;;  %v15287_v38 = vld [vmem:[#allocation6 + $0x73c] ss:$28 sps:$4 sm:$0xff]   ;;  %v15290_v62 = vld [vmem:[#allocation6 + $0x44] ss:$28 sps:$4 sm:$0xff]  }
 0x3b4   :  { %6178 = vmatprep.mubr.bf16.mxu0 %v16293_v18 }
 0x3b6   :  { %6149 = vmatpush1.bf16.msra.mxu0 %v15237_v63  ;;  %10398 = vmatpush1.bf16.msra.mxu1 %v15240_v0  ;;  %v15285_v63 = vld [vmem:[#allocation6 + $0x738] ss:$28 sps:$4 sm:$0xff]   ;;  %v15288_v0 = vld [vmem:[#allocation6 + $0x40] ss:$28 sps:$4 sm:$0xff]  }
 0x3b7   :  { %6150 = vmatprep.subr.bf16.mxu0 %v15245_v5  ;;  %10399 = vmatprep.subr.bf16.mxu1 %v15248_v7  ;;  %v15296_v5 = vld [vmem:[#allocation6 + $0x7c] ss:$28 sps:$4 sm:$0xff]   ;;  %v15291_v7 = vld [vmem:[#allocation6 + $0x770] ss:$28 sps:$4 sm:$0xff]  }
 0x3ba   :  { %6151 = vmatpush1.bf16.msra.mxu0 %v15243_v8  ;;  %10400 = vmatpush1.bf16.msra.mxu1 %v15246_v16  ;;  %v15294_v8 = vld [vmem:[#allocation6 + $0x78] ss:$28 sps:$4 sm:$0xff]   ;;  %v15299_v16 = vld [vmem:[#allocation6 + $0x7ac] ss:$28 sps:$4 sm:$0xff]  }
 0x3bb   :  { %6152 = vmatprep.subr.bf16.mxu0 %v15251_v19  ;;  %10401 = vmatprep.subr.bf16.mxu1 %v15254_v20  ;;  %v15302_v19 = vld [vmem:[#allocation6 + $0xb4] ss:$28 sps:$4 sm:$0xff]   ;;  %v15297_v20 = vld [vmem:[#allocation6 + $0x7a8] ss:$28 sps:$4 sm:$0xff]  }
 0x3be   :  { %6153 = vmatpush1.bf16.msra.mxu0 %v15249_v21  ;;  %10402 = vmatpush1.bf16.msra.mxu1 %v15252_v22  ;;  %v15300_v21 = vld [vmem:[#allocation6 + $0xb0] ss:$28 sps:$4 sm:$0xff]   ;;  %v15305_v22 = vld [vmem:[#allocation6 + $0x7e4] ss:$28 sps:$4 sm:$0xff]  }
 0x3bf   :  { %6154 = vmatprep.subr.bf16.mxu0 %v15257_v24  ;;  %10403 = vmatprep.subr.bf16.mxu1 %v15260_v25  ;;  %v15303_v24 = vld [vmem:[#allocation6 + $0x7e0] ss:$28 sps:$4 sm:$0xff]   ;;  %v15306_v25 = vld [vmem:[#allocation6 + $0xe8] ss:$28 sps:$4 sm:$0xff]  }
 0x3c2   :  { %6155 = vmatpush1.bf16.msra.mxu0 %v15255_v26  ;;  %10404 = vmatpush1.bf16.msra.mxu1 %v15258_v27  ;;  %v15311_v26 = vld [vmem:[#allocation6 + $0x81c] ss:$28 sps:$4 sm:$0xff]   ;;  %v15314_v27 = vld [vmem:[#allocation6 + $0x124] ss:$28 sps:$4 sm:$0xff]  }
 0x3c3   :  { %6156 = vmatprep.subr.bf16.mxu0 %v15263_v28  ;;  %10405 = vmatprep.subr.bf16.mxu1 %v15266_v29  ;;  %v15309_v28 = vld [vmem:[#allocation6 + $0x818] ss:$28 sps:$4 sm:$0xff]   ;;  %v15312_v29 = vld [vmem:[#allocation6 + $0x120] ss:$28 sps:$4 sm:$0xff]  }
 0x3c4   :  { %v13518_v37 = vpop.f32.mrb[12].mxu1 }
 0x3c5   :  { %v13519_v41 = vpop.f32.mrb[13].mxu1 }
 0x3c6   :  { %v13520_v42 = vadd.f32 %v13519_v41, %v13518_v37  ;;  %6157 = vmatpush1.bf16.msra.mxu0 %v15261_v31  ;;  %v13521_v43 = vpop.f32.mrb[14].mxu1  ;;  %10406 = vmatpush1.bf16.msra.mxu1 %v15264_v32  ;;  %v15320_v31 = vld [vmem:[#allocation6 + $0x15c] ss:$28 sps:$4 sm:$0xff]   ;;  %v15323_v41 = vld [vmem:[#allocation6 + $0x88c] ss:$28 sps:$4 sm:$0xff]  }
 0x3c7   :  { %v13522_v44 = vpop.f32.mrb[15].mxu1  ;;  %6158 = vmatprep.subr.bf16.mxu0 %v15269_v34  ;;  %10407 = vmatprep.subr.bf16.mxu1 %v15272_v35  ;;  %v15315_v34 = vld [vmem:[#allocation6 + $0x850] ss:$28 sps:$4 sm:$0xff]  }
 0x3c8   :  { %v16584_v50 = vadd.f32 %v13520_v42, %v6224_v36  ;;  %v13523_v51 = vadd.f32 %v13522_v44, %v13521_v43  ;;  %v15318_v36 = vld [vmem:[#allocation6 + $0x158] ss:$28 sps:$4 sm:$0xff]  }
 0x3c9   :  { %v15326_v42 = vld [vmem:[#allocation6 + $0x194] ss:$28 sps:$4 sm:$0xff]  }
 0x3ca   :  { %v16586_v33 = vadd.f32 %v13523_v51, %v6227_v48  ;;  %6159 = vmatpush1.bf16.msra.mxu0 %v15267_v39  ;;  %10408 = vmatpush1.bf16.msra.mxu1 %v15270_v40  ;;  %v15324_v48 = vld [vmem:[#allocation6 + $0x190] ss:$28 sps:$4 sm:$0xff]   ;;  %v15329_v51 = vld [vmem:[#allocation6 + $0x8c4] ss:$28 sps:$4 sm:$0xff]  }
 0x3cb   :  { %6160 = vmatprep.subr.bf16.mxu0 %v15275_v45  ;;  %10409 = vmatprep.subr.bf16.mxu1 %v15278_v47  ;;  %v15321_v45 = vld [vmem:[#allocation6 + $0x888] ss:$28 sps:$4 sm:$0xff]  }
 0x3ce   :  { %6161 = vmatpush1.bf16.msra.mxu0 %v15273_v53  ;;  %10410 = vmatpush1.bf16.msra.mxu1 %v15276_v49  ;;  %v15327_v53 = vld [vmem:[#allocation6 + $0x8c0] ss:$28 sps:$4 sm:$0xff]   ;;  %v15332_v49 = vld [vmem:[#allocation6 + $0x1cc] ss:$28 sps:$4 sm:$0xff]  }
 0x3cf   :  { %10422 = vmatprep.subr.bf16.mxu1 %v15281_v54  ;;  %10594 = vmatprep.subr.bf16.mxu0 %v15284_v55  ;;  %v15330_v54 = vld [vmem:[#allocation6 + $0x1c8] ss:$28 sps:$4 sm:$0xff]   ;;  %v15333_v55 = vld [vmem:[#allocation6 + $0x8f8] ss:$28 sps:$4 sm:$0xff]  }
 0x3d1   :  { %6179 = vmatmul.mubr.bf16.vlgmr.msra.gmra.mrb[8].mxu0 %v16139_v52  ;;  %10412 = vmatmul.mubr.bf16.vlgmr.msra.gmra.mrb[28].mxu1 %v16477_v58  ;;  %v15342_v52 = vld [vmem:[#allocation6 + $0x238] ss:$28 sps:$4 sm:$0xff]  }
 0x3d2   :  { %10423 = vmatpush1.bf16.msra.mxu1 %v15279_v56  ;;  %10454 = vmatprep.mubr.bf16.mxu1 %v16567_v9  ;;  %v15338_v56 = vld [vmem:[#allocation6 + $0x204] ss:$28 sps:$4 sm:$0xff]  }
 0x3d3   :  { %10595 = vmatpush1.bf16.msra.mxu0 %v15282_v59  ;;  %10626 = vmatprep.mubr.bf16.mxu0 %v16479_v60  ;;  %v15341_v59 = vld [vmem:[#allocation6 + $0x934] ss:$28 sps:$4 sm:$0xff]  }
 0x3d4   :  { %10424 = vmatprep.subr.bf16.mxu1 %v15287_v38  ;;  %10596 = vmatprep.subr.bf16.mxu0 %v15290_v62  ;;  %v15339_v38 = vld [vmem:[#allocation6 + $0x930] ss:$28 sps:$4 sm:$0xff]   ;;  %v15344_v62 = vld [vmem:[#allocation6 + $0x23c] ss:$28 sps:$4 sm:$0xff]  }
 0x3d6   :  { %10425 = vmatpush1.bf16.msra.mxu1 %v15285_v63  ;;  %v15347_v63 = vld [vmem:[#allocation6 + $0x96c] ss:$28 sps:$4 sm:$0xff]  }
 0x3d7   :  { %10597 = vmatpush1.bf16.msra.mxu0 %v15288_v0  ;;  %10426 = vmatprep.subr.bf16.mxu1 %v15293_v3  ;;  %v15345_v0 = vld [vmem:[#allocation6 + $0x968] ss:$28 sps:$4 sm:$0xff]   ;;  %v15350_v3 = vld [vmem:[#allocation6 + $0x274] ss:$28 sps:$4 sm:$0xff]  }
 0x3d8   :  { %10598 = vmatprep.subr.bf16.mxu0 %v15296_v5  ;;  %v15348_v5 = vld [vmem:[#allocation6 + $0x270] ss:$28 sps:$4 sm:$0xff]  }
 0x3da   :  { %10427 = vmatpush1.bf16.msra.mxu1 %v15291_v7  ;;  %v15353_v7 = vld [vmem:[#allocation6 + $0x9a4] ss:$28 sps:$4 sm:$0xff]  }
 0x3db   :  { %10599 = vmatpush1.bf16.msra.mxu0 %v15294_v8  ;;  %10428 = vmatprep.subr.bf16.mxu1 %v15299_v16  ;;  %v15356_v8 = vld [vmem:[#allocation6 + $0x2ac] ss:$28 sps:$4 sm:$0xff]   ;;  %v15351_v16 = vld [vmem:[#allocation6 + $0x9a0] ss:$28 sps:$4 sm:$0xff]  }
 0x3dc   :  { %10600 = vmatprep.subr.bf16.mxu0 %v15302_v19  ;;  %v15354_v19 = vld [vmem:[#allocation6 + $0x2a8] ss:$28 sps:$4 sm:$0xff]  }
 0x3de   :  { %10429 = vmatpush1.bf16.msra.mxu1 %v15297_v20  ;;  %v15359_v20 = vld [vmem:[#allocation6 + $0x9dc] ss:$28 sps:$4 sm:$0xff]  }
 0x3df   :  { %10601 = vmatpush1.bf16.msra.mxu0 %v15300_v21  ;;  %10430 = vmatprep.subr.bf16.mxu1 %v15305_v22  ;;  %v15362_v21 = vld [vmem:[#allocation6 + $0x2e4] ss:$28 sps:$4 sm:$0xff]   ;;  %v15357_v22 = vld [vmem:[#allocation6 + $0x9d8] ss:$28 sps:$4 sm:$0xff]  }
 0x3e0   :  { %10602 = vmatprep.subr.bf16.mxu0 %v15308_v23  ;;  %v15360_v23 = vld [vmem:[#allocation6 + $0x2e0] ss:$28 sps:$4 sm:$0xff]  }
 0x3e2   :  { %10431 = vmatpush1.bf16.msra.mxu1 %v15303_v24  ;;  %v15365_v24 = vld [vmem:[#allocation6 + $0xa14] ss:$28 sps:$4 sm:$0xff]  }
 0x3e3   :  { %10603 = vmatpush1.bf16.msra.mxu0 %v15306_v25  ;;  %10432 = vmatprep.subr.bf16.mxu1 %v15311_v26  ;;  %v15368_v26 = vld [vmem:[#allocation6 + $0x31c] ss:$28 sps:$4 sm:$0xff]  }
 0x3e4   :  { %v13540_v32 = vpop.f32.mrb[16].mxu1  ;;  %10604 = vmatprep.subr.bf16.mxu0 %v15314_v27 }
 0x3e5   :  { %v13541_v35 = vpop.f32.mrb[17].mxu1 }
 0x3e6   :  { %v13542_v37 = vadd.f32 %v13541_v35, %v13540_v32  ;;  %v13543_v39 = vpop.f32.mrb[18].mxu1  ;;  %10433 = vmatpush1.bf16.msra.mxu1 %v15309_v28  ;;  %v15366_v32 = vld [vmem:[#allocation6 + $0x318] ss:$28 sps:$4 sm:$0xff]  }
 0x3e7   :  { %10605 = vmatpush1.bf16.msra.mxu0 %v15312_v29  ;;  %v13544_v40 = vpop.f32.mrb[19].mxu1  ;;  %10434 = vmatprep.subr.bf16.mxu1 %v15317_v30  ;;  %v15363_v30 = vld [vmem:[#allocation6 + $0xa10] ss:$28 sps:$4 sm:$0xff]  }
 0x3e8   :  { %v16595_v43 = vadd.f32 %v13542_v37, %v16584_v50  ;;  %v13545_v44 = vadd.f32 %v13544_v40, %v13543_v39  ;;  %10606 = vmatprep.subr.bf16.mxu0 %v15320_v31  ;;  %v15335_v50 = vld [vmem:[#allocation6 + $0x8fc] ss:$28 sps:$4 sm:$0xff]   ;;  %v15369_v39 = vld [vmem:[#allocation6 + $0xa48] ss:$28 sps:$4 sm:$0xff]  }
 0x3ea   :  { %v16598_v47 = vadd.f32 %v13545_v44, %v16586_v33  ;;  %10435 = vmatpush1.bf16.msra.mxu1 %v15315_v34  ;;  %v15336_v33 = vld [vmem:[#allocation6 + $0x200] ss:$28 sps:$4 sm:$0xff]   ;;  %v15371_v34 = vld [vmem:[#allocation6 + $0xa4c] ss:$28 sps:$4 sm:$0xff]  }
 0x3eb   :  { %10607 = vmatpush1.bf16.msra.mxu0 %v15318_v36  ;;  %10436 = vmatprep.subr.bf16.mxu1 %v15323_v41  ;;  %v15374_v36 = vld [vmem:[#allocation6 + $0x354] ss:$28 sps:$4 sm:$0xff]   ;;  %v15380_v44 = vld [vmem:[#allocation6 + $0x38c] ss:$28 sps:$4 sm:$0xff]  }
 0x3ec   :  { %10608 = vmatprep.subr.bf16.mxu0 %v15326_v42  ;;  %v15372_v41 = vld [vmem:[#allocation6 + $0x350] ss:$28 sps:$4 sm:$0xff]   ;;  %v15377_v42 = vld [vmem:[#allocation6 + $0xa84] ss:$28 sps:$4 sm:$0xff]  }
 0x3ee   :  { %10437 = vmatpush1.bf16.msra.mxu1 %v15321_v45  ;;  %v15375_v45 = vld [vmem:[#allocation6 + $0xa80] ss:$28 sps:$4 sm:$0xff]  }
 0x3ef   :  { %10609 = vmatpush1.bf16.msra.mxu0 %v15324_v48  ;;  %10438 = vmatprep.subr.bf16.mxu1 %v15329_v51  ;;  %v15378_v48 = vld [vmem:[#allocation6 + $0x388] ss:$28 sps:$4 sm:$0xff]   ;;  %v15383_v51 = vld [vmem:[#allocation6 + $0xabc] ss:$28 sps:$4 sm:$0xff]  }
 0x3f0   :  { %10610 = vmatprep.subr.bf16.mxu0 %v15332_v49  ;;  %v15389_v49 = vld [vmem:[#allocation6 + $0xaf4] ss:$28 sps:$4 sm:$0xff]  }
 0x3f2   :  { %10439 = vmatpush1.bf16.msra.mxu1 %v15327_v53  ;;  %v15384_v53 = vld [vmem:[#allocation6 + $0x3c0] ss:$28 sps:$4 sm:$0xff]  }
 0x3f3   :  { %10611 = vmatpush1.bf16.msra.mxu0 %v15330_v54  ;;  %10440 = vmatprep.subr.bf16.mxu1 %v15335_v50  ;;  %v15392_v54 = vld [vmem:[#allocation6 + $0x3fc] ss:$28 sps:$4 sm:$0xff]   ;;  %v15387_v50 = vld [vmem:[#allocation6 + $0xaf0] ss:$28 sps:$4 sm:$0xff]  }
 0x3f4   :  { %10612 = vmatprep.subr.bf16.mxu0 %v15338_v56  ;;  %v15395_v56 = vld [vmem:[#allocation6 + $0xb2c] ss:$28 sps:$4 sm:$0xff]  }
 0x3f6   :  { %10441 = vmatpush1.bf16.msra.mxu1 %v15333_v55  ;;  %v15390_v55 = vld [vmem:[#allocation6 + $0x3f8] ss:$28 sps:$4 sm:$0xff]  }
 0x3f7   :  { %10613 = vmatpush1.bf16.msra.mxu0 %v15336_v33  ;;  %10442 = vmatprep.subr.bf16.mxu1 %v15341_v59  ;;  %v15398_v33 = vld [vmem:[#allocation6 + $0x434] ss:$28 sps:$4 sm:$0xff]   ;;  %v15393_v59 = vld [vmem:[#allocation6 + $0xb28] ss:$28 sps:$4 sm:$0xff]  }
 0x3f8   :  { %10614 = vmatprep.subr.bf16.mxu0 %v15344_v62  ;;  %v15401_v62 = vld [vmem:[#allocation6 + $0xb64] ss:$28 sps:$4 sm:$0xff]  }
 0x3fa   :  { %10443 = vmatpush1.bf16.msra.mxu1 %v15339_v38  ;;  %v15396_v38 = vld [vmem:[#allocation6 + $0x430] ss:$28 sps:$4 sm:$0xff]  }
 0x3fb   :  { %10615 = vmatpush1.bf16.msra.mxu0 %v15342_v52  ;;  %10444 = vmatprep.subr.bf16.mxu1 %v15347_v63  ;;  %v15404_v52 = vld [vmem:[#allocation6 + $0x46c] ss:$28 sps:$4 sm:$0xff]   ;;  %v15399_v63 = vld [vmem:[#allocation6 + $0xb60] ss:$28 sps:$4 sm:$0xff]  }
 0x3fc   :  { %10616 = vmatprep.subr.bf16.mxu0 %v15350_v3  ;;  %v15407_v3 = vld [vmem:[#allocation6 + $0xb9c] ss:$28 sps:$4 sm:$0xff]  }
 0x3fe   :  { %10445 = vmatpush1.bf16.msra.mxu1 %v15345_v0  ;;  %v15402_v0 = vld [vmem:[#allocation6 + $0x468] ss:$28 sps:$4 sm:$0xff]  }
 0x3ff   :  { %10617 = vmatpush1.bf16.msra.mxu0 %v15348_v5  ;;  %10446 = vmatprep.subr.bf16.mxu1 %v15353_v7  ;;  %v15410_v5 = vld [vmem:[#allocation6 + $0x4a4] ss:$28 sps:$4 sm:$0xff]   ;;  %v15405_v7 = vld [vmem:[#allocation6 + $0xb98] ss:$28 sps:$4 sm:$0xff]  }
 0x400   :  { %10618 = vmatprep.subr.bf16.mxu0 %v15356_v8  ;;  %v15408_v8 = vld [vmem:[#allocation6 + $0x4a0] ss:$28 sps:$4 sm:$0xff]  }
 0x402   :  { %10447 = vmatpush1.bf16.msra.mxu1 %v15351_v16  ;;  %v15413_v16 = vld [vmem:[#allocation6 + $0xbd4] ss:$28 sps:$4 sm:$0xff]  }
 0x403   :  { %10619 = vmatpush1.bf16.msra.mxu0 %v15354_v19  ;;  %10448 = vmatprep.subr.bf16.mxu1 %v15359_v20  ;;  %v15416_v20 = vld [vmem:[#allocation6 + $0x4dc] ss:$28 sps:$4 sm:$0xff]  }
 0x404   :  { %v13562_v25 = vpop.f32.mrb[20].mxu1  ;;  %10620 = vmatprep.subr.bf16.mxu0 %v15362_v21 }
 0x405   :  { %v13563_v27 = vpop.f32.mrb[21].mxu1 }
 0x406   :  { %v13564_v28 = vadd.f32 %v13563_v27, %v13562_v25  ;;  %v13565_v29 = vpop.f32.mrb[22].mxu1  ;;  %10449 = vmatpush1.bf16.msra.mxu1 %v15357_v22  ;;  %v15419_v27 = vld [vmem:[#allocation6 + $0xc0c] ss:$28 sps:$4 sm:$0xff]  }
 0x407   :  { %10621 = vmatpush1.bf16.msra.mxu0 %v15360_v23  ;;  %v13566_v31 = vpop.f32.mrb[23].mxu1  ;;  %10450 = vmatprep.subr.bf16.mxu1 %v15365_v24  ;;  %v15411_v24 = vld [vmem:[#allocation6 + $0xbd0] ss:$28 sps:$4 sm:$0xff]  }
 0x408   :  { %v13567_v35 = vadd.f32 %v13566_v31, %v13565_v29  ;;  %10622 = vmatprep.subr.bf16.mxu0 %v15368_v26  ;;  %v16601_v37 = vadd.f32 %v13564_v28, %v16595_v43  ;;  %v15386_v43 = vld [vmem:[#allocation6 + $0x3c4] ss:$28 sps:$4 sm:$0xff]   ;;  %v15414_v26 = vld [vmem:[#allocation6 + $0x4d8] ss:$28 sps:$4 sm:$0xff]  }
 0x409   :  { %v15422_v29 = vld [vmem:[#allocation6 + $0x514] ss:$28 sps:$4 sm:$0xff]  }
 0x40a   :  { %10451 = vmatpush1.bf16.msra.mxu1 %v15363_v30  ;;  %v16604_v40 = vadd.f32 %v13567_v35, %v16598_v47  ;;  %v15381_v47 = vld [vmem:[#allocation6 + $0xab8] ss:$28 sps:$4 sm:$0xff]   ;;  %v15420_v35 = vld [vmem:[#allocation6 + $0x510] ss:$28 sps:$4 sm:$0xff]  }
 0x40b   :  { %10623 = vmatpush1.bf16.msra.mxu0 %v15366_v32  ;;  %10452 = vmatprep.subr.bf16.mxu1 %v15371_v34  ;;  %v15417_v32 = vld [vmem:[#allocation6 + $0xc08] ss:$28 sps:$4 sm:$0xff]  }
 0x40c   :  { %10624 = vmatprep.subr.bf16.mxu0 %v15374_v36  ;;  %v15425_v36 = vld [vmem:[#allocation6 + $0xc44] ss:$28 sps:$4 sm:$0xff]  }
 0x40e   :  { %10453 = vmatpush1.bf16.msra.mxu1 %v15369_v39  ;;  %v15423_v39 = vld [vmem:[#allocation6 + $0xc40] ss:$28 sps:$4 sm:$0xff]  }
 0x40f   :  { %10625 = vmatpush1.bf16.msra.mxu0 %v15372_v41  ;;  %10465 = vmatprep.subr.bf16.mxu1 %v15377_v42  ;;  %v15431_v41 = vld [vmem:[#allocation6 + $0xc7c] ss:$28 sps:$4 sm:$0xff]   ;;  %v15434_v42 = vld [vmem:[#allocation6 + $0x584] ss:$28 sps:$4 sm:$0xff]  }
 0x410   :  { %10637 = vmatprep.subr.bf16.mxu0 %v15380_v44  ;;  %v15429_v44 = vld [vmem:[#allocation6 + $0xc78] ss:$28 sps:$4 sm:$0xff]  }
 0x411   :  { %10455 = vmatmul.mubr.bf16.vlgmr.msra.gmra.mrb[28].mxu1 %v16563_v1 }
 0x412   :  { %10627 = vmatmul.mubr.bf16.vlgmr.msra.gmra.mrb[12].mxu0 %v16475_v57  ;;  %10466 = vmatpush1.bf16.msra.mxu1 %v15375_v45  ;;  %v15432_v45 = vld [vmem:[#allocation6 + $0x580] ss:$28 sps:$4 sm:$0xff]  }
 0x413   :  { %10497 = vmatprep.mubr.bf16.mxu1 %v16569_v6  ;;  %10638 = vmatpush1.bf16.msra.mxu0 %v15378_v48  ;;  %v15437_v48 = vld [vmem:[#allocation6 + $0xcb4] ss:$28 sps:$4 sm:$0xff]  }
 0x414   :  { %10669 = vmatprep.mubr.bf16.mxu0 %v16481_v61  ;;  %10467 = vmatprep.subr.bf16.mxu1 %v15383_v51  ;;  %v15440_v51 = vld [vmem:[#allocation6 + $0x5bc] ss:$28 sps:$4 sm:$0xff]  }
 0x415   :  { %10639 = vmatprep.subr.bf16.mxu0 %v15386_v43  ;;  %v15435_v43 = vld [vmem:[#allocation6 + $0xcb0] ss:$28 sps:$4 sm:$0xff]  }
 0x416   :  { %10468 = vmatpush1.bf16.msra.mxu1 %v15381_v47  ;;  %v15438_v47 = vld [vmem:[#allocation6 + $0x5b8] ss:$28 sps:$4 sm:$0xff]  }
 0x417   :  { %10640 = vmatpush1.bf16.msra.mxu0 %v15384_v53  ;;  %10469 = vmatprep.subr.bf16.mxu1 %v15389_v49  ;;  %v15443_v53 = vld [vmem:[#allocation6 + $0xcec] ss:$28 sps:$4 sm:$0xff]   ;;  %v15446_v49 = vld [vmem:[#allocation6 + $0x5f4] ss:$28 sps:$4 sm:$0xff]  }
 0x418   :  { %10641 = vmatprep.subr.bf16.mxu0 %v15392_v54  ;;  %v15441_v54 = vld [vmem:[#allocation6 + $0xce8] ss:$28 sps:$4 sm:$0xff]  }
 0x41a   :  { %10470 = vmatpush1.bf16.msra.mxu1 %v15387_v50  ;;  %v15444_v50 = vld [vmem:[#allocation6 + $0x5f0] ss:$28 sps:$4 sm:$0xff]  }
 0x41b   :  { %10642 = vmatpush1.bf16.msra.mxu0 %v15390_v55  ;;  %10471 = vmatprep.subr.bf16.mxu1 %v15395_v56  ;;  %v15449_v55 = vld [vmem:[#allocation6 + $0xd24] ss:$28 sps:$4 sm:$0xff]   ;;  %v15452_v56 = vld [vmem:[#allocation6 + $0x62c] ss:$28 sps:$4 sm:$0xff]  }
 0x41c   :  { %10643 = vmatprep.subr.bf16.mxu0 %v15398_v33  ;;  %v15447_v33 = vld [vmem:[#allocation6 + $0xd20] ss:$28 sps:$4 sm:$0xff]  }
 0x41e   :  { %10472 = vmatpush1.bf16.msra.mxu1 %v15393_v59  ;;  %v15450_v59 = vld [vmem:[#allocation6 + $0x628] ss:$28 sps:$4 sm:$0xff]  }
 0x41f   :  { %10644 = vmatpush1.bf16.msra.mxu0 %v15396_v38  ;;  %10473 = vmatprep.subr.bf16.mxu1 %v15401_v62  ;;  %v15455_v38 = vld [vmem:[#allocation6 + $0xd5c] ss:$28 sps:$4 sm:$0xff]   ;;  %v15458_v62 = vld [vmem:[#allocation6 + $0x664] ss:$28 sps:$4 sm:$0xff]  }
 0x420   :  { %10645 = vmatprep.subr.bf16.mxu0 %v15404_v52  ;;  %v15453_v52 = vld [vmem:[#allocation6 + $0xd58] ss:$28 sps:$4 sm:$0xff]  }
 0x422   :  { %10474 = vmatpush1.bf16.msra.mxu1 %v15399_v63  ;;  %v15456_v63 = vld [vmem:[#allocation6 + $0x660] ss:$28 sps:$4 sm:$0xff]  }
 0x423   :  { %10646 = vmatpush1.bf16.msra.mxu0 %v15402_v0  ;;  %10475 = vmatprep.subr.bf16.mxu1 %v15407_v3  ;;  %v15461_v0 = vld [vmem:[#allocation6 + $0xd94] ss:$28 sps:$4 sm:$0xff]   ;;  %v15464_v3 = vld [vmem:[#allocation6 + $0x69c] ss:$28 sps:$4 sm:$0xff]  }
 0x424   :  { %v6387_v19 = vpop.f32.mrb[24].mxu1  ;;  %10647 = vmatprep.subr.bf16.mxu0 %v15410_v5  ;;  %v15459_v5 = vld [vmem:[#allocation6 + $0xd90] ss:$28 sps:$4 sm:$0xff]  }
 0x425   :  { %v6388_v21 = vadd.f32 %v6387_v19, %v16601_v37  ;;  %v13789_v22 = vpop.f32.mrb[25].mxu1  ;;  %v15428_v37 = vld [vmem:[#allocation6 + $0x54c] ss:$28 sps:$4 sm:$0xff]  }
 0x426   :  { %v6390_v23 = vpop.f32.mrb[26].mxu1  ;;  %10476 = vmatpush1.bf16.msra.mxu1 %v15405_v7  ;;  %v15462_v7 = vld [vmem:[#allocation6 + $0x698] ss:$28 sps:$4 sm:$0xff]   ;;  %v15465_v19 = vld [vmem:[#allocation6 + $0xdc8] ss:$28 sps:$4 sm:$0xff]  }
 0x427   :  { %v6391_v25 = vadd.f32 %v6390_v23, %v16604_v40  ;;  %10648 = vmatpush1.bf16.msra.mxu0 %v15408_v8  ;;  %10477 = vmatprep.subr.bf16.mxu1 %v15413_v16  ;;  %v13790_v28 = vpop.f32.mrb[27].mxu1  ;;  %v6404_v30 = vmax.f32 %v6388_v21, 0.0  ;;  %v15426_v40 = vld [vmem:[#allocation6 + $0x548] ss:$28 sps:$4 sm:$0xff]   ;;  %v15470_v16 = vld [vmem:[#allocation6 + $0x6d4] ss:$28 sps:$4 sm:$0xff]  }
 0x428   :  { %10649 = vmatprep.subr.bf16.mxu0 %v15416_v20  ;;  %v15467_v8 = vld [vmem:[#allocation6 + $0xdcc] ss:$28 sps:$4 sm:$0xff]   ;;  %v15497_v21 = vld [vmem:[#allocation6 + $0xe04] ss:$28 sps:$4 sm:$0xff]  }
 0x429   :  { %v6415_v31 = vmax.f32 %v6391_v25, 0.0  ;;  %v15468_v20 = vld [vmem:[#allocation6 + $0x6d0] ss:$28 sps:$4 sm:$0xff]   ;;  %v15495_v23 = vld [vmem:[#allocation6 + $0xe00] ss:$28 sps:$4 sm:$0xff]  }
 0x42a   :  { %10478 = vmatpush1.bf16.msra.mxu1 %v15411_v24  ;;  %v15473_v22 = vld [vmem:[#allocation6 + $0x70c] ss:$28 sps:$4 sm:$0xff]   ;;  %v15476_v25 = vld [vmem:[#allocation6 + $0x744] ss:$28 sps:$4 sm:$0xff]  }
 0x42b   :  { %v16612_v34 = vpack.c.bf16 %v6415_v31, %v6404_v30  ;;  %10650 = vmatpush1.bf16.msra.mxu0 %v15414_v26  ;;  %10479 = vmatprep.subr.bf16.mxu1 %v15419_v27  ;;  %v15471_v24 = vld [vmem:[#allocation6 + $0x708] ss:$28 sps:$4 sm:$0xff]   ;;  %v15503_v26 = vld [vmem:[#allocation6 + $0xe3c] ss:$28 sps:$4 sm:$0xff]   ;;  %v15507_v31 = vld [vmem:[#allocation6 + $0xe70] ss:$28 sps:$4 sm:$0xff]  }
 0x42c   :  { %10651 = vmatprep.subr.bf16.mxu0 %v15422_v29  ;;  %v15501_v27 = vld [vmem:[#allocation6 + $0xe38] ss:$28 sps:$4 sm:$0xff]   ;;  %v15474_v28 = vld [vmem:[#allocation6 + $0x740] ss:$28 sps:$4 sm:$0xff]  }
 0x42d   :  { %v15509_v29 = vld [vmem:[#allocation6 + $0xe74] ss:$28 sps:$4 sm:$0xff]   ;;  %v15479_v30 = vld [vmem:[#allocation6 + $0x77c] ss:$28 sps:$4 sm:$0xff]  }
 0x42e   :  { %10480 = vmatpush1.bf16.msra.mxu1 %v15417_v32  ;;  %v15477_v32 = vld [vmem:[#allocation6 + $0x778] ss:$28 sps:$4 sm:$0xff]  }
 0x42f   :  { %10652 = vmatpush1.bf16.msra.mxu0 %v15420_v35  ;;  %10481 = vmatprep.subr.bf16.mxu1 %v15425_v36  ;;  %v15515_v35 = vld [vmem:[#allocation6 + $0xeac] ss:$28 sps:$4 sm:$0xff]   ;;  %v15482_v36 = vld [vmem:[#allocation6 + $0x7b4] ss:$28 sps:$4 sm:$0xff]  }
 0x430   :  { %10653 = vmatprep.subr.bf16.mxu0 %v15428_v37  ;;  %v15513_v37 = vld [vmem:[#allocation6 + $0xea8] ss:$28 sps:$4 sm:$0xff]  }
 0x432   :  { %10482 = vmatpush1.bf16.msra.mxu1 %v15423_v39  ;;  %v15480_v39 = vld [vmem:[#allocation6 + $0x7b0] ss:$28 sps:$4 sm:$0xff]  }
 0x433   :  { %10654 = vmatpush1.bf16.msra.mxu0 %v15426_v40  ;;  %10483 = vmatprep.subr.bf16.mxu1 %v15431_v41  ;;  %v15521_v40 = vld [vmem:[#allocation6 + $0xee4] ss:$28 sps:$4 sm:$0xff]   ;;  %v15485_v41 = vld [vmem:[#allocation6 + $0x7ec] ss:$28 sps:$4 sm:$0xff]  }
 0x434   :  { %10655 = vmatprep.subr.bf16.mxu0 %v15434_v42  ;;  %v15519_v42 = vld [vmem:[#allocation6 + $0xee0] ss:$28 sps:$4 sm:$0xff]  }
 0x436   :  { %10484 = vmatpush1.bf16.msra.mxu1 %v15429_v44  ;;  %v15483_v44 = vld [vmem:[#allocation6 + $0x7e8] ss:$28 sps:$4 sm:$0xff]  }
 0x437   :  { %10656 = vmatpush1.bf16.msra.mxu0 %v15432_v45  ;;  %10485 = vmatprep.subr.bf16.mxu1 %v15437_v48  ;;  %v15527_v45 = vld [vmem:[#allocation6 + $0xf1c] ss:$28 sps:$4 sm:$0xff]   ;;  %v15488_v48 = vld [vmem:[#allocation6 + $0x824] ss:$28 sps:$4 sm:$0xff]  }
 0x438   :  { %10657 = vmatprep.subr.bf16.mxu0 %v15440_v51  ;;  %v15525_v51 = vld [vmem:[#allocation6 + $0xf18] ss:$28 sps:$4 sm:$0xff]  }
 0x43a   :  { %10486 = vmatpush1.bf16.msra.mxu1 %v15435_v43  ;;  %v15486_v43 = vld [vmem:[#allocation6 + $0x820] ss:$28 sps:$4 sm:$0xff]  }
 0x43b   :  { %10658 = vmatpush1.bf16.msra.mxu0 %v15438_v47  ;;  %10487 = vmatprep.subr.bf16.mxu1 %v15443_v53  ;;  %v15533_v47 = vld [vmem:[#allocation6 + $0xf54] ss:$28 sps:$4 sm:$0xff]   ;;  %v15491_v53 = vld [vmem:[#allocation6 + $0x85c] ss:$28 sps:$4 sm:$0xff]  }
 0x43c   :  { %10659 = vmatprep.subr.bf16.mxu0 %v15446_v49  ;;  %v15531_v49 = vld [vmem:[#allocation6 + $0xf50] ss:$28 sps:$4 sm:$0xff]  }
 0x43e   :  { %10488 = vmatpush1.bf16.msra.mxu1 %v15441_v54  ;;  %v15489_v54 = vld [vmem:[#allocation6 + $0x858] ss:$28 sps:$4 sm:$0xff]  }
 0x43f   :  { %10660 = vmatpush1.bf16.msra.mxu0 %v15444_v50  ;;  %10489 = vmatprep.subr.bf16.mxu1 %v15449_v55  ;;  %v15539_v50 = vld [vmem:[#allocation6 + $0xf8c] ss:$28 sps:$4 sm:$0xff]   ;;  %v15494_v55 = vld [vmem:[#allocation6 + $0x894] ss:$28 sps:$4 sm:$0xff]  }
 0x440   :  { %10661 = vmatprep.subr.bf16.mxu0 %v15452_v56  ;;  %v15537_v56 = vld [vmem:[#allocation6 + $0xf88] ss:$28 sps:$4 sm:$0xff]  }
 0x442   :  { %10490 = vmatpush1.bf16.msra.mxu1 %v15447_v33  ;;  %v15492_v33 = vld [vmem:[#allocation6 + $0x890] ss:$28 sps:$4 sm:$0xff]  }
 0x443   :  { %10662 = vmatpush1.bf16.msra.mxu0 %v15450_v59  ;;  %10491 = vmatprep.subr.bf16.mxu1 %v15455_v38  ;;  %v15545_v59 = vld [vmem:[#allocation6 + $0xfc4] ss:$28 sps:$4 sm:$0xff]   ;;  %v15500_v38 = vld [vmem:[#allocation6 + $0x8cc] ss:$28 sps:$4 sm:$0xff]  }
 0x444   :  { %10663 = vmatprep.subr.bf16.mxu0 %v15458_v62  ;;  %v15543_v62 = vld [vmem:[#allocation6 + $0xfc0] ss:$28 sps:$4 sm:$0xff]  }
 0x446   :  { %10492 = vmatpush1.bf16.msra.mxu1 %v15453_v52  ;;  %v15498_v52 = vld [vmem:[#allocation6 + $0x8c8] ss:$28 sps:$4 sm:$0xff]  }
 0x447   :  { %10664 = vmatpush1.bf16.msra.mxu0 %v15456_v63  ;;  %10493 = vmatprep.subr.bf16.mxu1 %v15461_v0  ;;  %v15551_v63 = vld [vmem:[#allocation6 + $0xffc] ss:$28 sps:$4 sm:$0xff]   ;;  %v15506_v0 = vld [vmem:[#allocation6 + $0x904] ss:$28 sps:$4 sm:$0xff]  }
 0x448   :  { %10665 = vmatprep.subr.bf16.mxu0 %v15464_v3  ;;  %v15549_v3 = vld [vmem:[#allocation6 + $0xff8] ss:$28 sps:$4 sm:$0xff]  }
 0x44a   :  { %10494 = vmatpush1.bf16.msra.mxu1 %v15459_v5  ;;  %v15504_v5 = vld [vmem:[#allocation6 + $0x900] ss:$28 sps:$4 sm:$0xff]  }
 0x44b   :  { %10666 = vmatpush1.bf16.msra.mxu0 %v15462_v7  ;;  %10495 = vmatprep.subr.bf16.mxu1 %v15467_v8  ;;  %v15557_v7 = vld [vmem:[#allocation6 + $0x1034] ss:$28 sps:$4 sm:$0xff]   ;;  %v15512_v8 = vld [vmem:[#allocation6 + $0x93c] ss:$28 sps:$4 sm:$0xff]  }
 0x44c   :  { %10667 = vmatprep.subr.bf16.mxu0 %v15470_v16  ;;  %v15555_v16 = vld [vmem:[#allocation6 + $0x1030] ss:$28 sps:$4 sm:$0xff]  }
 0x44e   :  { %10496 = vmatpush1.bf16.msra.mxu1 %v15465_v19  ;;  %v15510_v19 = vld [vmem:[#allocation6 + $0x938] ss:$28 sps:$4 sm:$0xff]  }
 0x44f   :  { %10668 = vmatpush1.bf16.msra.mxu0 %v15468_v20  ;;  %10508 = vmatprep.subr.bf16.mxu1 %v15497_v21  ;;  %v15563_v20 = vld [vmem:[#allocation6 + $0x106c] ss:$28 sps:$4 sm:$0xff]   ;;  %v15518_v21 = vld [vmem:[#allocation6 + $0x974] ss:$28 sps:$4 sm:$0xff]  }
 0x450   :  { %10680 = vmatprep.subr.bf16.mxu0 %v15473_v22  ;;  %v15561_v22 = vld [vmem:[#allocation6 + $0x1068] ss:$28 sps:$4 sm:$0xff]  }
 0x451   :  { %10498 = vmatmul.mubr.bf16.vlgmr.msra.gmra.mrb[28].mxu1 %v16565_v2 }
 0x452   :  { %10670 = vmatmul.mubr.bf16.vlgmr.msra.gmra.mrb[12].mxu0 %v16477_v58  ;;  %10509 = vmatpush1.bf16.msra.mxu1 %v15495_v23  ;;  %v15516_v23 = vld [vmem:[#allocation6 + $0x970] ss:$28 sps:$4 sm:$0xff]  }
 0x453   :  { %10681 = vmatpush1.bf16.msra.mxu0 %v15471_v24  ;;  %10712 = vmatprep.mubr.bf16.mxu0 %v16567_v9  ;;  %v15569_v24 = vld [vmem:[#allocation6 + $0x10a4] ss:$28 sps:$4 sm:$0xff]  }
 0x454   :  { %10682 = vmatprep.subr.bf16.mxu0 %v15476_v25  ;;  %10510 = vmatprep.subr.bf16.mxu1 %v15503_v26  ;;  %v15524_v25 = vld [vmem:[#allocation6 + $0x9ac] ss:$28 sps:$4 sm:$0xff]   ;;  %v15567_v26 = vld [vmem:[#allocation6 + $0x10a0] ss:$28 sps:$4 sm:$0xff]  }
 0x456   :  { %10511 = vmatpush1.bf16.msra.mxu1 %v15501_v27  ;;  %v15522_v27 = vld [vmem:[#allocation6 + $0x9a8] ss:$28 sps:$4 sm:$0xff]  }
 0x457   :  { %10683 = vmatpush1.bf16.msra.mxu0 %v15474_v28  ;;  %10512 = vmatprep.subr.bf16.mxu1 %v15509_v29  ;;  %v15575_v28 = vld [vmem:[#allocation6 + $0x10dc] ss:$28 sps:$4 sm:$0xff]   ;;  %v15530_v29 = vld [vmem:[#allocation6 + $0x9e4] ss:$28 sps:$4 sm:$0xff]  }
 0x458   :  { %10684 = vmatprep.subr.bf16.mxu0 %v15479_v30  ;;  %v15573_v30 = vld [vmem:[#allocation6 + $0x10d8] ss:$28 sps:$4 sm:$0xff]  }
 0x45a   :  { %10513 = vmatpush1.bf16.msra.mxu1 %v15507_v31  ;;  %v15528_v31 = vld [vmem:[#allocation6 + $0x9e0] ss:$28 sps:$4 sm:$0xff]  }
 0x45b   :  { %10685 = vmatpush1.bf16.msra.mxu0 %v15477_v32  ;;  %10514 = vmatprep.subr.bf16.mxu1 %v15515_v35  ;;  %v15581_v32 = vld [vmem:[#allocation6 + $0x1114] ss:$28 sps:$4 sm:$0xff]   ;;  %v15536_v35 = vld [vmem:[#allocation6 + $0xa1c] ss:$28 sps:$4 sm:$0xff]  }
 0x45c   :  { %10686 = vmatprep.subr.bf16.mxu0 %v15482_v36  ;;  %v15579_v36 = vld [vmem:[#allocation6 + $0x1110] ss:$28 sps:$4 sm:$0xff]  }
 0x45e   :  { %10515 = vmatpush1.bf16.msra.mxu1 %v15513_v37  ;;  %v15534_v37 = vld [vmem:[#allocation6 + $0xa18] ss:$28 sps:$4 sm:$0xff]  }
 0x45f   :  { %10687 = vmatpush1.bf16.msra.mxu0 %v15480_v39  ;;  %10516 = vmatprep.subr.bf16.mxu1 %v15521_v40  ;;  %v15587_v39 = vld [vmem:[#allocation6 + $0x114c] ss:$28 sps:$4 sm:$0xff]   ;;  %v15542_v40 = vld [vmem:[#allocation6 + $0xa54] ss:$28 sps:$4 sm:$0xff]  }
 0x460   :  { %10688 = vmatprep.subr.bf16.mxu0 %v15485_v41  ;;  %v15585_v41 = vld [vmem:[#allocation6 + $0x1148] ss:$28 sps:$4 sm:$0xff]  }
 0x462   :  { %10517 = vmatpush1.bf16.msra.mxu1 %v15519_v42  ;;  %v15540_v42 = vld [vmem:[#allocation6 + $0xa50] ss:$28 sps:$4 sm:$0xff]  }
 0x463   :  { %10689 = vmatpush1.bf16.msra.mxu0 %v15483_v44  ;;  %10518 = vmatprep.subr.bf16.mxu1 %v15527_v45  ;;  %v15593_v44 = vld [vmem:[#allocation6 + $0x1184] ss:$28 sps:$4 sm:$0xff]   ;;  %v15548_v45 = vld [vmem:[#allocation6 + $0xa8c] ss:$28 sps:$4 sm:$0xff]  }
 0x464   :  { %10690 = vmatprep.subr.bf16.mxu0 %v15488_v48  ;;  %v15546_v48 = vld [vmem:[#allocation6 + $0xa88] ss:$28 sps:$4 sm:$0xff]  }
 0x466   :  { %10519 = vmatpush1.bf16.msra.mxu1 %v15525_v51  ;;  %v15554_v51 = vld [vmem:[#allocation6 + $0xac4] ss:$28 sps:$4 sm:$0xff]  }
 0x467   :  { %10691 = vmatpush1.bf16.msra.mxu0 %v15486_v43  ;;  %10520 = vmatprep.subr.bf16.mxu1 %v15533_v47  ;;  %v15552_v43 = vld [vmem:[#allocation6 + $0xac0] ss:$28 sps:$4 sm:$0xff]  }
 0x468   :  { %10692 = vmatprep.subr.bf16.mxu0 %v15491_v53  ;;  %v15560_v47 = vld [vmem:[#allocation6 + $0xafc] ss:$28 sps:$4 sm:$0xff]  }
 0x469   :  { %v15558_v53 = vld [vmem:[#allocation6 + $0xaf8] ss:$28 sps:$4 sm:$0xff]  }
 0x46a   :  { %10521 = vmatpush1.bf16.msra.mxu1 %v15531_v49  ;;  %v15566_v49 = vld [vmem:[#allocation6 + $0xb34] ss:$28 sps:$4 sm:$0xff]  }
 0x46b   :  { %10693 = vmatpush1.bf16.msra.mxu0 %v15489_v54  ;;  %10522 = vmatprep.subr.bf16.mxu1 %v15539_v50  ;;  %v15564_v54 = vld [vmem:[#allocation6 + $0xb30] ss:$28 sps:$4 sm:$0xff]  }
 0x46c   :  { %10694 = vmatprep.subr.bf16.mxu0 %v15494_v55  ;;  %v15572_v50 = vld [vmem:[#allocation6 + $0xb6c] ss:$28 sps:$4 sm:$0xff]  }
 0x46d   :  { %v15570_v55 = vld [vmem:[#allocation6 + $0xb68] ss:$28 sps:$4 sm:$0xff]  }
 0x46e   :  { %10523 = vmatpush1.bf16.msra.mxu1 %v15537_v56  ;;  %v15578_v56 = vld [vmem:[#allocation6 + $0xba4] ss:$28 sps:$4 sm:$0xff]  }
 0x46f   :  { %10695 = vmatpush1.bf16.msra.mxu0 %v15492_v33  ;;  %10524 = vmatprep.subr.bf16.mxu1 %v15545_v59  ;;  %v16140_v33 = vld [vmem:[#allocation4 + $0x8] sm:$0x7] }
 0x470   :  { %10696 = vmatprep.subr.bf16.mxu0 %v15500_v38  ;;  %v1016_v59 = vrot.slane %v16140_v33, %v16461_v10  ;;  %v1020_v38 = vrot.slane %v16140_v33, %v16467_v13  ;;  %v15624_v33 = vld [vmem:[#allocation6 + $0xd60] ss:$28 sps:$4 sm:$0xff]  }
 0x472   :  { %10525 = vmatpush1.bf16.msra.mxu1 %v15543_v62  ;;  %v15576_v62 = vld [vmem:[#allocation6 + $0xba0] ss:$28 sps:$4 sm:$0xff]  }
 0x473   :  { %10697 = vmatpush1.bf16.msra.mxu0 %v15498_v52  ;;  %10526 = vmatprep.subr.bf16.mxu1 %v15551_v63  ;;  %v15584_v63 = vld [vmem:[#allocation6 + $0xbdc] ss:$28 sps:$4 sm:$0xff]  }
 0x474   :  { %10698 = vmatprep.subr.bf16.mxu0 %v15506_v0 }
 0x476   :  { %10527 = vmatpush1.bf16.msra.mxu1 %v15549_v3 }
 0x477   :  { %10699 = vmatpush1.bf16.msra.mxu0 %v15504_v5  ;;  %10528 = vmatprep.subr.bf16.mxu1 %v15557_v7 }
 0x478   :  { %10700 = vmatprep.subr.bf16.mxu0 %v15512_v8 }
 0x47a   :  { %10529 = vmatpush1.bf16.msra.mxu1 %v15555_v16 }
 0x47b   :  { %10701 = vmatpush1.bf16.msra.mxu0 %v15510_v19  ;;  %10530 = vmatprep.subr.bf16.mxu1 %v15563_v20  ;;  %v15582_v19 = vld [vmem:[#allocation6 + $0xbd8] ss:$28 sps:$4 sm:$0xff]  }
 0x47c   :  { %10702 = vmatprep.subr.bf16.mxu0 %v15518_v21  ;;  %v15590_v21 = vld [vmem:[#allocation6 + $0xc14] ss:$28 sps:$4 sm:$0xff]  }
 0x47e   :  { %10531 = vmatpush1.bf16.msra.mxu1 %v15561_v22 }
 0x47f   :  { %10703 = vmatpush1.bf16.msra.mxu0 %v15516_v23  ;;  %10532 = vmatprep.subr.bf16.mxu1 %v15569_v24 }
 0x480   :  { %10704 = vmatprep.subr.bf16.mxu0 %v15524_v25 }
 0x482   :  { %10533 = vmatpush1.bf16.msra.mxu1 %v15567_v26 }
 0x483   :  { %10705 = vmatpush1.bf16.msra.mxu0 %v15522_v27  ;;  %10534 = vmatprep.subr.bf16.mxu1 %v15575_v28  ;;  %v15588_v27 = vld [vmem:[#allocation6 + $0xc10] ss:$28 sps:$4 sm:$0xff]  }
 0x484   :  { %10706 = vmatprep.subr.bf16.mxu0 %v15530_v29  ;;  %v15591_v29 = vld [vmem:[#allocation6 + $0x1180] ss:$28 sps:$4 sm:$0xff]  }
 0x486   :  { %10535 = vmatpush1.bf16.msra.mxu1 %v15573_v30  ;;  %v15596_v30 = vld [vmem:[#allocation6 + $0xc4c] ss:$28 sps:$4 sm:$0xff]  }
 0x487   :  { %10707 = vmatpush1.bf16.msra.mxu0 %v15528_v31  ;;  %10536 = vmatprep.subr.bf16.mxu1 %v15581_v32  ;;  %v15599_v31 = vld [vmem:[#allocation6 + $0x11bc] ss:$28 sps:$4 sm:$0xff]   ;;  %v15594_v32 = vld [vmem:[#allocation6 + $0xc48] ss:$28 sps:$4 sm:$0xff]  }
 0x488   :  { %10708 = vmatprep.subr.bf16.mxu0 %v15536_v35  ;;  %v15597_v35 = vld [vmem:[#allocation6 + $0x11b8] ss:$28 sps:$4 sm:$0xff]  }
 0x48a   :  { %10537 = vmatpush1.bf16.msra.mxu1 %v15579_v36  ;;  %v15602_v36 = vld [vmem:[#allocation6 + $0xc84] ss:$28 sps:$4 sm:$0xff]  }
 0x48b   :  { %10709 = vmatpush1.bf16.msra.mxu0 %v15534_v37  ;;  %10538 = vmatprep.subr.bf16.mxu1 %v15587_v39  ;;  %v15605_v37 = vld [vmem:[#allocation6 + $0x11f4] ss:$28 sps:$4 sm:$0xff]   ;;  %v15600_v39 = vld [vmem:[#allocation6 + $0xc80] ss:$28 sps:$4 sm:$0xff]  }
 0x48c   :  { %10710 = vmatprep.subr.bf16.mxu0 %v15542_v40  ;;  %v15603_v40 = vld [vmem:[#allocation6 + $0x11f0] ss:$28 sps:$4 sm:$0xff]  }
 0x48e   :  { %10539 = vmatpush1.bf16.msra.mxu1 %v15585_v41  ;;  %v15608_v41 = vld [vmem:[#allocation6 + $0xcbc] ss:$28 sps:$4 sm:$0xff]  }
 0x48f   :  { %10711 = vmatpush1.bf16.msra.mxu0 %v15540_v42  ;;  %10551 = vmatprep.subr.bf16.mxu1 %v15593_v44  ;;  %v15611_v42 = vld [vmem:[#allocation6 + $0x122c] ss:$28 sps:$4 sm:$0xff]   ;;  %v15606_v44 = vld [vmem:[#allocation6 + $0xcb8] ss:$28 sps:$4 sm:$0xff]  }
 0x490   :  { %10723 = vmatprep.subr.bf16.mxu0 %v15548_v45  ;;  %v15609_v45 = vld [vmem:[#allocation6 + $0x1228] ss:$28 sps:$4 sm:$0xff]  }
 0x492   :  { %10713 = vmatmul.mubr.bf16.vlgmr.msra.gmra.mrb[12].mxu0 %v16563_v1 }
 0x493   :  { %10724 = vmatpush1.bf16.msra.mxu0 %v15546_v48  ;;  %10755 = vmatprep.mubr.bf16.mxu0 %v16569_v6  ;;  %v15614_v48 = vld [vmem:[#allocation6 + $0xcf4] ss:$28 sps:$4 sm:$0xff]  }
 0x494   :  { %10725 = vmatprep.subr.bf16.mxu0 %v15554_v51  ;;  %v15617_v51 = vld [vmem:[#allocation6 + $0x1264] ss:$28 sps:$4 sm:$0xff]  }
 0x497   :  { %10726 = vmatpush1.bf16.msra.mxu0 %v15552_v43  ;;  %v15612_v43 = vld [vmem:[#allocation6 + $0xcf0] ss:$28 sps:$4 sm:$0xff]  }
 0x498   :  { %10727 = vmatprep.subr.bf16.mxu0 %v15560_v47  ;;  %v15615_v47 = vld [vmem:[#allocation6 + $0x1260] ss:$28 sps:$4 sm:$0xff]  }
 0x49b   :  { %10728 = vmatpush1.bf16.msra.mxu0 %v15558_v53  ;;  %v15620_v53 = vld [vmem:[#allocation6 + $0xd2c] ss:$28 sps:$4 sm:$0xff]  }
 0x49c   :  { %10729 = vmatprep.subr.bf16.mxu0 %v15566_v49  ;;  %v15623_v49 = vld [vmem:[#allocation6 + $0x129c] ss:$28 sps:$4 sm:$0xff]  }
 0x49f   :  { %10730 = vmatpush1.bf16.msra.mxu0 %v15564_v54  ;;  %v15618_v54 = vld [vmem:[#allocation6 + $0xd28] ss:$28 sps:$4 sm:$0xff]  }
 0x4a0   :  { %10731 = vmatprep.subr.bf16.mxu0 %v15572_v50  ;;  %v15621_v50 = vld [vmem:[#allocation6 + $0x1298] ss:$28 sps:$4 sm:$0xff]  }
 0x4a3   :  { %10732 = vmatpush1.bf16.msra.mxu0 %v15570_v55  ;;  %v15626_v55 = vld [vmem:[#allocation6 + $0xd64] ss:$28 sps:$4 sm:$0xff]  }
 0x4a4   :  { %v6180_v52 = vpop.f32.mrb[8].mxu0  ;;  %10733 = vmatprep.subr.bf16.mxu0 %v15578_v56  ;;  %v15629_v56 = vld [vmem:[#allocation6 + $0x12d4] ss:$28 sps:$4 sm:$0xff]  }
 0x4a5   :  { %v13847_v0 = vadd.f32 %v6180_v52, %v1016_v59  ;;  %v6182_v3 = vpop.f32.mrb[9].mxu0  ;;  %v15630_v52 = vld [vmem:[#allocation6 + $0xd98] ss:$28 sps:$4 sm:$0xff]  }
 0x4a6   :  { %v13848_v5 = vadd.f32 %v6182_v3, %v1020_v38  ;;  %v6184_v7 = vpop.f32.mrb[10].mxu0  ;;  %v15641_v3 = vld [vmem:[#allocation6 + $0x14] ss:$28 sps:$4 sm:$0xff]  }
 0x4a7   :  { %v13849_v8 = vadd.f32 %v6184_v7, %v1016_v59  ;;  %10734 = vmatpush1.bf16.msra.mxu0 %v15576_v62  ;;  %v6186_v16 = vpop.f32.mrb[11].mxu0  ;;  %v6402_v22 = vmax.f32 %v13847_v0, 0.0  ;;  %v15627_v59 = vld [vmem:[#allocation6 + $0x12d0] ss:$28 sps:$4 sm:$0xff]  }
 0x4a8   :  { %v13850_v20 = vadd.f32 %v6186_v16, %v1020_v38  ;;  %10735 = vmatprep.subr.bf16.mxu0 %v15584_v63  ;;  %v6403_v24 = vmax.f32 %v13848_v5, 0.0  ;;  %v15632_v38 = vld [vmem:[#allocation6 + $0xd9c] ss:$28 sps:$4 sm:$0xff]   ;;  %v15635_v62 = vld [vmem:[#allocation6 + $0x130c] ss:$28 sps:$4 sm:$0xff]  }
 0x4a9   :  { %v6413_v23 = vmax.f32 %v13849_v8, 0.0  ;;  %v15633_v63 = vld [vmem:[#allocation6 + $0x1308] ss:$28 sps:$4 sm:$0xff]   ;;  %v15638_v0 = vld [vmem:[#allocation6 + $0xdd4] ss:$28 sps:$4 sm:$0xff]  }
 0x4aa   :  { %v6414_v25 = vmax.f32 %v13850_v20, 0.0  ;;  %v15636_v5 = vld [vmem:[#allocation6 + $0xdd0] ss:$28 sps:$4 sm:$0xff]   ;;  %v15645_v20 = vld [vmem:[#allocation6 + $0x48] ss:$28 sps:$4 sm:$0xff]  }
 0x4ab   :  { %v16621_v26 = vpack.c.bf16 %v6413_v23, %v6402_v22  ;;  %10736 = vmatpush1.bf16.msra.mxu0 %v15582_v19  ;;  %v15639_v7 = vld [vmem:[#allocation6 + $0x10] ss:$28 sps:$4 sm:$0xff]   ;;  %v15642_v19 = vld [vmem:[#allocation6 + $0xe08] ss:$28 sps:$4 sm:$0xff]   ;;  %v15648_v23 = vld [vmem:[#allocation6 + $0xe40] ss:$28 sps:$4 sm:$0xff]  }
 0x4ac   :  { %v16623_v28 = vpack.c.bf16 %v6414_v25, %v6403_v24  ;;  %10737 = vmatprep.subr.bf16.mxu0 %v15590_v21  ;;  %v15644_v8 = vld [vmem:[#allocation6 + $0xe0c] ss:$28 sps:$4 sm:$0xff]   ;;  %v15650_v21 = vld [vmem:[#allocation6 + $0xe44] ss:$28 sps:$4 sm:$0xff]   ;;  %v15656_v25 = vld [vmem:[#allocation6 + $0xe7c] ss:$28 sps:$4 sm:$0xff]  }
 0x4ad   :  { %v15647_v16 = vld [vmem:[#allocation6 + $0x4c] ss:$28 sps:$4 sm:$0xff]   ;;  %v15653_v22 = vld [vmem:[#allocation6 + $0x84] ss:$28 sps:$4 sm:$0xff]  }
 0x4ae   :  { %10540 = vmatprep.mubr.bf16.mxu1 %v16623_v28  ;;  %v15651_v24 = vld [vmem:[#allocation6 + $0x80] ss:$28 sps:$4 sm:$0xff]  }
 0x4af   :  { %10738 = vmatpush1.bf16.msra.mxu0 %v15588_v27  ;;  %10541 = vmatmul.mubr.bf16.vlgmr.msra.gmra.mrb[28].mxu1 %v16621_v26  ;;  %v15659_v27 = vld [vmem:[#allocation6 + $0xbc] ss:$28 sps:$4 sm:$0xff]  }
 0x4b0   :  { %10552 = vmatpush1.bf16.msra.mxu1 %v15591_v29  ;;  %10739 = vmatprep.subr.bf16.mxu0 %v15596_v30  ;;  %v15654_v29 = vld [vmem:[#allocation6 + $0xe78] ss:$28 sps:$4 sm:$0xff]  }
 0x4b1   :  { %10553 = vmatprep.subr.bf16.mxu1 %v15599_v31  ;;  %10583 = vmatprep.mubr.bf16.mxu1 %v16293_v18  ;;  %v15657_v30 = vld [vmem:[#allocation6 + $0xb8] ss:$28 sps:$4 sm:$0xff]  }
 0x4b2   :  { %v15662_v31 = vld [vmem:[#allocation6 + $0xeb4] ss:$28 sps:$4 sm:$0xff]  }
 0x4b3   :  { %10740 = vmatpush1.bf16.msra.mxu0 %v15594_v32  ;;  %v15665_v32 = vld [vmem:[#allocation6 + $0xf4] ss:$28 sps:$4 sm:$0xff]  }
 0x4b4   :  { %10554 = vmatpush1.bf16.msra.mxu1 %v15597_v35  ;;  %10741 = vmatprep.subr.bf16.mxu0 %v15602_v36  ;;  %v15660_v35 = vld [vmem:[#allocation6 + $0xeb0] ss:$28 sps:$4 sm:$0xff]  }
 0x4b5   :  { %10555 = vmatprep.subr.bf16.mxu1 %v15605_v37  ;;  %v15663_v36 = vld [vmem:[#allocation6 + $0xf0] ss:$28 sps:$4 sm:$0xff]  }
 0x4b6   :  { %v15668_v37 = vld [vmem:[#allocation6 + $0xeec] ss:$28 sps:$4 sm:$0xff]  }
 0x4b7   :  { %10742 = vmatpush1.bf16.msra.mxu0 %v15600_v39  ;;  %v15671_v39 = vld [vmem:[#allocation6 + $0x12c] ss:$28 sps:$4 sm:$0xff]  }
 0x4b8   :  { %10556 = vmatpush1.bf16.msra.mxu1 %v15603_v40  ;;  %10743 = vmatprep.subr.bf16.mxu0 %v15608_v41  ;;  %v15666_v40 = vld [vmem:[#allocation6 + $0xee8] ss:$28 sps:$4 sm:$0xff]  }
 0x4b9   :  { %10557 = vmatprep.subr.bf16.mxu1 %v15611_v42  ;;  %v15669_v41 = vld [vmem:[#allocation6 + $0x128] ss:$28 sps:$4 sm:$0xff]  }
 0x4ba   :  { %v15674_v42 = vld [vmem:[#allocation6 + $0xf24] ss:$28 sps:$4 sm:$0xff]  }
 0x4bb   :  { %10744 = vmatpush1.bf16.msra.mxu0 %v15606_v44  ;;  %v15677_v44 = vld [vmem:[#allocation6 + $0x164] ss:$28 sps:$4 sm:$0xff]  }
 0x4bc   :  { %10558 = vmatpush1.bf16.msra.mxu1 %v15609_v45  ;;  %10745 = vmatprep.subr.bf16.mxu0 %v15614_v48  ;;  %v15672_v45 = vld [vmem:[#allocation6 + $0xf20] ss:$28 sps:$4 sm:$0xff]  }
 0x4bd   :  { %10559 = vmatprep.subr.bf16.mxu1 %v15617_v51  ;;  %v15675_v48 = vld [vmem:[#allocation6 + $0x160] ss:$28 sps:$4 sm:$0xff]  }
 0x4be   :  { %v15680_v51 = vld [vmem:[#allocation6 + $0xf5c] ss:$28 sps:$4 sm:$0xff]  }
 0x4bf   :  { %10746 = vmatpush1.bf16.msra.mxu0 %v15612_v43  ;;  %v15683_v43 = vld [vmem:[#allocation6 + $0x19c] ss:$28 sps:$4 sm:$0xff]  }
 0x4c0   :  { %10560 = vmatpush1.bf16.msra.mxu1 %v15615_v47  ;;  %10747 = vmatprep.subr.bf16.mxu0 %v15620_v53  ;;  %v15678_v47 = vld [vmem:[#allocation6 + $0xf58] ss:$28 sps:$4 sm:$0xff]  }
 0x4c1   :  { %10561 = vmatprep.subr.bf16.mxu1 %v15623_v49  ;;  %v15681_v53 = vld [vmem:[#allocation6 + $0x198] ss:$28 sps:$4 sm:$0xff]  }
 0x4c2   :  { %v15686_v49 = vld [vmem:[#allocation6 + $0xf94] ss:$28 sps:$4 sm:$0xff]  }
 0x4c3   :  { %10748 = vmatpush1.bf16.msra.mxu0 %v15618_v54  ;;  %v15689_v54 = vld [vmem:[#allocation6 + $0x1d4] ss:$28 sps:$4 sm:$0xff]  }
 0x4c4   :  { %10562 = vmatpush1.bf16.msra.mxu1 %v15621_v50  ;;  %10749 = vmatprep.subr.bf16.mxu0 %v15626_v55  ;;  %v15684_v50 = vld [vmem:[#allocation6 + $0xf90] ss:$28 sps:$4 sm:$0xff]  }
 0x4c5   :  { %10563 = vmatprep.subr.bf16.mxu1 %v15629_v56  ;;  %v15687_v55 = vld [vmem:[#allocation6 + $0x1d0] ss:$28 sps:$4 sm:$0xff]  }
 0x4c6   :  { %v15692_v56 = vld [vmem:[#allocation6 + $0xfcc] ss:$28 sps:$4 sm:$0xff]  }
 0x4c7   :  { %10750 = vmatpush1.bf16.msra.mxu0 %v15624_v33  ;;  %v15695_v33 = vld [vmem:[#allocation6 + $0x20c] ss:$28 sps:$4 sm:$0xff]  }
 0x4c8   :  { %10564 = vmatpush1.bf16.msra.mxu1 %v15627_v59  ;;  %10751 = vmatprep.subr.bf16.mxu0 %v15632_v38  ;;  %v15690_v59 = vld [vmem:[#allocation6 + $0xfc8] ss:$28 sps:$4 sm:$0xff]  }
 0x4c9   :  { %10565 = vmatprep.subr.bf16.mxu1 %v15635_v62  ;;  %v15693_v38 = vld [vmem:[#allocation6 + $0x208] ss:$28 sps:$4 sm:$0xff]  }
 0x4ca   :  { %v15698_v62 = vld [vmem:[#allocation6 + $0x1004] ss:$28 sps:$4 sm:$0xff]  }
 0x4cb   :  { %10752 = vmatpush1.bf16.msra.mxu0 %v15630_v52  ;;  %v15701_v52 = vld [vmem:[#allocation6 + $0x244] ss:$28 sps:$4 sm:$0xff]  }
 0x4cc   :  { %10566 = vmatpush1.bf16.msra.mxu1 %v15633_v63  ;;  %10753 = vmatprep.subr.bf16.mxu0 %v15638_v0  ;;  %v15696_v63 = vld [vmem:[#allocation6 + $0x1000] ss:$28 sps:$4 sm:$0xff]  }
 0x4cd   :  { %10852 = vmatprep.subr.bf16.mxu1 %v15641_v3  ;;  %v15699_v0 = vld [vmem:[#allocation6 + $0x240] ss:$28 sps:$4 sm:$0xff]  }
 0x4ce   :  { %v15704_v3 = vld [vmem:[#allocation6 + $0x103c] ss:$28 sps:$4 sm:$0xff]  }
 0x4cf   :  { %10584 = vmatmul.mubr.bf16.vlgmr.msra.gmra.mrb[28].mxu1 %v16612_v34  ;;  %10754 = vmatpush1.bf16.msra.mxu0 %v15636_v5  ;;  %v15707_v5 = vld [vmem:[#allocation6 + $0x27c] ss:$28 sps:$4 sm:$0xff]  }
 0x4d0   :  { %10853 = vmatpush1.bf16.msra.mxu1 %v15639_v7  ;;  %10884 = vmatprep.mubr.bf16.mxu1 %v16479_v60  ;;  %v15702_v7 = vld [vmem:[#allocation6 + $0x1038] ss:$28 sps:$4 sm:$0xff]  }
 0x4d1   :  { %10766 = vmatprep.subr.bf16.mxu0 %v15644_v8  ;;  %10854 = vmatprep.subr.bf16.mxu1 %v15647_v16  ;;  %v15705_v8 = vld [vmem:[#allocation6 + $0x278] ss:$28 sps:$4 sm:$0xff]  }
 0x4d2   :  { %10756 = vmatmul.mubr.bf16.vlgmr.msra.gmra.mrb[12].mxu0 %v16565_v2  ;;  %v15710_v16 = vld [vmem:[#allocation6 + $0x1074] ss:$28 sps:$4 sm:$0xff]  }
 0x4d3   :  { %10767 = vmatpush1.bf16.msra.mxu0 %v15642_v19  ;;  %10798 = vmatprep.mubr.bf16.mxu0 %v16623_v28  ;;  %v15713_v19 = vld [vmem:[#allocation6 + $0x2b4] ss:$28 sps:$4 sm:$0xff]  }
 0x4d4   :  { %10855 = vmatpush1.bf16.msra.mxu1 %v15645_v20  ;;  %10768 = vmatprep.subr.bf16.mxu0 %v15650_v21  ;;  %v15708_v20 = vld [vmem:[#allocation6 + $0x1070] ss:$28 sps:$4 sm:$0xff]  }
 0x4d5   :  { %10856 = vmatprep.subr.bf16.mxu1 %v15653_v22  ;;  %v15711_v21 = vld [vmem:[#allocation6 + $0x2b0] ss:$28 sps:$4 sm:$0xff]  }
 0x4d6   :  { %v15716_v22 = vld [vmem:[#allocation6 + $0x10ac] ss:$28 sps:$4 sm:$0xff]  }
 0x4d7   :  { %10769 = vmatpush1.bf16.msra.mxu0 %v15648_v23  ;;  %v15719_v23 = vld [vmem:[#allocation6 + $0x2ec] ss:$28 sps:$4 sm:$0xff]  }
 0x4d8   :  { %10857 = vmatpush1.bf16.msra.mxu1 %v15651_v24  ;;  %10770 = vmatprep.subr.bf16.mxu0 %v15656_v25  ;;  %v15714_v24 = vld [vmem:[#allocation6 + $0x10a8] ss:$28 sps:$4 sm:$0xff]  }
 0x4d9   :  { %10858 = vmatprep.subr.bf16.mxu1 %v15659_v27  ;;  %v15717_v25 = vld [vmem:[#allocation6 + $0x2e8] ss:$28 sps:$4 sm:$0xff]  }
 0x4da   :  { %v15722_v27 = vld [vmem:[#allocation6 + $0x10e4] ss:$28 sps:$4 sm:$0xff]  }
 0x4db   :  { %10771 = vmatpush1.bf16.msra.mxu0 %v15654_v29  ;;  %v15725_v29 = vld [vmem:[#allocation6 + $0x324] ss:$28 sps:$4 sm:$0xff]  }
 0x4dc   :  { %10859 = vmatpush1.bf16.msra.mxu1 %v15657_v30  ;;  %10772 = vmatprep.subr.bf16.mxu0 %v15662_v31  ;;  %v15720_v30 = vld [vmem:[#allocation6 + $0x10e0] ss:$28 sps:$4 sm:$0xff]  }
 0x4dd   :  { %10860 = vmatprep.subr.bf16.mxu1 %v15665_v32  ;;  %v15723_v31 = vld [vmem:[#allocation6 + $0x320] ss:$28 sps:$4 sm:$0xff]  }
 0x4de   :  { %v15728_v32 = vld [vmem:[#allocation6 + $0x111c] ss:$28 sps:$4 sm:$0xff]  }
 0x4df   :  { %10773 = vmatpush1.bf16.msra.mxu0 %v15660_v35  ;;  %v15731_v35 = vld [vmem:[#allocation6 + $0x35c] ss:$28 sps:$4 sm:$0xff]  }
 0x4e0   :  { %10861 = vmatpush1.bf16.msra.mxu1 %v15663_v36  ;;  %10774 = vmatprep.subr.bf16.mxu0 %v15668_v37  ;;  %v15726_v36 = vld [vmem:[#allocation6 + $0x1118] ss:$28 sps:$4 sm:$0xff]  }
 0x4e1   :  { %10862 = vmatprep.subr.bf16.mxu1 %v15671_v39  ;;  %v15729_v37 = vld [vmem:[#allocation6 + $0x358] ss:$28 sps:$4 sm:$0xff]  }
 0x4e2   :  { %v15734_v39 = vld [vmem:[#allocation6 + $0x1154] ss:$28 sps:$4 sm:$0xff]  }
 0x4e3   :  { %10775 = vmatpush1.bf16.msra.mxu0 %v15666_v40  ;;  %v15737_v40 = vld [vmem:[#allocation6 + $0x394] ss:$28 sps:$4 sm:$0xff]  }
 0x4e4   :  { %10863 = vmatpush1.bf16.msra.mxu1 %v15669_v41  ;;  %10776 = vmatprep.subr.bf16.mxu0 %v15674_v42  ;;  %v15732_v41 = vld [vmem:[#allocation6 + $0x1150] ss:$28 sps:$4 sm:$0xff]  }
 0x4e5   :  { %10864 = vmatprep.subr.bf16.mxu1 %v15677_v44  ;;  %v15735_v42 = vld [vmem:[#allocation6 + $0x390] ss:$28 sps:$4 sm:$0xff]  }
 0x4e6   :  { %v15740_v44 = vld [vmem:[#allocation6 + $0x118c] ss:$28 sps:$4 sm:$0xff]  }
 0x4e7   :  { %10777 = vmatpush1.bf16.msra.mxu0 %v15672_v45  ;;  %v15743_v45 = vld [vmem:[#allocation6 + $0x3cc] ss:$28 sps:$4 sm:$0xff]  }
 0x4e8   :  { %10865 = vmatpush1.bf16.msra.mxu1 %v15675_v48  ;;  %10778 = vmatprep.subr.bf16.mxu0 %v15680_v51  ;;  %v15738_v48 = vld [vmem:[#allocation6 + $0x1188] ss:$28 sps:$4 sm:$0xff]  }
 0x4e9   :  { %10866 = vmatprep.subr.bf16.mxu1 %v15683_v43  ;;  %v15741_v51 = vld [vmem:[#allocation6 + $0x3c8] ss:$28 sps:$4 sm:$0xff]  }
 0x4ea   :  { %v15746_v43 = vld [vmem:[#allocation6 + $0x11c4] ss:$28 sps:$4 sm:$0xff]  }
 0x4eb   :  { %10779 = vmatpush1.bf16.msra.mxu0 %v15678_v47  ;;  %v15749_v47 = vld [vmem:[#allocation6 + $0x404] ss:$28 sps:$4 sm:$0xff]  }
 0x4ec   :  { %10867 = vmatpush1.bf16.msra.mxu1 %v15681_v53  ;;  %10780 = vmatprep.subr.bf16.mxu0 %v15686_v49  ;;  %v15744_v53 = vld [vmem:[#allocation6 + $0x11c0] ss:$28 sps:$4 sm:$0xff]  }
 0x4ed   :  { %10868 = vmatprep.subr.bf16.mxu1 %v15689_v54  ;;  %v15747_v49 = vld [vmem:[#allocation6 + $0x400] ss:$28 sps:$4 sm:$0xff]  }
 0x4ee   :  { %v15752_v54 = vld [vmem:[#allocation6 + $0x11fc] ss:$28 sps:$4 sm:$0xff]  }
 0x4ef   :  { %10781 = vmatpush1.bf16.msra.mxu0 %v15684_v50  ;;  %v15755_v50 = vld [vmem:[#allocation6 + $0x43c] ss:$28 sps:$4 sm:$0xff]  }
 0x4f0   :  { %10869 = vmatpush1.bf16.msra.mxu1 %v15687_v55  ;;  %10782 = vmatprep.subr.bf16.mxu0 %v15692_v56  ;;  %v15750_v55 = vld [vmem:[#allocation6 + $0x11f8] ss:$28 sps:$4 sm:$0xff]  }
 0x4f1   :  { %10870 = vmatprep.subr.bf16.mxu1 %v15695_v33  ;;  %v15753_v56 = vld [vmem:[#allocation6 + $0x438] ss:$28 sps:$4 sm:$0xff]  }
 0x4f2   :  { %v15758_v33 = vld [vmem:[#allocation6 + $0x1234] ss:$28 sps:$4 sm:$0xff]  }
 0x4f3   :  { %10783 = vmatpush1.bf16.msra.mxu0 %v15690_v59  ;;  %v15761_v59 = vld [vmem:[#allocation6 + $0x474] ss:$28 sps:$4 sm:$0xff]  }
 0x4f4   :  { %10871 = vmatpush1.bf16.msra.mxu1 %v15693_v38  ;;  %10784 = vmatprep.subr.bf16.mxu0 %v15698_v62  ;;  %v15756_v38 = vld [vmem:[#allocation6 + $0x1230] ss:$28 sps:$4 sm:$0xff]  }
 0x4f5   :  { %10872 = vmatprep.subr.bf16.mxu1 %v15701_v52  ;;  %v15759_v62 = vld [vmem:[#allocation6 + $0x470] ss:$28 sps:$4 sm:$0xff]  }
 0x4f6   :  { %v15764_v52 = vld [vmem:[#allocation6 + $0x126c] ss:$28 sps:$4 sm:$0xff]  }
 0x4f7   :  { %10785 = vmatpush1.bf16.msra.mxu0 %v15696_v63  ;;  %v15767_v63 = vld [vmem:[#allocation6 + $0x4ac] ss:$28 sps:$4 sm:$0xff]  }
 0x4f8   :  { %10873 = vmatpush1.bf16.msra.mxu1 %v15699_v0  ;;  %10786 = vmatprep.subr.bf16.mxu0 %v15704_v3  ;;  %v15762_v0 = vld [vmem:[#allocation6 + $0x1268] ss:$28 sps:$4 sm:$0xff]  }
 0x4f9   :  { %10874 = vmatprep.subr.bf16.mxu1 %v15707_v5  ;;  %v15765_v3 = vld [vmem:[#allocation6 + $0x4a8] ss:$28 sps:$4 sm:$0xff]  }
 0x4fa   :  { %v15770_v5 = vld [vmem:[#allocation6 + $0x12a4] ss:$28 sps:$4 sm:$0xff]  }
 0x4fb   :  { %10787 = vmatpush1.bf16.msra.mxu0 %v15702_v7  ;;  %v15773_v7 = vld [vmem:[#allocation6 + $0x4e4] ss:$28 sps:$4 sm:$0xff]  }
 0x4fc   :  { %10875 = vmatpush1.bf16.msra.mxu1 %v15705_v8  ;;  %10788 = vmatprep.subr.bf16.mxu0 %v15710_v16  ;;  %v15768_v8 = vld [vmem:[#allocation6 + $0x12a0] ss:$28 sps:$4 sm:$0xff]  }
 0x4fd   :  { %10876 = vmatprep.subr.bf16.mxu1 %v15713_v19  ;;  %v15771_v16 = vld [vmem:[#allocation6 + $0x4e0] ss:$28 sps:$4 sm:$0xff]  }
 0x4fe   :  { %v15776_v19 = vld [vmem:[#allocation6 + $0x12dc] ss:$28 sps:$4 sm:$0xff]  }
 0x4ff   :  { %10789 = vmatpush1.bf16.msra.mxu0 %v15708_v20  ;;  %v15779_v20 = vld [vmem:[#allocation6 + $0x51c] ss:$28 sps:$4 sm:$0xff]  }
 0x500   :  { %10877 = vmatpush1.bf16.msra.mxu1 %v15711_v21  ;;  %10790 = vmatprep.subr.bf16.mxu0 %v15716_v22  ;;  %v15774_v21 = vld [vmem:[#allocation6 + $0x12d8] ss:$28 sps:$4 sm:$0xff]  }
 0x501   :  { %10878 = vmatprep.subr.bf16.mxu1 %v15719_v23  ;;  %v15777_v22 = vld [vmem:[#allocation6 + $0x518] ss:$28 sps:$4 sm:$0xff]  }
 0x502   :  { %v15782_v23 = vld [vmem:[#allocation6 + $0x1314] ss:$28 sps:$4 sm:$0xff]  }
 0x503   :  { %10791 = vmatpush1.bf16.msra.mxu0 %v15714_v24  ;;  %v15785_v24 = vld [vmem:[#allocation6 + $0x554] ss:$28 sps:$4 sm:$0xff]  }
 0x504   :  { %10879 = vmatpush1.bf16.msra.mxu1 %v15717_v25  ;;  %10792 = vmatprep.subr.bf16.mxu0 %v15722_v27  ;;  %v15780_v25 = vld [vmem:[#allocation6 + $0x1310] ss:$28 sps:$4 sm:$0xff]  }
 0x505   :  { %10880 = vmatprep.subr.bf16.mxu1 %v15725_v29  ;;  %v15783_v27 = vld [vmem:[#allocation6 + $0x550] ss:$28 sps:$4 sm:$0xff]   ;;  %v15786_v29 = vld [vmem:[#allocation6 + $0x1d8] ss:$28 sps:$4 sm:$0xff]  }
 0x507   :  { %10793 = vmatpush1.bf16.msra.mxu0 %v15720_v30  ;;  %v15789_v30 = vld [vmem:[#allocation6 + $0x58c] ss:$28 sps:$4 sm:$0xff]  }
 0x508   :  { %10881 = vmatpush1.bf16.msra.mxu1 %v15723_v31  ;;  %10794 = vmatprep.subr.bf16.mxu0 %v15728_v32  ;;  %v15790_v31 = vld [vmem:[#allocation6 + $0x18] ss:$28 sps:$4 sm:$0xff]   ;;  %v15787_v32 = vld [vmem:[#allocation6 + $0x588] ss:$28 sps:$4 sm:$0xff]  }
 0x509   :  { %10882 = vmatprep.subr.bf16.mxu1 %v15731_v35  ;;  %v15791_v35 = vld [vmem:[#allocation6 + $0x210] ss:$28 sps:$4 sm:$0xff]  }
 0x50b   :  { %10795 = vmatpush1.bf16.msra.mxu0 %v15726_v36  ;;  %v15794_v36 = vld [vmem:[#allocation6 + $0x5c4] ss:$28 sps:$4 sm:$0xff]  }
 0x50c   :  { %10883 = vmatpush1.bf16.msra.mxu1 %v15729_v37  ;;  %10796 = vmatprep.subr.bf16.mxu0 %v15734_v39  ;;  %v15795_v37 = vld [vmem:[#allocation6 + $0x50] ss:$28 sps:$4 sm:$0xff]   ;;  %v15792_v39 = vld [vmem:[#allocation6 + $0x5c0] ss:$28 sps:$4 sm:$0xff]  }
 0x50d   :  { %10895 = vmatprep.subr.bf16.mxu1 %v15737_v40  ;;  %v15796_v40 = vld [vmem:[#allocation6 + $0x248] ss:$28 sps:$4 sm:$0xff]  }
 0x50f   :  { %10797 = vmatpush1.bf16.msra.mxu0 %v15732_v41  ;;  %10885 = vmatmul.mubr.bf16.vlgmr.msra.gmra.mrb[32].mxu1 %v16475_v57  ;;  %v15799_v41 = vld [vmem:[#allocation6 + $0x5fc] ss:$28 sps:$4 sm:$0xff]  }
 0x510   :  { %10896 = vmatpush1.bf16.msra.mxu1 %v15735_v42  ;;  %10927 = vmatprep.mubr.bf16.mxu1 %v16481_v61  ;;  %v15800_v42 = vld [vmem:[#allocation6 + $0x88] ss:$28 sps:$4 sm:$0xff]  }
 0x511   :  { %10809 = vmatprep.subr.bf16.mxu0 %v15740_v44  ;;  %10897 = vmatprep.subr.bf16.mxu1 %v15743_v45  ;;  %v15797_v44 = vld [vmem:[#allocation6 + $0x5f8] ss:$28 sps:$4 sm:$0xff]   ;;  %v15801_v45 = vld [vmem:[#allocation6 + $0x280] ss:$28 sps:$4 sm:$0xff]  }
 0x512   :  { %10799 = vmatmul.mubr.bf16.vlgmr.msra.gmra.mrb[12].mxu0 %v16621_v26 }
 0x513   :  { %10810 = vmatpush1.bf16.msra.mxu0 %v15738_v48  ;;  %10841 = vmatprep.mubr.bf16.mxu0 %v16293_v18  ;;  %v15804_v48 = vld [vmem:[#allocation6 + $0x634] ss:$28 sps:$4 sm:$0xff]  }
 0x514   :  { %10898 = vmatpush1.bf16.msra.mxu1 %v15741_v51  ;;  %10811 = vmatprep.subr.bf16.mxu0 %v15746_v43  ;;  %v15805_v51 = vld [vmem:[#allocation6 + $0xc0] ss:$28 sps:$4 sm:$0xff]   ;;  %v15806_v43 = vld [vmem:[#allocation6 + $0x2b8] ss:$28 sps:$4 sm:$0xff]  }
 0x515   :  { %10899 = vmatprep.subr.bf16.mxu1 %v15749_v47  ;;  %v15809_v47 = vld [vmem:[#allocation6 + $0x66c] ss:$28 sps:$4 sm:$0xff]  }
 0x517   :  { %10812 = vmatpush1.bf16.msra.mxu0 %v15744_v53  ;;  %v15810_v53 = vld [vmem:[#allocation6 + $0xf8] ss:$28 sps:$4 sm:$0xff]  }
 0x518   :  { %10900 = vmatpush1.bf16.msra.mxu1 %v15747_v49  ;;  %10813 = vmatprep.subr.bf16.mxu0 %v15752_v54  ;;  %v15807_v49 = vld [vmem:[#allocation6 + $0x668] ss:$28 sps:$4 sm:$0xff]   ;;  %v15811_v54 = vld [vmem:[#allocation6 + $0x2f0] ss:$28 sps:$4 sm:$0xff]  }
 0x519   :  { %10901 = vmatprep.subr.bf16.mxu1 %v15755_v50  ;;  %v15814_v50 = vld [vmem:[#allocation6 + $0x6a4] ss:$28 sps:$4 sm:$0xff]  }
 0x51b   :  { %10814 = vmatpush1.bf16.msra.mxu0 %v15750_v55  ;;  %v15815_v55 = vld [vmem:[#allocation6 + $0x130] ss:$28 sps:$4 sm:$0xff]  }
 0x51c   :  { %10902 = vmatpush1.bf16.msra.mxu1 %v15753_v56  ;;  %10815 = vmatprep.subr.bf16.mxu0 %v15758_v33  ;;  %v15812_v56 = vld [vmem:[#allocation6 + $0x6a0] ss:$28 sps:$4 sm:$0xff]   ;;  %v15816_v33 = vld [vmem:[#allocation6 + $0x328] ss:$28 sps:$4 sm:$0xff]  }
 0x51d   :  { %10903 = vmatprep.subr.bf16.mxu1 %v15761_v59  ;;  %v15819_v59 = vld [vmem:[#allocation6 + $0x6dc] ss:$28 sps:$4 sm:$0xff]  }
 0x51f   :  { %10816 = vmatpush1.bf16.msra.mxu0 %v15756_v38  ;;  %v15820_v38 = vld [vmem:[#allocation6 + $0x168] ss:$28 sps:$4 sm:$0xff]  }
 0x520   :  { %10904 = vmatpush1.bf16.msra.mxu1 %v15759_v62  ;;  %10817 = vmatprep.subr.bf16.mxu0 %v15764_v52  ;;  %v15817_v62 = vld [vmem:[#allocation6 + $0x6d8] ss:$28 sps:$4 sm:$0xff]   ;;  %v15821_v52 = vld [vmem:[#allocation6 + $0x360] ss:$28 sps:$4 sm:$0xff]  }
 0x521   :  { %10905 = vmatprep.subr.bf16.mxu1 %v15767_v63  ;;  %v15824_v63 = vld [vmem:[#allocation6 + $0x714] ss:$28 sps:$4 sm:$0xff]  }
 0x523   :  { %10818 = vmatpush1.bf16.msra.mxu0 %v15762_v0  ;;  %v15825_v0 = vld [vmem:[#allocation6 + $0x1a0] ss:$28 sps:$4 sm:$0xff]  }
 0x524   :  { %10906 = vmatpush1.bf16.msra.mxu1 %v15765_v3  ;;  %10819 = vmatprep.subr.bf16.mxu0 %v15770_v5  ;;  %v15822_v3 = vld [vmem:[#allocation6 + $0x710] ss:$28 sps:$4 sm:$0xff]   ;;  %v15826_v5 = vld [vmem:[#allocation6 + $0x558] ss:$28 sps:$4 sm:$0xff]  }
 0x525   :  { %10907 = vmatprep.subr.bf16.mxu1 %v15773_v7  ;;  %v15829_v7 = vld [vmem:[#allocation6 + $0x74c] ss:$28 sps:$4 sm:$0xff]  }
 0x527   :  { %10820 = vmatpush1.bf16.msra.mxu0 %v15768_v8  ;;  %v15830_v8 = vld [vmem:[#allocation6 + $0x398] ss:$28 sps:$4 sm:$0xff]  }
 0x528   :  { %10908 = vmatpush1.bf16.msra.mxu1 %v15771_v16  ;;  %10821 = vmatprep.subr.bf16.mxu0 %v15776_v19  ;;  %v15827_v16 = vld [vmem:[#allocation6 + $0x748] ss:$28 sps:$4 sm:$0xff]   ;;  %v15831_v19 = vld [vmem:[#allocation6 + $0x590] ss:$28 sps:$4 sm:$0xff]  }
 0x529   :  { %10909 = vmatprep.subr.bf16.mxu1 %v15779_v20  ;;  %v15834_v20 = vld [vmem:[#allocation6 + $0x784] ss:$28 sps:$4 sm:$0xff]  }
 0x52b   :  { %10822 = vmatpush1.bf16.msra.mxu0 %v15774_v21  ;;  %v15835_v21 = vld [vmem:[#allocation6 + $0x3d0] ss:$28 sps:$4 sm:$0xff]  }
 0x52c   :  { %10910 = vmatpush1.bf16.msra.mxu1 %v15777_v22  ;;  %10823 = vmatprep.subr.bf16.mxu0 %v15782_v23  ;;  %v15832_v22 = vld [vmem:[#allocation6 + $0x780] ss:$28 sps:$4 sm:$0xff]   ;;  %v15836_v23 = vld [vmem:[#allocation6 + $0x5c8] ss:$28 sps:$4 sm:$0xff]  }
 0x52d   :  { %10911 = vmatprep.subr.bf16.mxu1 %v15785_v24  ;;  %v15839_v24 = vld [vmem:[#allocation6 + $0x7bc] ss:$28 sps:$4 sm:$0xff]  }
 0x52f   :  { %10824 = vmatpush1.bf16.msra.mxu0 %v15780_v25  ;;  %v15840_v25 = vld [vmem:[#allocation6 + $0x408] ss:$28 sps:$4 sm:$0xff]  }
 0x530   :  { %10912 = vmatpush1.bf16.msra.mxu1 %v15783_v27  ;;  %13577 = vmatprep.subr.bf16.mxu0 %v15786_v29  ;;  %v15837_v27 = vld [vmem:[#allocation6 + $0x7b8] ss:$28 sps:$4 sm:$0xff]   ;;  %v15841_v29 = vld [vmem:[#allocation6 + $0x600] ss:$28 sps:$4 sm:$0xff]  }
 0x531   :  { %10913 = vmatprep.subr.bf16.mxu1 %v15789_v30  ;;  %v15844_v30 = vld [vmem:[#allocation6 + $0x7f4] ss:$28 sps:$4 sm:$0xff]  }
 0x532   :  { %10842 = vmatmul.mubr.bf16.vlgmr.msra.gmra.mrb[12].mxu0 %v16612_v34 }
 0x533   :  { %13578 = vmatpush3.bf16.msra.mxu0 %v15790_v31  ;;  %11142 = vmatprep.mubr.bf16.mxu0 %v16479_v60  ;;  %v15802_v60 = vld [vmem:[#allocation6 + $0x630] ss:$28 sps:$4 sm:$0xff]   ;;  %v15846_v31 = vld [vmem:[#allocation6 + $0x638] ss:$28 sps:$4 sm:$0xff]  }
 0x534   :  { %10914 = vmatpush1.bf16.msra.mxu1 %v15787_v32  ;;  %13579 = vmatprep.subr.bf16.mxu0 %v15791_v35  ;;  %v15849_v32 = vld [vmem:[#allocation6 + $0x82c] ss:$28 sps:$4 sm:$0xff]   ;;  %v15850_v35 = vld [vmem:[#allocation6 + $0x478] ss:$28 sps:$4 sm:$0xff]  }
 0x535   :  { %10915 = vmatprep.subr.bf16.mxu1 %v15794_v36  ;;  %v15847_v36 = vld [vmem:[#allocation6 + $0x828] ss:$28 sps:$4 sm:$0xff]  }
 0x537   :  { %13580 = vmatpush3.bf16.msra.mxu0 %v15795_v37  ;;  %v15851_v37 = vld [vmem:[#allocation6 + $0x670] ss:$28 sps:$4 sm:$0xff]  }
 0x538   :  { %10916 = vmatpush1.bf16.msra.mxu1 %v15792_v39  ;;  %13581 = vmatprep.subr.bf16.mxu0 %v15796_v40  ;;  %v15854_v39 = vld [vmem:[#allocation6 + $0x864] ss:$28 sps:$4 sm:$0xff]   ;;  %v15855_v40 = vld [vmem:[#allocation6 + $0x4b0] ss:$28 sps:$4 sm:$0xff]  }
 0x539   :  { %10917 = vmatprep.subr.bf16.mxu1 %v15799_v41  ;;  %v15852_v41 = vld [vmem:[#allocation6 + $0x860] ss:$28 sps:$4 sm:$0xff]  }
 0x53b   :  { %13582 = vmatpush3.bf16.msra.mxu0 %v15800_v42  ;;  %v15856_v42 = vld [vmem:[#allocation6 + $0x6a8] ss:$28 sps:$4 sm:$0xff]  }
 0x53c   :  { %10918 = vmatpush1.bf16.msra.mxu1 %v15797_v44  ;;  %13583 = vmatprep.subr.bf16.mxu0 %v15801_v45  ;;  %v15859_v44 = vld [vmem:[#allocation6 + $0x89c] ss:$28 sps:$4 sm:$0xff]   ;;  %v15860_v45 = vld [vmem:[#allocation6 + $0x4e8] ss:$28 sps:$4 sm:$0xff]  }
 0x53d   :  { %10919 = vmatprep.subr.bf16.mxu1 %v15804_v48  ;;  %v15857_v48 = vld [vmem:[#allocation6 + $0x898] ss:$28 sps:$4 sm:$0xff]  }
 0x53f   :  { %13584 = vmatpush3.bf16.msra.mxu0 %v15805_v51  ;;  %v15861_v51 = vld [vmem:[#allocation6 + $0x6e0] ss:$28 sps:$4 sm:$0xff]  }
 0x540   :  { %10920 = vmatpush1.bf16.msra.mxu1 %v15802_v60  ;;  %13585 = vmatprep.subr.bf16.mxu0 %v15806_v43  ;;  %v15864_v60 = vld [vmem:[#allocation6 + $0x8d4] ss:$28 sps:$4 sm:$0xff]   ;;  %v15865_v43 = vld [vmem:[#allocation6 + $0x520] ss:$28 sps:$4 sm:$0xff]  }
 0x541   :  { %10921 = vmatprep.subr.bf16.mxu1 %v15809_v47  ;;  %v15862_v47 = vld [vmem:[#allocation6 + $0x8d0] ss:$28 sps:$4 sm:$0xff]  }
 0x543   :  { %13586 = vmatpush3.bf16.msra.mxu0 %v15810_v53  ;;  %v15866_v53 = vld [vmem:[#allocation6 + $0x8d8] ss:$28 sps:$4 sm:$0xff]  }
 0x544   :  { %10922 = vmatpush1.bf16.msra.mxu1 %v15807_v49  ;;  %13587 = vmatprep.subr.bf16.mxu0 %v15811_v54  ;;  %v15869_v49 = vld [vmem:[#allocation6 + $0x90c] ss:$28 sps:$4 sm:$0xff]   ;;  %v15870_v54 = vld [vmem:[#allocation6 + $0x718] ss:$28 sps:$4 sm:$0xff]  }
 0x545   :  { %10923 = vmatprep.subr.bf16.mxu1 %v15814_v50  ;;  %v15867_v50 = vld [vmem:[#allocation6 + $0x908] ss:$28 sps:$4 sm:$0xff]  }
 0x547   :  { %13588 = vmatpush3.bf16.msra.mxu0 %v15815_v55  ;;  %v15871_v55 = vld [vmem:[#allocation6 + $0x910] ss:$28 sps:$4 sm:$0xff]  }
 0x548   :  { %10924 = vmatpush1.bf16.msra.mxu1 %v15812_v56  ;;  %13589 = vmatprep.subr.bf16.mxu0 %v15816_v33  ;;  %v15874_v56 = vld [vmem:[#allocation6 + $0x944] ss:$28 sps:$4 sm:$0xff]   ;;  %v15875_v33 = vld [vmem:[#allocation6 + $0x750] ss:$28 sps:$4 sm:$0xff]  }
 0x549   :  { %10925 = vmatprep.subr.bf16.mxu1 %v15819_v59  ;;  %v15872_v59 = vld [vmem:[#allocation6 + $0x940] ss:$28 sps:$4 sm:$0xff]  }
 0x54b   :  { %13590 = vmatpush3.bf16.msra.mxu0 %v15820_v38  ;;  %v15876_v38 = vld [vmem:[#allocation6 + $0x948] ss:$28 sps:$4 sm:$0xff]  }
 0x54c   :  { %10926 = vmatpush1.bf16.msra.mxu1 %v15817_v62  ;;  %13591 = vmatprep.subr.bf16.mxu0 %v15821_v52  ;;  %v15879_v62 = vld [vmem:[#allocation6 + $0x97c] ss:$28 sps:$4 sm:$0xff]   ;;  %v15880_v52 = vld [vmem:[#allocation6 + $0x788] ss:$28 sps:$4 sm:$0xff]  }
 0x54d   :  { %10938 = vmatprep.subr.bf16.mxu1 %v15824_v63  ;;  %v15877_v63 = vld [vmem:[#allocation6 + $0x978] ss:$28 sps:$4 sm:$0xff]  }
 0x54f   :  { %10928 = vmatmul.mubr.bf16.vlgmr.msra.gmra.mrb[32].mxu1 %v16477_v58  ;;  %13592 = vmatpush3.bf16.msra.mxu0 %v15825_v0  ;;  %v15881_v0 = vld [vmem:[#allocation6 + $0x980] ss:$28 sps:$4 sm:$0xff]  }
 0x550   :  { %10939 = vmatpush1.bf16.msra.mxu1 %v15822_v3  ;;  %10970 = vmatprep.mubr.bf16.mxu1 %v16567_v9  ;;  %v15884_v3 = vld [vmem:[#allocation6 + $0x9b4] ss:$28 sps:$4 sm:$0xff]  }
 0x551   :  { %13599 = vmatprep.subr.bf16.mxu0 %v15826_v5  ;;  %10940 = vmatprep.subr.bf16.mxu1 %v15829_v7  ;;  %v15886_v5 = vld [vmem:[#allocation6 + $0x9b8] ss:$28 sps:$4 sm:$0xff]   ;;  %v15889_v7 = vld [vmem:[#allocation6 + $0x9ec] ss:$28 sps:$4 sm:$0xff]  }
 0x552   :  { %11143 = vmatmul.mubr.bf16.vlgmr.msra.gmra.mrb[16].mxu0 %v16475_v57  ;;  %v15845_v57 = vld [vmem:[#allocation6 + $0x440] ss:$28 sps:$4 sm:$0xff]  }
 0x553   :  { %13600 = vmatpush3.bf16.msra.mxu0 %v15830_v8  ;;  %11183 = vmatprep.mubr.bf16.mxu0 %v16481_v61  ;;  %v15842_v61 = vld [vmem:[#allocation6 + $0x7f0] ss:$28 sps:$4 sm:$0xff]   ;;  %v15890_v8 = vld [vmem:[#allocation6 + $0x7f8] ss:$28 sps:$4 sm:$0xff]  }
 0x554   :  { %10941 = vmatpush1.bf16.msra.mxu1 %v15827_v16  ;;  %13601 = vmatprep.subr.bf16.mxu0 %v15831_v19  ;;  %v15887_v16 = vld [vmem:[#allocation6 + $0x9e8] ss:$28 sps:$4 sm:$0xff]   ;;  %v15891_v19 = vld [vmem:[#allocation6 + $0x9f0] ss:$28 sps:$4 sm:$0xff]  }
 0x555   :  { %10942 = vmatprep.subr.bf16.mxu1 %v15834_v20  ;;  %v15894_v20 = vld [vmem:[#allocation6 + $0xa24] ss:$28 sps:$4 sm:$0xff]  }
 0x557   :  { %13602 = vmatpush3.bf16.msra.mxu0 %v15835_v21  ;;  %v15895_v21 = vld [vmem:[#allocation6 + $0x830] ss:$28 sps:$4 sm:$0xff]  }
 0x558   :  { %10943 = vmatpush1.bf16.msra.mxu1 %v15832_v22  ;;  %13603 = vmatprep.subr.bf16.mxu0 %v15836_v23  ;;  %v15892_v22 = vld [vmem:[#allocation6 + $0xa20] ss:$28 sps:$4 sm:$0xff]   ;;  %v15896_v23 = vld [vmem:[#allocation6 + $0xa28] ss:$28 sps:$4 sm:$0xff]  }
 0x559   :  { %10944 = vmatprep.subr.bf16.mxu1 %v15839_v24  ;;  %v15899_v24 = vld [vmem:[#allocation6 + $0xa5c] ss:$28 sps:$4 sm:$0xff]  }
 0x55b   :  { %13604 = vmatpush3.bf16.msra.mxu0 %v15840_v25  ;;  %v15900_v25 = vld [vmem:[#allocation6 + $0x868] ss:$28 sps:$4 sm:$0xff]  }
 0x55c   :  { %10945 = vmatpush1.bf16.msra.mxu1 %v15837_v27  ;;  %13605 = vmatprep.subr.bf16.mxu0 %v15841_v29  ;;  %v15897_v27 = vld [vmem:[#allocation6 + $0xa58] ss:$28 sps:$4 sm:$0xff]   ;;  %v15901_v29 = vld [vmem:[#allocation6 + $0xa60] ss:$28 sps:$4 sm:$0xff]  }
 0x55d   :  { %10946 = vmatprep.subr.bf16.mxu1 %v15844_v30  ;;  %v15904_v30 = vld [vmem:[#allocation6 + $0xa94] ss:$28 sps:$4 sm:$0xff]  }
 0x55f   :  { %13606 = vmatpush3.bf16.msra.mxu0 %v15845_v57  ;;  %v15905_v57 = vld [vmem:[#allocation6 + $0x8a0] ss:$28 sps:$4 sm:$0xff]  }
 0x560   :  { %10947 = vmatpush1.bf16.msra.mxu1 %v15842_v61  ;;  %13607 = vmatprep.subr.bf16.mxu0 %v15846_v31  ;;  %v15902_v61 = vld [vmem:[#allocation6 + $0xa90] ss:$28 sps:$4 sm:$0xff]   ;;  %v15906_v31 = vld [vmem:[#allocation6 + $0xc58] ss:$28 sps:$4 sm:$0xff]  }
 0x561   :  { %10948 = vmatprep.subr.bf16.mxu1 %v15849_v32  ;;  %v15909_v32 = vld [vmem:[#allocation6 + $0xacc] ss:$28 sps:$4 sm:$0xff]  }
 0x563   :  { %13608 = vmatpush3.bf16.msra.mxu0 %v15850_v35  ;;  %v15910_v35 = vld [vmem:[#allocation6 + $0xa98] ss:$28 sps:$4 sm:$0xff]  }
 0x564   :  { %10949 = vmatpush1.bf16.msra.mxu1 %v15847_v36  ;;  %13609 = vmatprep.subr.bf16.mxu0 %v15851_v37  ;;  %v15907_v36 = vld [vmem:[#allocation6 + $0xac8] ss:$28 sps:$4 sm:$0xff]   ;;  %v15911_v37 = vld [vmem:[#allocation6 + $0xc90] ss:$28 sps:$4 sm:$0xff]  }
 0x565   :  { %10950 = vmatprep.subr.bf16.mxu1 %v15854_v39  ;;  %v15914_v39 = vld [vmem:[#allocation6 + $0xb04] ss:$28 sps:$4 sm:$0xff]  }
 0x567   :  { %13610 = vmatpush3.bf16.msra.mxu0 %v15855_v40  ;;  %v15915_v40 = vld [vmem:[#allocation6 + $0xad0] ss:$28 sps:$4 sm:$0xff]  }
 0x568   :  { %10951 = vmatpush1.bf16.msra.mxu1 %v15852_v41  ;;  %13611 = vmatprep.subr.bf16.mxu0 %v15856_v42  ;;  %v15912_v41 = vld [vmem:[#allocation6 + $0xb00] ss:$28 sps:$4 sm:$0xff]   ;;  %v15916_v42 = vld [vmem:[#allocation6 + $0xcc8] ss:$28 sps:$4 sm:$0xff]  }
 0x569   :  { %10952 = vmatprep.subr.bf16.mxu1 %v15859_v44  ;;  %v15919_v44 = vld [vmem:[#allocation6 + $0xb3c] ss:$28 sps:$4 sm:$0xff]  }
 0x56b   :  { %13612 = vmatpush3.bf16.msra.mxu0 %v15860_v45  ;;  %v15920_v45 = vld [vmem:[#allocation6 + $0xb08] ss:$28 sps:$4 sm:$0xff]  }
 0x56c   :  { %10953 = vmatpush1.bf16.msra.mxu1 %v15857_v48  ;;  %13613 = vmatprep.subr.bf16.mxu0 %v15861_v51  ;;  %v15917_v48 = vld [vmem:[#allocation6 + $0xb38] ss:$28 sps:$4 sm:$0xff]   ;;  %v15921_v51 = vld [vmem:[#allocation6 + $0xd00] ss:$28 sps:$4 sm:$0xff]  }
 0x56d   :  { %10954 = vmatprep.subr.bf16.mxu1 %v15864_v60  ;;  %v15924_v60 = vld [vmem:[#allocation6 + $0xb74] ss:$28 sps:$4 sm:$0xff]  }
 0x56f   :  { %13614 = vmatpush3.bf16.msra.mxu0 %v15865_v43  ;;  %v16648_v43 = vld [vmem:[#allocation7] sm:$0xff] }
 0x570   :  { %10955 = vmatpush1.bf16.msra.mxu1 %v15862_v47  ;;  %13621 = vmatprep.subr.bf16.mxu0 %v15866_v53  ;;  %v15926_v47 = vld [vmem:[#allocation6 + $0xd38] ss:$28 sps:$4 sm:$0xff]   ;;  %v15929_v53 = vld [vmem:[#allocation6 + $0xbac] ss:$28 sps:$4 sm:$0xff]  }
 0x571   :  { %10956 = vmatprep.subr.bf16.mxu1 %v15869_v49  ;;  %v7136_v49 = vrot.slane %v16648_v43, %v16461_v10  ;;  %v15932_v10 = vld [vmem:[#allocation6 + $0xbe0] ss:$28 sps:$4 sm:$0xff]  }
 0x572   :  { %11184 = vmatmul.mubr.bf16.vlgmr.msra.gmra.mrb[20].mxu0 %v16477_v58  ;;  %v15885_v58 = vld [vmem:[#allocation6 + $0x7c0] ss:$28 sps:$4 sm:$0xff]  }
 0x573   :  { %13622 = vmatpush3.bf16.msra.mxu0 %v15870_v54  ;;  %11224 = vmatprep.mubr.bf16.mxu0 %v16567_v9  ;;  %v15882_v9 = vld [vmem:[#allocation6 + $0x9b0] ss:$28 sps:$4 sm:$0xff]   ;;  %v15930_v54 = vld [vmem:[#allocation6 + $0xb78] ss:$28 sps:$4 sm:$0xff]  }
 0x574   :  { %10957 = vmatpush1.bf16.msra.mxu1 %v15867_v50  ;;  %13623 = vmatprep.subr.bf16.mxu0 %v15871_v55  ;;  %v7140_v50 = vrot.slane %v16648_v43, %v16467_v13  ;;  %v15927_v55 = vld [vmem:[#allocation6 + $0xba8] ss:$28 sps:$4 sm:$0xff]  }
 0x575   :  { %10958 = vmatprep.subr.bf16.mxu1 %v15874_v56  ;;  %v15931_v56 = vld [vmem:[#allocation6 + $0xd70] ss:$28 sps:$4 sm:$0xff]  }
 0x577   :  { %13624 = vmatpush3.bf16.msra.mxu0 %v15875_v33  ;;  %v15934_v33 = vld [vmem:[#allocation6 + $0xbe4] ss:$28 sps:$4 sm:$0xff]  }
 0x578   :  { %10959 = vmatpush1.bf16.msra.mxu1 %v15872_v59  ;;  %13625 = vmatprep.subr.bf16.mxu0 %v15876_v38 }
 0x579   :  { %10960 = vmatprep.subr.bf16.mxu1 %v15879_v62 }
 0x57b   :  { %13626 = vmatpush3.bf16.msra.mxu0 %v15880_v52  ;;  %v15935_v52 = vld [vmem:[#allocation6 + $0xbb0] ss:$28 sps:$4 sm:$0xff]  }
 0x57c   :  { %10961 = vmatpush1.bf16.msra.mxu1 %v15877_v63  ;;  %13627 = vmatprep.subr.bf16.mxu0 %v15881_v0 }
 0x57d   :  { %10962 = vmatprep.subr.bf16.mxu1 %v15884_v3  ;;  %v15936_v3 = vld [vmem:[#allocation6 + $0xda8] ss:$28 sps:$4 sm:$0xff]  }
 0x57f   :  { %13628 = vmatpush3.bf16.msra.mxu0 %v15885_v58 }
 0x580   :  { %10963 = vmatpush1.bf16.msra.mxu1 %v15882_v9  ;;  %13629 = vmatprep.subr.bf16.mxu0 %v15886_v5  ;;  %v15939_v5 = vld [vmem:[#allocation6 + $0xc1c] ss:$28 sps:$4 sm:$0xff]  }
 0x581   :  { %10964 = vmatprep.subr.bf16.mxu1 %v15889_v7 }
 0x583   :  { %13630 = vmatpush3.bf16.msra.mxu0 %v15890_v8 }
 0x584   :  { %10965 = vmatpush1.bf16.msra.mxu1 %v15887_v16  ;;  %13631 = vmatprep.subr.bf16.mxu0 %v15891_v19  ;;  %v15940_v16 = vld [vmem:[#allocation6 + $0xbe8] ss:$28 sps:$4 sm:$0xff]  }
 0x585   :  { %10966 = vmatprep.subr.bf16.mxu1 %v15894_v20 }
 0x587   :  { %13632 = vmatpush3.bf16.msra.mxu0 %v15895_v21  ;;  %v15937_v21 = vld [vmem:[#allocation6 + $0xc18] ss:$28 sps:$4 sm:$0xff]  }
 0x588   :  { %10967 = vmatpush1.bf16.msra.mxu1 %v15892_v22  ;;  %13633 = vmatprep.subr.bf16.mxu0 %v15896_v23  ;;  %v15941_v22 = vld [vmem:[#allocation6 + $0xde0] ss:$28 sps:$4 sm:$0xff]  }
 0x589   :  { %10968 = vmatprep.subr.bf16.mxu1 %v15899_v24  ;;  %v15944_v24 = vld [vmem:[#allocation6 + $0xc54] ss:$28 sps:$4 sm:$0xff]  }
 0x58b   :  { %13634 = vmatpush3.bf16.msra.mxu0 %v15900_v25 }
 0x58c   :  { %10969 = vmatpush1.bf16.msra.mxu1 %v15897_v27  ;;  %13635 = vmatprep.subr.bf16.mxu0 %v15901_v29  ;;  %v15945_v27 = vld [vmem:[#allocation6 + $0xc20] ss:$28 sps:$4 sm:$0xff]   ;;  %v15942_v29 = vld [vmem:[#allocation6 + $0xc50] ss:$28 sps:$4 sm:$0xff]  }
 0x58d   :  { %10981 = vmatprep.subr.bf16.mxu1 %v15904_v30  ;;  %v15946_v30 = vld [vmem:[#allocation6 + $0xfd8] ss:$28 sps:$4 sm:$0xff]  }
 0x58f   :  { %10971 = vmatmul.mubr.bf16.vlgmr.msra.gmra.mrb[32].mxu1 %v16563_v1  ;;  %13636 = vmatpush3.bf16.msra.mxu0 %v15905_v57  ;;  %v15949_v57 = vld [vmem:[#allocation6 + $0xc8c] ss:$28 sps:$4 sm:$0xff]  }
 0x590   :  { %10982 = vmatpush1.bf16.msra.mxu1 %v15902_v61  ;;  %11013 = vmatprep.mubr.bf16.mxu1 %v16569_v6  ;;  %v15950_v61 = vld [vmem:[#allocation6 + $0xe18] ss:$28 sps:$4 sm:$0xff]  }
 0x591   :  { %13643 = vmatprep.subr.bf16.mxu0 %v15906_v31  ;;  %10983 = vmatprep.subr.bf16.mxu1 %v15909_v32  ;;  %v15947_v31 = vld [vmem:[#allocation6 + $0xc88] ss:$28 sps:$4 sm:$0xff]   ;;  %v15951_v32 = vld [vmem:[#allocation6 + $0x1010] ss:$28 sps:$4 sm:$0xff]  }
 0x592   :  { %11225 = vmatmul.mubr.bf16.vlgmr.msra.gmra.mrb[24].mxu0 %v16563_v1  ;;  %v15925_v1 = vld [vmem:[#allocation6 + $0xb40] ss:$28 sps:$4 sm:$0xff]  }
 0x593   :  { %13644 = vmatpush3.bf16.msra.mxu0 %v15910_v35  ;;  %11265 = vmatprep.mubr.bf16.mxu0 %v16569_v6  ;;  %v15922_v6 = vld [vmem:[#allocation6 + $0xb70] ss:$28 sps:$4 sm:$0xff]   ;;  %v15954_v35 = vld [vmem:[#allocation6 + $0xcc4] ss:$28 sps:$4 sm:$0xff]  }
 0x594   :  { %10984 = vmatpush1.bf16.msra.mxu1 %v15907_v36  ;;  %13645 = vmatprep.subr.bf16.mxu0 %v15911_v37  ;;  %v15955_v36 = vld [vmem:[#allocation6 + $0xe50] ss:$28 sps:$4 sm:$0xff]   ;;  %v15952_v37 = vld [vmem:[#allocation6 + $0xcc0] ss:$28 sps:$4 sm:$0xff]  }
 0x595   :  { %10985 = vmatprep.subr.bf16.mxu1 %v15914_v39  ;;  %v15956_v39 = vld [vmem:[#allocation6 + $0x1048] ss:$28 sps:$4 sm:$0xff]  }
 0x597   :  { %13646 = vmatpush3.bf16.msra.mxu0 %v15915_v40  ;;  %v15959_v40 = vld [vmem:[#allocation6 + $0xcfc] ss:$28 sps:$4 sm:$0xff]  }
 0x598   :  { %10986 = vmatpush1.bf16.msra.mxu1 %v15912_v41  ;;  %13647 = vmatprep.subr.bf16.mxu0 %v15916_v42  ;;  %v15960_v41 = vld [vmem:[#allocation6 + $0xe88] ss:$28 sps:$4 sm:$0xff]   ;;  %v15957_v42 = vld [vmem:[#allocation6 + $0xcf8] ss:$28 sps:$4 sm:$0xff]  }
 0x599   :  { %10987 = vmatprep.subr.bf16.mxu1 %v15919_v44  ;;  %v15961_v44 = vld [vmem:[#allocation6 + $0x1080] ss:$28 sps:$4 sm:$0xff]  }
 0x59b   :  { %13648 = vmatpush3.bf16.msra.mxu0 %v15920_v45  ;;  %v15964_v45 = vld [vmem:[#allocation6 + $0xd34] ss:$28 sps:$4 sm:$0xff]  }
 0x59c   :  { %10988 = vmatpush1.bf16.msra.mxu1 %v15917_v48  ;;  %13649 = vmatprep.subr.bf16.mxu0 %v15921_v51  ;;  %v15965_v48 = vld [vmem:[#allocation6 + $0xec0] ss:$28 sps:$4 sm:$0xff]   ;;  %v15962_v51 = vld [vmem:[#allocation6 + $0xd30] ss:$28 sps:$4 sm:$0xff]  }
 0x59d   :  { %10989 = vmatprep.subr.bf16.mxu1 %v15924_v60  ;;  %v15966_v60 = vld [vmem:[#allocation6 + $0x10b8] ss:$28 sps:$4 sm:$0xff]  }
 0x59f   :  { %13650 = vmatpush3.bf16.msra.mxu0 %v15925_v1  ;;  %v15969_v1 = vld [vmem:[#allocation6 + $0xd6c] ss:$28 sps:$4 sm:$0xff]  }
 0x5a0   :  { %10990 = vmatpush1.bf16.msra.mxu1 %v15922_v6  ;;  %13651 = vmatprep.subr.bf16.mxu0 %v15926_v47  ;;  %v15970_v6 = vld [vmem:[#allocation6 + $0xef8] ss:$28 sps:$4 sm:$0xff]   ;;  %v15967_v47 = vld [vmem:[#allocation6 + $0xd68] ss:$28 sps:$4 sm:$0xff]  }
 0x5a1   :  { %10991 = vmatprep.subr.bf16.mxu1 %v15929_v53  ;;  %v15971_v53 = vld [vmem:[#allocation6 + $0x10f0] ss:$28 sps:$4 sm:$0xff]  }
 0x5a2   :  { %v10585_v59 = vpop.f32.mrb[28].mxu1 }
 0x5a3   :  { %v13851_v38 = vadd.f32 %v10585_v59, %v7136_v49  ;;  %v10587_v62 = vpop.f32.mrb[29].mxu1  ;;  %13652 = vmatpush3.bf16.msra.mxu0 %v15930_v54  ;;  %v15975_v54 = vld [vmem:[#allocation6 + $0xf30] ss:$28 sps:$4 sm:$0xff]   ;;  %v15977_v59 = vld [vmem:[#allocation6 + $0xdd8] ss:$28 sps:$4 sm:$0xff]  }
 0x5a4   :  { %v13852_v63 = vadd.f32 %v10587_v62, %v7140_v50  ;;  %v10589_v0 = vpop.f32.mrb[30].mxu1  ;;  %10992 = vmatpush1.bf16.msra.mxu1 %v15927_v55  ;;  %13653 = vmatprep.subr.bf16.mxu0 %v15931_v56  ;;  %v15976_v55 = vld [vmem:[#allocation6 + $0x1128] ss:$28 sps:$4 sm:$0xff]   ;;  %v15979_v56 = vld [vmem:[#allocation6 + $0xddc] ss:$28 sps:$4 sm:$0xff]  }
 0x5a5   :  { %v13853_v58 = vadd.f32 %v10589_v0, %v7136_v49  ;;  %v10591_v9 = vpop.f32.mrb[31].mxu1  ;;  %10993 = vmatprep.subr.bf16.mxu1 %v15934_v33  ;;  %v11356_v7 = vmax.f32 %v13851_v38, 0.0  ;;  %v15974_v49 = vld [vmem:[#allocation6 + $0xda4] ss:$28 sps:$4 sm:$0xff]   ;;  %v15984_v62 = vld [vmem:[#allocation6 + $0xe14] ss:$28 sps:$4 sm:$0xff]  }
 0x5a6   :  { %v13854_v13 = vadd.f32 %v10591_v9, %v7140_v50  ;;  %v11357_v19 = vmax.f32 %v13852_v63, 0.0  ;;  %v15972_v50 = vld [vmem:[#allocation6 + $0xda0] ss:$28 sps:$4 sm:$0xff]   ;;  %v15980_v33 = vld [vmem:[#allocation6 + $0xf68] ss:$28 sps:$4 sm:$0xff]  }
 0x5a7   :  { %v11363_v8 = vmax.f32 %v13853_v58, 0.0  ;;  %13654 = vmatpush3.bf16.msra.mxu0 %v15935_v52  ;;  %v15981_v38 = vld [vmem:[#allocation6 + $0x1160] ss:$28 sps:$4 sm:$0xff]   ;;  %v15982_v63 = vld [vmem:[#allocation6 + $0xe10] ss:$28 sps:$4 sm:$0xff]  }
 0x5a8   :  { %v11364_v20 = vmax.f32 %v13854_v13, 0.0  ;;  %10994 = vmatpush1.bf16.msra.mxu1 %v15932_v10  ;;  %13655 = vmatprep.subr.bf16.mxu0 %v15936_v3  ;;  %v15985_v52 = vld [vmem:[#allocation6 + $0xfa0] ss:$28 sps:$4 sm:$0xff]   ;;  %v15988_v0 = vld [vmem:[#allocation6 + $0xe4c] ss:$28 sps:$4 sm:$0xff]  }
 0x5a9   :  { %v16654_v23 = vpack.c.bf16 %v11363_v8, %v11356_v7  ;;  %10995 = vmatprep.subr.bf16.mxu1 %v15939_v5  ;;  %v15989_v10 = vld [vmem:[#allocation6 + $0x1198] ss:$28 sps:$4 sm:$0xff]   ;;  %v15986_v3 = vld [vmem:[#allocation6 + $0xe48] ss:$28 sps:$4 sm:$0xff]   ;;  %v15993_v9 = vld [vmem:[#allocation6 + $0x11d0] ss:$28 sps:$4 sm:$0xff]  }
 0x5aa   :  { %v16656_v25 = vpack.c.bf16 %v11364_v20, %v11357_v19  ;;  %v15992_v58 = vld [vmem:[#allocation6 + $0xe84] ss:$28 sps:$4 sm:$0xff]   ;;  %v15996_v5 = vld [vmem:[#allocation6 + $0xebc] ss:$28 sps:$4 sm:$0xff]   ;;  %v16000_v7 = vld [vmem:[#allocation6 + $0xef4] ss:$28 sps:$4 sm:$0xff]  }
 0x5ab   :  { %13656 = vmatpush3.bf16.msra.mxu0 %v15940_v16  ;;  %v15994_v13 = vld [vmem:[#allocation6 + $0xeb8] ss:$28 sps:$4 sm:$0xff]   ;;  %v16001_v8 = vld [vmem:[#allocation6 + $0x1240] ss:$28 sps:$4 sm:$0xff]   ;;  %v15998_v16 = vld [vmem:[#allocation6 + $0xef0] ss:$28 sps:$4 sm:$0xff]  }
 0x5ac   :  { %10996 = vmatpush1.bf16.msra.mxu1 %v15937_v21  ;;  %13657 = vmatprep.subr.bf16.mxu0 %v15941_v22  ;;  %v16004_v19 = vld [vmem:[#allocation6 + $0xf2c] ss:$28 sps:$4 sm:$0xff]   ;;  %v16005_v20 = vld [vmem:[#allocation6 + $0x1278] ss:$28 sps:$4 sm:$0xff]   ;;  %v16008_v22 = vld [vmem:[#allocation6 + $0xf64] ss:$28 sps:$4 sm:$0xff]  }
 0x5ad   :  { %10997 = vmatprep.subr.bf16.mxu1 %v15944_v24  ;;  %v16002_v21 = vld [vmem:[#allocation6 + $0xf28] ss:$28 sps:$4 sm:$0xff]   ;;  %v16009_v24 = vld [vmem:[#allocation6 + $0x12b0] ss:$28 sps:$4 sm:$0xff]  }
 0x5af   :  { %13658 = vmatpush3.bf16.msra.mxu0 %v15945_v27  ;;  %v16006_v27 = vld [vmem:[#allocation6 + $0xf60] ss:$28 sps:$4 sm:$0xff]  }
 0x5b0   :  { %10998 = vmatpush1.bf16.msra.mxu1 %v15942_v29  ;;  %13665 = vmatprep.subr.bf16.mxu0 %v15946_v30  ;;  %v16012_v29 = vld [vmem:[#allocation6 + $0xf9c] ss:$28 sps:$4 sm:$0xff]   ;;  %v16013_v30 = vld [vmem:[#allocation6 + $0x12e8] ss:$28 sps:$4 sm:$0xff]  }
 0x5b1   :  { %10999 = vmatprep.subr.bf16.mxu1 %v15949_v57  ;;  %v16010_v57 = vld [vmem:[#allocation6 + $0xf98] ss:$28 sps:$4 sm:$0xff]  }
 0x5b2   :  { %11266 = vmatmul.mubr.bf16.vlgmr.msra.gmra.mrb[28].mxu0 %v16565_v2 }
 0x5b3   :  { %13666 = vmatpush3.bf16.msra.mxu0 %v15950_v61  ;;  %11306 = vmatprep.mubr.bf16.mxu0 %v16623_v28  ;;  %v16016_v61 = vld [vmem:[#allocation6 + $0xfd4] ss:$28 sps:$4 sm:$0xff]  }
 0x5b4   :  { %11000 = vmatpush1.bf16.msra.mxu1 %v15947_v31  ;;  %13667 = vmatprep.subr.bf16.mxu0 %v15951_v32  ;;  %v16017_v31 = vld [vmem:[#allocation6 + $0x1320] ss:$28 sps:$4 sm:$0xff]   ;;  %v16014_v32 = vld [vmem:[#allocation6 + $0xfd0] ss:$28 sps:$4 sm:$0xff]  }
 0x5b5   :  { %11001 = vmatprep.subr.bf16.mxu1 %v15954_v35  ;;  %v16018_v35 = vld [vmem:[#allocation9 + $0x40] sm:$0xff]  }
 0x5b7   :  { %13668 = vmatpush3.bf16.msra.mxu0 %v15955_v36  ;;  %v16021_v36 = vld [vmem:[#allocation6 + $0x100c] ss:$28 sps:$4 sm:$0xff]  }
 0x5b8   :  { %11002 = vmatpush1.bf16.msra.mxu1 %v15952_v37  ;;  %13669 = vmatprep.subr.bf16.mxu0 %v15956_v39  ;;  %v16022_v37 = vld [vmem:[#allocation9] sm:$0xff]  }
 0x5b9   :  { %11003 = vmatprep.subr.bf16.mxu1 %v15959_v40  ;;  %v16019_v39 = vld [vmem:[#allocation6 + $0x1008] ss:$28 sps:$4 sm:$0xff]   ;;  %v16023_v40 = vld [vmem:[#allocation9 + $0x48] sm:$0xff]  }
 0x5bb   :  { %13670 = vmatpush3.bf16.msra.mxu0 %v15960_v41  ;;  %v16026_v41 = vld [vmem:[#allocation6 + $0x1044] ss:$28 sps:$4 sm:$0xff]  }
 0x5bc   :  { %11004 = vmatpush1.bf16.msra.mxu1 %v15957_v42  ;;  %13671 = vmatprep.subr.bf16.mxu0 %v15961_v44  ;;  %v16027_v42 = vld [vmem:[#allocation9 + $0x8] sm:$0xff]   ;;  %v16024_v44 = vld [vmem:[#allocation6 + $0x1040] ss:$28 sps:$4 sm:$0xff]  }
 0x5bd   :  { %11005 = vmatprep.subr.bf16.mxu1 %v15964_v45  ;;  %v16028_v45 = vld [vmem:[#allocation9 + $0x50] sm:$0xff]  }
 0x5bf   :  { %13672 = vmatpush3.bf16.msra.mxu0 %v15965_v48  ;;  %v16031_v48 = vld [vmem:[#allocation6 + $0x107c] ss:$28 sps:$4 sm:$0xff]  }
 0x5c0   :  { %11006 = vmatpush1.bf16.msra.mxu1 %v15962_v51  ;;  %13673 = vmatprep.subr.bf16.mxu0 %v15966_v60  ;;  %v16032_v51 = vld [vmem:[#allocation9 + $0x10] sm:$0xff]  }
 0x5c1   :  { %11007 = vmatprep.subr.bf16.mxu1 %v15969_v1  ;;  %v16029_v60 = vld [vmem:[#allocation6 + $0x1078] ss:$28 sps:$4 sm:$0xff]   ;;  %v16033_v1 = vld [vmem:[#allocation9 + $0x58] sm:$0xff]  }
 0x5c3   :  { %13674 = vmatpush3.bf16.msra.mxu0 %v15970_v6  ;;  %v16036_v6 = vld [vmem:[#allocation6 + $0x10b4] ss:$28 sps:$4 sm:$0xff]  }
 0x5c4   :  { %11008 = vmatpush1.bf16.msra.mxu1 %v15967_v47  ;;  %13675 = vmatprep.subr.bf16.mxu0 %v15971_v53  ;;  %v16037_v47 = vld [vmem:[#allocation9 + $0x18] sm:$0xff]   ;;  %v16038_v53 = vld [vmem:[#allocation9 + $0x60] sm:$0xff]  }
 0x5c5   :  { %11009 = vmatprep.subr.bf16.mxu1 %v15974_v49  ;;  %v16041_v49 = vld [vmem:[#allocation6 + $0x10ec] ss:$28 sps:$4 sm:$0xff]  }
 0x5c7   :  { %13676 = vmatpush3.bf16.msra.mxu0 %v15975_v54  ;;  %v16042_v54 = vld [vmem:[#allocation9 + $0x20] sm:$0xff]  }
 0x5c8   :  { %11010 = vmatpush1.bf16.msra.mxu1 %v15972_v50  ;;  %13677 = vmatprep.subr.bf16.mxu0 %v15976_v55  ;;  %v16039_v50 = vld [vmem:[#allocation6 + $0x10e8] ss:$28 sps:$4 sm:$0xff]   ;;  %v16043_v55 = vld [vmem:[#allocation9 + $0x68] sm:$0xff]  }
 0x5c9   :  { %11011 = vmatprep.subr.bf16.mxu1 %v15979_v56  ;;  %v16046_v56 = vld [vmem:[#allocation6 + $0x1124] ss:$28 sps:$4 sm:$0xff]  }
 0x5cb   :  { %13678 = vmatpush3.bf16.msra.mxu0 %v15980_v33  ;;  %v7144_v33 = vrot.slane %v16648_v43, %v16464_v11 }
 0x5cc   :  { %11012 = vmatpush1.bf16.msra.mxu1 %v15977_v59  ;;  %13679 = vmatprep.subr.bf16.mxu0 %v15981_v38  ;;  %v7148_v59 = vrot.slane %v16648_v43, %v995_v14  ;;  %v16047_v38 = vld [vmem:[#allocation9 + $0x28] sm:$0xff]   ;;  %v16053_v14 = vld [vmem:[#allocation9 + $0x78] sm:$0xff]  }
 0x5cd   :  { %11024 = vmatprep.subr.bf16.mxu1 %v15984_v62  ;;  %v16044_v62 = vld [vmem:[#allocation6 + $0x1120] ss:$28 sps:$4 sm:$0xff]  }
 0x5cf   :  { %11014 = vmatmul.mubr.bf16.vlgmr.msra.gmra.mrb[32].mxu1 %v16565_v2  ;;  %13680 = vmatpush3.bf16.msra.mxu0 %v15985_v52  ;;  %v15990_v2 = vld [vmem:[#allocation6 + $0xe80] ss:$28 sps:$4 sm:$0xff]  }
 0x5d0   :  { %11025 = vmatpush1.bf16.msra.mxu1 %v15982_v63  ;;  %11056 = vmatprep.mubr.bf16.mxu1 %v16623_v28  ;;  %v15997_v28 = vld [vmem:[#allocation6 + $0x1208] ss:$28 sps:$4 sm:$0xff]   ;;  %v16048_v52 = vld [vmem:[#allocation9 + $0x70] sm:$0xff]  }
 0x5d1   :  { %13791 = vmatprep.subr.bf16.mxu0 %v16294_v46  ;;  %11026 = vmatprep.subr.bf16.mxu1 %v15988_v0  ;;  %v16051_v0 = vld [vmem:[#allocation6 + $0x115c] ss:$28 sps:$4 sm:$0xff]  }
 0x5d2   :  { %11307 = vmatmul.mubr.bf16.vlgmr.msra.gmra.mrb[32].mxu0 %v16621_v26 }
 0x5d3   :  { %13792 = vmatpush3.bf16.msra.mxu0 %v15989_v10  ;;  %13807 = vmatprep.mubr.msk.bf16.mxu0 %vm16295_vm0, %v16294_v46 }
 0x5d4   :  { %11027 = vmatpush1.bf16.msra.mxu1 %v15986_v3  ;;  %13793 = vmatprep.subr.bf16.mxu0 %v16294_v46 }
 0x5d5   :  { %11028 = vmatprep.subr.bf16.mxu1 %v15992_v58 }
 0x5d7   :  { %13794 = vmatpush3.bf16.msra.mxu0 %v15993_v9 }
 0x5d8   :  { %11029 = vmatpush1.bf16.msra.mxu1 %v15990_v2  ;;  %13795 = vmatprep.subr.bf16.mxu0 %v16294_v46  ;;  %v16052_v2 = vld [vmem:[#allocation9 + $0x30] sm:$0xff]  }
 0x5d9   :  { %11030 = vmatprep.subr.bf16.mxu1 %v15996_v5 }
 0x5db   :  { %13796 = vmatpush3.bf16.msra.mxu0 %v15997_v28  ;;  %v16049_v28 = vld [vmem:[#allocation6 + $0x1158] ss:$28 sps:$4 sm:$0xff]  }
 0x5dc   :  { %11031 = vmatpush1.bf16.msra.mxu1 %v15994_v13  ;;  %13797 = vmatprep.subr.bf16.mxu0 %v16294_v46 }
 0x5dd   :  { %11032 = vmatprep.subr.bf16.mxu1 %v16000_v7  ;;  %v16056_v7 = vld [vmem:[#allocation6 + $0x1194] ss:$28 sps:$4 sm:$0xff]  }
 0x5df   :  { %13798 = vmatpush3.bf16.msra.mxu0 %v16001_v8 }
 0x5e0   :  { %11033 = vmatpush1.bf16.msra.mxu1 %v15998_v16  ;;  %13799 = vmatprep.subr.bf16.mxu0 %v16294_v46 }
 0x5e1   :  { %11034 = vmatprep.subr.bf16.mxu1 %v16004_v19 }
 0x5e3   :  { %13800 = vmatpush3.bf16.msra.mxu0 %v16005_v20 }
 0x5e4   :  { %11035 = vmatpush1.bf16.msra.mxu1 %v16002_v21  ;;  %13801 = vmatprep.subr.bf16.mxu0 %v16294_v46  ;;  %v16057_v21 = vld [vmem:[#allocation9 + $0x38] sm:$0xff]  }
 0x5e5   :  { %11036 = vmatprep.subr.bf16.mxu1 %v16008_v22 }
 0x5e7   :  { %13802 = vmatpush3.bf16.msra.mxu0 %v16009_v24  ;;  %v16054_v24 = vld [vmem:[#allocation6 + $0x1190] ss:$28 sps:$4 sm:$0xff]  }
 0x5e8   :  { %11037 = vmatpush1.bf16.msra.mxu1 %v16006_v27  ;;  %13803 = vmatprep.subr.bf16.mxu0 %v16294_v46  ;;  %v16058_v27 = vld [vmem:[#allocation9 + $0xc0] sm:$0xff]  }
 0x5e9   :  { %11038 = vmatprep.subr.bf16.mxu1 %v16012_v29 }
 0x5eb   :  { %13804 = vmatpush3.bf16.msra.mxu0 %v16013_v30  ;;  %v16061_v30 = vld [vmem:[#allocation6 + $0x11cc] ss:$28 sps:$4 sm:$0xff]  }
 0x5ec   :  { %11039 = vmatpush1.bf16.msra.mxu1 %v16010_v57  ;;  %13805 = vmatprep.subr.bf16.mxu0 %v16294_v46  ;;  %v16062_v57 = vld [vmem:[#allocation9 + $0x80] sm:$0xff]  }
 0x5ed   :  { %11040 = vmatprep.subr.bf16.mxu1 %v16016_v61  ;;  %v16059_v61 = vld [vmem:[#allocation6 + $0x11c8] ss:$28 sps:$4 sm:$0xff]  }
 0x5ef   :  { %13806 = vmatpush3.bf16.msra.mxu0 %v16017_v31  ;;  %v16063_v31 = vld [vmem:[#allocation9 + $0xc8] sm:$0xff]  }
 0x5f0   :  { %11041 = vmatpush1.bf16.msra.mxu1 %v16014_v32  ;;  %13696 = vmatprep.subr.bf16.mxu0 %v16018_v35  ;;  %v16066_v32 = vld [vmem:[#allocation6 + $0x1204] ss:$28 sps:$4 sm:$0xff]   ;;  %v16067_v35 = vld [vmem:[#allocation9 + $0x88] sm:$0xff]  }
 0x5f1   :  { %11042 = vmatprep.subr.bf16.mxu1 %v16021_v36  ;;  %v16064_v36 = vld [vmem:[#allocation6 + $0x1200] ss:$28 sps:$4 sm:$0xff]  }
 0x5f2   :  { %13808 = vmatmul.mubr.bf16.vlgmr.msra.gmra.mrb[36].mxu0 %v16612_v34 }
 0x5f3   :  { %13697 = vmatpush3.bf16.msra.mxu0 %v16022_v37  ;;  %11864 = vmatprep.mubr.bf16.mxu0 %v16656_v25  ;;  %v16034_v25 = vld [vmem:[#allocation6 + $0x10b0] ss:$28 sps:$4 sm:$0xff]   ;;  %v16068_v37 = vld [vmem:[#allocation9 + $0xd0] sm:$0xff]  }
 0x5f4   :  { %11043 = vmatpush1.bf16.msra.mxu1 %v16019_v39  ;;  %13698 = vmatprep.subr.bf16.mxu0 %v16023_v40  ;;  %v16072_v39 = vld [vmem:[#allocation9 + $0x90] sm:$0xff]  }
 0x5f5   :  { %11044 = vmatprep.subr.bf16.mxu1 %v16026_v41  ;;  %v16069_v40 = vld [vmem:[#allocation6 + $0x1238] ss:$28 sps:$4 sm:$0xff]   ;;  %v16073_v41 = vld [vmem:[#allocation9 + $0xd8] sm:$0xff]  }
 0x5f7   :  { %13699 = vmatpush3.bf16.msra.mxu0 %v16027_v42  ;;  %v16076_v42 = vld [vmem:[#allocation6 + $0x1274] ss:$28 sps:$4 sm:$0xff]  }
 0x5f8   :  { %11045 = vmatpush1.bf16.msra.mxu1 %v16024_v44  ;;  %13700 = vmatprep.subr.bf16.mxu0 %v16028_v45  ;;  %v16078_v44 = vld [vmem:[#allocation9 + $0xe0] sm:$0xff]  }
 0x5f9   :  { %11046 = vmatprep.subr.bf16.mxu1 %v16031_v48  ;;  %v16081_v45 = vld [vmem:[#allocation6 + $0x12ac] ss:$28 sps:$4 sm:$0xff]  }
 0x5fa   :  { %v16082_v48 = vld [vmem:[#allocation9 + $0xa0] sm:$0xff]  }
 0x5fb   :  { %13701 = vmatpush3.bf16.msra.mxu0 %v16032_v51  ;;  %v16079_v51 = vld [vmem:[#allocation6 + $0x12a8] ss:$28 sps:$4 sm:$0xff]  }
 0x5fc   :  { %11047 = vmatpush1.bf16.msra.mxu1 %v16029_v60  ;;  %13702 = vmatprep.subr.bf16.mxu0 %v16033_v1  ;;  %v16083_v60 = vld [vmem:[#allocation9 + $0xe8] sm:$0xff]   ;;  %v16086_v1 = vld [vmem:[#allocation6 + $0x12e4] ss:$28 sps:$4 sm:$0xff]  }
 0x5fd   :  { %11048 = vmatprep.subr.bf16.mxu1 %v16036_v6  ;;  %v16087_v6 = vld [vmem:[#allocation9 + $0xa8] sm:$0xff]  }
 0x5ff   :  { %13703 = vmatpush3.bf16.msra.mxu0 %v16037_v47  ;;  %v16084_v47 = vld [vmem:[#allocation6 + $0x12e0] ss:$28 sps:$4 sm:$0xff]  }
 0x600   :  { %11049 = vmatpush1.bf16.msra.mxu1 %v16034_v25  ;;  %13704 = vmatprep.subr.bf16.mxu0 %v16038_v53  ;;  %v16088_v25 = vld [vmem:[#allocation9 + $0xf0] sm:$0xff]  }
 0x601   :  { %11050 = vmatprep.subr.bf16.mxu1 %v16041_v49  ;;  %v16091_v49 = vld [vmem:[#allocation6 + $0x131c] ss:$28 sps:$4 sm:$0xff]  }
 0x603   :  { %13705 = vmatpush3.bf16.msra.mxu0 %v16042_v54 }
 0x604   :  { %11051 = vmatpush1.bf16.msra.mxu1 %v16039_v50  ;;  %13706 = vmatprep.subr.bf16.mxu0 %v16043_v55 }
 0x605   :  { %v10843_v63 = vpop.f32.mrb[12].mxu0  ;;  %11052 = vmatprep.subr.bf16.mxu1 %v16046_v56  ;;  %v16092_v56 = vld [vmem:[#allocation9 + $0xb0] sm:$0xff]  }
 0x606   :  { %v13855_v10 = vadd.f32 %v10843_v63, %v7144_v33  ;;  %v10845_v3 = vpop.f32.mrb[13].mxu0  ;;  %v16095_v63 = vld [vmem:[#allocation9 + $0x180] sm:$0xff]  }
 0x607   :  { %v13856_v58 = vadd.f32 %v10845_v3, %v7148_v59  ;;  %v10847_v9 = vpop.f32.mrb[14].mxu0  ;;  %13707 = vmatpush3.bf16.msra.mxu0 %v16047_v38  ;;  %v16093_v38 = vld [vmem:[#allocation9 + $0xf8] sm:$0xff]  }
 0x608   :  { %v13857_v11 = vadd.f32 %v10847_v9, %v7144_v33  ;;  %v10849_v5 = vpop.f32.mrb[15].mxu0  ;;  %11053 = vmatpush1.bf16.msra.mxu1 %v16044_v62  ;;  %13708 = vmatprep.subr.bf16.mxu0 %v16048_v52  ;;  %v11358_v8 = vmax.f32 %v13855_v10, 0.0  ;;  %v16094_v52 = vld [vmem:[#allocation9 + $0xb8] sm:$0xff]   ;;  %v16097_v10 = vld [vmem:[#allocation9 + $0x190] sm:$0xff]   ;;  %v16100_v9 = vld [vmem:[#allocation9 + $0x1a8] sm:$0xff]  }
 0x609   :  { %v13858_v13 = vadd.f32 %v10849_v5, %v7148_v59  ;;  %11054 = vmatprep.subr.bf16.mxu1 %v16051_v0  ;;  %v11359_v19 = vmax.f32 %v13856_v58, 0.0  ;;  %v16089_v59 = vld [vmem:[#allocation6 + $0x1318] ss:$28 sps:$4 sm:$0xff]   ;;  %v16098_v3 = vld [vmem:[#allocation9 + $0x198] sm:$0xff]   ;;  %v7160_v58 = vrot.slane %v16648_v43, %v1007_v17 }
 0x60a   :  { %v11365_v16 = vmax.f32 %v13857_v11, 0.0  ;;  %v16096_v0 = vld [vmem:[#allocation9 + $0x188] sm:$0xff]   ;;  %v16102_v17 = vld [vmem:[#allocation9 + $0x1b8] sm:$0xff]  }
 0x60b   :  { %v11366_v20 = vmax.f32 %v13858_v13, 0.0  ;;  %13709 = vmatpush3.bf16.msra.mxu0 %v16052_v2  ;;  %v16101_v13 = vld [vmem:[#allocation9 + $0x1b0] sm:$0xff]  }
 0x60c   :  { %v16680_v22 = vpack.c.bf16 %v11365_v16, %v11358_v8  ;;  %11055 = vmatpush1.bf16.msra.mxu1 %v16049_v28  ;;  %13710 = vmatprep.subr.bf16.mxu0 %v16053_v14 }
 0x60d   :  { %v11373_v29 = vpack.c.bf16 %v11366_v20, %v11359_v19  ;;  %11067 = vmatprep.subr.bf16.mxu1 %v16056_v7 }
 0x60f   :  { %11057 = vmatmul.mubr.bf16.vlgmr.msra.gmra.mrb[32].mxu1 %v16621_v26  ;;  %13711 = vmatpush3.bf16.msra.mxu0 %v16057_v21  ;;  %v16071_v26 = vld [vmem:[#allocation6 + $0x123c] ss:$28 sps:$4 sm:$0xff]  }
 0x610   :  { %11068 = vmatpush1.bf16.msra.mxu1 %v16054_v24  ;;  %13718 = vmatprep.subr.bf16.mxu0 %v16058_v27 }
 0x611   :  { %11069 = vmatprep.subr.bf16.mxu1 %v16061_v30  ;;  %11099 = vmatprep.mubr.bf16.mxu1 %v16293_v18  ;;  %v16077_v18 = vld [vmem:[#allocation9 + $0x98] sm:$0xff]  }
 0x612   :  { %11865 = vmatmul.mubr.bf16.vlgmr.msra.gmra.mrb[40].mxu0 %v16654_v23  ;;  %v16074_v23 = vld [vmem:[#allocation6 + $0x1270] ss:$28 sps:$4 sm:$0xff]  }
 0x613   :  { %13719 = vmatpush3.bf16.msra.mxu0 %v16062_v57  ;;  %11905 = vmatprep.mubr.bf16.mxu0 %v11373_v29 }
 0x614   :  { %11070 = vmatpush1.bf16.msra.mxu1 %v16059_v61  ;;  %13720 = vmatprep.subr.bf16.mxu0 %v16063_v31  ;;  %v16103_v31 = vld [vmem:[#allocation9 + $0x140] sm:$0xff]  }
 0x615   :  { %11071 = vmatprep.subr.bf16.mxu1 %v16066_v32  ;;  %v16104_v32 = vld [vmem:[#allocation9 + $0x100] sm:$0xff]  }
 0x617   :  { %13721 = vmatpush3.bf16.msra.mxu0 %v16067_v35  ;;  %v16105_v35 = vld [vmem:[#allocation9 + $0x148] sm:$0xff]  }
 0x618   :  { %11072 = vmatpush1.bf16.msra.mxu1 %v16064_v36  ;;  %13722 = vmatprep.subr.bf16.mxu0 %v16068_v37  ;;  %v16106_v36 = vld [vmem:[#allocation9 + $0x108] sm:$0xff]   ;;  %v16107_v37 = vld [vmem:[#allocation9 + $0x150] sm:$0xff]  }
 0x619   :  { %11073 = vmatprep.subr.bf16.mxu1 %v16071_v26  ;;  %v16108_v26 = vld [vmem:[#allocation9 + $0x110] sm:$0xff]  }
 0x61b   :  { %13723 = vmatpush3.bf16.msra.mxu0 %v16072_v39  ;;  %v16110_v39 = vld [vmem:[#allocation9 + $0x118] sm:$0xff]  }
 0x61c   :  { %11074 = vmatpush1.bf16.msra.mxu1 %v16069_v40  ;;  %13724 = vmatprep.subr.bf16.mxu0 %v16073_v41  ;;  %v16111_v40 = vld [vmem:[#allocation9 + $0x160] sm:$0xff]  }
 0x61d   :  { %11075 = vmatprep.subr.bf16.mxu1 %v16076_v42  ;;  %v16112_v41 = vld [vmem:[#allocation9 + $0x120] sm:$0xff]   ;;  %v16113_v42 = vld [vmem:[#allocation9 + $0x168] sm:$0xff]  }
 0x61f   :  { %13725 = vmatpush3.bf16.msra.mxu0 %v16077_v18  ;;  %v16114_v18 = vld [vmem:[#allocation9 + $0x128] sm:$0xff]  }
 0x620   :  { %11076 = vmatpush1.bf16.msra.mxu1 %v16074_v23  ;;  %13726 = vmatprep.subr.bf16.mxu0 %v16078_v44  ;;  %v16115_v23 = vld [vmem:[#allocation9 + $0x170] sm:$0xff]  }
 0x621   :  { %11077 = vmatprep.subr.bf16.mxu1 %v16081_v45  ;;  %v16116_v45 = vld [vmem:[#allocation9 + $0x130] sm:$0xff]  }
 0x623   :  { %13727 = vmatpush3.bf16.msra.mxu0 %v16082_v48 }
 0x624   :  { %11078 = vmatpush1.bf16.msra.mxu1 %v16079_v51  ;;  %13728 = vmatprep.subr.bf16.mxu0 %v16083_v60 }
 0x625   :  { %v13593_v53 = vpop.f32.mrb[16].mxu0  ;;  %11079 = vmatprep.subr.bf16.mxu1 %v16086_v1 }
 0x626   :  { %v13594_v54 = vpop.f32.mrb[17].mxu0 }
 0x627   :  { %v13595_v50 = vadd.f32 %v13594_v54, %v13593_v53  ;;  %v13596_v55 = vpop.f32.mrb[18].mxu0  ;;  %13729 = vmatpush3.bf16.msra.mxu0 %v16087_v6  ;;  %v16117_v6 = vld [vmem:[#allocation9 + $0x178] sm:$0xff]  }
 0x628   :  { %11080 = vmatpush1.bf16.msra.mxu1 %v16084_v47  ;;  %v13597_v33 = vpop.f32.mrb[19].mxu0  ;;  %13730 = vmatprep.subr.bf16.mxu0 %v16088_v25  ;;  %v16118_v53 = vld [vmem:[#allocation9 + $0x138] sm:$0xff]  }
 0x629   :  { %v13598_v62 = vadd.f32 %v13597_v33, %v13596_v55  ;;  %11081 = vmatprep.subr.bf16.mxu1 %v16091_v49  ;;  %v11145_v5 = vadd.f32 %v13595_v50, %v7160_v58 }
 0x62b   :  { %13731 = vmatpush3.bf16.msra.mxu0 %v16092_v56  ;;  %v11148_v8 = vadd.f32 %v13598_v62, %v7160_v58 }
 0x62c   :  { %11082 = vmatpush1.bf16.msra.mxu1 %v16089_v59  ;;  %13732 = vmatprep.subr.bf16.mxu0 %v16093_v38 }
 0x62d   :  { %13740 = vmatprep.subr.bf16.mxu1 %v16103_v31 }
 0x62f   :  { %11100 = vmatmul.mubr.bf16.vlgmr.msra.gmra.mrb[32].mxu1 %v16612_v34  ;;  %13733 = vmatpush3.bf16.msra.mxu0 %v16094_v52  ;;  %v16099_v34 = vld [vmem:[#allocation9 + $0x1a0] sm:$0xff]  }
 0x630   :  { %13811 = vmatprep.subr.bf16.mxu0 %v16294_v46  ;;  %13741 = vmatpush3.bf16.msra.mxu1 %v16104_v32 }
 0x631   :  { %13742 = vmatprep.subr.bf16.mxu1 %v16105_v35 }
 0x632   :  { %11906 = vmatmul.mubr.bf16.vlgmr.msra.gmra.mrb[44].mxu0 %v16680_v22 }
 0x633   :  { %13812 = vmatpush3.bf16.msra.mxu0 %v16095_v63  ;;  %13827 = vmatprep.mubr.msk.bf16.mxu0 %vm16295_vm0, %v16294_v46 }
 0x634   :  { %13813 = vmatprep.subr.bf16.mxu0 %v16294_v46  ;;  %13743 = vmatpush3.bf16.msra.mxu1 %v16106_v36 }
 0x635   :  { %13744 = vmatprep.subr.bf16.mxu1 %v16107_v37 }
 0x637   :  { %13814 = vmatpush3.bf16.msra.mxu0 %v16096_v0 }
 0x638   :  { %13815 = vmatprep.subr.bf16.mxu0 %v16294_v46  ;;  %13745 = vmatpush3.bf16.msra.mxu1 %v16108_v26 }
 0x63b   :  { %13816 = vmatpush3.bf16.msra.mxu0 %v16097_v10 }
 0x63c   :  { %13817 = vmatprep.subr.bf16.mxu0 %v16294_v46 }
 0x63f   :  { %13818 = vmatpush3.bf16.msra.mxu0 %v16098_v3 }
 0x640   :  { %13819 = vmatprep.subr.bf16.mxu0 %v16294_v46 }
 0x643   :  { %13820 = vmatpush3.bf16.msra.mxu0 %v16099_v34 }
 0x644   :  { %13821 = vmatprep.subr.bf16.mxu0 %v16294_v46 }
 0x645   :  { %v13615_v2 = vpop.f32.mrb[20].mxu0 }
 0x646   :  { %v13616_v11 = vpop.f32.mrb[21].mxu0 }
 0x647   :  { %v13617_v28 = vadd.f32 %v13616_v11, %v13615_v2  ;;  %v13618_v14 = vpop.f32.mrb[22].mxu0  ;;  %13822 = vmatpush3.bf16.msra.mxu0 %v16100_v9 }
 0x648   :  { %v13619_v7 = vpop.f32.mrb[23].mxu0  ;;  %13823 = vmatprep.subr.bf16.mxu0 %v16294_v46 }
 0x649   :  { %v11186_v16 = vadd.f32 %v13617_v28, %v11145_v5  ;;  %v13620_v19 = vadd.f32 %v13619_v7, %v13618_v14 }
 0x64b   :  { %v11189_v20 = vadd.f32 %v13620_v19, %v11148_v8  ;;  %13824 = vmatpush3.bf16.msra.mxu0 %v16101_v13  ;;  %v7152_v8 = vrot.slane %v16648_v43, %v999_v12 }
 0x64c   :  { %13825 = vmatprep.subr.bf16.mxu0 %v16294_v46  ;;  %v16109_v46 = vld [vmem:[#allocation9 + $0x158] sm:$0xff]  }
 0x64d   :  { %13746 = vmatprep.subr.bf16.mxu1 %v16109_v46 }
 0x64e   :  { %13747 = vmatpush3.bf16.msra.mxu1 %v16110_v39 }
 0x64f   :  { %13826 = vmatpush3.bf16.msra.mxu0 %v16102_v17  ;;  %13748 = vmatprep.subr.bf16.mxu1 %v16111_v40 }
 0x652   :  { %13749 = vmatpush3.bf16.msra.mxu1 %v16112_v41 }
 0x653   :  { %13750 = vmatprep.subr.bf16.mxu1 %v16113_v42 }
 0x656   :  { %13751 = vmatpush3.bf16.msra.mxu1 %v16114_v18 }
 0x657   :  { %13752 = vmatprep.subr.bf16.mxu1 %v16115_v23 }
 0x65a   :  { %13753 = vmatpush3.bf16.msra.mxu1 %v16116_v45 }
 0x65b   :  { %13754 = vmatprep.subr.bf16.mxu1 %v16117_v6 }
 0x65e   :  { %13755 = vmatpush3.bf16.msra.mxu1 %v16118_v53 }
 0x665   :  { %v13637_v21 = vpop.f32.mrb[24].mxu0 }
 0x666   :  { %v13638_v22 = vpop.f32.mrb[25].mxu0 }
 0x667   :  { %v13639_v24 = vadd.f32 %v13638_v22, %v13637_v21  ;;  %v13640_v27 = vpop.f32.mrb[26].mxu0  ;;  %v13423_v21 = vld [vmem:[#allocation10] ss:$0 sm:$0xff] }
 0x668   :  { %v13641_v29 = vpop.f32.mrb[27].mxu0 }
 0x669   :  { %v11227_v30 = vadd.f32 %v13639_v24, %v11186_v16  ;;  %v13642_v57 = vadd.f32 %v13641_v29, %v13640_v27  ;;  %v7156_v16 = vrot.slane %v16648_v43, %v1003_v15 }
 0x66b   :  { %v11230_v61 = vadd.f32 %v13642_v57, %v11189_v20 }
 0x685   :  { %v13659_v44 = vpop.f32.mrb[28].mxu0 }
 0x686   :  { %v13660_v48 = vpop.f32.mrb[29].mxu0 }
 0x687   :  { %v13661_v51 = vadd.f32 %v13660_v48, %v13659_v44  ;;  %v13662_v60 = vpop.f32.mrb[30].mxu0 }
 0x688   :  { %v13663_v1 = vpop.f32.mrb[31].mxu0 }
 0x689   :  { %v11268_v47 = vadd.f32 %v13661_v51, %v11227_v30  ;;  %v13664_v25 = vadd.f32 %v13663_v1, %v13662_v60 }
 0x68b   :  { %v11271_v49 = vadd.f32 %v13664_v25, %v11230_v61 }
 0x6a5   :  { %v13681_v54 = vpop.f32.mrb[32].mxu0 }
 0x6a6   :  { %v13682_v50 = vpop.f32.mrb[33].mxu0 }
 0x6a7   :  { %v13683_v55 = vadd.f32 %v13682_v50, %v13681_v54  ;;  %v13684_v56 = vpop.f32.mrb[34].mxu0 }
 0x6a8   :  { %v13685_v33 = vpop.f32.mrb[35].mxu0 }
 0x6a9   :  { %v13686_v59 = vadd.f32 %v13685_v33, %v13684_v56  ;;  %v11309_v38 = vadd.f32 %v13683_v55, %v11268_v47 }
 0x6ab   :  { %v11312_v62 = vadd.f32 %v13686_v59, %v11271_v49 }
 0x6c5   :  { %v11349_v52 = vpop.f32.mrb[36].mxu0 }
 0x6c6   :  { %v11350_v63 = vadd.f32 %v11349_v52, %v11309_v38  ;;  %v13809_v0 = vpop.f32.mrb[37].mxu0 }
 0x6c7   :  { %v11352_v10 = vpop.f32.mrb[38].mxu0 }
 0x6c8   :  { %v11353_v3 = vadd.f32 %v11352_v10, %v11312_v62  ;;  %v13810_v34 = vpop.f32.mrb[39].mxu0  ;;  %v11362_v58 = vmax.f32 %v11350_v63, 0.0 }
 0x6ca   :  { %v11369_v9 = vmax.f32 %v11353_v3, 0.0 }
 0x6cc   :  { %v11376_v2 = vpack.c.bf16 %v11369_v9, %v11362_v58 }
 0x6ce   :  { %13828 = vmatmul.mubr.bf16.vlgmr.msra.gmra.mrb[48].mxu0 %v11376_v2 }
 0x6e5   :  { %v13712_v11 = vpop.f32.mrb[40].mxu0 }
 0x6e6   :  { %v13713_v5 = vpop.f32.mrb[41].mxu0 }
 0x6e7   :  { %v13714_v28 = vadd.f32 %v13713_v5, %v13712_v11  ;;  %v13715_v14 = vpop.f32.mrb[42].mxu0 }
 0x6e8   :  { %v13716_v13 = vpop.f32.mrb[43].mxu0 }
 0x6e9   :  { %v13717_v7 = vadd.f32 %v13716_v13, %v13715_v14  ;;  %v11867_v31 = vadd.f32 %v13714_v28, %v13423_v21 }
 0x6eb   :  { %v11870_v15 = vadd.f32 %v13717_v7, %v13423_v21 }
 0x702   :  { %v11101_v19 = vpop.f32.mrb[32].mxu1 }
 0x703   :  { %v13859_v20 = vadd.f32 %v11101_v19, %v7152_v8  ;;  %v11103_v17 = vpop.f32.mrb[33].mxu1 }
 0x704   :  { %v13860_v22 = vadd.f32 %v11103_v17, %v7156_v16  ;;  %v11105_v24 = vpop.f32.mrb[34].mxu1 }
 0x705   :  { %v13861_v27 = vadd.f32 %v11105_v24, %v7152_v8  ;;  %v11107_v29 = vpop.f32.mrb[35].mxu1  ;;  %v13734_v30 = vpop.f32.mrb[44].mxu0  ;;  %v11360_v32 = vmax.f32 %v13859_v20, 0.0 }
 0x706   :  { %v13862_v57 = vadd.f32 %v11107_v29, %v7156_v16  ;;  %v13735_v61 = vpop.f32.mrb[45].mxu0  ;;  %v11361_v37 = vmax.f32 %v13860_v22, 0.0 }
 0x707   :  { %v11367_v35 = vmax.f32 %v13861_v27, 0.0  ;;  %v13736_v36 = vadd.f32 %v13735_v61, %v13734_v30  ;;  %v13737_v12 = vpop.f32.mrb[46].mxu0 }
 0x708   :  { %v11368_v4 = vmax.f32 %v13862_v57, 0.0  ;;  %v13738_v26 = vpop.f32.mrb[47].mxu0 }
 0x709   :  { %v11374_v43 = vpack.c.bf16 %v11367_v35, %v11360_v32  ;;  %v11908_v46 = vadd.f32 %v13736_v36, %v11867_v31  ;;  %v13739_v39 = vadd.f32 %v13738_v26, %v13737_v12 }
 0x70a   :  { %v11375_v40 = vpack.c.bf16 %v11368_v4, %v11361_v37 }
 0x70b   :  { %v11911_v41 = vadd.f32 %v13739_v39, %v11870_v15 }
 0x70c   :  { %11946 = vmatprep.mubr.bf16.mxu1 %v11375_v40 }
 0x70d   :  { %11947 = vmatmul.mubr.bf16.vlgmr.msra.gmra.mrb[36].mxu1 %v11374_v43 }
 0x7a1   :  { %v11989_v42 = vpop.f32.mrb[48].mxu0 }
 0x7a2   :  { %v13829_v18 = vpop.f32.mrb[49].mxu0 }
 0x7a3   :  { %v11992_v23 = vpop.f32.mrb[50].mxu0 }
 0x7a4   :  { %v13830_v44 = vpop.f32.mrb[51].mxu0 }
 0x7e0   :  { %v13756_v45 = vpop.f32.mrb[36].mxu1 }
 0x7e1   :  { %v13757_v48 = vpop.f32.mrb[37].mxu1 }
 0x7e2   :  { %v13758_v51 = vadd.f32 %v13757_v48, %v13756_v45  ;;  %v13759_v60 = vpop.f32.mrb[38].mxu1 }
 0x7e3   :  { %v13760_v1 = vpop.f32.mrb[39].mxu1 }
 0x7e4   :  { %v11949_v6 = vadd.f32 %v13758_v51, %v11908_v46  ;;  %v13761_v47 = vadd.f32 %v13760_v1, %v13759_v60 }
 0x7e6   :  { %v11990_v25 = vadd.f32 %v11989_v42, %v11949_v6  ;;  %v11952_v53 = vadd.f32 %v13761_v47, %v11911_v41 }
 0x7e8   :  { %11996 = vst [vmem:[%s16719_s7] sm:$0xff] %v11990_v25  ;;  %v11993_v49 = vadd.f32 %v11992_v23, %v11952_v53 }
 0x7ea   :  { %11997 = vst [vmem:[%s16719_s7 + $0x8] sm:$0xff] %v11993_v49 }
 0x7eb   :  { %12002 = vsyncpa [#allocation3], 1 }
 0x7ec   :  { %12003 = vsyncpa [#allocation5], 1 }
 0x7ed   :  { %12004 = vsyncpa [#allocation8], 1 }
 0x7ee   :  { %12005 = vsyncpa [#allocation11], 1 }

</bundles_post_ra>
